<compile_context>
chip_gen: v7x
topology: tpu7x:2x2x1
jax: 0.10.0
libtpu: 0.0.40
codegen_flags: <defaults>
</compile_context>

<pallas_src>
import math

import jax
import jax.numpy as jnp
from jax.experimental import pallas as pl
from jax.experimental.pallas import tpu as pltpu


# ---------------------------------------------------------------------------
# Bicubic resize (glue, matches F.interpolate(mode='bicubic', align_corners=False))
# ---------------------------------------------------------------------------
def _cubic_coeffs(t, A=-0.75):
    def c1(u):
        return ((A + 2.0) * u - (A + 3.0)) * u * u + 1.0

    def c2(u):
        return ((A * u - 5.0 * A) * u + 8.0 * A) * u - 4.0 * A

    return jnp.stack([c2(t + 1.0), c1(t), c1(1.0 - t), c2(2.0 - t)], axis=-1)


def _resize_matrix(in_size, out_size):
    scale = in_size / out_size
    d = jnp.arange(out_size, dtype=jnp.float32)
    src = (d + 0.5) * scale - 0.5                      # half-pixel centers
    fl = jnp.floor(src)
    t = src - fl
    coeffs = _cubic_coeffs(t)                          # (out, 4)
    idx = fl.astype(jnp.int32)[:, None] + jnp.arange(-1, 3, dtype=jnp.int32)[None, :]
    idx = jnp.clip(idx, 0, in_size - 1)                # border replicate
    rows = jnp.broadcast_to(jnp.arange(out_size, dtype=jnp.int32)[:, None], idx.shape)
    M = jnp.zeros((out_size, in_size), jnp.float32)
    return M.at[rows, idx].add(coeffs)


def bicubic_resize(x_nhwc, H_out, W_out):
    _, H_in, W_in, _ = x_nhwc.shape
    Mh = _resize_matrix(H_in, H_out)
    Mw = _resize_matrix(W_in, W_out)
    y = jnp.einsum('oh,nhwc->nowc', Mh, x_nhwc)
    y = jnp.einsum('pw,nowc->nopc', Mw, y)
    return y


# ---------------------------------------------------------------------------
# In-kernel 3x3 "same" convolution: 9 shifted channel matmuls off a zero-halo
# scratch.  pad_ref: (H+2, W+2, Cin) f32 VMEM scratch.  w_ref: (9*Cin, Cout)
# bf16 ref, tap-major rows.  Returns f32 (H*W, Cout).
# ---------------------------------------------------------------------------
def _conv3x3_acc(pad_ref, w_ref, H, W, Cin):
    acc = None
    for ky in range(3):
        for kx in range(3):
            k = ky * 3 + kx
            patch = pad_ref[ky:ky + H, kx:kx + W, :].reshape(H * W, Cin)
            d = jnp.dot(patch.astype(jnp.bfloat16),
                        w_ref[k * Cin:(k + 1) * Cin, :],
                        preferred_element_type=jnp.float32)
            acc = d if acc is None else acc + d
    return acc


# ---------------------------------------------------------------------------
# Single fused APFM2 kernel.  Grid = (N, 12).
#   b == 0      : head conv + S gate + residual, F_f gate MLP   (prologue)
#   every b     : ResBlock b (activation resident in `pada` scratch)
#   b == last   : F_p 1x1 convs + channel gate + condense conv  (epilogue)
# ---------------------------------------------------------------------------
def _apfm2_kernel(f_ref, x2_ref, s_ref,
                  hwa_ref, hwb_ref, hb_ref,
                  ff1w_ref, ff1b_ref, ff2w_ref, ff2b_ref,
                  w1_ref, b1_ref, w2_ref, b2_ref,
                  fp1w_ref, fp1b_ref, fp2w_ref, fp2b_ref,
                  cw_ref, cb_ref,
                  o_ref,
                  pada, padb, pad64, gate):
    blk = pl.program_id(1)
    H = pada.shape[0] - 2
    W = pada.shape[1] - 2
    F = pada.shape[2]
    C2 = pad64.shape[2]

    # ---- prologue: head conv over (implicit) concat [f_ref, x2] ----
    @pl.when(blk == 0)
    def _head():
        pada[...] = jnp.zeros_like(pada)
        padb[...] = jnp.zeros_like(padb)
        pad64[...] = jnp.zeros_like(pad64)
        pada[1:H + 1, 1:W + 1, :] = f_ref[...]
        pad64[1:H + 1, 1:W + 1, :] = x2_ref[...]

        acc = hb_ref[...] + _conv3x3_acc(pada, hwa_ref, H, W, F)
        acc = acc + _conv3x3_acc(pad64, hwb_ref, H, W, C2)

        # cor = f_ref + conv * S   (S broadcast over channels in-kernel)
        cor = f_ref[...].reshape(H * W, F) + acc * s_ref[...]

        # channel gate w = sigmoid(W2 relu(W1 mean(cor) + b1) + b2)
        pooled = jnp.mean(cor, axis=0, keepdims=True)            # (1, F)
        h = jnp.dot(pooled.astype(jnp.bfloat16), ff1w_ref[...],
                    preferred_element_type=jnp.float32) + ff1b_ref[...]
        h = jnp.maximum(h, 0.0)
        g = jnp.dot(h.astype(jnp.bfloat16), ff2w_ref[...],
                    preferred_element_type=jnp.float32) + ff2b_ref[...]
        gate[...] = 1.0 / (1.0 + jnp.exp(-g))

        pada[1:H + 1, 1:W + 1, :] = cor.reshape(H, W, F)

    # ---- ResBlock `blk` (halo of pada / padb stays zero throughout) ----
    t = _conv3x3_acc(pada, w1_ref, H, W, F) + b1_ref[...]
    t = jnp.maximum(t, 0.0)
    padb[1:H + 1, 1:W + 1, :] = t.reshape(H, W, F)

    y = _conv3x3_acc(padb, w2_ref, H, W, F) + b2_ref[...]
    y = y + pada[1:H + 1, 1:W + 1, :].reshape(H * W, F)          # res_scale = 1
    pada[1:H + 1, 1:W + 1, :] = y.reshape(H, W, F)

    # ---- epilogue: F_p (two 1x1 convs) + channel gate + condense conv ----
    @pl.when(blk == pl.num_programs(1) - 1)
    def _tail():
        xf = pada[1:H + 1, 1:W + 1, :].reshape(H * W, F)
        t1 = jnp.dot(xf.astype(jnp.bfloat16), fp1w_ref[...],
                     preferred_element_type=jnp.float32) + fp1b_ref[...]
        t2 = jnp.dot(t1.astype(jnp.bfloat16), fp2w_ref[...],
                     preferred_element_type=jnp.float32) + fp2b_ref[...]
        t2 = t2 * gate[...]
        padb[1:H + 1, 1:W + 1, :] = t2.reshape(H, W, F)
        out = _conv3x3_acc(padb, cw_ref, H, W, F) + cb_ref[...]
        o_ref[...] = out.reshape(H, W, F)


def apfm2_pallas(f_ref, x2h, s_flat, hwa, hwb, hb,
                 ff1w, ff1b, ff2w, ff2b,
                 w1s, b1s, w2s, b2s,
                 fp1w, fp1b, fp2w, fp2b, cw, cb):
    N, H, W, F = f_ref.shape
    C2 = x2h.shape[-1]
    nb = w1s.shape[0]
    F4 = ff1w.shape[1]
    return pl.pallas_call(
        _apfm2_kernel,
        out_shape=jax.ShapeDtypeStruct((N, H, W, F), jnp.float32),
        grid=(N, nb),
        in_specs=[
            pl.BlockSpec((None, H, W, F), lambda n, b: (n, 0, 0, 0)),    # f_ref
            pl.BlockSpec((None, H, W, C2), lambda n, b: (n, 0, 0, 0)),   # x2
            pl.BlockSpec((None, H * W, 1), lambda n, b: (n, 0, 0)),      # S (flat)
            pl.BlockSpec((9 * F, F), lambda n, b: (0, 0)),               # head w (f_ref part)
            pl.BlockSpec((9 * C2, F), lambda n, b: (0, 0)),              # head w (x2 part)
            pl.BlockSpec((1, F), lambda n, b: (0, 0)),                   # head bias
            pl.BlockSpec((F, F4), lambda n, b: (0, 0)),                  # F_f linear1 w
            pl.BlockSpec((1, F4), lambda n, b: (0, 0)),                  # F_f linear1 b
            pl.BlockSpec((F4, F), lambda n, b: (0, 0)),                  # F_f linear2 w
            pl.BlockSpec((1, F), lambda n, b: (0, 0)),                   # F_f linear2 b
            pl.BlockSpec((None, 9 * F, F), lambda n, b: (b, 0, 0)),      # RB conv1 w
            pl.BlockSpec((None, 1, F), lambda n, b: (b, 0, 0)),          # RB conv1 b
            pl.BlockSpec((None, 9 * F, F), lambda n, b: (b, 0, 0)),      # RB conv2 w
            pl.BlockSpec((None, 1, F), lambda n, b: (b, 0, 0)),          # RB conv2 b
            pl.BlockSpec((F, F4), lambda n, b: (0, 0)),                  # F_p conv1 w
            pl.BlockSpec((1, F4), lambda n, b: (0, 0)),                  # F_p conv1 b
            pl.BlockSpec((F4, F), lambda n, b: (0, 0)),                  # F_p conv2 w
            pl.BlockSpec((1, F), lambda n, b: (0, 0)),                   # F_p conv2 b
            pl.BlockSpec((9 * F, F), lambda n, b: (0, 0)),               # condense w
            pl.BlockSpec((1, F), lambda n, b: (0, 0)),                   # condense b
        ],
        out_specs=pl.BlockSpec((None, H, W, F), lambda n, b: (n, 0, 0, 0)),
        scratch_shapes=[
            pltpu.VMEM((H + 2, W + 2, F), jnp.float32),    # pada (activation + halo)
            pltpu.VMEM((H + 2, W + 2, F), jnp.float32),    # padb (intermediate + halo)
            pltpu.VMEM((H + 2, W + 2, C2), jnp.float32),   # pad64 (x2 + halo)
            pltpu.VMEM((1, F), jnp.float32),               # per-batch channel gate
        ],
        compiler_params=pltpu.CompilerParams(
            dimension_semantics=("parallel", "arbitrary")),
    )(f_ref, x2h, s_flat, hwa, hwb, hb, ff1w, ff1b, ff2w, ff2b,
      w1s, b1s, w2s, b2s, fp1w, fp1b, fp2w, fp2b, cw, cb)


# ---------------------------------------------------------------------------
# Parameters (deterministic synthetic init, shapes from APFM2.__init__)
# ---------------------------------------------------------------------------
def init_params(key, n_feats):
    F = n_feats
    keys = jax.random.split(key, 16)

    def nrm(k, shape, std):
        return jax.random.normal(k, shape, jnp.float32) * std

    p = {}
    p['head_w'] = nrm(keys[0], (3, 3, F + 64, F), 1.0 / math.sqrt(9 * (F + 64)))
    p['head_b'] = nrm(keys[1], (F,), 0.01)
    p['ff1_w'] = nrm(keys[2], (F, 4 * F), 1.0 / math.sqrt(F))
    p['ff1_b'] = nrm(keys[3], (4 * F,), 0.01)
    p['ff2_w'] = nrm(keys[4], (4 * F, F), 1.0 / math.sqrt(4 * F))
    p['ff2_b'] = nrm(keys[5], (F,), 0.01)
    p['rb_w1'] = nrm(keys[6], (12, 3, 3, F, F), 1.0 / math.sqrt(9 * F))
    p['rb_b1'] = nrm(keys[7], (12, F), 0.01)
    p['rb_w2'] = nrm(keys[8], (12, 3, 3, F, F), 1.0 / math.sqrt(9 * F))
    p['rb_b2'] = nrm(keys[9], (12, F), 0.01)
    p['fp1_w'] = nrm(keys[10], (F, 4 * F), 1.0 / math.sqrt(F))
    p['fp1_b'] = nrm(keys[11], (4 * F,), 0.01)
    p['fp2_w'] = nrm(keys[12], (4 * F, F), 1.0 / math.sqrt(4 * F))
    p['fp2_b'] = nrm(keys[13], (F,), 0.01)
    p['cond_w'] = nrm(keys[14], (3, 3, F, F), 1.0 / math.sqrt(9 * F))
    p['cond_b'] = nrm(keys[15], (F,), 0.01)
    return p


# ---------------------------------------------------------------------------
# APFM2 forward
#   x : (N, n_feats, H/2, W/2)   (NCHW)   -> bicubic x2
#   x2: (N, 64,      H,   W)     (NCHW)
#   S : (N, 1,       hs,  ws)    (NCHW)   -> bicubic to (H, W)
# ---------------------------------------------------------------------------
@jax.jit
def apfm2_forward(params, x, x2, S):
    N, F, _, _ = x.shape
    H, W = x2.shape[2], x2.shape[3]

    xh = jnp.transpose(x, (0, 2, 3, 1))
    x2h = jnp.transpose(x2, (0, 2, 3, 1))
    Sh = jnp.transpose(S, (0, 2, 3, 1))

    f_ref = bicubic_resize(xh, H, W)                      # (N, H, W, F)
    S_up = bicubic_resize(Sh, H, W).reshape(N, H * W, 1)  # per-pixel scale

    # weight packing: (3,3,Cin,Cout) -> (9*Cin, Cout), tap-major rows, bf16
    hwa = params['head_w'][:, :, :F, :].reshape(9 * F, F).astype(jnp.bfloat16)
    hwb = params['head_w'][:, :, F:, :].reshape(9 * 64, F).astype(jnp.bfloat16)
    nb = params['rb_w1'].shape[0]
    w1s = params['rb_w1'].reshape(nb, 9 * F, F).astype(jnp.bfloat16)
    w2s = params['rb_w2'].reshape(nb, 9 * F, F).astype(jnp.bfloat16)
    cw = params['cond_w'].reshape(9 * F, F).astype(jnp.bfloat16)

    out = apfm2_pallas(
        f_ref, x2h, S_up,
        hwa, hwb, params['head_b'].reshape(1, F),
        params['ff1_w'].astype(jnp.bfloat16), params['ff1_b'].reshape(1, 4 * F),
        params['ff2_w'].astype(jnp.bfloat16), params['ff2_b'].reshape(1, F),
        w1s, params['rb_b1'].reshape(nb, 1, F),
        w2s, params['rb_b2'].reshape(nb, 1, F),
        params['fp1_w'].astype(jnp.bfloat16), params['fp1_b'].reshape(1, 4 * F),
        params['fp2_w'].astype(jnp.bfloat16), params['fp2_b'].reshape(1, F),
        cw, params['cond_b'].reshape(1, F))

    return jnp.transpose(out, (0, 3, 1, 2))               # back to NCHW


if __name__ == "__main__":
    key = jax.random.PRNGKey(0)
    n_feats = 32
    N, H, W = 2, 16, 16

    kx, kx2, ks, kp = jax.random.split(key, 4)
    x = jax.random.normal(kx, (N, n_feats, H // 2, W // 2), jnp.float32)
    x2 = jax.random.normal(kx2, (N, 64, H, W), jnp.float32)
    S = jax.random.normal(ks, (N, 1, H // 2, W // 2), jnp.float32)

    params = init_params(kp, n_feats)

    out = apfm2_forward(params, x, x2, S)
    out = jax.block_until_ready(out)

    assert out.shape == (N, n_feats, H, W), out.shape
    assert bool(jnp.all(jnp.isfinite(out)))
    print("KERNEL_OK")
</pallas_src>

<mosaic_0001>
module attributes {stable_mosaic.version = 11 : i64} {
  func.func private @main(%arg0: i32) attributes {dimension_semantics = [#tpu.dimension_semantics<core_parallel>], iteration_bounds = array<i64: 2>, tpu.core_type = #tpu.core_type<sc_scalar_subcore>, window_params = []} {
    return
  }
}

module attributes {stable_mosaic.version = 11 : i64} {
  func.func private @main(%arg0: i32) attributes {dimension_semantics = [#tpu.dimension_semantics<core_parallel>], iteration_bounds = array<i64: 2>, tpu.core_type = #tpu.core_type<sc_scalar_subcore>, window_params = []} {
    return
  }
}

module attributes {stable_mosaic.version = 11 : i64} {
  func.func @_apfm2_kernel(%arg0: i32, %arg1: i32, %arg2: memref<1x16x16x32xf32, #tpu.memory_space<vmem>>, %arg3: memref<1x16x16x64xf32, #tpu.memory_space<vmem>>, %arg4: memref<1x256x1xf32, #tpu.memory_space<vmem>>, %arg5: memref<288x32xbf16, #tpu.memory_space<vmem>>, %arg6: memref<576x32xbf16, #tpu.memory_space<vmem>>, %arg7: memref<1x32xf32, #tpu.memory_space<vmem>>, %arg8: memref<32x128xbf16, #tpu.memory_space<vmem>>, %arg9: memref<1x128xf32, #tpu.memory_space<vmem>>, %arg10: memref<128x32xbf16, #tpu.memory_space<vmem>>, %arg11: memref<1x32xf32, #tpu.memory_space<vmem>>, %arg12: memref<1x288x32xbf16, #tpu.memory_space<vmem>>, %arg13: memref<1x1x32xf32, #tpu.memory_space<vmem>>, %arg14: memref<1x288x32xbf16, #tpu.memory_space<vmem>>, %arg15: memref<1x1x32xf32, #tpu.memory_space<vmem>>, %arg16: memref<32x128xbf16, #tpu.memory_space<vmem>>, %arg17: memref<1x128xf32, #tpu.memory_space<vmem>>, %arg18: memref<128x32xbf16, #tpu.memory_space<vmem>>, %arg19: memref<1x32xf32, #tpu.memory_space<vmem>>, %arg20: memref<288x32xbf16, #tpu.memory_space<vmem>>, %arg21: memref<1x32xf32, #tpu.memory_space<vmem>>, %arg22: memref<1x16x16x32xf32, #tpu.memory_space<vmem>>, %arg23: memref<18x18x32xf32, #tpu.memory_space<vmem>>, %arg24: memref<18x18x32xf32, #tpu.memory_space<vmem>>, %arg25: memref<18x18x64xf32, #tpu.memory_space<vmem>>, %arg26: memref<1x32xf32, #tpu.memory_space<vmem>>) attributes {dimension_semantics = [#tpu.dimension_semantics<parallel>, #tpu.dimension_semantics<arbitrary>], iteration_bounds = array<i64: 2, 12>, scalar_prefetch = 0 : i64, scratch_operands = 4 : i64, tpu.core_type = #tpu.core_type<tc>, window_params = [{transform_indices = @transform_0, window_bounds = array<i64: 1, 16, 16, 32>}, {transform_indices = @transform_1, window_bounds = array<i64: 1, 16, 16, 64>}, {transform_indices = @transform_2, window_bounds = array<i64: 1, 256, 1>}, {pipeline_mode = #tpu.pipeline_mode<synchronous>, transform_indices = @transform_3, window_bounds = array<i64: 288, 32>}, {pipeline_mode = #tpu.pipeline_mode<synchronous>, transform_indices = @transform_4, window_bounds = array<i64: 576, 32>}, {pipeline_mode = #tpu.pipeline_mode<synchronous>, transform_indices = @transform_5, window_bounds = array<i64: 1, 32>}, {pipeline_mode = #tpu.pipeline_mode<synchronous>, transform_indices = @transform_6, window_bounds = array<i64: 32, 128>}, {pipeline_mode = #tpu.pipeline_mode<synchronous>, transform_indices = @transform_7, window_bounds = array<i64: 1, 128>}, {pipeline_mode = #tpu.pipeline_mode<synchronous>, transform_indices = @transform_8, window_bounds = array<i64: 128, 32>}, {pipeline_mode = #tpu.pipeline_mode<synchronous>, transform_indices = @transform_9, window_bounds = array<i64: 1, 32>}, {transform_indices = @transform_10, window_bounds = array<i64: 1, 288, 32>}, {transform_indices = @transform_11, window_bounds = array<i64: 1, 1, 32>}, {transform_indices = @transform_12, window_bounds = array<i64: 1, 288, 32>}, {transform_indices = @transform_13, window_bounds = array<i64: 1, 1, 32>}, {pipeline_mode = #tpu.pipeline_mode<synchronous>, transform_indices = @transform_14, window_bounds = array<i64: 32, 128>}, {pipeline_mode = #tpu.pipeline_mode<synchronous>, transform_indices = @transform_15, window_bounds = array<i64: 1, 128>}, {pipeline_mode = #tpu.pipeline_mode<synchronous>, transform_indices = @transform_16, window_bounds = array<i64: 128, 32>}, {pipeline_mode = #tpu.pipeline_mode<synchronous>, transform_indices = @transform_17, window_bounds = array<i64: 1, 32>}, {pipeline_mode = #tpu.pipeline_mode<synchronous>, transform_indices = @transform_18, window_bounds = array<i64: 288, 32>}, {pipeline_mode = #tpu.pipeline_mode<synchronous>, transform_indices = @transform_19, window_bounds = array<i64: 1, 32>}, {transform_indices = @transform_20, window_bounds = array<i64: 1, 16, 16, 32>}]} {
    %c0_i32 = arith.constant 0 : i32
    %0 = arith.cmpi eq, %arg1, %c0_i32 : i32
    %1 = arith.extui %0 : i1 to i32
    %c0_i32_0 = arith.constant 0 : i32
    %2 = arith.cmpi ne, %1, %c0_i32_0 : i32
    scf.if %2 {
      %cst_132 = arith.constant 0.000000e+00 : f32
      %147 = vector.broadcast %cst_132 : f32 to vector<18x18x32xf32>
      %c0_133 = arith.constant 0 : index
      %c0_134 = arith.constant 0 : index
      %c0_135 = arith.constant 0 : index
      %148 = vector.load %arg23[%c0_133, %c0_134, %c0_135] : memref<18x18x32xf32, #tpu.memory_space<vmem>>, vector<18x18x32xf32>
      tpu.vector_store %arg23[%c0_133, %c0_134, %c0_135], %147 {strides = array<i32>} : memref<18x18x32xf32, #tpu.memory_space<vmem>>, vector<18x18x32xf32>,
      %cst_136 = arith.constant 0.000000e+00 : f32
      %149 = vector.broadcast %cst_136 : f32 to vector<18x18x32xf32>
      %c0_137 = arith.constant 0 : index
      %c0_138 = arith.constant 0 : index
      %c0_139 = arith.constant 0 : index
      %150 = vector.load %arg24[%c0_137, %c0_138, %c0_139] : memref<18x18x32xf32, #tpu.memory_space<vmem>>, vector<18x18x32xf32>
      tpu.vector_store %arg24[%c0_137, %c0_138, %c0_139], %149 {strides = array<i32>} : memref<18x18x32xf32, #tpu.memory_space<vmem>>, vector<18x18x32xf32>,
      %cst_140 = arith.constant 0.000000e+00 : f32
      %151 = vector.broadcast %cst_140 : f32 to vector<18x18x64xf32>
      %c0_141 = arith.constant 0 : index
      %c0_142 = arith.constant 0 : index
      %c0_143 = arith.constant 0 : index
      %152 = vector.load %arg25[%c0_141, %c0_142, %c0_143] : memref<18x18x64xf32, #tpu.memory_space<vmem>>, vector<18x18x64xf32>
      tpu.vector_store %arg25[%c0_141, %c0_142, %c0_143], %151 {strides = array<i32>} : memref<18x18x64xf32, #tpu.memory_space<vmem>>, vector<18x18x64xf32>,
      %c0_144 = arith.constant 0 : index
      %c0_145 = arith.constant 0 : index
      %c0_146 = arith.constant 0 : index
      %c0_147 = arith.constant 0 : index
      %153 = vector.load %arg2[%c0_144, %c0_145, %c0_146, %c0_147] : memref<1x16x16x32xf32, #tpu.memory_space<vmem>>, vector<1x16x16x32xf32>
      %154 = vector.shape_cast %153 : vector<1x16x16x32xf32> to vector<16x16x32xf32>
      %c1_148 = arith.constant 1 : index
      %c1_149 = arith.constant 1 : index
      %c0_150 = arith.constant 0 : index
      %155 = vector.load %arg23[%c1_148, %c1_149, %c0_150] : memref<18x18x32xf32, #tpu.memory_space<vmem>>, vector<16x16x32xf32>
      tpu.vector_store %arg23[%c1_148, %c1_149, %c0_150], %154 {strides = array<i32>} : memref<18x18x32xf32, #tpu.memory_space<vmem>>, vector<16x16x32xf32>,
      %c0_151 = arith.constant 0 : index
      %c0_152 = arith.constant 0 : index
      %c0_153 = arith.constant 0 : index
      %c0_154 = arith.constant 0 : index
      %156 = vector.load %arg3[%c0_151, %c0_152, %c0_153, %c0_154] : memref<1x16x16x64xf32, #tpu.memory_space<vmem>>, vector<1x16x16x64xf32>
      %157 = vector.shape_cast %156 : vector<1x16x16x64xf32> to vector<16x16x64xf32>
      %c1_155 = arith.constant 1 : index
      %c1_156 = arith.constant 1 : index
      %c0_157 = arith.constant 0 : index
      %158 = vector.load %arg25[%c1_155, %c1_156, %c0_157] : memref<18x18x64xf32, #tpu.memory_space<vmem>>, vector<16x16x64xf32>
      tpu.vector_store %arg25[%c1_155, %c1_156, %c0_157], %157 {strides = array<i32>} : memref<18x18x64xf32, #tpu.memory_space<vmem>>, vector<16x16x64xf32>,
      %c0_158 = arith.constant 0 : index
      %c0_159 = arith.constant 0 : index
      %159 = vector.load %arg7[%c0_158, %c0_159] : memref<1x32xf32, #tpu.memory_space<vmem>>, vector<1x32xf32>
      %c0_160 = arith.constant 0 : index
      %c0_161 = arith.constant 0 : index
      %c0_162 = arith.constant 0 : index
      %160 = vector.load %arg23[%c0_160, %c0_161, %c0_162] : memref<18x18x32xf32, #tpu.memory_space<vmem>>, vector<16x16x32xf32>
      %161 = vector.shape_cast %160 : vector<16x16x32xf32> to vector<256x32xf32>
      %162 = arith.truncf %161 : vector<256x32xf32> to vector<256x32xbf16>
      %c0_163 = arith.constant 0 : index
      %c0_164 = arith.constant 0 : index
      %163 = vector.load %arg5[%c0_163, %c0_164] : memref<288x32xbf16, #tpu.memory_space<vmem>>, vector<32x32xbf16>
      %cst_165 = arith.constant dense<0.000000e+00> : vector<256x32xf32>
      %164 = tpu.matmul %162, %163, %cst_165 {dimension_numbers = #tpu.dot_dimension_numbers<[1], [0], [0], [1], [0, 0, 1, 1], [], []>} : vector<256x32xbf16>, vector<32x32xbf16>, vector<256x32xf32> -> vector<256x32xf32>
      %c0_166 = arith.constant 0 : index
      %c1_167 = arith.constant 1 : index
      %c0_168 = arith.constant 0 : index
      %165 = vector.load %arg23[%c0_166, %c1_167, %c0_168] : memref<18x18x32xf32, #tpu.memory_space<vmem>>, vector<16x16x32xf32>
      %166 = vector.shape_cast %165 : vector<16x16x32xf32> to vector<256x32xf32>
      %167 = arith.truncf %166 : vector<256x32xf32> to vector<256x32xbf16>
      %c32_169 = arith.constant 32 : index
      %c0_170 = arith.constant 0 : index
      %168 = vector.load %arg5[%c32_169, %c0_170] : memref<288x32xbf16, #tpu.memory_space<vmem>>, vector<32x32xbf16>
      %cst_171 = arith.constant dense<0.000000e+00> : vector<256x32xf32>
      %169 = tpu.matmul %167, %168, %cst_171 {dimension_numbers = #tpu.dot_dimension_numbers<[1], [0], [0], [1], [0, 0, 1, 1], [], []>} : vector<256x32xbf16>, vector<32x32xbf16>, vector<256x32xf32> -> vector<256x32xf32>
      %170 = arith.addf %164, %169 : vector<256x32xf32>
      %c0_172 = arith.constant 0 : index
      %c2_173 = arith.constant 2 : index
      %c0_174 = arith.constant 0 : index
      %171 = vector.load %arg23[%c0_172, %c2_173, %c0_174] : memref<18x18x32xf32, #tpu.memory_space<vmem>>, vector<16x16x32xf32>
      %172 = vector.shape_cast %171 : vector<16x16x32xf32> to vector<256x32xf32>
      %173 = arith.truncf %172 : vector<256x32xf32> to vector<256x32xbf16>
      %c64_175 = arith.constant 64 : index
      %c0_176 = arith.constant 0 : index
      %174 = vector.load %arg5[%c64_175, %c0_176] : memref<288x32xbf16, #tpu.memory_space<vmem>>, vector<32x32xbf16>
      %cst_177 = arith.constant dense<0.000000e+00> : vector<256x32xf32>
      %175 = tpu.matmul %173, %174, %cst_177 {dimension_numbers = #tpu.dot_dimension_numbers<[1], [0], [0], [1], [0, 0, 1, 1], [], []>} : vector<256x32xbf16>, vector<32x32xbf16>, vector<256x32xf32> -> vector<256x32xf32>
      %176 = arith.addf %170, %175 : vector<256x32xf32>
      %c1_178 = arith.constant 1 : index
      %c0_179 = arith.constant 0 : index
      %c0_180 = arith.constant 0 : index
      %177 = vector.load %arg23[%c1_178, %c0_179, %c0_180] : memref<18x18x32xf32, #tpu.memory_space<vmem>>, vector<16x16x32xf32>
      %178 = vector.shape_cast %177 : vector<16x16x32xf32> to vector<256x32xf32>
      %179 = arith.truncf %178 : vector<256x32xf32> to vector<256x32xbf16>
      %c96_181 = arith.constant 96 : index
      %c0_182 = arith.constant 0 : index
      %180 = vector.load %arg5[%c96_181, %c0_182] : memref<288x32xbf16, #tpu.memory_space<vmem>>, vector<32x32xbf16>
      %cst_183 = arith.constant dense<0.000000e+00> : vector<256x32xf32>
      %181 = tpu.matmul %179, %180, %cst_183 {dimension_numbers = #tpu.dot_dimension_numbers<[1], [0], [0], [1], [0, 0, 1, 1], [], []>} : vector<256x32xbf16>, vector<32x32xbf16>, vector<256x32xf32> -> vector<256x32xf32>
      %182 = arith.addf %176, %181 : vector<256x32xf32>
      %c1_184 = arith.constant 1 : index
      %c1_185 = arith.constant 1 : index
      %c0_186 = arith.constant 0 : index
      %183 = vector.load %arg23[%c1_184, %c1_185, %c0_186] : memref<18x18x32xf32, #tpu.memory_space<vmem>>, vector<16x16x32xf32>
      %184 = vector.shape_cast %183 : vector<16x16x32xf32> to vector<256x32xf32>
      %185 = arith.truncf %184 : vector<256x32xf32> to vector<256x32xbf16>
      %c128_187 = arith.constant 128 : index
      %c0_188 = arith.constant 0 : index
      %186 = vector.load %arg5[%c128_187, %c0_188] : memref<288x32xbf16, #tpu.memory_space<vmem>>, vector<32x32xbf16>
      %cst_189 = arith.constant dense<0.000000e+00> : vector<256x32xf32>
      %187 = tpu.matmul %185, %186, %cst_189 {dimension_numbers = #tpu.dot_dimension_numbers<[1], [0], [0], [1], [0, 0, 1, 1], [], []>} : vector<256x32xbf16>, vector<32x32xbf16>, vector<256x32xf32> -> vector<256x32xf32>
      %188 = arith.addf %182, %187 : vector<256x32xf32>
      %c1_190 = arith.constant 1 : index
      %c2_191 = arith.constant 2 : index
      %c0_192 = arith.constant 0 : index
      %189 = vector.load %arg23[%c1_190, %c2_191, %c0_192] : memref<18x18x32xf32, #tpu.memory_space<vmem>>, vector<16x16x32xf32>
      %190 = vector.shape_cast %189 : vector<16x16x32xf32> to vector<256x32xf32>
      %191 = arith.truncf %190 : vector<256x32xf32> to vector<256x32xbf16>
      %c160_193 = arith.constant 160 : index
      %c0_194 = arith.constant 0 : index
      %192 = vector.load %arg5[%c160_193, %c0_194] : memref<288x32xbf16, #tpu.memory_space<vmem>>, vector<32x32xbf16>
      %cst_195 = arith.constant dense<0.000000e+00> : vector<256x32xf32>
      %193 = tpu.matmul %191, %192, %cst_195 {dimension_numbers = #tpu.dot_dimension_numbers<[1], [0], [0], [1], [0, 0, 1, 1], [], []>} : vector<256x32xbf16>, vector<32x32xbf16>, vector<256x32xf32> -> vector<256x32xf32>
      %194 = arith.addf %188, %193 : vector<256x32xf32>
      %c2_196 = arith.constant 2 : index
      %c0_197 = arith.constant 0 : index
      %c0_198 = arith.constant 0 : index
      %195 = vector.load %arg23[%c2_196, %c0_197, %c0_198] : memref<18x18x32xf32, #tpu.memory_space<vmem>>, vector<16x16x32xf32>
      %196 = vector.shape_cast %195 : vector<16x16x32xf32> to vector<256x32xf32>
      %197 = arith.truncf %196 : vector<256x32xf32> to vector<256x32xbf16>
      %c192_199 = arith.constant 192 : index
      %c0_200 = arith.constant 0 : index
      %198 = vector.load %arg5[%c192_199, %c0_200] : memref<288x32xbf16, #tpu.memory_space<vmem>>, vector<32x32xbf16>
      %cst_201 = arith.constant dense<0.000000e+00> : vector<256x32xf32>
      %199 = tpu.matmul %197, %198, %cst_201 {dimension_numbers = #tpu.dot_dimension_numbers<[1], [0], [0], [1], [0, 0, 1, 1], [], []>} : vector<256x32xbf16>, vector<32x32xbf16>, vector<256x32xf32> -> vector<256x32xf32>
      %200 = arith.addf %194, %199 : vector<256x32xf32>
      %c2_202 = arith.constant 2 : index
      %c1_203 = arith.constant 1 : index
      %c0_204 = arith.constant 0 : index
      %201 = vector.load %arg23[%c2_202, %c1_203, %c0_204] : memref<18x18x32xf32, #tpu.memory_space<vmem>>, vector<16x16x32xf32>
      %202 = vector.shape_cast %201 : vector<16x16x32xf32> to vector<256x32xf32>
      %203 = arith.truncf %202 : vector<256x32xf32> to vector<256x32xbf16>
      %c224_205 = arith.constant 224 : index
      %c0_206 = arith.constant 0 : index
      %204 = vector.load %arg5[%c224_205, %c0_206] : memref<288x32xbf16, #tpu.memory_space<vmem>>, vector<32x32xbf16>
      %cst_207 = arith.constant dense<0.000000e+00> : vector<256x32xf32>
      %205 = tpu.matmul %203, %204, %cst_207 {dimension_numbers = #tpu.dot_dimension_numbers<[1], [0], [0], [1], [0, 0, 1, 1], [], []>} : vector<256x32xbf16>, vector<32x32xbf16>, vector<256x32xf32> -> vector<256x32xf32>
      %206 = arith.addf %200, %205 : vector<256x32xf32>
      %c2_208 = arith.constant 2 : index
      %c2_209 = arith.constant 2 : index
      %c0_210 = arith.constant 0 : index
      %207 = vector.load %arg23[%c2_208, %c2_209, %c0_210] : memref<18x18x32xf32, #tpu.memory_space<vmem>>, vector<16x16x32xf32>
      %208 = vector.shape_cast %207 : vector<16x16x32xf32> to vector<256x32xf32>
      %209 = arith.truncf %208 : vector<256x32xf32> to vector<256x32xbf16>
      %c256_211 = arith.constant 256 : index
      %c0_212 = arith.constant 0 : index
      %210 = vector.load %arg5[%c256_211, %c0_212] : memref<288x32xbf16, #tpu.memory_space<vmem>>, vector<32x32xbf16>
      %cst_213 = arith.constant dense<0.000000e+00> : vector<256x32xf32>
      %211 = tpu.matmul %209, %210, %cst_213 {dimension_numbers = #tpu.dot_dimension_numbers<[1], [0], [0], [1], [0, 0, 1, 1], [], []>} : vector<256x32xbf16>, vector<32x32xbf16>, vector<256x32xf32> -> vector<256x32xf32>
      %212 = arith.addf %206, %211 : vector<256x32xf32>
      %213 = vector.broadcast %159 : vector<1x32xf32> to vector<256x32xf32>
      %214 = arith.addf %213, %212 : vector<256x32xf32>
      %c0_214 = arith.constant 0 : index
      %c0_215 = arith.constant 0 : index
      %c0_216 = arith.constant 0 : index
      %215 = vector.load %arg25[%c0_214, %c0_215, %c0_216] : memref<18x18x64xf32, #tpu.memory_space<vmem>>, vector<16x16x64xf32>
      %216 = vector.shape_cast %215 : vector<16x16x64xf32> to vector<256x64xf32>
      %217 = arith.truncf %216 : vector<256x64xf32> to vector<256x64xbf16>
      %c0_217 = arith.constant 0 : index
      %c0_218 = arith.constant 0 : index
      %218 = vector.load %arg6[%c0_217, %c0_218] : memref<576x32xbf16, #tpu.memory_space<vmem>>, vector<64x32xbf16>
      %cst_219 = arith.constant dense<0.000000e+00> : vector<256x32xf32>
      %219 = tpu.matmul %217, %218, %cst_219 {dimension_numbers = #tpu.dot_dimension_numbers<[1], [0], [0], [1], [0, 0, 1, 1], [], []>} : vector<256x64xbf16>, vector<64x32xbf16>, vector<256x32xf32> -> vector<256x32xf32>
      %c0_220 = arith.constant 0 : index
      %c1_221 = arith.constant 1 : index
      %c0_222 = arith.constant 0 : index
      %220 = vector.load %arg25[%c0_220, %c1_221, %c0_222] : memref<18x18x64xf32, #tpu.memory_space<vmem>>, vector<16x16x64xf32>
      %221 = vector.shape_cast %220 : vector<16x16x64xf32> to vector<256x64xf32>
      %222 = arith.truncf %221 : vector<256x64xf32> to vector<256x64xbf16>
      %c64_223 = arith.constant 64 : index
      %c0_224 = arith.constant 0 : index
      %223 = vector.load %arg6[%c64_223, %c0_224] : memref<576x32xbf16, #tpu.memory_space<vmem>>, vector<64x32xbf16>
      %cst_225 = arith.constant dense<0.000000e+00> : vector<256x32xf32>
      %224 = tpu.matmul %222, %223, %cst_225 {dimension_numbers = #tpu.dot_dimension_numbers<[1], [0], [0], [1], [0, 0, 1, 1], [], []>} : vector<256x64xbf16>, vector<64x32xbf16>, vector<256x32xf32> -> vector<256x32xf32>
      %225 = arith.addf %219, %224 : vector<256x32xf32>
      %c0_226 = arith.constant 0 : index
      %c2_227 = arith.constant 2 : index
      %c0_228 = arith.constant 0 : index
      %226 = vector.load %arg25[%c0_226, %c2_227, %c0_228] : memref<18x18x64xf32, #tpu.memory_space<vmem>>, vector<16x16x64xf32>
      %227 = vector.shape_cast %226 : vector<16x16x64xf32> to vector<256x64xf32>
      %228 = arith.truncf %227 : vector<256x64xf32> to vector<256x64xbf16>
      %c128_229 = arith.constant 128 : index
      %c0_230 = arith.constant 0 : index
      %229 = vector.load %arg6[%c128_229, %c0_230] : memref<576x32xbf16, #tpu.memory_space<vmem>>, vector<64x32xbf16>
      %cst_231 = arith.constant dense<0.000000e+00> : vector<256x32xf32>
      %230 = tpu.matmul %228, %229, %cst_231 {dimension_numbers = #tpu.dot_dimension_numbers<[1], [0], [0], [1], [0, 0, 1, 1], [], []>} : vector<256x64xbf16>, vector<64x32xbf16>, vector<256x32xf32> -> vector<256x32xf32>
      %231 = arith.addf %225, %230 : vector<256x32xf32>
      %c1_232 = arith.constant 1 : index
      %c0_233 = arith.constant 0 : index
      %c0_234 = arith.constant 0 : index
      %232 = vector.load %arg25[%c1_232, %c0_233, %c0_234] : memref<18x18x64xf32, #tpu.memory_space<vmem>>, vector<16x16x64xf32>
      %233 = vector.shape_cast %232 : vector<16x16x64xf32> to vector<256x64xf32>
      %234 = arith.truncf %233 : vector<256x64xf32> to vector<256x64xbf16>
      %c192_235 = arith.constant 192 : index
      %c0_236 = arith.constant 0 : index
      %235 = vector.load %arg6[%c192_235, %c0_236] : memref<576x32xbf16, #tpu.memory_space<vmem>>, vector<64x32xbf16>
      %cst_237 = arith.constant dense<0.000000e+00> : vector<256x32xf32>
      %236 = tpu.matmul %234, %235, %cst_237 {dimension_numbers = #tpu.dot_dimension_numbers<[1], [0], [0], [1], [0, 0, 1, 1], [], []>} : vector<256x64xbf16>, vector<64x32xbf16>, vector<256x32xf32> -> vector<256x32xf32>
      %237 = arith.addf %231, %236 : vector<256x32xf32>
      %c1_238 = arith.constant 1 : index
      %c1_239 = arith.constant 1 : index
      %c0_240 = arith.constant 0 : index
      %238 = vector.load %arg25[%c1_238, %c1_239, %c0_240] : memref<18x18x64xf32, #tpu.memory_space<vmem>>, vector<16x16x64xf32>
      %239 = vector.shape_cast %238 : vector<16x16x64xf32> to vector<256x64xf32>
      %240 = arith.truncf %239 : vector<256x64xf32> to vector<256x64xbf16>
      %c256_241 = arith.constant 256 : index
      %c0_242 = arith.constant 0 : index
      %241 = vector.load %arg6[%c256_241, %c0_242] : memref<576x32xbf16, #tpu.memory_space<vmem>>, vector<64x32xbf16>
      %cst_243 = arith.constant dense<0.000000e+00> : vector<256x32xf32>
      %242 = tpu.matmul %240, %241, %cst_243 {dimension_numbers = #tpu.dot_dimension_numbers<[1], [0], [0], [1], [0, 0, 1, 1], [], []>} : vector<256x64xbf16>, vector<64x32xbf16>, vector<256x32xf32> -> vector<256x32xf32>
      %243 = arith.addf %237, %242 : vector<256x32xf32>
      %c1_244 = arith.constant 1 : index
      %c2_245 = arith.constant 2 : index
      %c0_246 = arith.constant 0 : index
      %244 = vector.load %arg25[%c1_244, %c2_245, %c0_246] : memref<18x18x64xf32, #tpu.memory_space<vmem>>, vector<16x16x64xf32>
      %245 = vector.shape_cast %244 : vector<16x16x64xf32> to vector<256x64xf32>
      %246 = arith.truncf %245 : vector<256x64xf32> to vector<256x64xbf16>
      %c320 = arith.constant 320 : index
      %c0_247 = arith.constant 0 : index
      %247 = vector.load %arg6[%c320, %c0_247] : memref<576x32xbf16, #tpu.memory_space<vmem>>, vector<64x32xbf16>
      %cst_248 = arith.constant dense<0.000000e+00> : vector<256x32xf32>
      %248 = tpu.matmul %246, %247, %cst_248 {dimension_numbers = #tpu.dot_dimension_numbers<[1], [0], [0], [1], [0, 0, 1, 1], [], []>} : vector<256x64xbf16>, vector<64x32xbf16>, vector<256x32xf32> -> vector<256x32xf32>
      %249 = arith.addf %243, %248 : vector<256x32xf32>
      %c2_249 = arith.constant 2 : index
      %c0_250 = arith.constant 0 : index
      %c0_251 = arith.constant 0 : index
      %250 = vector.load %arg25[%c2_249, %c0_250, %c0_251] : memref<18x18x64xf32, #tpu.memory_space<vmem>>, vector<16x16x64xf32>
      %251 = vector.shape_cast %250 : vector<16x16x64xf32> to vector<256x64xf32>
      %252 = arith.truncf %251 : vector<256x64xf32> to vector<256x64xbf16>
      %c384 = arith.constant 384 : index
      %c0_252 = arith.constant 0 : index
      %253 = vector.load %arg6[%c384, %c0_252] : memref<576x32xbf16, #tpu.memory_space<vmem>>, vector<64x32xbf16>
      %cst_253 = arith.constant dense<0.000000e+00> : vector<256x32xf32>
      %254 = tpu.matmul %252, %253, %cst_253 {dimension_numbers = #tpu.dot_dimension_numbers<[1], [0], [0], [1], [0, 0, 1, 1], [], []>} : vector<256x64xbf16>, vector<64x32xbf16>, vector<256x32xf32> -> vector<256x32xf32>
      %255 = arith.addf %249, %254 : vector<256x32xf32>
      %c2_254 = arith.constant 2 : index
      %c1_255 = arith.constant 1 : index
      %c0_256 = arith.constant 0 : index
      %256 = vector.load %arg25[%c2_254, %c1_255, %c0_256] : memref<18x18x64xf32, #tpu.memory_space<vmem>>, vector<16x16x64xf32>
      %257 = vector.shape_cast %256 : vector<16x16x64xf32> to vector<256x64xf32>
      %258 = arith.truncf %257 : vector<256x64xf32> to vector<256x64xbf16>
      %c448 = arith.constant 448 : index
      %c0_257 = arith.constant 0 : index
      %259 = vector.load %arg6[%c448, %c0_257] : memref<576x32xbf16, #tpu.memory_space<vmem>>, vector<64x32xbf16>
      %cst_258 = arith.constant dense<0.000000e+00> : vector<256x32xf32>
      %260 = tpu.matmul %258, %259, %cst_258 {dimension_numbers = #tpu.dot_dimension_numbers<[1], [0], [0], [1], [0, 0, 1, 1], [], []>} : vector<256x64xbf16>, vector<64x32xbf16>, vector<256x32xf32> -> vector<256x32xf32>
      %261 = arith.addf %255, %260 : vector<256x32xf32>
      %c2_259 = arith.constant 2 : index
      %c2_260 = arith.constant 2 : index
      %c0_261 = arith.constant 0 : index
      %262 = vector.load %arg25[%c2_259, %c2_260, %c0_261] : memref<18x18x64xf32, #tpu.memory_space<vmem>>, vector<16x16x64xf32>
      %263 = vector.shape_cast %262 : vector<16x16x64xf32> to vector<256x64xf32>
      %264 = arith.truncf %263 : vector<256x64xf32> to vector<256x64xbf16>
      %c512 = arith.constant 512 : index
      %c0_262 = arith.constant 0 : index
      %265 = vector.load %arg6[%c512, %c0_262] : memref<576x32xbf16, #tpu.memory_space<vmem>>, vector<64x32xbf16>
      %cst_263 = arith.constant dense<0.000000e+00> : vector<256x32xf32>
      %266 = tpu.matmul %264, %265, %cst_263 {dimension_numbers = #tpu.dot_dimension_numbers<[1], [0], [0], [1], [0, 0, 1, 1], [], []>} : vector<256x64xbf16>, vector<64x32xbf16>, vector<256x32xf32> -> vector<256x32xf32>
      %267 = arith.addf %261, %266 : vector<256x32xf32>
      %268 = arith.addf %214, %267 : vector<256x32xf32>
      %c0_264 = arith.constant 0 : index
      %c0_265 = arith.constant 0 : index
      %c0_266 = arith.constant 0 : index
      %c0_267 = arith.constant 0 : index
      %269 = vector.load %arg2[%c0_264, %c0_265, %c0_266, %c0_267] : memref<1x16x16x32xf32, #tpu.memory_space<vmem>>, vector<1x16x16x32xf32>
      %270 = vector.shape_cast %269 : vector<1x16x16x32xf32> to vector<16x16x32xf32>
      %271 = vector.shape_cast %270 : vector<16x16x32xf32> to vector<256x32xf32>
      %c0_268 = arith.constant 0 : index
      %c0_269 = arith.constant 0 : index
      %c0_270 = arith.constant 0 : index
      %272 = vector.load %arg4[%c0_268, %c0_269, %c0_270] : memref<1x256x1xf32, #tpu.memory_space<vmem>>, vector<1x256x1xf32>
      %273 = vector.shape_cast %272 : vector<1x256x1xf32> to vector<256x1xf32>
      %274 = vector.broadcast %273 : vector<256x1xf32> to vector<256x32xf32>
      %275 = arith.mulf %268, %274 : vector<256x32xf32>
      %276 = arith.addf %271, %275 : vector<256x32xf32>
      %cst_271 = arith.constant dense<0.000000e+00> : vector<32xf32>
      %277 = vector.multi_reduction <add>, %276, %cst_271 [0] : vector<256x32xf32> to vector<32xf32>
      %278 = vector.shape_cast %277 : vector<32xf32> to vector<1x32xf32>
      %cst_272 = arith.constant 2.560000e+02 : f32
      %279 = vector.broadcast %cst_272 : f32 to vector<1x32xf32>
      %280 = arith.divf %278, %279 : vector<1x32xf32>
      %281 = arith.truncf %280 : vector<1x32xf32> to vector<1x32xbf16>
      %c0_273 = arith.constant 0 : index
      %c0_274 = arith.constant 0 : index
      %282 = vector.load %arg8[%c0_273, %c0_274] : memref<32x128xbf16, #tpu.memory_space<vmem>>, vector<32x128xbf16>
      %cst_275 = arith.constant dense<0.000000e+00> : vector<1x128xf32>
      %283 = tpu.matmul %281, %282, %cst_275 {dimension_numbers = #tpu.dot_dimension_numbers<[1], [0], [0], [1], [0, 0, 1, 1], [], []>} : vector<1x32xbf16>, vector<32x128xbf16>, vector<1x128xf32> -> vector<1x128xf32>
      %c0_276 = arith.constant 0 : index
      %c0_277 = arith.constant 0 : index
      %284 = vector.load %arg9[%c0_276, %c0_277] : memref<1x128xf32, #tpu.memory_space<vmem>>, vector<1x128xf32>
      %285 = arith.addf %283, %284 : vector<1x128xf32>
      %cst_278 = arith.constant 0.000000e+00 : f32
      %286 = vector.broadcast %cst_278 : f32 to vector<1x128xf32>
      %287 = arith.maximumf %285, %286 : vector<1x128xf32>
      %288 = arith.truncf %287 : vector<1x128xf32> to vector<1x128xbf16>
      %c0_279 = arith.constant 0 : index
      %c0_280 = arith.constant 0 : index
      %289 = vector.load %arg10[%c0_279, %c0_280] : memref<128x32xbf16, #tpu.memory_space<vmem>>, vector<128x32xbf16>
      %cst_281 = arith.constant dense<0.000000e+00> : vector<1x32xf32>
      %290 = tpu.matmul %288, %289, %cst_281 {dimension_numbers = #tpu.dot_dimension_numbers<[1], [0], [0], [1], [0, 0, 1, 1], [], []>} : vector<1x128xbf16>, vector<128x32xbf16>, vector<1x32xf32> -> vector<1x32xf32>
      %c0_282 = arith.constant 0 : index
      %c0_283 = arith.constant 0 : index
      %291 = vector.load %arg11[%c0_282, %c0_283] : memref<1x32xf32, #tpu.memory_space<vmem>>, vector<1x32xf32>
      %292 = arith.addf %290, %291 : vector<1x32xf32>
      %cst_284 = arith.constant 0.000000e+00 : f32
      %293 = vector.broadcast %cst_284 : f32 to vector<1x32xf32>
      %294 = arith.subf %293, %292 : vector<1x32xf32>
      %295 = math.exp %294 : vector<1x32xf32>
      %cst_285 = arith.constant 1.000000e+00 : f32
      %296 = vector.broadcast %cst_285 : f32 to vector<1x32xf32>
      %297 = arith.addf %296, %295 : vector<1x32xf32>
      %cst_286 = arith.constant 1.000000e+00 : f32
      %298 = vector.broadcast %cst_286 : f32 to vector<1x32xf32>
      %299 = arith.divf %298, %297 : vector<1x32xf32>
      %c0_287 = arith.constant 0 : index
      %c0_288 = arith.constant 0 : index
      %300 = vector.load %arg26[%c0_287, %c0_288] : memref<1x32xf32, #tpu.memory_space<vmem>>, vector<1x32xf32>
      tpu.vector_store %arg26[%c0_287, %c0_288], %299 {strides = array<i32>} : memref<1x32xf32, #tpu.memory_space<vmem>>, vector<1x32xf32>,
      %301 = vector.shape_cast %276 : vector<256x32xf32> to vector<16x16x32xf32>
      %c1_289 = arith.constant 1 : index
      %c1_290 = arith.constant 1 : index
      %c0_291 = arith.constant 0 : index
      %302 = vector.load %arg23[%c1_289, %c1_290, %c0_291] : memref<18x18x32xf32, #tpu.memory_space<vmem>>, vector<16x16x32xf32>
      tpu.vector_store %arg23[%c1_289, %c1_290, %c0_291], %301 {strides = array<i32>} : memref<18x18x32xf32, #tpu.memory_space<vmem>>, vector<16x16x32xf32>,
    } else {
    }
    %c0 = arith.constant 0 : index
    %c0_1 = arith.constant 0 : index
    %c0_2 = arith.constant 0 : index
    %3 = vector.load %arg23[%c0, %c0_1, %c0_2] : memref<18x18x32xf32, #tpu.memory_space<vmem>>, vector<16x16x32xf32>
    %4 = vector.shape_cast %3 : vector<16x16x32xf32> to vector<256x32xf32>
    %5 = arith.truncf %4 : vector<256x32xf32> to vector<256x32xbf16>
    %c0_3 = arith.constant 0 : index
    %c0_4 = arith.constant 0 : index
    %c0_5 = arith.constant 0 : index
    %6 = vector.load %arg12[%c0_3, %c0_4, %c0_5] : memref<1x288x32xbf16, #tpu.memory_space<vmem>>, vector<1x32x32xbf16>
    %7 = vector.shape_cast %6 : vector<1x32x32xbf16> to vector<32x32xbf16>
    %cst = arith.constant dense<0.000000e+00> : vector<256x32xf32>
    %8 = tpu.matmul %5, %7, %cst {dimension_numbers = #tpu.dot_dimension_numbers<[1], [0], [0], [1], [0, 0, 1, 1], [], []>} : vector<256x32xbf16>, vector<32x32xbf16>, vector<256x32xf32> -> vector<256x32xf32>
    %c0_6 = arith.constant 0 : index
    %c1 = arith.constant 1 : index
    %c0_7 = arith.constant 0 : index
    %9 = vector.load %arg23[%c0_6, %c1, %c0_7] : memref<18x18x32xf32, #tpu.memory_space<vmem>>, vector<16x16x32xf32>
    %10 = vector.shape_cast %9 : vector<16x16x32xf32> to vector<256x32xf32>
    %11 = arith.truncf %10 : vector<256x32xf32> to vector<256x32xbf16>
    %c0_8 = arith.constant 0 : index
    %c32 = arith.constant 32 : index
    %c0_9 = arith.constant 0 : index
    %12 = vector.load %arg12[%c0_8, %c32, %c0_9] : memref<1x288x32xbf16, #tpu.memory_space<vmem>>, vector<1x32x32xbf16>
    %13 = vector.shape_cast %12 : vector<1x32x32xbf16> to vector<32x32xbf16>
    %cst_10 = arith.constant dense<0.000000e+00> : vector<256x32xf32>
    %14 = tpu.matmul %11, %13, %cst_10 {dimension_numbers = #tpu.dot_dimension_numbers<[1], [0], [0], [1], [0, 0, 1, 1], [], []>} : vector<256x32xbf16>, vector<32x32xbf16>, vector<256x32xf32> -> vector<256x32xf32>
    %15 = arith.addf %8, %14 : vector<256x32xf32>
    %c0_11 = arith.constant 0 : index
    %c2 = arith.constant 2 : index
    %c0_12 = arith.constant 0 : index
    %16 = vector.load %arg23[%c0_11, %c2, %c0_12] : memref<18x18x32xf32, #tpu.memory_space<vmem>>, vector<16x16x32xf32>
    %17 = vector.shape_cast %16 : vector<16x16x32xf32> to vector<256x32xf32>
    %18 = arith.truncf %17 : vector<256x32xf32> to vector<256x32xbf16>
    %c0_13 = arith.constant 0 : index
    %c64 = arith.constant 64 : index
    %c0_14 = arith.constant 0 : index
    %19 = vector.load %arg12[%c0_13, %c64, %c0_14] : memref<1x288x32xbf16, #tpu.memory_space<vmem>>, vector<1x32x32xbf16>
    %20 = vector.shape_cast %19 : vector<1x32x32xbf16> to vector<32x32xbf16>
    %cst_15 = arith.constant dense<0.000000e+00> : vector<256x32xf32>
    %21 = tpu.matmul %18, %20, %cst_15 {dimension_numbers = #tpu.dot_dimension_numbers<[1], [0], [0], [1], [0, 0, 1, 1], [], []>} : vector<256x32xbf16>, vector<32x32xbf16>, vector<256x32xf32> -> vector<256x32xf32>
    %22 = arith.addf %15, %21 : vector<256x32xf32>
    %c1_16 = arith.constant 1 : index
    %c0_17 = arith.constant 0 : index
    %c0_18 = arith.constant 0 : index
    %23 = vector.load %arg23[%c1_16, %c0_17, %c0_18] : memref<18x18x32xf32, #tpu.memory_space<vmem>>, vector<16x16x32xf32>
    %24 = vector.shape_cast %23 : vector<16x16x32xf32> to vector<256x32xf32>
    %25 = arith.truncf %24 : vector<256x32xf32> to vector<256x32xbf16>
    %c0_19 = arith.constant 0 : index
    %c96 = arith.constant 96 : index
    %c0_20 = arith.constant 0 : index
    %26 = vector.load %arg12[%c0_19, %c96, %c0_20] : memref<1x288x32xbf16, #tpu.memory_space<vmem>>, vector<1x32x32xbf16>
    %27 = vector.shape_cast %26 : vector<1x32x32xbf16> to vector<32x32xbf16>
    %cst_21 = arith.constant dense<0.000000e+00> : vector<256x32xf32>
    %28 = tpu.matmul %25, %27, %cst_21 {dimension_numbers = #tpu.dot_dimension_numbers<[1], [0], [0], [1], [0, 0, 1, 1], [], []>} : vector<256x32xbf16>, vector<32x32xbf16>, vector<256x32xf32> -> vector<256x32xf32>
    %29 = arith.addf %22, %28 : vector<256x32xf32>
    %c1_22 = arith.constant 1 : index
    %c1_23 = arith.constant 1 : index
    %c0_24 = arith.constant 0 : index
    %30 = vector.load %arg23[%c1_22, %c1_23, %c0_24] : memref<18x18x32xf32, #tpu.memory_space<vmem>>, vector<16x16x32xf32>
    %31 = vector.shape_cast %30 : vector<16x16x32xf32> to vector<256x32xf32>
    %32 = arith.truncf %31 : vector<256x32xf32> to vector<256x32xbf16>
    %c0_25 = arith.constant 0 : index
    %c128 = arith.constant 128 : index
    %c0_26 = arith.constant 0 : index
    %33 = vector.load %arg12[%c0_25, %c128, %c0_26] : memref<1x288x32xbf16, #tpu.memory_space<vmem>>, vector<1x32x32xbf16>
    %34 = vector.shape_cast %33 : vector<1x32x32xbf16> to vector<32x32xbf16>
    %cst_27 = arith.constant dense<0.000000e+00> : vector<256x32xf32>
    %35 = tpu.matmul %32, %34, %cst_27 {dimension_numbers = #tpu.dot_dimension_numbers<[1], [0], [0], [1], [0, 0, 1, 1], [], []>} : vector<256x32xbf16>, vector<32x32xbf16>, vector<256x32xf32> -> vector<256x32xf32>
    %36 = arith.addf %29, %35 : vector<256x32xf32>
    %c1_28 = arith.constant 1 : index
    %c2_29 = arith.constant 2 : index
    %c0_30 = arith.constant 0 : index
    %37 = vector.load %arg23[%c1_28, %c2_29, %c0_30] : memref<18x18x32xf32, #tpu.memory_space<vmem>>, vector<16x16x32xf32>
    %38 = vector.shape_cast %37 : vector<16x16x32xf32> to vector<256x32xf32>
    %39 = arith.truncf %38 : vector<256x32xf32> to vector<256x32xbf16>
    %c0_31 = arith.constant 0 : index
    %c160 = arith.constant 160 : index
    %c0_32 = arith.constant 0 : index
    %40 = vector.load %arg12[%c0_31, %c160, %c0_32] : memref<1x288x32xbf16, #tpu.memory_space<vmem>>, vector<1x32x32xbf16>
    %41 = vector.shape_cast %40 : vector<1x32x32xbf16> to vector<32x32xbf16>
    %cst_33 = arith.constant dense<0.000000e+00> : vector<256x32xf32>
    %42 = tpu.matmul %39, %41, %cst_33 {dimension_numbers = #tpu.dot_dimension_numbers<[1], [0], [0], [1], [0, 0, 1, 1], [], []>} : vector<256x32xbf16>, vector<32x32xbf16>, vector<256x32xf32> -> vector<256x32xf32>
    %43 = arith.addf %36, %42 : vector<256x32xf32>
    %c2_34 = arith.constant 2 : index
    %c0_35 = arith.constant 0 : index
    %c0_36 = arith.constant 0 : index
    %44 = vector.load %arg23[%c2_34, %c0_35, %c0_36] : memref<18x18x32xf32, #tpu.memory_space<vmem>>, vector<16x16x32xf32>
    %45 = vector.shape_cast %44 : vector<16x16x32xf32> to vector<256x32xf32>
    %46 = arith.truncf %45 : vector<256x32xf32> to vector<256x32xbf16>
    %c0_37 = arith.constant 0 : index
    %c192 = arith.constant 192 : index
    %c0_38 = arith.constant 0 : index
    %47 = vector.load %arg12[%c0_37, %c192, %c0_38] : memref<1x288x32xbf16, #tpu.memory_space<vmem>>, vector<1x32x32xbf16>
    %48 = vector.shape_cast %47 : vector<1x32x32xbf16> to vector<32x32xbf16>
    %cst_39 = arith.constant dense<0.000000e+00> : vector<256x32xf32>
    %49 = tpu.matmul %46, %48, %cst_39 {dimension_numbers = #tpu.dot_dimension_numbers<[1], [0], [0], [1], [0, 0, 1, 1], [], []>} : vector<256x32xbf16>, vector<32x32xbf16>, vector<256x32xf32> -> vector<256x32xf32>
    %50 = arith.addf %43, %49 : vector<256x32xf32>
    %c2_40 = arith.constant 2 : index
    %c1_41 = arith.constant 1 : index
    %c0_42 = arith.constant 0 : index
    %51 = vector.load %arg23[%c2_40, %c1_41, %c0_42] : memref<18x18x32xf32, #tpu.memory_space<vmem>>, vector<16x16x32xf32>
    %52 = vector.shape_cast %51 : vector<16x16x32xf32> to vector<256x32xf32>
    %53 = arith.truncf %52 : vector<256x32xf32> to vector<256x32xbf16>
    %c0_43 = arith.constant 0 : index
    %c224 = arith.constant 224 : index
    %c0_44 = arith.constant 0 : index
    %54 = vector.load %arg12[%c0_43, %c224, %c0_44] : memref<1x288x32xbf16, #tpu.memory_space<vmem>>, vector<1x32x32xbf16>
    %55 = vector.shape_cast %54 : vector<1x32x32xbf16> to vector<32x32xbf16>
    %cst_45 = arith.constant dense<0.000000e+00> : vector<256x32xf32>
    %56 = tpu.matmul %53, %55, %cst_45 {dimension_numbers = #tpu.dot_dimension_numbers<[1], [0], [0], [1], [0, 0, 1, 1], [], []>} : vector<256x32xbf16>, vector<32x32xbf16>, vector<256x32xf32> -> vector<256x32xf32>
    %57 = arith.addf %50, %56 : vector<256x32xf32>
    %c2_46 = arith.constant 2 : index
    %c2_47 = arith.constant 2 : index
    %c0_48 = arith.constant 0 : index
    %58 = vector.load %arg23[%c2_46, %c2_47, %c0_48] : memref<18x18x32xf32, #tpu.memory_space<vmem>>, vector<16x16x32xf32>
    %59 = vector.shape_cast %58 : vector<16x16x32xf32> to vector<256x32xf32>
    %60 = arith.truncf %59 : vector<256x32xf32> to vector<256x32xbf16>
    %c0_49 = arith.constant 0 : index
    %c256 = arith.constant 256 : index
    %c0_50 = arith.constant 0 : index
    %61 = vector.load %arg12[%c0_49, %c256, %c0_50] : memref<1x288x32xbf16, #tpu.memory_space<vmem>>, vector<1x32x32xbf16>
    %62 = vector.shape_cast %61 : vector<1x32x32xbf16> to vector<32x32xbf16>
    %cst_51 = arith.constant dense<0.000000e+00> : vector<256x32xf32>
    %63 = tpu.matmul %60, %62, %cst_51 {dimension_numbers = #tpu.dot_dimension_numbers<[1], [0], [0], [1], [0, 0, 1, 1], [], []>} : vector<256x32xbf16>, vector<32x32xbf16>, vector<256x32xf32> -> vector<256x32xf32>
    %64 = arith.addf %57, %63 : vector<256x32xf32>
    %c0_52 = arith.constant 0 : index
    %c0_53 = arith.constant 0 : index
    %c0_54 = arith.constant 0 : index
    %65 = vector.load %arg13[%c0_52, %c0_53, %c0_54] : memref<1x1x32xf32, #tpu.memory_space<vmem>>, vector<1x1x32xf32>
    %66 = vector.shape_cast %65 : vector<1x1x32xf32> to vector<1x32xf32>
    %67 = vector.broadcast %66 : vector<1x32xf32> to vector<256x32xf32>
    %68 = arith.addf %64, %67 : vector<256x32xf32>
    %cst_55 = arith.constant 0.000000e+00 : f32
    %69 = vector.broadcast %cst_55 : f32 to vector<256x32xf32>
    %70 = arith.maximumf %68, %69 : vector<256x32xf32>
    %71 = vector.shape_cast %70 : vector<256x32xf32> to vector<16x16x32xf32>
    %c1_56 = arith.constant 1 : index
    %c1_57 = arith.constant 1 : index
    %c0_58 = arith.constant 0 : index
    %72 = vector.load %arg24[%c1_56, %c1_57, %c0_58] : memref<18x18x32xf32, #tpu.memory_space<vmem>>, vector<16x16x32xf32>
    tpu.vector_store %arg24[%c1_56, %c1_57, %c0_58], %71 {strides = array<i32>} : memref<18x18x32xf32, #tpu.memory_space<vmem>>, vector<16x16x32xf32>,
    %c0_59 = arith.constant 0 : index
    %c0_60 = arith.constant 0 : index
    %c0_61 = arith.constant 0 : index
    %73 = vector.load %arg24[%c0_59, %c0_60, %c0_61] : memref<18x18x32xf32, #tpu.memory_space<vmem>>, vector<16x16x32xf32>
    %74 = vector.shape_cast %73 : vector<16x16x32xf32> to vector<256x32xf32>
    %75 = arith.truncf %74 : vector<256x32xf32> to vector<256x32xbf16>
    %c0_62 = arith.constant 0 : index
    %c0_63 = arith.constant 0 : index
    %c0_64 = arith.constant 0 : index
    %76 = vector.load %arg14[%c0_62, %c0_63, %c0_64] : memref<1x288x32xbf16, #tpu.memory_space<vmem>>, vector<1x32x32xbf16>
    %77 = vector.shape_cast %76 : vector<1x32x32xbf16> to vector<32x32xbf16>
    %cst_65 = arith.constant dense<0.000000e+00> : vector<256x32xf32>
    %78 = tpu.matmul %75, %77, %cst_65 {dimension_numbers = #tpu.dot_dimension_numbers<[1], [0], [0], [1], [0, 0, 1, 1], [], []>} : vector<256x32xbf16>, vector<32x32xbf16>, vector<256x32xf32> -> vector<256x32xf32>
    %c0_66 = arith.constant 0 : index
    %c1_67 = arith.constant 1 : index
    %c0_68 = arith.constant 0 : index
    %79 = vector.load %arg24[%c0_66, %c1_67, %c0_68] : memref<18x18x32xf32, #tpu.memory_space<vmem>>, vector<16x16x32xf32>
    %80 = vector.shape_cast %79 : vector<16x16x32xf32> to vector<256x32xf32>
    %81 = arith.truncf %80 : vector<256x32xf32> to vector<256x32xbf16>
    %c0_69 = arith.constant 0 : index
    %c32_70 = arith.constant 32 : index
    %c0_71 = arith.constant 0 : index
    %82 = vector.load %arg14[%c0_69, %c32_70, %c0_71] : memref<1x288x32xbf16, #tpu.memory_space<vmem>>, vector<1x32x32xbf16>
    %83 = vector.shape_cast %82 : vector<1x32x32xbf16> to vector<32x32xbf16>
    %cst_72 = arith.constant dense<0.000000e+00> : vector<256x32xf32>
    %84 = tpu.matmul %81, %83, %cst_72 {dimension_numbers = #tpu.dot_dimension_numbers<[1], [0], [0], [1], [0, 0, 1, 1], [], []>} : vector<256x32xbf16>, vector<32x32xbf16>, vector<256x32xf32> -> vector<256x32xf32>
    %85 = arith.addf %78, %84 : vector<256x32xf32>
    %c0_73 = arith.constant 0 : index
    %c2_74 = arith.constant 2 : index
    %c0_75 = arith.constant 0 : index
    %86 = vector.load %arg24[%c0_73, %c2_74, %c0_75] : memref<18x18x32xf32, #tpu.memory_space<vmem>>, vector<16x16x32xf32>
    %87 = vector.shape_cast %86 : vector<16x16x32xf32> to vector<256x32xf32>
    %88 = arith.truncf %87 : vector<256x32xf32> to vector<256x32xbf16>
    %c0_76 = arith.constant 0 : index
    %c64_77 = arith.constant 64 : index
    %c0_78 = arith.constant 0 : index
    %89 = vector.load %arg14[%c0_76, %c64_77, %c0_78] : memref<1x288x32xbf16, #tpu.memory_space<vmem>>, vector<1x32x32xbf16>
    %90 = vector.shape_cast %89 : vector<1x32x32xbf16> to vector<32x32xbf16>
    %cst_79 = arith.constant dense<0.000000e+00> : vector<256x32xf32>
    %91 = tpu.matmul %88, %90, %cst_79 {dimension_numbers = #tpu.dot_dimension_numbers<[1], [0], [0], [1], [0, 0, 1, 1], [], []>} : vector<256x32xbf16>, vector<32x32xbf16>, vector<256x32xf32> -> vector<256x32xf32>
    %92 = arith.addf %85, %91 : vector<256x32xf32>
    %c1_80 = arith.constant 1 : index
    %c0_81 = arith.constant 0 : index
    %c0_82 = arith.constant 0 : index
    %93 = vector.load %arg24[%c1_80, %c0_81, %c0_82] : memref<18x18x32xf32, #tpu.memory_space<vmem>>, vector<16x16x32xf32>
    %94 = vector.shape_cast %93 : vector<16x16x32xf32> to vector<256x32xf32>
    %95 = arith.truncf %94 : vector<256x32xf32> to vector<256x32xbf16>
    %c0_83 = arith.constant 0 : index
    %c96_84 = arith.constant 96 : index
    %c0_85 = arith.constant 0 : index
    %96 = vector.load %arg14[%c0_83, %c96_84, %c0_85] : memref<1x288x32xbf16, #tpu.memory_space<vmem>>, vector<1x32x32xbf16>
    %97 = vector.shape_cast %96 : vector<1x32x32xbf16> to vector<32x32xbf16>
    %cst_86 = arith.constant dense<0.000000e+00> : vector<256x32xf32>
    %98 = tpu.matmul %95, %97, %cst_86 {dimension_numbers = #tpu.dot_dimension_numbers<[1], [0], [0], [1], [0, 0, 1, 1], [], []>} : vector<256x32xbf16>, vector<32x32xbf16>, vector<256x32xf32> -> vector<256x32xf32>
    %99 = arith.addf %92, %98 : vector<256x32xf32>
    %c1_87 = arith.constant 1 : index
    %c1_88 = arith.constant 1 : index
    %c0_89 = arith.constant 0 : index
    %100 = vector.load %arg24[%c1_87, %c1_88, %c0_89] : memref<18x18x32xf32, #tpu.memory_space<vmem>>, vector<16x16x32xf32>
    %101 = vector.shape_cast %100 : vector<16x16x32xf32> to vector<256x32xf32>
    %102 = arith.truncf %101 : vector<256x32xf32> to vector<256x32xbf16>
    %c0_90 = arith.constant 0 : index
    %c128_91 = arith.constant 128 : index
    %c0_92 = arith.constant 0 : index
    %103 = vector.load %arg14[%c0_90, %c128_91, %c0_92] : memref<1x288x32xbf16, #tpu.memory_space<vmem>>, vector<1x32x32xbf16>
    %104 = vector.shape_cast %103 : vector<1x32x32xbf16> to vector<32x32xbf16>
    %cst_93 = arith.constant dense<0.000000e+00> : vector<256x32xf32>
    %105 = tpu.matmul %102, %104, %cst_93 {dimension_numbers = #tpu.dot_dimension_numbers<[1], [0], [0], [1], [0, 0, 1, 1], [], []>} : vector<256x32xbf16>, vector<32x32xbf16>, vector<256x32xf32> -> vector<256x32xf32>
    %106 = arith.addf %99, %105 : vector<256x32xf32>
    %c1_94 = arith.constant 1 : index
    %c2_95 = arith.constant 2 : index
    %c0_96 = arith.constant 0 : index
    %107 = vector.load %arg24[%c1_94, %c2_95, %c0_96] : memref<18x18x32xf32, #tpu.memory_space<vmem>>, vector<16x16x32xf32>
    %108 = vector.shape_cast %107 : vector<16x16x32xf32> to vector<256x32xf32>
    %109 = arith.truncf %108 : vector<256x32xf32> to vector<256x32xbf16>
    %c0_97 = arith.constant 0 : index
    %c160_98 = arith.constant 160 : index
    %c0_99 = arith.constant 0 : index
    %110 = vector.load %arg14[%c0_97, %c160_98, %c0_99] : memref<1x288x32xbf16, #tpu.memory_space<vmem>>, vector<1x32x32xbf16>
    %111 = vector.shape_cast %110 : vector<1x32x32xbf16> to vector<32x32xbf16>
    %cst_100 = arith.constant dense<0.000000e+00> : vector<256x32xf32>
    %112 = tpu.matmul %109, %111, %cst_100 {dimension_numbers = #tpu.dot_dimension_numbers<[1], [0], [0], [1], [0, 0, 1, 1], [], []>} : vector<256x32xbf16>, vector<32x32xbf16>, vector<256x32xf32> -> vector<256x32xf32>
    %113 = arith.addf %106, %112 : vector<256x32xf32>
    %c2_101 = arith.constant 2 : index
    %c0_102 = arith.constant 0 : index
    %c0_103 = arith.constant 0 : index
    %114 = vector.load %arg24[%c2_101, %c0_102, %c0_103] : memref<18x18x32xf32, #tpu.memory_space<vmem>>, vector<16x16x32xf32>
    %115 = vector.shape_cast %114 : vector<16x16x32xf32> to vector<256x32xf32>
    %116 = arith.truncf %115 : vector<256x32xf32> to vector<256x32xbf16>
    %c0_104 = arith.constant 0 : index
    %c192_105 = arith.constant 192 : index
    %c0_106 = arith.constant 0 : index
    %117 = vector.load %arg14[%c0_104, %c192_105, %c0_106] : memref<1x288x32xbf16, #tpu.memory_space<vmem>>, vector<1x32x32xbf16>
    %118 = vector.shape_cast %117 : vector<1x32x32xbf16> to vector<32x32xbf16>
    %cst_107 = arith.constant dense<0.000000e+00> : vector<256x32xf32>
    %119 = tpu.matmul %116, %118, %cst_107 {dimension_numbers = #tpu.dot_dimension_numbers<[1], [0], [0], [1], [0, 0, 1, 1], [], []>} : vector<256x32xbf16>, vector<32x32xbf16>, vector<256x32xf32> -> vector<256x32xf32>
    %120 = arith.addf %113, %119 : vector<256x32xf32>
    %c2_108 = arith.constant 2 : index
    %c1_109 = arith.constant 1 : index
    %c0_110 = arith.constant 0 : index
    %121 = vector.load %arg24[%c2_108, %c1_109, %c0_110] : memref<18x18x32xf32, #tpu.memory_space<vmem>>, vector<16x16x32xf32>
    %122 = vector.shape_cast %121 : vector<16x16x32xf32> to vector<256x32xf32>
    %123 = arith.truncf %122 : vector<256x32xf32> to vector<256x32xbf16>
    %c0_111 = arith.constant 0 : index
    %c224_112 = arith.constant 224 : index
    %c0_113 = arith.constant 0 : index
    %124 = vector.load %arg14[%c0_111, %c224_112, %c0_113] : memref<1x288x32xbf16, #tpu.memory_space<vmem>>, vector<1x32x32xbf16>
    %125 = vector.shape_cast %124 : vector<1x32x32xbf16> to vector<32x32xbf16>
    %cst_114 = arith.constant dense<0.000000e+00> : vector<256x32xf32>
    %126 = tpu.matmul %123, %125, %cst_114 {dimension_numbers = #tpu.dot_dimension_numbers<[1], [0], [0], [1], [0, 0, 1, 1], [], []>} : vector<256x32xbf16>, vector<32x32xbf16>, vector<256x32xf32> -> vector<256x32xf32>
    %127 = arith.addf %120, %126 : vector<256x32xf32>
    %c2_115 = arith.constant 2 : index
    %c2_116 = arith.constant 2 : index
    %c0_117 = arith.constant 0 : index
    %128 = vector.load %arg24[%c2_115, %c2_116, %c0_117] : memref<18x18x32xf32, #tpu.memory_space<vmem>>, vector<16x16x32xf32>
    %129 = vector.shape_cast %128 : vector<16x16x32xf32> to vector<256x32xf32>
    %130 = arith.truncf %129 : vector<256x32xf32> to vector<256x32xbf16>
    %c0_118 = arith.constant 0 : index
    %c256_119 = arith.constant 256 : index
    %c0_120 = arith.constant 0 : index
    %131 = vector.load %arg14[%c0_118, %c256_119, %c0_120] : memref<1x288x32xbf16, #tpu.memory_space<vmem>>, vector<1x32x32xbf16>
    %132 = vector.shape_cast %131 : vector<1x32x32xbf16> to vector<32x32xbf16>
    %cst_121 = arith.constant dense<0.000000e+00> : vector<256x32xf32>
    %133 = tpu.matmul %130, %132, %cst_121 {dimension_numbers = #tpu.dot_dimension_numbers<[1], [0], [0], [1], [0, 0, 1, 1], [], []>} : vector<256x32xbf16>, vector<32x32xbf16>, vector<256x32xf32> -> vector<256x32xf32>
    %134 = arith.addf %127, %133 : vector<256x32xf32>
    %c0_122 = arith.constant 0 : index
    %c0_123 = arith.constant 0 : index
    %c0_124 = arith.constant 0 : index
    %135 = vector.load %arg15[%c0_122, %c0_123, %c0_124] : memref<1x1x32xf32, #tpu.memory_space<vmem>>, vector<1x1x32xf32>
    %136 = vector.shape_cast %135 : vector<1x1x32xf32> to vector<1x32xf32>
    %137 = vector.broadcast %136 : vector<1x32xf32> to vector<256x32xf32>
    %138 = arith.addf %134, %137 : vector<256x32xf32>
    %c1_125 = arith.constant 1 : index
    %c1_126 = arith.constant 1 : index
    %c0_127 = arith.constant 0 : index
    %139 = vector.load %arg23[%c1_125, %c1_126, %c0_127] : memref<18x18x32xf32, #tpu.memory_space<vmem>>, vector<16x16x32xf32>
    %140 = vector.shape_cast %139 : vector<16x16x32xf32> to vector<256x32xf32>
    %141 = arith.addf %138, %140 : vector<256x32xf32>
    %142 = vector.shape_cast %141 : vector<256x32xf32> to vector<16x16x32xf32>
    %c1_128 = arith.constant 1 : index
    %c1_129 = arith.constant 1 : index
    %c0_130 = arith.constant 0 : index
    %143 = vector.load %arg23[%c1_128, %c1_129, %c0_130] : memref<18x18x32xf32, #tpu.memory_space<vmem>>, vector<16x16x32xf32>
    tpu.vector_store %arg23[%c1_128, %c1_129, %c0_130], %142 {strides = array<i32>} : memref<18x18x32xf32, #tpu.memory_space<vmem>>, vector<16x16x32xf32>,
    %c11_i32 = arith.constant 11 : i32
    %144 = arith.cmpi eq, %arg1, %c11_i32 : i32
    %145 = arith.extui %144 : i1 to i32
    %c0_i32_131 = arith.constant 0 : i32
    %146 = arith.cmpi ne, %145, %c0_i32_131 : i32
    scf.if %146 {
      %c1_132 = arith.constant 1 : index
      %c1_133 = arith.constant 1 : index
      %c0_134 = arith.constant 0 : index
      %147 = vector.load %arg23[%c1_132, %c1_133, %c0_134] : memref<18x18x32xf32, #tpu.memory_space<vmem>>, vector<16x16x32xf32>
      %148 = vector.shape_cast %147 : vector<16x16x32xf32> to vector<256x32xf32>
      %149 = arith.truncf %148 : vector<256x32xf32> to vector<256x32xbf16>
      %c0_135 = arith.constant 0 : index
      %c0_136 = arith.constant 0 : index
      %150 = vector.load %arg16[%c0_135, %c0_136] : memref<32x128xbf16, #tpu.memory_space<vmem>>, vector<32x128xbf16>
      %cst_137 = arith.constant dense<0.000000e+00> : vector<256x128xf32>
      %151 = tpu.matmul %149, %150, %cst_137 {dimension_numbers = #tpu.dot_dimension_numbers<[1], [0], [0], [1], [0, 0, 1, 1], [], []>} : vector<256x32xbf16>, vector<32x128xbf16>, vector<256x128xf32> -> vector<256x128xf32>
      %c0_138 = arith.constant 0 : index
      %c0_139 = arith.constant 0 : index
      %152 = vector.load %arg17[%c0_138, %c0_139] : memref<1x128xf32, #tpu.memory_space<vmem>>, vector<1x128xf32>
      %153 = vector.broadcast %152 : vector<1x128xf32> to vector<256x128xf32>
      %154 = arith.addf %151, %153 : vector<256x128xf32>
      %155 = arith.truncf %154 : vector<256x128xf32> to vector<256x128xbf16>
      %c0_140 = arith.constant 0 : index
      %c0_141 = arith.constant 0 : index
      %156 = vector.load %arg18[%c0_140, %c0_141] : memref<128x32xbf16, #tpu.memory_space<vmem>>, vector<128x32xbf16>
      %cst_142 = arith.constant dense<0.000000e+00> : vector<256x32xf32>
      %157 = tpu.matmul %155, %156, %cst_142 {dimension_numbers = #tpu.dot_dimension_numbers<[1], [0], [0], [1], [0, 0, 1, 1], [], []>} : vector<256x128xbf16>, vector<128x32xbf16>, vector<256x32xf32> -> vector<256x32xf32>
      %c0_143 = arith.constant 0 : index
      %c0_144 = arith.constant 0 : index
      %158 = vector.load %arg19[%c0_143, %c0_144] : memref<1x32xf32, #tpu.memory_space<vmem>>, vector<1x32xf32>
      %159 = vector.broadcast %158 : vector<1x32xf32> to vector<256x32xf32>
      %160 = arith.addf %157, %159 : vector<256x32xf32>
      %c0_145 = arith.constant 0 : index
      %c0_146 = arith.constant 0 : index
      %161 = vector.load %arg26[%c0_145, %c0_146] : memref<1x32xf32, #tpu.memory_space<vmem>>, vector<1x32xf32>
      %162 = vector.broadcast %161 : vector<1x32xf32> to vector<256x32xf32>
      %163 = arith.mulf %160, %162 : vector<256x32xf32>
      %164 = vector.shape_cast %163 : vector<256x32xf32> to vector<16x16x32xf32>
      %c1_147 = arith.constant 1 : index
      %c1_148 = arith.constant 1 : index
      %c0_149 = arith.constant 0 : index
      %165 = vector.load %arg24[%c1_147, %c1_148, %c0_149] : memref<18x18x32xf32, #tpu.memory_space<vmem>>, vector<16x16x32xf32>
      tpu.vector_store %arg24[%c1_147, %c1_148, %c0_149], %164 {strides = array<i32>} : memref<18x18x32xf32, #tpu.memory_space<vmem>>, vector<16x16x32xf32>,
      %c0_150 = arith.constant 0 : index
      %c0_151 = arith.constant 0 : index
      %c0_152 = arith.constant 0 : index
      %166 = vector.load %arg24[%c0_150, %c0_151, %c0_152] : memref<18x18x32xf32, #tpu.memory_space<vmem>>, vector<16x16x32xf32>
      %167 = vector.shape_cast %166 : vector<16x16x32xf32> to vector<256x32xf32>
      %168 = arith.truncf %167 : vector<256x32xf32> to vector<256x32xbf16>
      %c0_153 = arith.constant 0 : index
      %c0_154 = arith.constant 0 : index
      %169 = vector.load %arg20[%c0_153, %c0_154] : memref<288x32xbf16, #tpu.memory_space<vmem>>, vector<32x32xbf16>
      %cst_155 = arith.constant dense<0.000000e+00> : vector<256x32xf32>
      %170 = tpu.matmul %168, %169, %cst_155 {dimension_numbers = #tpu.dot_dimension_numbers<[1], [0], [0], [1], [0, 0, 1, 1], [], []>} : vector<256x32xbf16>, vector<32x32xbf16>, vector<256x32xf32> -> vector<256x32xf32>
      %c0_156 = arith.constant 0 : index
      %c1_157 = arith.constant 1 : index
      %c0_158 = arith.constant 0 : index
      %171 = vector.load %arg24[%c0_156, %c1_157, %c0_158] : memref<18x18x32xf32, #tpu.memory_space<vmem>>, vector<16x16x32xf32>
      %172 = vector.shape_cast %171 : vector<16x16x32xf32> to vector<256x32xf32>
      %173 = arith.truncf %172 : vector<256x32xf32> to vector<256x32xbf16>
      %c32_159 = arith.constant 32 : index
      %c0_160 = arith.constant 0 : index
      %174 = vector.load %arg20[%c32_159, %c0_160] : memref<288x32xbf16, #tpu.memory_space<vmem>>, vector<32x32xbf16>
      %cst_161 = arith.constant dense<0.000000e+00> : vector<256x32xf32>
      %175 = tpu.matmul %173, %174, %cst_161 {dimension_numbers = #tpu.dot_dimension_numbers<[1], [0], [0], [1], [0, 0, 1, 1], [], []>} : vector<256x32xbf16>, vector<32x32xbf16>, vector<256x32xf32> -> vector<256x32xf32>
      %176 = arith.addf %170, %175 : vector<256x32xf32>
      %c0_162 = arith.constant 0 : index
      %c2_163 = arith.constant 2 : index
      %c0_164 = arith.constant 0 : index
      %177 = vector.load %arg24[%c0_162, %c2_163, %c0_164] : memref<18x18x32xf32, #tpu.memory_space<vmem>>, vector<16x16x32xf32>
      %178 = vector.shape_cast %177 : vector<16x16x32xf32> to vector<256x32xf32>
      %179 = arith.truncf %178 : vector<256x32xf32> to vector<256x32xbf16>
      %c64_165 = arith.constant 64 : index
      %c0_166 = arith.constant 0 : index
      %180 = vector.load %arg20[%c64_165, %c0_166] : memref<288x32xbf16, #tpu.memory_space<vmem>>, vector<32x32xbf16>
      %cst_167 = arith.constant dense<0.000000e+00> : vector<256x32xf32>
      %181 = tpu.matmul %179, %180, %cst_167 {dimension_numbers = #tpu.dot_dimension_numbers<[1], [0], [0], [1], [0, 0, 1, 1], [], []>} : vector<256x32xbf16>, vector<32x32xbf16>, vector<256x32xf32> -> vector<256x32xf32>
      %182 = arith.addf %176, %181 : vector<256x32xf32>
      %c1_168 = arith.constant 1 : index
      %c0_169 = arith.constant 0 : index
      %c0_170 = arith.constant 0 : index
      %183 = vector.load %arg24[%c1_168, %c0_169, %c0_170] : memref<18x18x32xf32, #tpu.memory_space<vmem>>, vector<16x16x32xf32>
      %184 = vector.shape_cast %183 : vector<16x16x32xf32> to vector<256x32xf32>
      %185 = arith.truncf %184 : vector<256x32xf32> to vector<256x32xbf16>
      %c96_171 = arith.constant 96 : index
      %c0_172 = arith.constant 0 : index
      %186 = vector.load %arg20[%c96_171, %c0_172] : memref<288x32xbf16, #tpu.memory_space<vmem>>, vector<32x32xbf16>
      %cst_173 = arith.constant dense<0.000000e+00> : vector<256x32xf32>
      %187 = tpu.matmul %185, %186, %cst_173 {dimension_numbers = #tpu.dot_dimension_numbers<[1], [0], [0], [1], [0, 0, 1, 1], [], []>} : vector<256x32xbf16>, vector<32x32xbf16>, vector<256x32xf32> -> vector<256x32xf32>
      %188 = arith.addf %182, %187 : vector<256x32xf32>
      %c1_174 = arith.constant 1 : index
      %c1_175 = arith.constant 1 : index
      %c0_176 = arith.constant 0 : index
      %189 = vector.load %arg24[%c1_174, %c1_175, %c0_176] : memref<18x18x32xf32, #tpu.memory_space<vmem>>, vector<16x16x32xf32>
      %190 = vector.shape_cast %189 : vector<16x16x32xf32> to vector<256x32xf32>
      %191 = arith.truncf %190 : vector<256x32xf32> to vector<256x32xbf16>
      %c128_177 = arith.constant 128 : index
      %c0_178 = arith.constant 0 : index
      %192 = vector.load %arg20[%c128_177, %c0_178] : memref<288x32xbf16, #tpu.memory_space<vmem>>, vector<32x32xbf16>
      %cst_179 = arith.constant dense<0.000000e+00> : vector<256x32xf32>
      %193 = tpu.matmul %191, %192, %cst_179 {dimension_numbers = #tpu.dot_dimension_numbers<[1], [0], [0], [1], [0, 0, 1, 1], [], []>} : vector<256x32xbf16>, vector<32x32xbf16>, vector<256x32xf32> -> vector<256x32xf32>
      %194 = arith.addf %188, %193 : vector<256x32xf32>
      %c1_180 = arith.constant 1 : index
      %c2_181 = arith.constant 2 : index
      %c0_182 = arith.constant 0 : index
      %195 = vector.load %arg24[%c1_180, %c2_181, %c0_182] : memref<18x18x32xf32, #tpu.memory_space<vmem>>, vector<16x16x32xf32>
      %196 = vector.shape_cast %195 : vector<16x16x32xf32> to vector<256x32xf32>
      %197 = arith.truncf %196 : vector<256x32xf32> to vector<256x32xbf16>
      %c160_183 = arith.constant 160 : index
      %c0_184 = arith.constant 0 : index
      %198 = vector.load %arg20[%c160_183, %c0_184] : memref<288x32xbf16, #tpu.memory_space<vmem>>, vector<32x32xbf16>
      %cst_185 = arith.constant dense<0.000000e+00> : vector<256x32xf32>
      %199 = tpu.matmul %197, %198, %cst_185 {dimension_numbers = #tpu.dot_dimension_numbers<[1], [0], [0], [1], [0, 0, 1, 1], [], []>} : vector<256x32xbf16>, vector<32x32xbf16>, vector<256x32xf32> -> vector<256x32xf32>
      %200 = arith.addf %194, %199 : vector<256x32xf32>
      %c2_186 = arith.constant 2 : index
      %c0_187 = arith.constant 0 : index
      %c0_188 = arith.constant 0 : index
      %201 = vector.load %arg24[%c2_186, %c0_187, %c0_188] : memref<18x18x32xf32, #tpu.memory_space<vmem>>, vector<16x16x32xf32>
      %202 = vector.shape_cast %201 : vector<16x16x32xf32> to vector<256x32xf32>
      %203 = arith.truncf %202 : vector<256x32xf32> to vector<256x32xbf16>
      %c192_189 = arith.constant 192 : index
      %c0_190 = arith.constant 0 : index
      %204 = vector.load %arg20[%c192_189, %c0_190] : memref<288x32xbf16, #tpu.memory_space<vmem>>, vector<32x32xbf16>
      %cst_191 = arith.constant dense<0.000000e+00> : vector<256x32xf32>
      %205 = tpu.matmul %203, %204, %cst_191 {dimension_numbers = #tpu.dot_dimension_numbers<[1], [0], [0], [1], [0, 0, 1, 1], [], []>} : vector<256x32xbf16>, vector<32x32xbf16>, vector<256x32xf32> -> vector<256x32xf32>
      %206 = arith.addf %200, %205 : vector<256x32xf32>
      %c2_192 = arith.constant 2 : index
      %c1_193 = arith.constant 1 : index
      %c0_194 = arith.constant 0 : index
      %207 = vector.load %arg24[%c2_192, %c1_193, %c0_194] : memref<18x18x32xf32, #tpu.memory_space<vmem>>, vector<16x16x32xf32>
      %208 = vector.shape_cast %207 : vector<16x16x32xf32> to vector<256x32xf32>
      %209 = arith.truncf %208 : vector<256x32xf32> to vector<256x32xbf16>
      %c224_195 = arith.constant 224 : index
      %c0_196 = arith.constant 0 : index
      %210 = vector.load %arg20[%c224_195, %c0_196] : memref<288x32xbf16, #tpu.memory_space<vmem>>, vector<32x32xbf16>
      %cst_197 = arith.constant dense<0.000000e+00> : vector<256x32xf32>
      %211 = tpu.matmul %209, %210, %cst_197 {dimension_numbers = #tpu.dot_dimension_numbers<[1], [0], [0], [1], [0, 0, 1, 1], [], []>} : vector<256x32xbf16>, vector<32x32xbf16>, vector<256x32xf32> -> vector<256x32xf32>
      %212 = arith.addf %206, %211 : vector<256x32xf32>
      %c2_198 = arith.constant 2 : index
      %c2_199 = arith.constant 2 : index
      %c0_200 = arith.constant 0 : index
      %213 = vector.load %arg24[%c2_198, %c2_199, %c0_200] : memref<18x18x32xf32, #tpu.memory_space<vmem>>, vector<16x16x32xf32>
      %214 = vector.shape_cast %213 : vector<16x16x32xf32> to vector<256x32xf32>
      %215 = arith.truncf %214 : vector<256x32xf32> to vector<256x32xbf16>
      %c256_201 = arith.constant 256 : index
      %c0_202 = arith.constant 0 : index
      %216 = vector.load %arg20[%c256_201, %c0_202] : memref<288x32xbf16, #tpu.memory_space<vmem>>, vector<32x32xbf16>
      %cst_203 = arith.constant dense<0.000000e+00> : vector<256x32xf32>
      %217 = tpu.matmul %215, %216, %cst_203 {dimension_numbers = #tpu.dot_dimension_numbers<[1], [0], [0], [1], [0, 0, 1, 1], [], []>} : vector<256x32xbf16>, vector<32x32xbf16>, vector<256x32xf32> -> vector<256x32xf32>
      %218 = arith.addf %212, %217 : vector<256x32xf32>
      %c0_204 = arith.constant 0 : index
      %c0_205 = arith.constant 0 : index
      %219 = vector.load %arg21[%c0_204, %c0_205] : memref<1x32xf32, #tpu.memory_space<vmem>>, vector<1x32xf32>
      %220 = vector.broadcast %219 : vector<1x32xf32> to vector<256x32xf32>
      %221 = arith.addf %218, %220 : vector<256x32xf32>
      %222 = vector.shape_cast %221 : vector<256x32xf32> to vector<16x16x32xf32>
      %c0_206 = arith.constant 0 : index
      %c0_207 = arith.constant 0 : index
      %c0_208 = arith.constant 0 : index
      %c0_209 = arith.constant 0 : index
      %223 = vector.load %arg22[%c0_206, %c0_207, %c0_208, %c0_209] : memref<1x16x16x32xf32, #tpu.memory_space<vmem>>, vector<1x16x16x32xf32>
      %224 = vector.shape_cast %223 : vector<1x16x16x32xf32> to vector<16x16x32xf32>
      %225 = vector.shape_cast %222 : vector<16x16x32xf32> to vector<1x16x16x32xf32>
      tpu.vector_store %arg22[%c0_206, %c0_207, %c0_208, %c0_209], %225 {strides = array<i32>} : memref<1x16x16x32xf32, #tpu.memory_space<vmem>>, vector<1x16x16x32xf32>,
    } else {
    }
    return
  }
  func.func @transform_0(%arg0: i32, %arg1: i32) -> (i32, i32, i32, i32) {
    %c0_i32 = arith.constant 0 : i32
    %c0_i32_0 = arith.constant 0 : i32
    %c0_i32_1 = arith.constant 0 : i32
    %c0_i32_2 = arith.constant 0 : i32
    return %arg0, %c0_i32, %c0_i32_0, %c0_i32_1 : i32, i32, i32, i32
  }
  func.func @transform_1(%arg0: i32, %arg1: i32) -> (i32, i32, i32, i32) {
    %c0_i32 = arith.constant 0 : i32
    %c0_i32_0 = arith.constant 0 : i32
    %c0_i32_1 = arith.constant 0 : i32
    %c0_i32_2 = arith.constant 0 : i32
    return %arg0, %c0_i32, %c0_i32_0, %c0_i32_1 : i32, i32, i32, i32
  }
  func.func @transform_2(%arg0: i32, %arg1: i32) -> (i32, i32, i32) {
    %c0_i32 = arith.constant 0 : i32
    %c0_i32_0 = arith.constant 0 : i32
    %c0_i32_1 = arith.constant 0 : i32
    return %arg0, %c0_i32, %c0_i32_0 : i32, i32, i32
  }
  func.func @transform_3(%arg0: i32, %arg1: i32) -> (i32, i32) {
    %c0_i32 = arith.constant 0 : i32
    %c0_i32_0 = arith.constant 0 : i32
    %c0_i32_1 = arith.constant 0 : i32
    return %c0_i32, %c0_i32_0 : i32, i32
  }
  func.func @transform_4(%arg0: i32, %arg1: i32) -> (i32, i32) {
    %c0_i32 = arith.constant 0 : i32
    %c0_i32_0 = arith.constant 0 : i32
    %c0_i32_1 = arith.constant 0 : i32
    return %c0_i32, %c0_i32_0 : i32, i32
  }
  func.func @transform_5(%arg0: i32, %arg1: i32) -> (i32, i32) {
    %c0_i32 = arith.constant 0 : i32
    %c0_i32_0 = arith.constant 0 : i32
    %c0_i32_1 = arith.constant 0 : i32
    return %c0_i32, %c0_i32_0 : i32, i32
  }
  func.func @transform_6(%arg0: i32, %arg1: i32) -> (i32, i32) {
    %c0_i32 = arith.constant 0 : i32
    %c0_i32_0 = arith.constant 0 : i32
    %c0_i32_1 = arith.constant 0 : i32
    return %c0_i32, %c0_i32_0 : i32, i32
  }
  func.func @transform_7(%arg0: i32, %arg1: i32) -> (i32, i32) {
    %c0_i32 = arith.constant 0 : i32
    %c0_i32_0 = arith.constant 0 : i32
    %c0_i32_1 = arith.constant 0 : i32
    return %c0_i32, %c0_i32_0 : i32, i32
  }
  func.func @transform_8(%arg0: i32, %arg1: i32) -> (i32, i32) {
    %c0_i32 = arith.constant 0 : i32
    %c0_i32_0 = arith.constant 0 : i32
    %c0_i32_1 = arith.constant 0 : i32
    return %c0_i32, %c0_i32_0 : i32, i32
  }
  func.func @transform_9(%arg0: i32, %arg1: i32) -> (i32, i32) {
    %c0_i32 = arith.constant 0 : i32
    %c0_i32_0 = arith.constant 0 : i32
    %c0_i32_1 = arith.constant 0 : i32
    return %c0_i32, %c0_i32_0 : i32, i32
  }
  func.func @transform_10(%arg0: i32, %arg1: i32) -> (i32, i32, i32) {
    %c0_i32 = arith.constant 0 : i32
    %c0_i32_0 = arith.constant 0 : i32
    %c0_i32_1 = arith.constant 0 : i32
    return %arg1, %c0_i32, %c0_i32_0 : i32, i32, i32
  }
  func.func @transform_11(%arg0: i32, %arg1: i32) -> (i32, i32, i32) {
    %c0_i32 = arith.constant 0 : i32
    %c0_i32_0 = arith.constant 0 : i32
    %c0_i32_1 = arith.constant 0 : i32
    return %arg1, %c0_i32, %c0_i32_0 : i32, i32, i32
  }
  func.func @transform_12(%arg0: i32, %arg1: i32) -> (i32, i32, i32) {
    %c0_i32 = arith.constant 0 : i32
    %c0_i32_0 = arith.constant 0 : i32
    %c0_i32_1 = arith.constant 0 : i32
    return %arg1, %c0_i32, %c0_i32_0 : i32, i32, i32
  }
  func.func @transform_13(%arg0: i32, %arg1: i32) -> (i32, i32, i32) {
    %c0_i32 = arith.constant 0 : i32
    %c0_i32_0 = arith.constant 0 : i32
    %c0_i32_1 = arith.constant 0 : i32
    return %arg1, %c0_i32, %c0_i32_0 : i32, i32, i32
  }
  func.func @transform_14(%arg0: i32, %arg1: i32) -> (i32, i32) {
    %c0_i32 = arith.constant 0 : i32
    %c0_i32_0 = arith.constant 0 : i32
    %c0_i32_1 = arith.constant 0 : i32
    return %c0_i32, %c0_i32_0 : i32, i32
  }
  func.func @transform_15(%arg0: i32, %arg1: i32) -> (i32, i32) {
    %c0_i32 = arith.constant 0 : i32
    %c0_i32_0 = arith.constant 0 : i32
    %c0_i32_1 = arith.constant 0 : i32
    return %c0_i32, %c0_i32_0 : i32, i32
  }
  func.func @transform_16(%arg0: i32, %arg1: i32) -> (i32, i32) {
    %c0_i32 = arith.constant 0 : i32
    %c0_i32_0 = arith.constant 0 : i32
    %c0_i32_1 = arith.constant 0 : i32
    return %c0_i32, %c0_i32_0 : i32, i32
  }
  func.func @transform_17(%arg0: i32, %arg1: i32) -> (i32, i32) {
    %c0_i32 = arith.constant 0 : i32
    %c0_i32_0 = arith.constant 0 : i32
    %c0_i32_1 = arith.constant 0 : i32
    return %c0_i32, %c0_i32_0 : i32, i32
  }
  func.func @transform_18(%arg0: i32, %arg1: i32) -> (i32, i32) {
    %c0_i32 = arith.constant 0 : i32
    %c0_i32_0 = arith.constant 0 : i32
    %c0_i32_1 = arith.constant 0 : i32
    return %c0_i32, %c0_i32_0 : i32, i32
  }
  func.func @transform_19(%arg0: i32, %arg1: i32) -> (i32, i32) {
    %c0_i32 = arith.constant 0 : i32
    %c0_i32_0 = arith.constant 0 : i32
    %c0_i32_1 = arith.constant 0 : i32
    return %c0_i32, %c0_i32_0 : i32, i32
  }
  func.func @transform_20(%arg0: i32, %arg1: i32) -> (i32, i32, i32, i32) {
    %c0_i32 = arith.constant 0 : i32
    %c0_i32_0 = arith.constant 0 : i32
    %c0_i32_1 = arith.constant 0 : i32
    %c0_i32_2 = arith.constant 0 : i32
    return %arg0, %c0_i32, %c0_i32_0, %c0_i32_1 : i32, i32, i32, i32
  }
}

</mosaic_0001>

<bundles_post_ra>
// kernel: apfm2_forward.1
= control target key start
LH: loop header
LB: loop body
LE: loop exit
PB: predicated region body
PF: predicated region fallthrough
CT: control target
= control target key end

     0   :  { %s25258_s0 = inlined_call_operand.vmem [shape: f32[2,16,16,32], index: 0, kind: input, shape index: {}]   ;;  %s25259_s1 = inlined_call_operand.vmem [shape: f32[2,16,16,64], index: 1, kind: input, shape index: {}]   ;;  %s25260_s2 = inlined_call_operand.vmem [shape: f32[2,256,1], index: 2, kind: input, shape index: {}]   ;;  %s25261_s3 = inlined_call_operand.vmem [shape: bf16[288,32], index: 3, kind: input, shape index: {}]   ;;  %s25262_s4 = inlined_call_operand.vmem [shape: bf16[576,32], index: 4, kind: input, shape index: {}]   ;;  %s25263_s5 = inlined_call_operand.vmem [shape: f32[1,32], index: 5, kind: input, shape index: {}]   ;;  %s25264_s6 = inlined_call_operand.vmem [shape: bf16[32,128], index: 6, kind: input, shape index: {}]   ;;  %s25265_s7 = inlined_call_operand.vmem [shape: f32[1,128], index: 7, kind: input, shape index: {}]   ;;  %s25266_s8 = inlined_call_operand.vmem [shape: bf16[128,32], index: 8, kind: input, shape index: {}]   ;;  %s25267_s9 = inlined_call_operand.vmem [shape: f32[1,32], index: 9, kind: input, shape index: {}]   ;;  %s25268_s10 = inlined_call_operand.vmem [shape: bf16[12,288,32], index: 10, kind: input, shape index: {}]   ;;  %s25269_s11 = inlined_call_operand.vmem [shape: f32[12,1,32], index: 11, kind: input, shape index: {}]   ;;  %s25270_s12 = inlined_call_operand.vmem [shape: bf16[12,288,32], index: 12, kind: input, shape index: {}]   ;;  %s25271_s13 = inlined_call_operand.vmem [shape: f32[12,1,32], index: 13, kind: input, shape index: {}]   ;;  %s25272_s14 = inlined_call_operand.vmem [shape: bf16[32,128], index: 14, kind: input, shape index: {}]   ;;  %s25273_s15 = inlined_call_operand.vmem [shape: f32[1,128], index: 15, kind: input, shape index: {}]   ;;  %s25274_s16 = inlined_call_operand.vmem [shape: bf16[128,32], index: 16, kind: input, shape index: {}]   ;;  %s25275_s17 = inlined_call_operand.vmem [shape: f32[1,32], index: 17, kind: input, shape index: {}]   ;;  %s25276_s18 = inlined_call_operand.vmem [shape: bf16[288,32], index: 18, kind: input, shape index: {}]   ;;  %s25277_s19 = inlined_call_operand.vmem [shape: f32[1,32], index: 19, kind: input, shape index: {}]   ;;  %s25278_s20 = inlined_call_operand.hbm [shape: f32[2,16,16,32], index: 20, kind: output, shape index: {}]  }
   0x1   :  { %25307 = sst [smem:[#allocation28_spill]] %s25258_s0 }
   0x2   :  { %25308 = sst [smem:[#allocation29_spill]] %s25259_s1 }
   0x3   :  { %25309 = sst [smem:[#allocation30_spill]] %s25260_s2 }
   0x4   :  { %25310 = sst [smem:[#allocation31_spill]] %s25261_s3 }
   0x5   :  { %25311 = sst [smem:[#allocation32_spill]] %s25262_s4 }
   0x6   :  { %25312 = sst [smem:[#allocation33_spill]] %s25272_s14 }
   0x7   :  { %25313 = sst [smem:[#allocation34_spill]] %s25273_s15 }
   0x8   :  { %25314 = sst [smem:[#allocation35_spill]] %s25274_s16 }
   0x9   :  { %25315 = sst [smem:[#allocation36_spill]] %s25275_s17 }
   0xa   :  { %25316 = sst [smem:[#allocation37_spill]] %s25276_s18 }
   0xb   :  { %25317 = sst [smem:[#allocation38_spill]] %s25277_s19 }
   0xc   :  { %25318 = sst [smem:[#allocation39_spill]] %s25278_s20 }
   0xd   :  { %25 = vsyncpa [#allocation7], 0 }
   0xe   :  { %27 = vsyncpa [#allocation7 + $0x1], 0  ;;  %s21627_s1 = smov 0   ;;  %s21629_s22 = smov 0  }
   0xf   :  { %s21631_s23 = smov 0   ;;  %s21633_s24 = smov 0  }
  0x10   :  { %s21635_s2 = smov 0   ;;  %s21637_s25 = smov 0  }
  0x11   :  { %s21639_s3 = smov 0   ;;  %s21641_s26 = smov 0  }
  0x12 LB: > { %25319 = sst [smem:[#allocation9_spill]] %s21486_s1  ;;  %s16308_s27 = sadd.s32 4294967295, %s21514_s26   ;;  %s21514_s26 = sphi %s21641_s26, %s33_s26   ;;  %s21510_s3 = sphi %s21639_s3, %s25375_s3   ;;  %s21506_s25 = sphi %s21637_s25, %s25374_s25   ;;  %s21502_s2 = sphi %s21635_s2, %s25373_s2   ;;  %s21498_s24 = sphi %s21633_s24, %s25372_s24   ;;  %s21494_s23 = sphi %s21631_s23, %s25371_s23   ;;  %s21490_s22 = sphi %s21629_s22, %s25370_s22   ;;  %s21486_s1 = sphi %s21627_s1, %s25369_s1  }
  0x13   : > { %25320 = sst [smem:[#allocation10_spill]] %s21490_s22  ;;  %s16309_s28 = sadd.s32 4294967294, %s21514_s26  }
  0x14   : > { %25321 = sst [smem:[#allocation11_spill]] %s21494_s23  ;;  %s42_s4 = sadd.s32 1, %s21506_s25 }
  0x15   : > { %25322 = sst [smem:[#allocation12_spill]] %s21502_s2  ;;  %p43_p0 = scmp.ge.s32.totalorder %s42_s4, 12 }
  0x16   : > { %25323 = sst [smem:[#allocation13_spill]] %s21506_s25  ;;  %s45_s29 = sadd.s32 1, %s21510_s3 }
  0x17   : > { %25324 = sst [smem:[#allocation14_spill]] %s21510_s3  ;;  %p517_p1 = scmp.ne.s32.totalorder %s21494_s23, %s21490_s22 }
  0x18   : > { %25325 = sst [smem:[#allocation15_spill]] %s21514_s26  ;;  %p518_p2 = scmp.eq.s32.totalorder %s16308_s27, 23 }
  0x19   : > { %s25377_s4 = smov (%p43_p0, %s42_s4), 0  ;;  %s25379_s29 = smov (!%p43_p0, %s45_s29), %s21510_s3 }
  0x1a   : > { %25326 = sst [smem:[#allocation16_spill]] %s25377_s4  ;;  %p21676_p3 = por %p518_p2, %p517_p1 }
  0x1b   : > { %p523_p4 = scmp.ne.s32.totalorder %s21490_s22, %s21486_s1  ;;  %p47_p5 = scmp.ge.s32.totalorder %s25379_s29, 2 }
  0x1c   : > { %s25327_s30 = scalar_select %p21676_p3, 1, 0 }
  0x1d   : > { %p524_p6 = scmp.eq.s32.totalorder %s16309_s28, 23  ;;  %p16312_p7 = scmp.ge.s32.totalorder %s21514_s26, 1 }
  0x1e   : > { %25328 = sst [smem:[#allocation17_spill]] %s25327_s30  ;;  %p633_p8 = scmp.lt.s32.totalorder %s21514_s26, 25 }
  0x1f   : > { %s25381_s29 = smov (%p47_p5, %s25379_s29), 0  ;;  %p21686_p9 = por %p524_p6, %p523_p4 }
  0x20   : > { %25329 = sst [smem:[#allocation18_spill]] %s25381_s29  ;;  %p634_p10 = pnand %p16312_p7, %p633_p8 }
  0x21   : > { %s25330_s0 = scalar_select %p21686_p9, 1, 0 }
  0x22   : > { %s504_s21 = ssub.s32 %s21510_s3, %s25381_s29  ;;  %s507_s27 = sadd.s32 1, %s21494_s23 }
  0x23   : > { %25331 = sst [smem:[#allocation19_spill]] %s25330_s0  ;;  %p505_p11 = scmp.eq.s32.totalorder %s504_s21, 0 }
  0x24   : > { %637 = sbr.rel (%p634_p10) target bundleno = 4017 (0xfb1), region = 100  ;;  %s25293_s28 = sand.u32 (!%p634_p10), 1, %s21490_s22  }
  0x25   : > { %s21694_s4 = scalar_select %p505_p11, %s21494_s23, %s507_s27  }
  0x26   : > { %p717_p12 = scmp.lt.s32.totalorder (!%p634_p10), %s21502_s2, 1  ;;  %s16313_s25 = sshll.u32 (!%p634_p10), %s25293_s28, 8 }
  0x27   : > { %25332 = sst [smem:[#allocation20_spill]] %s21694_s4  ;;  %p732_p13 = scmp.lt.s32.totalorder (!%p634_p10), %s21498_s24, 11 }
  0x28   : > { %s25333_s3 = sld [smem:[#allocation28_spill]] (!%p634_p10)  ;;  %s25334_s20 = sld [smem:[#allocation29_spill]] (!%p634_p10) }
  0x29   : > { %s25335_s19 = sld [smem:[#allocation30_spill]] (!%p634_p10)  ;;  %p16322_p0 = scmp.ne.s32.totalorder (!%p634_p10), %s21498_s24, 0 }
  0x2b   : > { %s718_s1 = scalar_select %p717_p12, %s21502_s2, 1 }
  0x2c   : > { %s21703_s0 = scalar_select %p732_p13, %s21498_s24, 11 }
  0x2d   : > { %s17201_s21 = sshll.u32 %s718_s1, 8  ;;  %752 = sbr.rel (%p16322_p0) target bundleno = 1437 (0x59d), region = 104 }
  0x2e   : > { %s21708_s4 = scalar_lea.vmem %s25333_s3, %s17201_s21  ;;  %s21713_s30 = scalar_lea.vmem %s25334_s20, %s17201_s21 }
  0x2f   : > { %s21718_s2 = scalar_lea.vmem %s25335_s19, %s17201_s21  ;;  %s21207_s17 = smul.u32 144, %s21703_s0 }
  0x30   : > { %s739_s1 = scalar_lea.vmem %s25269_s11, %s21703_s0  ;;  %s747_s3 = scalar_lea.vmem %s25271_s13, %s21703_s0 }
  0x31   : > { %s21732_s23 = scalar_lea.vmem %s25268_s10, %s21207_s17  ;;  %s21737_s22 = scalar_lea.vmem %s25270_s12, %s21207_s17 }
  0x32   : > { %s21739_s19 = scalar_lea.vmem [#allocation6], %s16313_s25 }
  0x34   : > { %s25336_s28 = sld [smem:[#allocation31_spill]]  ;;  %vm753_vm0 = vcmask 261120   ;;  %v25298_v3 = vmov 0.0   ;;  %vm756_vm1 = vcmask 254976   ;;  %vm863_vm2 = vcmask 523264   ;;  %v919_v5 = vld [vmem:[%s21708_s4] sm:$0xff] }
  0x35   : > { %754 = vst.msk [vmem:[#allocation2] sm:$0xff] %vm753_vm0, %v25298_v3  ;;  %755 = vst.msk [vmem:[#allocation2 + $0x8] sm:$0xff] %vm753_vm0, %v25298_v3  ;;  %v920_v6 = vld [vmem:[%s21708_s4 + $0x8] sm:$0xff]  ;;  %v921_v7 = vld [vmem:[%s21708_s4 + $0x10] sm:$0xff]  ;;  %vm866_vm3 = vcmask 517120   ;;  %s25337_s26 = sld [smem:[#allocation32_spill]] }
  0x36   : > { %809 = vst.msk [vmem:[#allocation3] sm:$0xff] %vm753_vm0, %v25298_v3  ;;  %810 = vst.msk [vmem:[#allocation3 + $0x8] sm:$0xff] %vm753_vm0, %v25298_v3  ;;  %v922_v8 = vld [vmem:[%s21708_s4 + $0x18] sm:$0xff]  ;;  %v923_v10 = vld [vmem:[%s21708_s4 + $0x20] sm:$0xff]  ;;  %vm21518_vm4 = vmmov 0   ;;  %vm7161_vm5 = vcmask 253952  }
  0x37   : > { %812 = vst.msk [vmem:[#allocation3 + $0x18] sm:$0xff] %vm753_vm0, %v25298_v3  ;;  %813 = vst.msk [vmem:[#allocation3 + $0x20] sm:$0xff] %vm753_vm0, %v25298_v3  ;;  %v924_v11 = vld [vmem:[%s21708_s4 + $0x28] sm:$0xff]  ;;  %v925_v12 = vld [vmem:[%s21708_s4 + $0x30] sm:$0xff] }
  0x38   : > { %815 = vst.msk [vmem:[#allocation3 + $0x30] sm:$0xff] %vm753_vm0, %v25298_v3  ;;  %816 = vst.msk [vmem:[#allocation3 + $0x38] sm:$0xff] %vm753_vm0, %v25298_v3  ;;  %v926_v13 = vld [vmem:[%s21708_s4 + $0x38] sm:$0xff]  ;;  %v927_v16 = vld [vmem:[%s21708_s4 + $0x40] sm:$0xff] }
  0x39   : > { %818 = vst.msk [vmem:[#allocation3 + $0x48] sm:$0xff] %vm753_vm0, %v25298_v3  ;;  %819 = vst.msk [vmem:[#allocation3 + $0x50] sm:$0xff] %vm753_vm0, %v25298_v3  ;;  %v928_v17 = vld [vmem:[%s21708_s4 + $0x48] sm:$0xff]  ;;  %v984_v45 = vld [vmem:[%s21713_s30] sm:$0xff] }
  0x3a   : > { %v21745_v0 = vld [vmem:[%s25336_s28 + $0x10] sm:$0xff]   ;;  %v21750_v1 = vld [vmem:[%s25336_s28 + $0x80] sm:$0xff]   ;;  %v21756_v2 = vld [vmem:[%s25336_s28 + $0x18] sm:$0xff]   ;;  %821 = vst.msk [vmem:[#allocation3 + $0x60] sm:$0xff] %vm753_vm0, %v25298_v3 }
  0x3b   : > { %18087 = vmatprep.subr.bf16.mxu1 %v21745_v0  ;;  %822 = vst.msk [vmem:[#allocation3 + $0x68] sm:$0xff] %vm753_vm0, %v25298_v3  ;;  %824 = vst.msk [vmem:[#allocation3 + $0x78] sm:$0xff] %vm753_vm0, %v25298_v3  ;;  %18375 = vmatprep.subr.bf16.mxu0 %v21750_v1  ;;  %v21907_v4 = vld [vmem:[%s25336_s28 + $0x88] sm:$0xff]   ;;  %s25338_s15 = smov %s25337_s26  ;;  %v21290_v9 = vld [vmem:[%s25337_s26 + $0x20] sm:$0xff]  }
  0x3c   : > { %825 = vst.msk [vmem:[#allocation3 + $0x80] sm:$0xff] %vm753_vm0, %v25298_v3  ;;  %827 = vst.msk [vmem:[#allocation3 + $0x90] sm:$0xff] %vm753_vm0, %v25298_v3  ;;  %18088 = vmatpush3.bf16.msra.mxu1 %v21745_v0  ;;  %18376 = vmatpush3.bf16.msra.mxu0 %v21750_v1  ;;  %v1102_v14 = vld [vmem:[#allocation2 + $0x1] sm:$0xff]  ;;  %v21292_v39 = vld [vmem:[%s25338_s15 + $0x30] sm:$0xff]  }
  0x3d   : > { %828 = vst.msk [vmem:[#allocation3 + $0x98] sm:$0xff] %vm753_vm0, %v25298_v3  ;;  %830 = vst.msk [vmem:[#allocation3 + $0xa8] sm:$0xff] %vm753_vm0, %v25298_v3  ;;  %18089 = vmatprep.subr.bf16.mxu1 %v21756_v2  ;;  %18377 = vmatprep.subr.bf16.mxu0 %v21907_v4  ;;  %v21291_v31 = vld [vmem:[%s25338_s15 + $0x28] sm:$0xff]   ;;  %v929_v48 = vld [vmem:[%s21708_s4 + $0x50] sm:$0xff] }
  0x3e   : > { %831 = vst.msk [vmem:[#allocation3 + $0xb0] sm:$0xff] %vm753_vm0, %v25298_v3  ;;  %833 = vst.msk [vmem:[#allocation3 + $0xc0] sm:$0xff] %vm753_vm0, %v25298_v3  ;;  %v985_v47 = vld [vmem:[%s21713_s30 + $0x8] sm:$0xff]  ;;  %v930_v49 = vld [vmem:[%s21708_s4 + $0x58] sm:$0xff] }
  0x3f   : > { %834 = vst.msk [vmem:[#allocation3 + $0xc8] sm:$0xff] %vm753_vm0, %v25298_v3  ;;  %836 = vst.msk [vmem:[#allocation3 + $0xd8] sm:$0xff] %vm753_vm0, %v25298_v3  ;;  %v21293_v51 = vld [vmem:[%s25338_s15 + $0x38] sm:$0xff]   ;;  %v931_v52 = vld [vmem:[%s21708_s4 + $0x60] sm:$0xff] }
  0x40   : > { %837 = vst.msk [vmem:[#allocation3 + $0xe0] sm:$0xff] %vm753_vm0, %v25298_v3  ;;  %839 = vst.msk [vmem:[#allocation3 + $0xf0] sm:$0xff] %vm753_vm0, %v25298_v3  ;;  %18090 = vmatpush3.bf16.msra.mxu1 %v21756_v2  ;;  %18378 = vmatpush3.bf16.msra.mxu0 %v21907_v4  ;;  %v932_v53 = vld [vmem:[%s21708_s4 + $0x68] sm:$0xff]  ;;  %v986_v54 = vld [vmem:[%s21713_s30 + $0x10] sm:$0xff] }
  0x41   : > { %840 = vst.msk [vmem:[#allocation3 + $0xf8] sm:$0xff] %vm753_vm0, %v25298_v3  ;;  %842 = vst.msk [vmem:[#allocation3 + $0x108] sm:$0xff] %vm753_vm0, %v25298_v3  ;;  %18411 = vmatprep.subr.bf16.mxu0 %v21290_v9  ;;  %v987_v58 = vld [vmem:[%s21713_s30 + $0x18] sm:$0xff]  ;;  %v988_v59 = vld [vmem:[%s21713_s30 + $0x20] sm:$0xff] }
  0x42   : > { %843 = vst.msk [vmem:[#allocation3 + $0x110] sm:$0xff] %vm753_vm0, %v25298_v3  ;;  %845 = vst.msk [vmem:[#allocation3 + $0x120] sm:$0xff] %vm753_vm0, %v25298_v3  ;;  %v989_v60 = vld [vmem:[%s21713_s30 + $0x28] sm:$0xff]  ;;  %v21295_v61 = vld [vmem:[%s25336_s28] sm:$0xff]  }
  0x43   : > { %846 = vst.msk [vmem:[#allocation3 + $0x128] sm:$0xff] %vm753_vm0, %v25298_v3  ;;  %848 = vst.msk [vmem:[#allocation3 + $0x138] sm:$0xff] %vm753_vm0, %v25298_v3  ;;  %v933_v62 = vld [vmem:[%s21708_s4 + $0x70] sm:$0xff]  ;;  %v934_v63 = vld [vmem:[%s21708_s4 + $0x78] sm:$0xff]  ;;  %18123 = vmatprep.subr.bf16.mxu1 %v21295_v61 }
  0x44   : > { %849 = vst.msk [vmem:[#allocation3 + $0x140] sm:$0xff] %vm753_vm0, %v25298_v3  ;;  %851 = vst.msk [vmem:[#allocation3 + $0x150] sm:$0xff] %vm753_vm0, %v25298_v3  ;;  %v935_v0 = vld [vmem:[%s21708_s4 + $0x80] sm:$0xff]  ;;  %v936_v1 = vld [vmem:[%s21708_s4 + $0x88] sm:$0xff] }
  0x45   : > { %852 = vst.msk [vmem:[#allocation3 + $0x158] sm:$0xff] %vm753_vm0, %v25298_v3  ;;  %854 = vst.msk [vmem:[#allocation3 + $0x168] sm:$0xff] %vm753_vm0, %v25298_v3  ;;  %v990_v2 = vld [vmem:[%s21713_s30 + $0x30] sm:$0xff]  ;;  %v991_v4 = vld [vmem:[%s21713_s30 + $0x38] sm:$0xff] }
  0x46   : > { %855 = vst.msk [vmem:[#allocation3 + $0x170] sm:$0xff] %vm753_vm0, %v25298_v3  ;;  %857 = vst.msk [vmem:[#allocation3 + $0x180] sm:$0xff] %vm753_vm0, %v25298_v3 }
  0x47   : > { %858 = vst.msk [vmem:[#allocation3 + $0x188] sm:$0xff] %vm753_vm0, %v25298_v3  ;;  %860 = vst.msk [vmem:[#allocation3 + $0x198] sm:$0xff] %vm753_vm0, %v25298_v3 }
  0x48   : > { %861 = vst.msk [vmem:[#allocation3 + $0x1a0] sm:$0xff] %vm753_vm0, %v25298_v3  ;;  %758 = vst.msk [vmem:[#allocation2 + $0x18] sm:$0xff] %vm753_vm0, %v25298_v3 }
  0x49   : > { %759 = vst.msk [vmem:[#allocation2 + $0x20] sm:$0xff] %vm753_vm0, %v25298_v3  ;;  %761 = vst.msk [vmem:[#allocation2 + $0x30] sm:$0xff] %vm753_vm0, %v25298_v3 }
  0x4a   : > { %762 = vst.msk [vmem:[#allocation2 + $0x38] sm:$0xff] %vm753_vm0, %v25298_v3  ;;  %764 = vst.msk [vmem:[#allocation2 + $0x48] sm:$0xff] %vm753_vm0, %v25298_v3 }
  0x4b   : > { %765 = vst.msk [vmem:[#allocation2 + $0x50] sm:$0xff] %vm753_vm0, %v25298_v3  ;;  %767 = vst.msk [vmem:[#allocation2 + $0x60] sm:$0xff] %vm753_vm0, %v25298_v3 }
  0x4c   : > { %768 = vst.msk [vmem:[#allocation2 + $0x68] sm:$0xff] %vm753_vm0, %v25298_v3  ;;  %770 = vst.msk [vmem:[#allocation2 + $0x78] sm:$0xff] %vm753_vm0, %v25298_v3 }
  0x4d   : > { %771 = vst.msk [vmem:[#allocation2 + $0x80] sm:$0xff] %vm753_vm0, %v25298_v3  ;;  %773 = vst.msk [vmem:[#allocation2 + $0x90] sm:$0xff] %vm753_vm0, %v25298_v3 }
  0x4e   : > { %774 = vst.msk [vmem:[#allocation2 + $0x98] sm:$0xff] %vm753_vm0, %v25298_v3  ;;  %776 = vst.msk [vmem:[#allocation2 + $0xa8] sm:$0xff] %vm753_vm0, %v25298_v3 }
  0x4f   : > { %777 = vst.msk [vmem:[#allocation2 + $0xb0] sm:$0xff] %vm753_vm0, %v25298_v3  ;;  %779 = vst.msk [vmem:[#allocation2 + $0xc0] sm:$0xff] %vm753_vm0, %v25298_v3 }
  0x50   : > { %780 = vst.msk [vmem:[#allocation2 + $0xc8] sm:$0xff] %vm753_vm0, %v25298_v3  ;;  %782 = vst.msk [vmem:[#allocation2 + $0xd8] sm:$0xff] %vm753_vm0, %v25298_v3 }
  0x51   : > { %783 = vst.msk [vmem:[#allocation2 + $0xe0] sm:$0xff] %vm753_vm0, %v25298_v3  ;;  %785 = vst.msk [vmem:[#allocation2 + $0xf0] sm:$0xff] %vm753_vm0, %v25298_v3 }
  0x52   : > { %786 = vst.msk [vmem:[#allocation2 + $0xf8] sm:$0xff] %vm753_vm0, %v25298_v3  ;;  %788 = vst.msk [vmem:[#allocation2 + $0x108] sm:$0xff] %vm753_vm0, %v25298_v3 }
  0x53   : > { %789 = vst.msk [vmem:[#allocation2 + $0x110] sm:$0xff] %vm753_vm0, %v25298_v3  ;;  %791 = vst.msk [vmem:[#allocation2 + $0x120] sm:$0xff] %vm753_vm0, %v25298_v3 }
  0x54   : > { %792 = vst.msk [vmem:[#allocation2 + $0x128] sm:$0xff] %vm753_vm0, %v25298_v3  ;;  %794 = vst.msk [vmem:[#allocation2 + $0x138] sm:$0xff] %vm753_vm0, %v25298_v3 }
  0x55   : > { %795 = vst.msk [vmem:[#allocation2 + $0x140] sm:$0xff] %vm753_vm0, %v25298_v3  ;;  %797 = vst.msk [vmem:[#allocation2 + $0x150] sm:$0xff] %vm753_vm0, %v25298_v3 }
  0x56   : > { %798 = vst.msk [vmem:[#allocation2 + $0x158] sm:$0xff] %vm753_vm0, %v25298_v3  ;;  %800 = vst.msk [vmem:[#allocation2 + $0x168] sm:$0xff] %vm753_vm0, %v25298_v3 }
  0x57   : > { %801 = vst.msk [vmem:[#allocation2 + $0x170] sm:$0xff] %vm753_vm0, %v25298_v3  ;;  %803 = vst.msk [vmem:[#allocation2 + $0x180] sm:$0xff] %vm753_vm0, %v25298_v3 }
  0x58   : > { %804 = vst.msk [vmem:[#allocation2 + $0x188] sm:$0xff] %vm753_vm0, %v25298_v3  ;;  %806 = vst.msk [vmem:[#allocation2 + $0x198] sm:$0xff] %vm753_vm0, %v25298_v3 }
  0x59   : > { %807 = vst.msk [vmem:[#allocation2 + $0x1a0] sm:$0xff] %vm753_vm0, %v25298_v3  ;;  %952 = vst.msk [vmem:[#allocation2 + $0x19] sm:$0xff] %vm753_vm0, %v919_v5  ;;  %v21294_v5 = vld [vmem:[%s25338_s15] sm:$0xff]  }
  0x5a   : > { %757 = vst.msk [vmem:[#allocation2 + $0x10] sm:$0x3] %vm756_vm1, %v25298_v3  ;;  %811 = vst.msk [vmem:[#allocation3 + $0x10] sm:$0x3] %vm756_vm1, %v25298_v3 }
  0x5b   : > { %814 = vst.msk [vmem:[#allocation3 + $0x28] sm:$0x3] %vm756_vm1, %v25298_v3  ;;  %817 = vst.msk [vmem:[#allocation3 + $0x40] sm:$0x3] %vm756_vm1, %v25298_v3 }
  0x5c   : > { %820 = vst.msk [vmem:[#allocation3 + $0x58] sm:$0x3] %vm756_vm1, %v25298_v3  ;;  %823 = vst.msk [vmem:[#allocation3 + $0x70] sm:$0x3] %vm756_vm1, %v25298_v3 }
  0x5d   : > { %826 = vst.msk [vmem:[#allocation3 + $0x88] sm:$0x3] %vm756_vm1, %v25298_v3  ;;  %829 = vst.msk [vmem:[#allocation3 + $0xa0] sm:$0x3] %vm756_vm1, %v25298_v3 }
  0x5e   : > { %832 = vst.msk [vmem:[#allocation3 + $0xb8] sm:$0x3] %vm756_vm1, %v25298_v3  ;;  %835 = vst.msk [vmem:[#allocation3 + $0xd0] sm:$0x3] %vm756_vm1, %v25298_v3 }
  0x5f   : > { %838 = vst.msk [vmem:[#allocation3 + $0xe8] sm:$0x3] %vm756_vm1, %v25298_v3  ;;  %841 = vst.msk [vmem:[#allocation3 + $0x100] sm:$0x3] %vm756_vm1, %v25298_v3 }
  0x60   : > { %844 = vst.msk [vmem:[#allocation3 + $0x118] sm:$0x3] %vm756_vm1, %v25298_v3  ;;  %847 = vst.msk [vmem:[#allocation3 + $0x130] sm:$0x3] %vm756_vm1, %v25298_v3  ;;  %v1104_v19 = vld [vmem:[#allocation2 + $0x19] sm:$0xff] }
  0x61   : > { %850 = vst.msk [vmem:[#allocation3 + $0x148] sm:$0x3] %vm756_vm1, %v25298_v3  ;;  %853 = vst.msk [vmem:[#allocation3 + $0x160] sm:$0x3] %vm756_vm1, %v25298_v3  ;;  %v1103_v15 = vld [vmem:[#allocation2 + $0x9] sm:$0xff] }
  0x62   : > { %856 = vst.msk [vmem:[#allocation3 + $0x178] sm:$0x3] %vm756_vm1, %v25298_v3  ;;  %859 = vst.msk [vmem:[#allocation3 + $0x190] sm:$0x3] %vm756_vm1, %v25298_v3  ;;  %v1134_v18 = vpack.c.bf16 %v1103_v15, %v1102_v14 }
  0x63   : > { %862 = vst.msk [vmem:[#allocation3 + $0x1a8] sm:$0x3] %vm756_vm1, %v25298_v3  ;;  %760 = vst.msk [vmem:[#allocation2 + $0x28] sm:$0x3] %vm756_vm1, %v25298_v3 }
  0x64   : > { %763 = vst.msk [vmem:[#allocation2 + $0x40] sm:$0x3] %vm756_vm1, %v25298_v3  ;;  %766 = vst.msk [vmem:[#allocation2 + $0x58] sm:$0x3] %vm756_vm1, %v25298_v3  ;;  %18091 = vmatprep.mubr.msk.bf16.mxu1 %vm753_vm0, %v1134_v18 }
  0x65   : > { %769 = vst.msk [vmem:[#allocation2 + $0x70] sm:$0x3] %vm756_vm1, %v25298_v3  ;;  %772 = vst.msk [vmem:[#allocation2 + $0x88] sm:$0x3] %vm756_vm1, %v25298_v3 }
  0x66   : > { %775 = vst.msk [vmem:[#allocation2 + $0xa0] sm:$0x3] %vm756_vm1, %v25298_v3  ;;  %778 = vst.msk [vmem:[#allocation2 + $0xb8] sm:$0x3] %vm756_vm1, %v25298_v3 }
  0x67   : > { %781 = vst.msk [vmem:[#allocation2 + $0xd0] sm:$0x3] %vm756_vm1, %v25298_v3  ;;  %784 = vst.msk [vmem:[#allocation2 + $0xe8] sm:$0x3] %vm756_vm1, %v25298_v3 }
  0x68   : > { %787 = vst.msk [vmem:[#allocation2 + $0x100] sm:$0x3] %vm756_vm1, %v25298_v3  ;;  %790 = vst.msk [vmem:[#allocation2 + $0x118] sm:$0x3] %vm756_vm1, %v25298_v3 }
  0x69   : > { %793 = vst.msk [vmem:[#allocation2 + $0x130] sm:$0x3] %vm756_vm1, %v25298_v3  ;;  %796 = vst.msk [vmem:[#allocation2 + $0x148] sm:$0x3] %vm756_vm1, %v25298_v3 }
  0x6a   : > { %799 = vst.msk [vmem:[#allocation2 + $0x160] sm:$0x3] %vm756_vm1, %v25298_v3  ;;  %802 = vst.msk [vmem:[#allocation2 + $0x178] sm:$0x3] %vm756_vm1, %v25298_v3 }
  0x6b   : > { %805 = vst.msk [vmem:[#allocation2 + $0x190] sm:$0x3] %vm756_vm1, %v25298_v3  ;;  %808 = vst.msk [vmem:[#allocation2 + $0x1a8] sm:$0x3] %vm756_vm1, %v25298_v3 }
  0x6c   : > { %864 = vst.msk [vmem:[#allocation4] sm:$0xff] %vm863_vm2, %v25298_v3  ;;  %865 = vst.msk [vmem:[#allocation4 + $0x8] sm:$0xff] %vm863_vm2, %v25298_v3 }
  0x6d   : > { %868 = vst.msk [vmem:[#allocation4 + $0x18] sm:$0xff] %vm863_vm2, %v25298_v3  ;;  %869 = vst.msk [vmem:[#allocation4 + $0x20] sm:$0xff] %vm863_vm2, %v25298_v3 }
  0x6e   : > { %871 = vst.msk [vmem:[#allocation4 + $0x30] sm:$0xff] %vm863_vm2, %v25298_v3  ;;  %872 = vst.msk [vmem:[#allocation4 + $0x38] sm:$0xff] %vm863_vm2, %v25298_v3 }
  0x6f   : > { %874 = vst.msk [vmem:[#allocation4 + $0x48] sm:$0xff] %vm863_vm2, %v25298_v3  ;;  %875 = vst.msk [vmem:[#allocation4 + $0x50] sm:$0xff] %vm863_vm2, %v25298_v3 }
  0x70   : > { %877 = vst.msk [vmem:[#allocation4 + $0x60] sm:$0xff] %vm863_vm2, %v25298_v3  ;;  %878 = vst.msk [vmem:[#allocation4 + $0x68] sm:$0xff] %vm863_vm2, %v25298_v3 }
  0x71   : > { %880 = vst.msk [vmem:[#allocation4 + $0x78] sm:$0xff] %vm863_vm2, %v25298_v3  ;;  %881 = vst.msk [vmem:[#allocation4 + $0x80] sm:$0xff] %vm863_vm2, %v25298_v3 }
  0x72   : > { %883 = vst.msk [vmem:[#allocation4 + $0x90] sm:$0xff] %vm863_vm2, %v25298_v3  ;;  %884 = vst.msk [vmem:[#allocation4 + $0x98] sm:$0xff] %vm863_vm2, %v25298_v3 }
  0x73   : > { %886 = vst.msk [vmem:[#allocation4 + $0xa8] sm:$0xff] %vm863_vm2, %v25298_v3  ;;  %887 = vst.msk [vmem:[#allocation4 + $0xb0] sm:$0xff] %vm863_vm2, %v25298_v3  ;;  %v3826_v43 = vld [vmem:[#allocation4 + $0x1] sm:$0xff] }
  0x74   : > { %889 = vst.msk [vmem:[#allocation4 + $0xc0] sm:$0xff] %vm863_vm2, %v25298_v3  ;;  %890 = vst.msk [vmem:[#allocation4 + $0xc8] sm:$0xff] %vm863_vm2, %v25298_v3 }
  0x75   : > { %892 = vst.msk [vmem:[#allocation4 + $0xd8] sm:$0xff] %vm863_vm2, %v25298_v3  ;;  %893 = vst.msk [vmem:[#allocation4 + $0xe0] sm:$0xff] %vm863_vm2, %v25298_v3 }
  0x76   : > { %895 = vst.msk [vmem:[#allocation4 + $0xf0] sm:$0xff] %vm863_vm2, %v25298_v3  ;;  %896 = vst.msk [vmem:[#allocation4 + $0xf8] sm:$0xff] %vm863_vm2, %v25298_v3 }
  0x77   : > { %898 = vst.msk [vmem:[#allocation4 + $0x108] sm:$0xff] %vm863_vm2, %v25298_v3  ;;  %899 = vst.msk [vmem:[#allocation4 + $0x110] sm:$0xff] %vm863_vm2, %v25298_v3 }
  0x78   : > { %901 = vst.msk [vmem:[#allocation4 + $0x120] sm:$0xff] %vm863_vm2, %v25298_v3  ;;  %902 = vst.msk [vmem:[#allocation4 + $0x128] sm:$0xff] %vm863_vm2, %v25298_v3 }
  0x79   : > { %904 = vst.msk [vmem:[#allocation4 + $0x138] sm:$0xff] %vm863_vm2, %v25298_v3  ;;  %905 = vst.msk [vmem:[#allocation4 + $0x140] sm:$0xff] %vm863_vm2, %v25298_v3 }
  0x7a   : > { %907 = vst.msk [vmem:[#allocation4 + $0x150] sm:$0xff] %vm863_vm2, %v25298_v3  ;;  %908 = vst.msk [vmem:[#allocation4 + $0x158] sm:$0xff] %vm863_vm2, %v25298_v3 }
  0x7b   : > { %910 = vst.msk [vmem:[#allocation4 + $0x168] sm:$0xff] %vm863_vm2, %v25298_v3  ;;  %911 = vst.msk [vmem:[#allocation4 + $0x170] sm:$0xff] %vm863_vm2, %v25298_v3 }
  0x7c   : > { %913 = vst.msk [vmem:[#allocation4 + $0x180] sm:$0xff] %vm863_vm2, %v25298_v3  ;;  %914 = vst.msk [vmem:[#allocation4 + $0x188] sm:$0xff] %vm863_vm2, %v25298_v3 }
  0x7d   : > { %916 = vst.msk [vmem:[#allocation4 + $0x198] sm:$0xff] %vm863_vm2, %v25298_v3  ;;  %917 = vst.msk [vmem:[#allocation4 + $0x1a0] sm:$0xff] %vm863_vm2, %v25298_v3 }
  0x7e   : > { %953 = vst.msk [vmem:[#allocation2 + $0x21] sm:$0xff] %vm753_vm0, %v920_v6  ;;  %954 = vst.msk [vmem:[#allocation2 + $0x31] sm:$0xff] %vm753_vm0, %v921_v7 }
  0x7f   : > { %867 = vst.msk [vmem:[#allocation4 + $0x10] sm:$0x3] %vm866_vm3, %v25298_v3  ;;  %870 = vst.msk [vmem:[#allocation4 + $0x28] sm:$0x3] %vm866_vm3, %v25298_v3 }
  0x80   : > { %873 = vst.msk [vmem:[#allocation4 + $0x40] sm:$0x3] %vm866_vm3, %v25298_v3  ;;  %876 = vst.msk [vmem:[#allocation4 + $0x58] sm:$0x3] %vm866_vm3, %v25298_v3 }
  0x81   : > { %879 = vst.msk [vmem:[#allocation4 + $0x70] sm:$0x3] %vm866_vm3, %v25298_v3  ;;  %882 = vst.msk [vmem:[#allocation4 + $0x88] sm:$0x3] %vm866_vm3, %v25298_v3 }
  0x82   : > { %885 = vst.msk [vmem:[#allocation4 + $0xa0] sm:$0x3] %vm866_vm3, %v25298_v3  ;;  %888 = vst.msk [vmem:[#allocation4 + $0xb8] sm:$0x3] %vm866_vm3, %v25298_v3 }
  0x83   : > { %891 = vst.msk [vmem:[#allocation4 + $0xd0] sm:$0x3] %vm866_vm3, %v25298_v3  ;;  %894 = vst.msk [vmem:[#allocation4 + $0xe8] sm:$0x3] %vm866_vm3, %v25298_v3 }
  0x84   : > { %897 = vst.msk [vmem:[#allocation4 + $0x100] sm:$0x3] %vm866_vm3, %v25298_v3  ;;  %900 = vst.msk [vmem:[#allocation4 + $0x118] sm:$0x3] %vm866_vm3, %v25298_v3 }
  0x85   : > { %903 = vst.msk [vmem:[#allocation4 + $0x130] sm:$0x3] %vm866_vm3, %v25298_v3  ;;  %906 = vst.msk [vmem:[#allocation4 + $0x148] sm:$0x3] %vm866_vm3, %v25298_v3  ;;  %v1105_v20 = vld [vmem:[#allocation2 + $0x21] sm:$0xff]  ;;  %v1106_v21 = vld [vmem:[#allocation2 + $0x31] sm:$0xff] }
  0x86   : > { %909 = vst.msk [vmem:[#allocation4 + $0x160] sm:$0x3] %vm866_vm3, %v25298_v3  ;;  %912 = vst.msk [vmem:[#allocation4 + $0x178] sm:$0x3] %vm866_vm3, %v25298_v3  ;;  %v1135_v22 = vpack.c.bf16 %v1105_v20, %v1104_v19  ;;  %v3827_v44 = vld [vmem:[#allocation4 + $0x9] sm:$0xff]  ;;  %v938_v20 = vld [vmem:[%s21708_s4 + $0x98] sm:$0xff] }
  0x87   : > { %915 = vst.msk [vmem:[#allocation4 + $0x190] sm:$0x3] %vm866_vm3, %v25298_v3  ;;  %918 = vst.msk [vmem:[#allocation4 + $0x1a8] sm:$0x3] %vm866_vm3, %v25298_v3  ;;  %v3858_v57 = vpack.c.bf16 %v3827_v44, %v3826_v43  ;;  %v937_v19 = vld [vmem:[%s21708_s4 + $0x90] sm:$0xff]  ;;  %v943_v43 = vld [vmem:[%s21708_s4 + $0xc0] sm:$0xff] }
  0x88   : > { %955 = vst.msk [vmem:[#allocation2 + $0x39] sm:$0xff] %vm753_vm0, %v922_v8  ;;  %956 = vst.msk [vmem:[#allocation2 + $0x49] sm:$0xff] %vm753_vm0, %v923_v10  ;;  %18092 = vmatmul.mubr.msk.bf16.vlgmr.msra.gmra.mrb[0].mxu1 %vm753_vm0, %v1135_v22  ;;  %v992_v8 = vld [vmem:[%s21713_s30 + $0x40] sm:$0xff]  ;;  %v944_v44 = vld [vmem:[%s21708_s4 + $0xc8] sm:$0xff] }
  0x89   : > { %957 = vst.msk [vmem:[#allocation2 + $0x51] sm:$0xff] %vm753_vm0, %v924_v11  ;;  %958 = vst.msk [vmem:[#allocation2 + $0x61] sm:$0xff] %vm753_vm0, %v925_v12  ;;  %18124 = vmatpush3.bf16.msra.mxu1 %v21295_v61 }
  0x8a   : > { %959 = vst.msk [vmem:[#allocation2 + $0x69] sm:$0xff] %vm753_vm0, %v926_v13  ;;  %960 = vst.msk [vmem:[#allocation2 + $0x79] sm:$0xff] %vm753_vm0, %v927_v16 }
  0x8b   : > { %961 = vst.msk [vmem:[#allocation2 + $0x81] sm:$0xff] %vm753_vm0, %v928_v17  ;;  %962 = vst.msk [vmem:[#allocation2 + $0x91] sm:$0xff] %vm753_vm0, %v929_v48  ;;  %v21296_v17 = vld [vmem:[%s25338_s15 + $0x8] sm:$0xff]   ;;  %v999_v48 = vld [vmem:[%s21713_s30 + $0x78] sm:$0xff] }
  0x8c   : > { %1017 = vst.msk [vmem:[#allocation4 + $0x19] sm:$0xff] %vm863_vm2, %v984_v45  ;;  %1018 = vst.msk [vmem:[#allocation4 + $0x21] sm:$0xff] %vm863_vm2, %v985_v47  ;;  %v998_v45 = vld [vmem:[%s21713_s30 + $0x70] sm:$0xff] }
  0x8d   : > { %963 = vst.msk [vmem:[#allocation2 + $0x99] sm:$0xff] %vm753_vm0, %v930_v49  ;;  %964 = vst.msk [vmem:[#allocation2 + $0xa9] sm:$0xff] %vm753_vm0, %v931_v52 }
  0x8e   : > { %965 = vst.msk [vmem:[#allocation2 + $0xb1] sm:$0xff] %vm753_vm0, %v932_v53  ;;  %966 = vst.msk [vmem:[#allocation2 + $0xc1] sm:$0xff] %vm753_vm0, %v933_v62  ;;  %v21297_v53 = vld [vmem:[%s25338_s15 + $0x10] sm:$0xff]  }
  0x8f   : > { %v3427_v23 = vld [vmem:[#allocation2 + $0x32] sm:$0xff]  ;;  %v3428_v24 = vld [vmem:[#allocation2 + $0x3a] sm:$0xff]  ;;  %v1108_v32 = vld [vmem:[#allocation2 + $0x49] sm:$0xff]  ;;  %1019 = vst.msk [vmem:[#allocation4 + $0x31] sm:$0xff] %vm863_vm2, %v986_v54 }
  0x90   : > { %v1107_v25 = vld [vmem:[#allocation2 + $0x39] sm:$0xff]  ;;  %v22118_v26 = vpack.c.bf16 %v3428_v24, %v3427_v23  ;;  %v3429_v27 = vld [vmem:[#allocation2 + $0x4a] sm:$0xff]  ;;  %v1110_v36 = vld [vmem:[#allocation2 + $0x61] sm:$0xff]  ;;  %1020 = vst.msk [vmem:[#allocation4 + $0x39] sm:$0xff] %vm863_vm2, %v987_v58 }
  0x91   : > { %v3430_v28 = vld [vmem:[#allocation2 + $0x52] sm:$0xff]  ;;  %v1136_v29 = vpack.c.bf16 %v1107_v25, %v1106_v21  ;;  %v3431_v34 = vld [vmem:[#allocation2 + $0x62] sm:$0xff]  ;;  %v3432_v35 = vld [vmem:[#allocation2 + $0x6a] sm:$0xff]  ;;  %1021 = vst.msk [vmem:[#allocation4 + $0x49] sm:$0xff] %vm863_vm2, %v988_v59 }
  0x92   : > { %v22121_v30 = vpack.c.bf16 %v3430_v28, %v3429_v27  ;;  %v1109_v33 = vld [vmem:[#allocation2 + $0x51] sm:$0xff]  ;;  %18379 = vmatprep.mubr.msk.bf16.mxu0 %vm753_vm0, %v22118_v26  ;;  %v22131_v37 = vpack.c.bf16 %v3432_v35, %v3431_v34  ;;  %v1111_v38 = vld [vmem:[#allocation2 + $0x69] sm:$0xff]  ;;  %v3433_v40 = vld [vmem:[#allocation2 + $0x7a] sm:$0xff]  ;;  %1022 = vst.msk [vmem:[#allocation4 + $0x51] sm:$0xff] %vm863_vm2, %v989_v60 }
  0x93   : > { %18095 = vmatprep.mubr.msk.bf16.mxu1 %vm753_vm0, %v1136_v29  ;;  %v3434_v41 = vld [vmem:[#allocation2 + $0x82] sm:$0xff]  ;;  %v1137_v42 = vpack.c.bf16 %v1109_v33, %v1108_v32  ;;  %v1138_v46 = vpack.c.bf16 %v1111_v38, %v1110_v36  ;;  %v1112_v55 = vld [vmem:[#allocation2 + $0x79] sm:$0xff]  ;;  %967 = vst.msk [vmem:[#allocation2 + $0xc9] sm:$0xff] %vm753_vm0, %v934_v63  ;;  %968 = vst.msk [vmem:[#allocation2 + $0xd9] sm:$0xff] %vm753_vm0, %v935_v0 }
  0x94   : > { %18380 = vmatmul.mubr.msk.bf16.vlgmr.msra.gmra.mrb[0].mxu0 %vm753_vm0, %v22121_v30  ;;  %v22143_v50 = vpack.c.bf16 %v3434_v41, %v3433_v40  ;;  %v1113_v56 = vld [vmem:[#allocation2 + $0x81] sm:$0xff]  ;;  %969 = vst.msk [vmem:[#allocation2 + $0xe1] sm:$0xff] %vm753_vm0, %v936_v1  ;;  %v3828_v7 = vld [vmem:[#allocation4 + $0x19] sm:$0xff]  ;;  %v1114_v11 = vld [vmem:[#allocation2 + $0x91] sm:$0xff] }
  0x95   : > { %18412 = vmatpush3.bf16.msra.mxu0 %v21290_v9  ;;  %18383 = vmatprep.mubr.msk.bf16.mxu0 %vm753_vm0, %v22131_v37  ;;  %1023 = vst.msk [vmem:[#allocation4 + $0x61] sm:$0xff] %vm863_vm2, %v990_v2  ;;  %1024 = vst.msk [vmem:[#allocation4 + $0x69] sm:$0xff] %vm863_vm2, %v991_v4  ;;  %v1139_v6 = vpack.c.bf16 %v1113_v56, %v1112_v55  ;;  %v993_v9 = vld [vmem:[%s21713_s30 + $0x48] sm:$0xff]  ;;  %v1115_v12 = vld [vmem:[#allocation2 + $0x99] sm:$0xff] }
  0x96   : > { %18413 = vmatprep.subr.bf16.mxu0 %v21291_v31  ;;  %18096 = vmatmul.mubr.msk.bf16.gmra.mrb[4].mxu1 %vm753_vm0, %v1137_v42  ;;  %v3829_v10 = vld [vmem:[#allocation4 + $0x21] sm:$0xff]  ;;  %1025 = vst.msk [vmem:[#allocation4 + $0x79] sm:$0xff] %vm863_vm2, %v992_v8  ;;  %1026 = vst.msk [vmem:[#allocation4 + $0x81] sm:$0xff] %vm863_vm2, %v993_v9  ;;  %v1140_v14 = vpack.c.bf16 %v1115_v12, %v1114_v11  ;;  %v3830_v15 = vld [vmem:[#allocation4 + $0x31] sm:$0xff] }
  0x97   : > { %18099 = vmatprep.mubr.msk.bf16.mxu1 %vm753_vm0, %v1138_v46  ;;  %v3859_v13 = vpack.c.bf16 %v3829_v10, %v3828_v7  ;;  %v3831_v16 = vld [vmem:[#allocation4 + $0x39] sm:$0xff]  ;;  %v1116_v22 = vld [vmem:[#allocation2 + $0xa9] sm:$0xff]  ;;  %v1117_v23 = vld [vmem:[#allocation2 + $0xb1] sm:$0xff]  ;;  %970 = vst.msk [vmem:[#allocation2 + $0xf1] sm:$0xff] %vm753_vm0, %v937_v19 }
  0x98   : > { %v3860_v18 = vpack.c.bf16 %v3831_v16, %v3830_v15  ;;  %v939_v21 = vld [vmem:[%s21708_s4 + $0xa0] sm:$0xff]  ;;  %v3832_v24 = vld [vmem:[#allocation4 + $0x49] sm:$0xff]  ;;  %971 = vst.msk [vmem:[#allocation2 + $0xf9] sm:$0xff] %vm753_vm0, %v938_v20  ;;  %v995_v32 = vld [vmem:[%s21713_s30 + $0x58] sm:$0xff]  ;;  %v1141_v33 = vpack.c.bf16 %v1117_v23, %v1116_v22 }
  0x99   : > { %18414 = vmatpush3.bf16.msra.mxu0 %v21291_v31  ;;  %972 = vst.msk [vmem:[#allocation2 + $0x109] sm:$0xff] %vm753_vm0, %v939_v21  ;;  %v3833_v25 = vld [vmem:[#allocation4 + $0x51] sm:$0xff]  ;;  %v1118_v27 = vld [vmem:[#allocation2 + $0xc1] sm:$0xff]  ;;  %976 = vst.msk [vmem:[#allocation2 + $0x139] sm:$0xff] %vm753_vm0, %v943_v43 }
  0x9a   : > { %18415 = vmatprep.subr.bf16.mxu0 %v21292_v39  ;;  %v1119_v28 = vld [vmem:[#allocation2 + $0xc9] sm:$0xff]  ;;  %1028 = vst.msk [vmem:[#allocation4 + $0x99] sm:$0xff] %vm863_vm2, %v995_v32  ;;  %v996_v36 = vld [vmem:[%s21713_s30 + $0x60] sm:$0xff]  ;;  %v942_v41 = vld [vmem:[%s21708_s4 + $0xb8] sm:$0xff]  ;;  %v3861_v42 = vpack.c.bf16 %v3833_v25, %v3832_v24 }
  0x9b   : > { %v940_v29 = vld [vmem:[%s21708_s4 + $0xa8] sm:$0xff]  ;;  %v994_v31 = vld [vmem:[%s21713_s30 + $0x50] sm:$0xff]  ;;  %v1142_v38 = vpack.c.bf16 %v1119_v28, %v1118_v27  ;;  %1029 = vst.msk [vmem:[#allocation4 + $0xa9] sm:$0xff] %vm863_vm2, %v996_v36  ;;  %v1120_v46 = vld [vmem:[#allocation2 + $0xd9] sm:$0xff] }
  0x9c   : > { %18384 = vmatmul.mubr.msk.bf16.gmra.mrb[4].mxu0 %vm753_vm0, %v22143_v50  ;;  %v3834_v34 = vld [vmem:[#allocation4 + $0x61] sm:$0xff]  ;;  %v3835_v35 = vld [vmem:[#allocation4 + $0x69] sm:$0xff]  ;;  %973 = vst.msk [vmem:[#allocation2 + $0x111] sm:$0xff] %vm753_vm0, %v940_v29  ;;  %975 = vst.msk [vmem:[#allocation2 + $0x129] sm:$0xff] %vm753_vm0, %v942_v41 }
  0x9d   : > { %18416 = vmatpush3.bf16.msra.mxu0 %v21292_v39  ;;  %18419 = vmatprep.mubr.msk.bf16.mxu0 %vm863_vm2, %v3858_v57  ;;  %1027 = vst.msk [vmem:[#allocation4 + $0x91] sm:$0xff] %vm863_vm2, %v994_v31  ;;  %v997_v39 = vld [vmem:[%s21713_s30 + $0x68] sm:$0xff]  ;;  %v941_v40 = vld [vmem:[%s21708_s4 + $0xb0] sm:$0xff]  ;;  %v3862_v47 = vpack.c.bf16 %v3835_v35, %v3834_v34  ;;  %1031 = vst.msk [vmem:[#allocation4 + $0xc1] sm:$0xff] %vm863_vm2, %v998_v45 }
  0x9e   : > { %18417 = vmatprep.subr.bf16.mxu0 %v21293_v51  ;;  %18100 = vmatmul.mubr.msk.bf16.gmra.mrb[8].mxu1 %vm753_vm0, %v1139_v6  ;;  %1030 = vst.msk [vmem:[#allocation4 + $0xb1] sm:$0xff] %vm863_vm2, %v997_v39  ;;  %v1121_v49 = vld [vmem:[#allocation2 + $0xe1] sm:$0xff]  ;;  %1032 = vst.msk [vmem:[#allocation4 + $0xc9] sm:$0xff] %vm863_vm2, %v999_v48  ;;  %v945_v56 = vld [vmem:[%s21708_s4 + $0xd0] sm:$0xff] }
  0x9f   : > { %18103 = vmatprep.mubr.msk.bf16.mxu1 %vm753_vm0, %v1140_v14  ;;  %974 = vst.msk [vmem:[#allocation2 + $0x121] sm:$0xff] %vm753_vm0, %v941_v40  ;;  %977 = vst.msk [vmem:[#allocation2 + $0x141] sm:$0xff] %vm753_vm0, %v944_v44  ;;  %v1123_v52 = vld [vmem:[#allocation2 + $0xf9] sm:$0xff]  ;;  %v1001_v55 = vld [vmem:[%s21713_s30 + $0x88] sm:$0xff]  ;;  %v1143_v62 = vpack.c.bf16 %v1121_v49, %v1120_v46 }
  0xa0   : > { %v1000_v54 = vld [vmem:[%s21713_s30 + $0x80] sm:$0xff]  ;;  %1034 = vst.msk [vmem:[#allocation4 + $0xe1] sm:$0xff] %vm863_vm2, %v1001_v55  ;;  %v946_v57 = vld [vmem:[%s21708_s4 + $0xd8] sm:$0xff]  ;;  %v948_v0 = vld [vmem:[%s21708_s4 + $0xe8] sm:$0xff] }
  0xa1   : > { %18418 = vmatpush3.bf16.msra.mxu0 %v21293_v51  ;;  %v1122_v51 = vld [vmem:[#allocation2 + $0xf1] sm:$0xff]  ;;  %1033 = vst.msk [vmem:[#allocation4 + $0xd9] sm:$0xff] %vm863_vm2, %v1000_v54  ;;  %v947_v58 = vld [vmem:[%s21708_s4 + $0xe0] sm:$0xff]  ;;  %v1005_v8 = vld [vmem:[%s21713_s30 + $0xa8] sm:$0xff] }
  0xa2   : > { %18451 = vmatprep.subr.bf16.mxu0 %v21294_v5  ;;  %v3836_v59 = vld [vmem:[#allocation4 + $0x79] sm:$0xff]  ;;  %v3837_v60 = vld [vmem:[#allocation4 + $0x81] sm:$0xff]  ;;  %978 = vst.msk [vmem:[#allocation2 + $0x151] sm:$0xff] %vm753_vm0, %v945_v56  ;;  %979 = vst.msk [vmem:[#allocation2 + $0x159] sm:$0xff] %vm753_vm0, %v946_v57  ;;  %v1144_v2 = vpack.c.bf16 %v1123_v52, %v1122_v51 }
  0xa3   : > { %980 = vst.msk [vmem:[#allocation2 + $0x169] sm:$0xff] %vm753_vm0, %v947_v58  ;;  %v3839_v63 = vld [vmem:[#allocation4 + $0x99] sm:$0xff]  ;;  %v1002_v1 = vld [vmem:[%s21713_s30 + $0x90] sm:$0xff]  ;;  %981 = vst.msk [vmem:[#allocation2 + $0x171] sm:$0xff] %vm753_vm0, %v948_v0  ;;  %v3863_v4 = vpack.c.bf16 %v3837_v60, %v3836_v59 }
  0xa4   : > { %18420 = vmatmul.mubr.msk.bf16.vlgmr.msra.gmra.mrb[0].mxu0 %vm863_vm2, %v3859_v13  ;;  %v3838_v61 = vld [vmem:[#allocation4 + $0x91] sm:$0xff]  ;;  %1035 = vst.msk [vmem:[#allocation4 + $0xf1] sm:$0xff] %vm863_vm2, %v1002_v1  ;;  %v1004_v7 = vld [vmem:[%s21713_s30 + $0xa0] sm:$0xff]  ;;  %v1124_v9 = vld [vmem:[#allocation2 + $0x109] sm:$0xff] }
  0xa5   : > { %18452 = vmatpush3.bf16.msra.mxu0 %v21294_v5  ;;  %18423 = vmatprep.mubr.msk.bf16.mxu0 %vm863_vm2, %v3860_v18  ;;  %v3864_v5 = vpack.c.bf16 %v3839_v63, %v3838_v61  ;;  %v1003_v6 = vld [vmem:[%s21713_s30 + $0x98] sm:$0xff]  ;;  %1037 = vst.msk [vmem:[#allocation4 + $0x109] sm:$0xff] %vm863_vm2, %v1004_v7  ;;  %1038 = vst.msk [vmem:[#allocation4 + $0x111] sm:$0xff] %vm863_vm2, %v1005_v8  ;;  %v21298_v11 = vld [vmem:[%s25336_s28 + $0x8] sm:$0xff]  }
  0xa6   : > { %18453 = vmatprep.subr.bf16.mxu0 %v21296_v17  ;;  %18104 = vmatmul.mubr.msk.bf16.gmra.mrb[12].mxu1 %vm753_vm0, %v1141_v33  ;;  %1036 = vst.msk [vmem:[#allocation4 + $0xf9] sm:$0xff] %vm863_vm2, %v1003_v6  ;;  %v1125_v10 = vld [vmem:[#allocation2 + $0x111] sm:$0xff]  ;;  %v1126_v12 = vld [vmem:[#allocation2 + $0x121] sm:$0xff]  ;;  %v1127_v13 = vld [vmem:[#allocation2 + $0x129] sm:$0xff] }
  0xa7   : > { %18107 = vmatprep.mubr.msk.bf16.mxu1 %vm753_vm0, %v1142_v38  ;;  %v3840_v14 = vld [vmem:[#allocation4 + $0xa9] sm:$0xff]  ;;  %v3841_v15 = vld [vmem:[#allocation4 + $0xb1] sm:$0xff]  ;;  %18125 = vmatprep.subr.bf16.mxu1 %v21298_v11  ;;  %v1145_v16 = vpack.c.bf16 %v1125_v10, %v1124_v9  ;;  %v1146_v19 = vpack.c.bf16 %v1127_v13, %v1126_v12  ;;  %v1008_v24 = vld [vmem:[%s21713_s30 + $0xc0] sm:$0xff] }
  0xa8   : > { %v3843_v18 = vld [vmem:[#allocation4 + $0xc9] sm:$0xff]  ;;  %18126 = vmatpush3.bf16.msra.mxu1 %v21298_v11  ;;  %v1007_v21 = vld [vmem:[%s21713_s30 + $0xb8] sm:$0xff]  ;;  %v3865_v22 = vpack.c.bf16 %v3841_v15, %v3840_v14  ;;  %1041 = vst.msk [vmem:[#allocation4 + $0x139] sm:$0xff] %vm863_vm2, %v1008_v24  ;;  %v1129_v29 = vld [vmem:[#allocation2 + $0x141] sm:$0xff] }
  0xa9   : > { %18454 = vmatpush3.bf16.msra.mxu0 %v21296_v17  ;;  %v3842_v17 = vld [vmem:[#allocation4 + $0xc1] sm:$0xff]  ;;  %v1006_v20 = vld [vmem:[%s21713_s30 + $0xb0] sm:$0xff]  ;;  %1040 = vst.msk [vmem:[#allocation4 + $0x129] sm:$0xff] %vm863_vm2, %v1007_v21  ;;  %v21299_v23 = vld [vmem:[%s25338_s15 + $0x18] sm:$0xff]  }
  0xaa   : > { %18455 = vmatprep.subr.bf16.mxu0 %v21297_v53  ;;  %1039 = vst.msk [vmem:[#allocation4 + $0x121] sm:$0xff] %vm863_vm2, %v1006_v20  ;;  %v3866_v25 = vpack.c.bf16 %v3843_v18, %v3842_v17  ;;  %v1009_v27 = vld [vmem:[%s21713_s30 + $0xc8] sm:$0xff]  ;;  %v1128_v28 = vld [vmem:[#allocation2 + $0x139] sm:$0xff]  ;;  %v1130_v31 = vld [vmem:[#allocation2 + $0x151] sm:$0xff] }
  0xab   : > { %1042 = vst.msk [vmem:[#allocation4 + $0x141] sm:$0xff] %vm863_vm2, %v1009_v27  ;;  %v1131_v32 = vld [vmem:[#allocation2 + $0x159] sm:$0xff]  ;;  %v1010_v33 = vld [vmem:[%s21713_s30 + $0xd0] sm:$0xff]  ;;  %v1013_v36 = vld [vmem:[%s21713_s30 + $0xe8] sm:$0xff]  ;;  %v1147_v40 = vpack.c.bf16 %v1129_v29, %v1128_v28 }
  0xac   : > { %18424 = vmatmul.mubr.msk.bf16.gmra.mrb[4].mxu0 %vm863_vm2, %v3861_v42  ;;  %v1011_v34 = vld [vmem:[%s21713_s30 + $0xd8] sm:$0xff]  ;;  %1043 = vst.msk [vmem:[#allocation4 + $0x151] sm:$0xff] %vm863_vm2, %v1010_v33  ;;  %v1012_v35 = vld [vmem:[%s21713_s30 + $0xe0] sm:$0xff]  ;;  %1046 = vst.msk [vmem:[#allocation4 + $0x171] sm:$0xff] %vm863_vm2, %v1013_v36  ;;  %v1148_v43 = vpack.c.bf16 %v1131_v32, %v1130_v31 }
  0xad   : > { %18427 = vmatprep.mubr.msk.bf16.mxu0 %vm863_vm2, %v3862_v47  ;;  %18456 = vmatpush3.bf16.msra.mxu0 %v21297_v53  ;;  %v3844_v38 = vld [vmem:[#allocation4 + $0xd9] sm:$0xff]  ;;  %v3845_v39 = vld [vmem:[#allocation4 + $0xe1] sm:$0xff]  ;;  %1044 = vst.msk [vmem:[#allocation4 + $0x159] sm:$0xff] %vm863_vm2, %v1011_v34  ;;  %1045 = vst.msk [vmem:[#allocation4 + $0x169] sm:$0xff] %vm863_vm2, %v1012_v35 }
  0xae   : > { %18108 = vmatmul.mubr.msk.bf16.gmra.mrb[16].mxu1 %vm753_vm0, %v1143_v62  ;;  %18457 = vmatprep.subr.bf16.mxu0 %v21299_v23  ;;  %v3846_v41 = vld [vmem:[#allocation4 + $0xf1] sm:$0xff]  ;;  %v3847_v42 = vld [vmem:[#allocation4 + $0xf9] sm:$0xff]  ;;  %v3867_v44 = vpack.c.bf16 %v3845_v39, %v3844_v38  ;;  %v1132_v47 = vld [vmem:[#allocation2 + $0x169] sm:$0xff] }
  0xaf   : > { %18111 = vmatprep.mubr.msk.bf16.mxu1 %vm753_vm0, %v1144_v2  ;;  %v22285_v45 = vld [vmem:[%s25338_s15 + $0x40] sm:$0xff]   ;;  %v3868_v46 = vpack.c.bf16 %v3847_v42, %v3846_v41  ;;  %v1133_v48 = vld [vmem:[#allocation2 + $0x171] sm:$0xff]  ;;  %v3848_v49 = vld [vmem:[#allocation4 + $0x109] sm:$0xff] }
  0xb0   : > { %v1050_v51 = vld [vmem:[#allocation2] sm:$0xff]  ;;  %v1051_v52 = vld [vmem:[#allocation2 + $0x8] sm:$0xff]  ;;  %v3849_v53 = vld [vmem:[#allocation4 + $0x111] sm:$0xff]  ;;  %v1149_v56 = vpack.c.bf16 %v1133_v48, %v1132_v47 }
  0xb1   : > { %18458 = vmatpush3.bf16.msra.mxu0 %v21299_v23  ;;  %v3850_v54 = vld [vmem:[#allocation4 + $0x121] sm:$0xff]  ;;  %v3851_v55 = vld [vmem:[#allocation4 + $0x129] sm:$0xff]  ;;  %v1082_v58 = vpack.c.bf16 %v1051_v52, %v1050_v51  ;;  %v3869_v59 = vpack.c.bf16 %v3849_v53, %v3848_v49  ;;  %v1052_v61 = vld [vmem:[#allocation2 + $0x18] sm:$0xff] }
  0xb2   : > { %18491 = vmatprep.subr.bf16.mxu0 %v22285_v45  ;;  %v21301_v57 = vld [vmem:[%s25336_s28 + $0x20] sm:$0xff]   ;;  %v3870_v60 = vpack.c.bf16 %v3851_v55, %v3850_v54  ;;  %v1054_v63 = vld [vmem:[#allocation2 + $0x30] sm:$0xff]  ;;  %v1055_v0 = vld [vmem:[#allocation2 + $0x38] sm:$0xff] }
  0xb3   : > { %18159 = vmatprep.subr.bf16.mxu1 %v21301_v57  ;;  %v1053_v62 = vld [vmem:[#allocation2 + $0x20] sm:$0xff]  ;;  %v22301_v7 = vpack.c.bf16 %v1055_v0, %v1054_v63  ;;  %v1056_v10 = vld [vmem:[#allocation2 + $0x48] sm:$0xff]  ;;  %v1057_v11 = vld [vmem:[#allocation2 + $0x50] sm:$0xff] }
  0xb4   : > { %18428 = vmatmul.mubr.msk.bf16.gmra.mrb[8].mxu0 %vm863_vm2, %v3863_v4  ;;  %v3852_v1 = vld [vmem:[#allocation4 + $0x139] sm:$0xff]  ;;  %v3853_v2 = vld [vmem:[#allocation4 + $0x141] sm:$0xff]  ;;  %v22299_v4 = vpack.c.bf16 %v1053_v62, %v1052_v61  ;;  %v3856_v15 = vld [vmem:[#allocation4 + $0x169] sm:$0xff]  ;;  %v22312_v17 = vpack.c.bf16 %v1057_v11, %v1056_v10 }
  0xb5   : > { %18431 = vmatprep.mubr.msk.bf16.mxu0 %vm863_vm2, %v3864_v5  ;;  %v3854_v5 = vld [vmem:[#allocation4 + $0x151] sm:$0xff]  ;;  %v3855_v6 = vld [vmem:[#allocation4 + $0x159] sm:$0xff]  ;;  %v3871_v8 = vpack.c.bf16 %v3853_v2, %v3852_v1  ;;  %v1059_v13 = vld [vmem:[#allocation2 + $0x68] sm:$0xff] }
  0xb6   : > { %18112 = vmatmul.mubr.msk.bf16.gmra.mrb[20].mxu1 %vm753_vm0, %v1145_v16  ;;  %v3872_v9 = vpack.c.bf16 %v3855_v6, %v3854_v5  ;;  %v1058_v12 = vld [vmem:[#allocation2 + $0x60] sm:$0xff]  ;;  %v21304_v14 = vld [vmem:[%s25336_s28 + $0x28] sm:$0xff]   ;;  %v3857_v16 = vld [vmem:[#allocation4 + $0x171] sm:$0xff] }
  0xb7   : > { %18115 = vmatprep.mubr.msk.bf16.mxu1 %vm753_vm0, %v1146_v19  ;;  %v3770_v18 = vld [vmem:[#allocation4] sm:$0xff]  ;;  %v3771_v19 = vld [vmem:[#allocation4 + $0x8] sm:$0xff]  ;;  %v22314_v20 = vpack.c.bf16 %v1059_v13, %v1058_v12  ;;  %v3873_v21 = vpack.c.bf16 %v3857_v16, %v3856_v15  ;;  %v1060_v23 = vld [vmem:[#allocation2 + $0x78] sm:$0xff] }
  0xb8   : > { %v1061_v24 = vld [vmem:[#allocation2 + $0x80] sm:$0xff]  ;;  %v1063_v27 = vld [vmem:[#allocation2 + $0x98] sm:$0xff]  ;;  %v3774_v32 = vld [vmem:[#allocation4 + $0x30] sm:$0xff] }
  0xb9   : > { %v3772_v28 = vld [vmem:[#allocation4 + $0x18] sm:$0xff]  ;;  %v3773_v29 = vld [vmem:[#allocation4 + $0x20] sm:$0xff]  ;;  %v22322_v31 = vpack.c.bf16 %v1061_v24, %v1060_v23  ;;  %v22329_v35 = vld [vmem:[%s25336_s28 + $0x30] sm:$0xff]  }
  0xba   : > { %v3775_v33 = vld [vmem:[#allocation4 + $0x38] sm:$0xff]  ;;  %v22331_v36 = vpack.c.bf16 %v3773_v29, %v3772_v28  ;;  %v21302_v39 = vld [vmem:[%s25338_s15 + $0x48] sm:$0xff]   ;;  %v1065_v41 = vld [vmem:[#allocation2 + $0xb0] sm:$0xff] }
  0xbb   : > { %v22333_v38 = vpack.c.bf16 %v3775_v33, %v3774_v32  ;;  %v1066_v42 = vld [vmem:[#allocation2 + $0xc0] sm:$0xff]  ;;  %v3779_v49 = vld [vmem:[#allocation4 + $0x68] sm:$0xff]  ;;  %v21303_v51 = vld [vmem:[%s25338_s15 + $0x50] sm:$0xff]  }
  0xbc   : > { %18432 = vmatmul.mubr.msk.bf16.gmra.mrb[12].mxu0 %vm863_vm2, %v3865_v22  ;;  %v3802_v22 = vpack.c.bf16 %v3771_v19, %v3770_v18  ;;  %v3778_v48 = vld [vmem:[#allocation4 + $0x60] sm:$0xff]  ;;  %v21305_v55 = vld [vmem:[%s25338_s15 + $0x58] sm:$0xff]   ;;  %v3782_v61 = vld [vmem:[#allocation4 + $0x90] sm:$0xff] }
  0xbd   : > { %18435 = vmatprep.mubr.msk.bf16.mxu0 %vm863_vm2, %v3866_v25  ;;  %v1062_v25 = vld [vmem:[#allocation2 + $0x90] sm:$0xff]  ;;  %v22357_v54 = vpack.c.bf16 %v3779_v49, %v3778_v48  ;;  %v3783_v62 = vld [vmem:[#allocation4 + $0x98] sm:$0xff]  ;;  %v22375_v0 = vld [vmem:[%s25338_s15 + $0x60] sm:$0xff]  }
  0xbe   : > { %18116 = vmatmul.mubr.msk.bf16.gmra.mrb[24].mxu1 %vm753_vm0, %v1147_v40  ;;  %v22324_v34 = vpack.c.bf16 %v1063_v27, %v1062_v25  ;;  %v1064_v40 = vld [vmem:[#allocation2 + $0xa8] sm:$0xff]  ;;  %v1073_v6 = vld [vmem:[#allocation2 + $0x110] sm:$0xff]  ;;  %v3786_v13 = vld [vmem:[#allocation4 + $0xc0] sm:$0xff] }
  0xbf   : > { %18119 = vmatprep.mubr.msk.bf16.mxu1 %vm753_vm0, %v1148_v43  ;;  %v1067_v43 = vld [vmem:[#allocation2 + $0xc8] sm:$0xff]  ;;  %v22348_v47 = vpack.c.bf16 %v1065_v41, %v1064_v40  ;;  %v3785_v11 = vld [vmem:[#allocation4 + $0xb0] sm:$0xff]  ;;  %v1076_v19 = vld [vmem:[#allocation2 + $0x138] sm:$0xff] }
  0xc0   : > { %v22353_v52 = vpack.c.bf16 %v1067_v43, %v1066_v42  ;;  %v1072_v5 = vld [vmem:[#allocation2 + $0x108] sm:$0xff]  ;;  %v1078_v23 = vld [vmem:[#allocation2 + $0x150] sm:$0xff]  ;;  %v1079_v24 = vld [vmem:[#allocation2 + $0x158] sm:$0xff] }
  0xc1   : > { %v3784_v10 = vld [vmem:[#allocation4 + $0xa8] sm:$0xff]  ;;  %v22392_v15 = vpack.c.bf16 %v1073_v6, %v1072_v5  ;;  %v3788_v25 = vld [vmem:[#allocation4 + $0xd8] sm:$0xff]  ;;  %v3789_v27 = vld [vmem:[#allocation4 + $0xe0] sm:$0xff]  ;;  %v22410_v33 = vpack.c.bf16 %v1079_v24, %v1078_v23 }
  0xc2   : > { %v1075_v12 = vld [vmem:[#allocation2 + $0x128] sm:$0xff]  ;;  %v22396_v18 = vpack.c.bf16 %v3785_v11, %v3784_v10  ;;  %v3790_v28 = vld [vmem:[#allocation4 + $0xf0] sm:$0xff]  ;;  %v3791_v29 = vld [vmem:[#allocation4 + $0xf8] sm:$0xff] }
  0xc3   : > { %v949_v40 = vld [vmem:[%s21708_s4 + $0xf0] sm:$0xff]  ;;  %v950_v41 = vld [vmem:[%s21708_s4 + $0xf8] sm:$0xff]  ;;  %v1080_v42 = vld [vmem:[#allocation2 + $0x168] sm:$0xff] }
  0xc4   : > { %18436 = vmatmul.mubr.msk.bf16.gmra.mrb[16].mxu0 %vm863_vm2, %v3867_v44  ;;  %v3776_v44 = vld [vmem:[#allocation4 + $0x48] sm:$0xff]  ;;  %v1081_v43 = vld [vmem:[#allocation2 + $0x170] sm:$0xff]  ;;  %982 = vst.msk [vmem:[#allocation2 + $0x181] sm:$0xff] %vm753_vm0, %v949_v40  ;;  %983 = vst.msk [vmem:[#allocation2 + $0x189] sm:$0xff] %vm753_vm0, %v950_v41 }
  0xc5   : > { %18439 = vmatprep.mubr.msk.bf16.mxu0 %vm863_vm2, %v3868_v46  ;;  %v3777_v46 = vld [vmem:[#allocation4 + $0x50] sm:$0xff]  ;;  %v3792_v49 = vld [vmem:[#allocation4 + $0x108] sm:$0xff]  ;;  %v3797_v5 = vld [vmem:[#allocation4 + $0x140] sm:$0xff] }
  0xc6   : > { %18120 = vmatmul.mubr.msk.bf16.gmra.mrb[28].mxu1 %vm753_vm0, %v1149_v56  ;;  %v22355_v53 = vpack.c.bf16 %v3777_v46, %v3776_v44  ;;  %v1069_v56 = vld [vmem:[#allocation2 + $0xe0] sm:$0xff]  ;;  %v22416_v44 = vpack.c.bf16 %v3791_v29, %v3790_v28  ;;  %v1597_v48 = vld [vmem:[#allocation2 + $0xa] sm:$0xff]  ;;  %v3799_v10 = vld [vmem:[#allocation4 + $0x158] sm:$0xff] }
  0xc7   : > { %18127 = vmatprep.mubr.msk.bf16.mxu1 %vm753_vm0, %v1082_v58  ;;  %v1070_v58 = vld [vmem:[#allocation2 + $0xf0] sm:$0xff]  ;;  %v1596_v46 = vld [vmem:[#allocation2 + $0x2] sm:$0xff]  ;;  %v1609_v29 = vld [vmem:[#allocation2 + $0x9a] sm:$0xff] }
  0xc8   : > { %v3798_v6 = vld [vmem:[#allocation4 + $0x150] sm:$0xff]  ;;  %v3800_v23 = vld [vmem:[#allocation4 + $0x168] sm:$0xff]  ;;  %v4350_v40 = vld [vmem:[#allocation4 + $0x1a] sm:$0xff] }
  0xc9   : > { %v3801_v24 = vld [vmem:[#allocation4 + $0x170] sm:$0xff]  ;;  %v4351_v41 = vld [vmem:[#allocation4 + $0x22] sm:$0xff] }
  0xca   : > { %v1608_v28 = vld [vmem:[#allocation2 + $0x92] sm:$0xff] }
  0xcb   : > { %v2237_v3 = vld [vmem:[#allocation2 + $0x189] sm:$0xff] }
  0xcc   : > { %18440 = vmatmul.mubr.msk.bf16.gmra.mrb[20].mxu0 %vm863_vm2, %v3869_v59  ;;  %v1071_v59 = vld [vmem:[#allocation2 + $0xf8] sm:$0xff] }
  0xcd   : > { %18443 = vmatprep.mubr.msk.bf16.mxu0 %vm863_vm2, %v3870_v60  ;;  %v3781_v60 = vld [vmem:[#allocation4 + $0x80] sm:$0xff]  ;;  %v22377_v1 = vpack.c.bf16 %v1071_v59, %v1070_v58 }
  0xce   : > { %18128 = vmatmul.mubr.msk.bf16.vlgmr.msra.gmra.mrb[0].mxu1 %vm753_vm0, %v22299_v4  ;;  %v1598_v59 = vld [vmem:[#allocation2 + $0x1a] sm:$0xff] }
  0xcf   : > { %18131 = vmatprep.mubr.msk.bf16.mxu1 %vm753_vm0, %v22301_v7  ;;  %18160 = vmatpush3.bf16.msra.mxu1 %v21301_v57  ;;  %v3780_v57 = vld [vmem:[#allocation4 + $0x78] sm:$0xff] }
  0xd0   : > { %18161 = vmatprep.subr.bf16.mxu1 %v21304_v14  ;;  %v22379_v2 = vpack.c.bf16 %v3781_v60, %v3780_v57  ;;  %v1628_v57 = vpack.c.bf16 %v1597_v48, %v1596_v46  ;;  %v1599_v60 = vld [vmem:[#allocation2 + $0x22] sm:$0xff]  ;;  %v22478_v46 = vpack.c.bf16 %v1609_v29, %v1608_v28  ;;  %v22480_v48 = vpack.c.bf16 %v4351_v41, %v4350_v40  ;;  %v4360_v28 = vld [vmem:[#allocation4 + $0x92] sm:$0xff]  ;;  %v4361_v29 = vld [vmem:[#allocation4 + $0x9a] sm:$0xff] }
  0xd1   : > { %v22523_v40 = vld [vmem:[%s25338_s15 + $0x80] sm:$0xff]  }
  0xd3   : > { %18162 = vmatpush3.bf16.msra.mxu1 %v21304_v14  ;;  %v3787_v14 = vld [vmem:[#allocation4 + $0xc8] sm:$0xff] }
  0xd4   : > { %18444 = vmatmul.mubr.msk.bf16.gmra.mrb[24].mxu0 %vm863_vm2, %v3871_v8  ;;  %18195 = vmatprep.subr.bf16.mxu1 %v22329_v35  ;;  %v22381_v8 = vpack.c.bf16 %v3783_v62, %v3782_v61  ;;  %v3796_v62 = vld [vmem:[#allocation4 + $0x138] sm:$0xff] }
  0xd5   : > { %18447 = vmatprep.mubr.msk.bf16.mxu0 %vm863_vm2, %v3872_v9  ;;  %v1074_v9 = vld [vmem:[#allocation2 + $0x120] sm:$0xff]  ;;  %v22443_v11 = vpack.c.bf16 %v3797_v5, %v3796_v62  ;;  %v4357_v62 = vld [vmem:[#allocation4 + $0x6a] sm:$0xff] }
  0xd6   : > { %18132 = vmatmul.mubr.msk.bf16.gmra.mrb[4].mxu1 %vm753_vm0, %v22312_v17  ;;  %v22394_v16 = vpack.c.bf16 %v1075_v12, %v1074_v9  ;;  %v22441_v9 = vpack.c.bf16 %v1599_v60, %v1598_v59  ;;  %v21310_v12 = vld [vmem:[%s25336_s28 + $0x38] sm:$0xff]   ;;  %v4356_v60 = vld [vmem:[#allocation4 + $0x62] sm:$0xff]  ;;  %v21309_v5 = vld [vmem:[%s25338_s15 + $0x70] sm:$0xff]  }
  0xd7   : > { %18135 = vmatprep.mubr.msk.bf16.mxu1 %vm753_vm0, %v22314_v20 }
  0xdc   : > { %18448 = vmatmul.mubr.msk.bf16.gmra.mrb[28].mxu0 %vm863_vm2, %v3873_v21  ;;  %v1077_v21 = vld [vmem:[#allocation2 + $0x140] sm:$0xff] }
  0xdd   : > { %18459 = vmatprep.mubr.msk.bf16.mxu0 %vm863_vm2, %v3802_v22  ;;  %v22398_v22 = vpack.c.bf16 %v3787_v14, %v3786_v13  ;;  %v22408_v32 = vpack.c.bf16 %v1077_v21, %v1076_v19  ;;  %v22448_v13 = vpack.c.bf16 %v3799_v10, %v3798_v6  ;;  %v1014_v14 = vld [vmem:[%s21713_s30 + $0xf0] sm:$0xff]  ;;  %v1015_v19 = vld [vmem:[%s21713_s30 + $0xf8] sm:$0xff]  ;;  %v22464_v21 = vld [vmem:[%s25336_s28 + $0x40] sm:$0xff]  }
  0xde   : > { %18136 = vmatmul.mubr.msk.bf16.gmra.mrb[8].mxu1 %vm753_vm0, %v22322_v31  ;;  %1047 = vst.msk [vmem:[#allocation4 + $0x181] sm:$0xff] %vm863_vm2, %v1014_v14  ;;  %1048 = vst.msk [vmem:[#allocation4 + $0x189] sm:$0xff] %vm863_vm2, %v1015_v19  ;;  %v1614_v14 = vld [vmem:[#allocation2 + $0xda] sm:$0xff]  ;;  %v1615_v19 = vld [vmem:[#allocation2 + $0xe2] sm:$0xff] }
  0xdf   : > { %18139 = vmatprep.mubr.msk.bf16.mxu1 %vm753_vm0, %v22324_v34 }
  0xe4   : > { %18460 = vmatmul.mubr.msk.bf16.vlgmr.msra.gmra.mrb[0].mxu0 %vm863_vm2, %v22331_v36 }
  0xe5   : > { %18492 = vmatpush3.bf16.msra.mxu0 %v22285_v45  ;;  %18463 = vmatprep.mubr.msk.bf16.mxu0 %vm863_vm2, %v22333_v38  ;;  %v1068_v45 = vld [vmem:[#allocation2 + $0xd8] sm:$0xff] }
  0xe6   : > { %18493 = vmatprep.subr.bf16.mxu0 %v21302_v39  ;;  %18140 = vmatmul.mubr.msk.bf16.gmra.mrb[12].mxu1 %vm753_vm0, %v22348_v47  ;;  %v22370_v63 = vpack.c.bf16 %v1069_v56, %v1068_v45  ;;  %v3794_v45 = vld [vmem:[#allocation4 + $0x120] sm:$0xff]  ;;  %v22428_v56 = vpack.c.bf16 %v1081_v43, %v1080_v42  ;;  %v4352_v42 = vld [vmem:[#allocation4 + $0x32] sm:$0xff] }
  0xe7   : > { %18143 = vmatprep.mubr.msk.bf16.mxu1 %vm753_vm0, %v22353_v52  ;;  %v4353_v43 = vld [vmem:[#allocation4 + $0x3a] sm:$0xff] }
  0xe9   : > { %18494 = vmatpush3.bf16.msra.mxu0 %v21302_v39  ;;  %v22412_v39 = vpack.c.bf16 %v3789_v27, %v3788_v25  ;;  %v4348_v25 = vld [vmem:[#allocation4 + $0x2] sm:$0xff]  ;;  %v4349_v27 = vld [vmem:[#allocation4 + $0xa] sm:$0xff] }
  0xea   : > { %18495 = vmatprep.subr.bf16.mxu0 %v21303_v51 }
  0xec   : > { %18464 = vmatmul.mubr.msk.bf16.gmra.mrb[4].mxu0 %vm863_vm2, %v22355_v53 }
  0xed   : > { %18467 = vmatprep.mubr.msk.bf16.mxu0 %vm863_vm2, %v22357_v54  ;;  %18496 = vmatpush3.bf16.msra.mxu0 %v21303_v51  ;;  %v3793_v51 = vld [vmem:[#allocation4 + $0x110] sm:$0xff] }
  0xee   : > { %18497 = vmatprep.subr.bf16.mxu0 %v21305_v55  ;;  %18144 = vmatmul.mubr.msk.bf16.gmra.mrb[16].mxu1 %vm753_vm0, %v22370_v63  ;;  %v22430_v58 = vpack.c.bf16 %v3793_v51, %v3792_v49  ;;  %v22482_v49 = vpack.c.bf16 %v4353_v43, %v4352_v42  ;;  %v1611_v51 = vld [vmem:[#allocation2 + $0xb2] sm:$0xff]  ;;  %v22529_v43 = vpack.c.bf16 %v4361_v29, %v4360_v28  ;;  %v4367_v28 = vld [vmem:[#allocation4 + $0xe2] sm:$0xff] }
  0xef   : > { %18147 = vmatprep.mubr.msk.bf16.mxu1 %vm753_vm0, %v22377_v1 }
  0xf1   : > { %18498 = vmatpush3.bf16.msra.mxu0 %v21305_v55  ;;  %v3795_v55 = vld [vmem:[#allocation4 + $0x128] sm:$0xff] }
  0xf2   : > { %18531 = vmatprep.subr.bf16.mxu0 %v22375_v0  ;;  %v22432_v61 = vpack.c.bf16 %v3795_v55, %v3794_v45  ;;  %v1612_v45 = vld [vmem:[#allocation2 + $0xc2] sm:$0xff]  ;;  %v1613_v55 = vld [vmem:[#allocation2 + $0xca] sm:$0xff] }
  0xf3   : > { %v22501_v6 = vpack.c.bf16 %v1613_v55, %v1612_v45  ;;  %v1621_v45 = vld [vmem:[#allocation2 + $0x12a] sm:$0xff] }
  0xf4   : > { %18468 = vmatmul.mubr.msk.bf16.gmra.mrb[8].mxu0 %vm863_vm2, %v22379_v2  ;;  %v4362_v55 = vld [vmem:[#allocation4 + $0xaa] sm:$0xff] }
  0xf5   : > { %18471 = vmatprep.mubr.msk.bf16.mxu0 %vm863_vm2, %v22381_v8 }
  0xf6   : > { %18148 = vmatmul.mubr.msk.bf16.gmra.mrb[20].mxu1 %vm753_vm0, %v22392_v15 }
  0xf7   : > { %18151 = vmatprep.mubr.msk.bf16.mxu1 %vm753_vm0, %v22394_v16 }
  0xfc   : > { %18472 = vmatmul.mubr.msk.bf16.gmra.mrb[12].mxu0 %vm863_vm2, %v22396_v18 }
  0xfd   : > { %18475 = vmatprep.mubr.msk.bf16.mxu0 %vm863_vm2, %v22398_v22 }
  0xfe   : > { %18152 = vmatmul.mubr.msk.bf16.gmra.mrb[24].mxu1 %vm753_vm0, %v22408_v32 }
  0xff   : > { %18155 = vmatprep.mubr.msk.bf16.mxu1 %vm753_vm0, %v22410_v33 }
 0x104   : > { %18476 = vmatmul.mubr.msk.bf16.gmra.mrb[16].mxu0 %vm863_vm2, %v22412_v39 }
 0x105   : > { %18479 = vmatprep.mubr.msk.bf16.mxu0 %vm863_vm2, %v22416_v44 }
 0x106   : > { %18156 = vmatmul.mubr.msk.bf16.gmra.mrb[28].mxu1 %vm753_vm0, %v22428_v56 }
 0x107   : > { %18163 = vmatprep.mubr.msk.bf16.mxu1 %vm753_vm0, %v1628_v57  ;;  %v4355_v57 = vld [vmem:[#allocation4 + $0x52] sm:$0xff] }
 0x10c   : > { %18480 = vmatmul.mubr.msk.bf16.gmra.mrb[20].mxu0 %vm863_vm2, %v22430_v58 }
 0x10d   : > { %18483 = vmatprep.mubr.msk.bf16.mxu0 %vm863_vm2, %v22432_v61 }
 0x10e   : > { %18164 = vmatmul.mubr.msk.bf16.vlgmr.msra.gmra.mrb[0].mxu1 %vm753_vm0, %v22441_v9 }
 0x10f   : > { %18167 = vmatprep.mubr.msk.bf16.mxu1 %vm753_vm0, %v22118_v26  ;;  %18196 = vmatpush3.bf16.msra.mxu1 %v22329_v35  ;;  %v22468_v26 = vpack.c.bf16 %v3801_v24, %v3800_v23  ;;  %v4380_v35 = vpack.c.bf16 %v4349_v27, %v4348_v25  ;;  %v1616_v23 = vld [vmem:[#allocation2 + $0xf2] sm:$0xff]  ;;  %v1617_v24 = vld [vmem:[#allocation2 + $0xfa] sm:$0xff]  ;;  %v4359_v27 = vld [vmem:[#allocation4 + $0x82] sm:$0xff] }
 0x110   : > { %18197 = vmatprep.subr.bf16.mxu1 %v21310_v12  ;;  %v4358_v25 = vld [vmem:[#allocation4 + $0x7a] sm:$0xff]  ;;  %v22525_v41 = vpack.c.bf16 %v1617_v24, %v1616_v23  ;;  %v1623_v23 = vld [vmem:[#allocation2 + $0x142] sm:$0xff]  ;;  %v1624_v24 = vld [vmem:[#allocation2 + $0x152] sm:$0xff] }
 0x111   : > { %v22527_v42 = vpack.c.bf16 %v4359_v27, %v4358_v25  ;;  %v1625_v25 = vld [vmem:[#allocation2 + $0x15a] sm:$0xff] }
 0x112   : > { %v4366_v27 = vld [vmem:[#allocation4 + $0xda] sm:$0xff] }
 0x113   : > { %18198 = vmatpush3.bf16.msra.mxu1 %v21310_v12  ;;  %v22505_v12 = vpack.c.bf16 %v4357_v62, %v4356_v60  ;;  %v4364_v60 = vld [vmem:[#allocation4 + $0xc2] sm:$0xff]  ;;  %v4365_v62 = vld [vmem:[#allocation4 + $0xca] sm:$0xff] }
 0x114   : > { %18484 = vmatmul.mubr.msk.bf16.gmra.mrb[24].mxu0 %vm863_vm2, %v22443_v11  ;;  %18231 = vmatprep.subr.bf16.mxu1 %v22464_v21 }
 0x115   : > { %18487 = vmatprep.mubr.msk.bf16.mxu0 %vm863_vm2, %v22448_v13 }
 0x116   : > { %18168 = vmatmul.mubr.msk.bf16.gmra.mrb[4].mxu1 %vm753_vm0, %v22121_v30  ;;  %v21308_v30 = vld [vmem:[%s25338_s15 + $0x68] sm:$0xff]  }
 0x117   : > { %18171 = vmatprep.mubr.msk.bf16.mxu1 %vm753_vm0, %v22131_v37  ;;  %v1610_v37 = vld [vmem:[#allocation2 + $0xaa] sm:$0xff] }
 0x118   : > { %v22496_v59 = vpack.c.bf16 %v1611_v51, %v1610_v37  ;;  %v1619_v37 = vld [vmem:[#allocation2 + $0x112] sm:$0xff]  ;;  %v1620_v51 = vld [vmem:[#allocation2 + $0x122] sm:$0xff] }
 0x11c   : > { %18488 = vmatmul.mubr.msk.bf16.gmra.mrb[28].mxu0 %vm863_vm2, %v22468_v26 }
 0x11d   : > { %18499 = vmatprep.mubr.msk.bf16.mxu0 %vm863_vm2, %v4380_v35  ;;  %v22518_v35 = vpack.c.bf16 %v1615_v19, %v1614_v14  ;;  %v22546_v14 = vpack.c.bf16 %v4365_v62, %v4364_v60  ;;  %v1622_v19 = vld [vmem:[#allocation2 + $0x13a] sm:$0xff]  ;;  %v1627_v60 = vld [vmem:[#allocation2 + $0x172] sm:$0xff]  ;;  %v4370_v62 = vld [vmem:[#allocation4 + $0x10a] sm:$0xff] }
 0x11e   : > { %18172 = vmatmul.mubr.msk.bf16.gmra.mrb[8].mxu1 %vm753_vm0, %v22143_v50  ;;  %v4354_v50 = vld [vmem:[#allocation4 + $0x4a] sm:$0xff]  ;;  %v22556_v29 = vpack.c.bf16 %v1623_v23, %v1622_v19  ;;  %v4371_v19 = vld [vmem:[#allocation4 + $0x112] sm:$0xff] }
 0x11f   : > { %18175 = vmatprep.mubr.msk.bf16.mxu1 %vm753_vm0, %v22478_v46  ;;  %v22503_v10 = vpack.c.bf16 %v4355_v57, %v4354_v50  ;;  %v4363_v50 = vld [vmem:[#allocation4 + $0xb2] sm:$0xff] }
 0x124   : > { %18500 = vmatmul.mubr.msk.bf16.vlgmr.msra.gmra.mrb[0].mxu0 %vm863_vm2, %v22480_v48 }
 0x125   : > { %18532 = vmatpush3.bf16.msra.mxu0 %v22375_v0  ;;  %18503 = vmatprep.mubr.msk.bf16.mxu0 %vm863_vm2, %v22482_v49  ;;  %v21311_v0 = vld [vmem:[%s25338_s15 + $0x78] sm:$0xff]  }
 0x126   : > { %18533 = vmatprep.subr.bf16.mxu0 %v21308_v30  ;;  %18176 = vmatmul.mubr.msk.bf16.gmra.mrb[12].mxu1 %vm753_vm0, %v22496_v59 }
 0x127   : > { %18179 = vmatprep.mubr.msk.bf16.mxu1 %vm753_vm0, %v22501_v6 }
 0x129   : > { %18534 = vmatpush3.bf16.msra.mxu0 %v21308_v30  ;;  %v1618_v30 = vld [vmem:[#allocation2 + $0x10a] sm:$0xff] }
 0x12a   : > { %18535 = vmatprep.subr.bf16.mxu0 %v21309_v5  ;;  %v22540_v57 = vpack.c.bf16 %v1619_v37, %v1618_v30  ;;  %v4368_v30 = vld [vmem:[#allocation4 + $0xf2] sm:$0xff]  ;;  %v4369_v37 = vld [vmem:[#allocation4 + $0xfa] sm:$0xff] }
 0x12c   : > { %18504 = vmatmul.mubr.msk.bf16.gmra.mrb[4].mxu0 %vm863_vm2, %v22503_v10 }
 0x12d   : > { %18507 = vmatprep.mubr.msk.bf16.mxu0 %vm863_vm2, %v22505_v12  ;;  %18536 = vmatpush3.bf16.msra.mxu0 %v21309_v5  ;;  %v22542_v5 = vpack.c.bf16 %v1621_v45, %v1620_v51  ;;  %v22558_v51 = vpack.c.bf16 %v1625_v25, %v1624_v24  ;;  %v22560_v45 = vpack.c.bf16 %v4367_v28, %v4366_v27  ;;  %v4372_v24 = vld [vmem:[#allocation4 + $0x122] sm:$0xff]  ;;  %v4373_v25 = vld [vmem:[#allocation4 + $0x12a] sm:$0xff] }
 0x12e   : > { %18537 = vmatprep.subr.bf16.mxu0 %v21311_v0  ;;  %18180 = vmatmul.mubr.msk.bf16.gmra.mrb[16].mxu1 %vm753_vm0, %v22518_v35  ;;  %v22574_v27 = vpack.c.bf16 %v4371_v19, %v4370_v62  ;;  %v22576_v28 = vpack.c.bf16 %v4373_v25, %v4372_v24  ;;  %v21316_v19 = vld [vmem:[%s25336_s28 + $0x48] sm:$0xff]  }
 0x12f   : > { %18183 = vmatprep.mubr.msk.bf16.mxu1 %vm753_vm0, %v22525_v41  ;;  %v4378_v25 = vld [vmem:[#allocation4 + $0x16a] sm:$0xff] }
 0x131   : > { %18538 = vmatpush3.bf16.msra.mxu0 %v21311_v0  ;;  %v22544_v0 = vpack.c.bf16 %v4363_v50, %v4362_v55  ;;  %v22562_v55 = vpack.c.bf16 %v4369_v37, %v4368_v30  ;;  %v1626_v50 = vld [vmem:[#allocation2 + $0x16a] sm:$0xff]  ;;  %v4374_v30 = vld [vmem:[#allocation4 + $0x13a] sm:$0xff]  ;;  %v4375_v37 = vld [vmem:[#allocation4 + $0x142] sm:$0xff] }
 0x132   : > { %18571 = vmatprep.subr.bf16.mxu0 %v22523_v40  ;;  %v22572_v23 = vpack.c.bf16 %v1627_v60, %v1626_v50  ;;  %v4376_v50 = vld [vmem:[#allocation4 + $0x152] sm:$0xff]  ;;  %v4377_v60 = vld [vmem:[#allocation4 + $0x15a] sm:$0xff]  ;;  %v22586_v62 = vpack.c.bf16 %v4375_v37, %v4374_v30 }
 0x133   : > { %v22591_v24 = vpack.c.bf16 %v4377_v60, %v4376_v50  ;;  %v4379_v30 = vld [vmem:[#allocation4 + $0x172] sm:$0xff]  ;;  %v2218_v60 = vld [vmem:[#allocation2 + $0xa9] sm:$0xff] }
 0x134   : > { %18508 = vmatmul.mubr.msk.bf16.gmra.mrb[8].mxu0 %vm863_vm2, %v22527_v42  ;;  %v2217_v50 = vld [vmem:[#allocation2 + $0x99] sm:$0xff] }
 0x135   : > { %18511 = vmatprep.mubr.msk.bf16.mxu0 %vm863_vm2, %v22529_v43 }
 0x136   : > { %18184 = vmatmul.mubr.msk.bf16.gmra.mrb[20].mxu1 %vm753_vm0, %v22540_v57 }
 0x137   : > { %18187 = vmatprep.mubr.msk.bf16.mxu1 %vm753_vm0, %v22542_v5 }
 0x13c   : > { %18512 = vmatmul.mubr.msk.bf16.gmra.mrb[12].mxu0 %vm863_vm2, %v22544_v0 }
 0x13d   : > { %18515 = vmatprep.mubr.msk.bf16.mxu0 %vm863_vm2, %v22546_v14 }
 0x13e   : > { %18188 = vmatmul.mubr.msk.bf16.gmra.mrb[24].mxu1 %vm753_vm0, %v22556_v29 }
 0x13f   : > { %18191 = vmatprep.mubr.msk.bf16.mxu1 %vm753_vm0, %v22558_v51 }
 0x144   : > { %18516 = vmatmul.mubr.msk.bf16.gmra.mrb[16].mxu0 %vm863_vm2, %v22560_v45 }
 0x145   : > { %18519 = vmatprep.mubr.msk.bf16.mxu0 %vm863_vm2, %v22562_v55 }
 0x146   : > { %18192 = vmatmul.mubr.msk.bf16.gmra.mrb[28].mxu1 %vm753_vm0, %v22572_v23 }
 0x147   : > { %18199 = vmatprep.mubr.msk.bf16.mxu1 %vm753_vm0, %v22299_v4  ;;  %v22603_v4 = vld [vmem:[%s25336_s28 + $0x50] sm:$0xff]  }
 0x14c   : > { %18520 = vmatmul.mubr.msk.bf16.gmra.mrb[20].mxu0 %vm863_vm2, %v22574_v27 }
 0x14d   : > { %18523 = vmatprep.mubr.msk.bf16.mxu0 %vm863_vm2, %v22576_v28 }
 0x14e   : > { %18200 = vmatmul.mubr.msk.bf16.vlgmr.msra.gmra.mrb[0].mxu1 %vm753_vm0, %v22301_v7  ;;  %v22607_v7 = vpack.c.bf16 %v4379_v30, %v4378_v25  ;;  %v4993_v25 = vld [vmem:[#allocation4 + $0x39] sm:$0xff] }
 0x14f   : > { %18203 = vmatprep.mubr.msk.bf16.mxu1 %vm753_vm0, %v22312_v17  ;;  %18232 = vmatpush3.bf16.msra.mxu1 %v22464_v21  ;;  %v21314_v17 = vld [vmem:[%s25338_s15 + $0x88] sm:$0xff]  }
 0x150   : > { %18233 = vmatprep.subr.bf16.mxu1 %v21316_v19  ;;  %v4991_v21 = vld [vmem:[#allocation4 + $0x21] sm:$0xff] }
 0x153   : > { %18234 = vmatpush3.bf16.msra.mxu1 %v21316_v19  ;;  %v2219_v19 = vld [vmem:[#allocation2 + $0xb1] sm:$0xff] }
 0x154   : > { %18524 = vmatmul.mubr.msk.bf16.gmra.mrb[24].mxu0 %vm863_vm2, %v22586_v62  ;;  %18267 = vmatprep.subr.bf16.mxu1 %v22603_v4 }
 0x155   : > { %18527 = vmatprep.mubr.msk.bf16.mxu0 %vm863_vm2, %v22591_v24 }
 0x156   : > { %18204 = vmatmul.mubr.msk.bf16.gmra.mrb[4].mxu1 %vm753_vm0, %v22314_v20  ;;  %v21315_v20 = vld [vmem:[%s25338_s15 + $0x90] sm:$0xff]  }
 0x157   : > { %18207 = vmatprep.mubr.msk.bf16.mxu1 %vm753_vm0, %v22322_v31  ;;  %v21317_v31 = vld [vmem:[%s25338_s15 + $0x98] sm:$0xff]  }
 0x15c   : > { %18528 = vmatmul.mubr.msk.bf16.gmra.mrb[28].mxu0 %vm863_vm2, %v22607_v7 }
 0x15d   : > { %18539 = vmatprep.mubr.msk.bf16.mxu0 %vm863_vm2, %v22331_v36  ;;  %v1931_v36 = vld [vmem:[#allocation2 + $0x180] sm:$0xff] }
 0x15e   : > { %18208 = vmatmul.mubr.msk.bf16.gmra.mrb[8].mxu1 %vm753_vm0, %v22324_v34  ;;  %v22647_v34 = vld [vmem:[%s25338_s15 + $0xa0] sm:$0xff]  }
 0x15f   : > { %18211 = vmatprep.mubr.msk.bf16.mxu1 %vm753_vm0, %v22348_v47  ;;  %v2206_v47 = vld [vmem:[#allocation2 + $0x19] sm:$0xff] }
 0x164   : > { %18540 = vmatmul.mubr.msk.bf16.vlgmr.msra.gmra.mrb[0].mxu0 %vm863_vm2, %v22333_v38  ;;  %v1932_v38 = vld [vmem:[#allocation2 + $0x188] sm:$0xff] }
 0x165   : > { %18572 = vmatpush3.bf16.msra.mxu0 %v22523_v40  ;;  %18543 = vmatprep.mubr.msk.bf16.mxu0 %vm863_vm2, %v22355_v53  ;;  %v22674_v53 = vpack.c.bf16 %v1932_v38, %v1931_v36 }
 0x166   : > { %18573 = vmatprep.subr.bf16.mxu0 %v21314_v17  ;;  %18212 = vmatmul.mubr.msk.bf16.gmra.mrb[12].mxu1 %vm753_vm0, %v22353_v52  ;;  %v2207_v52 = vld [vmem:[#allocation2 + $0x21] sm:$0xff] }
 0x167   : > { %18215 = vmatprep.mubr.msk.bf16.mxu1 %vm753_vm0, %v22370_v63  ;;  %v2208_v63 = vld [vmem:[#allocation2 + $0x31] sm:$0xff] }
 0x169   : > { %18574 = vmatpush3.bf16.msra.mxu0 %v21314_v17  ;;  %v4994_v17 = vld [vmem:[#allocation4 + $0x49] sm:$0xff] }
 0x16a   : > { %18575 = vmatprep.subr.bf16.mxu0 %v21315_v20 }
 0x16c   : > { %18544 = vmatmul.mubr.msk.bf16.gmra.mrb[4].mxu0 %vm863_vm2, %v22357_v54  ;;  %v2238_v54 = vpack.c.bf16 %v2207_v52, %v2206_v47  ;;  %v21320_v47 = vld [vmem:[%s25338_s15 + $0xa8] sm:$0xff]  }
 0x16d   : > { %18547 = vmatprep.mubr.msk.bf16.mxu0 %vm863_vm2, %v22379_v2  ;;  %18576 = vmatpush3.bf16.msra.mxu0 %v21315_v20  ;;  %v2210_v2 = vld [vmem:[#allocation2 + $0x49] sm:$0xff]  ;;  %v4995_v20 = vld [vmem:[#allocation4 + $0x51] sm:$0xff]  ;;  %v2220_v52 = vld [vmem:[#allocation2 + $0xc1] sm:$0xff] }
 0x16e   : > { %18577 = vmatprep.subr.bf16.mxu0 %v21317_v31  ;;  %18216 = vmatmul.mubr.msk.bf16.gmra.mrb[16].mxu1 %vm753_vm0, %v22377_v1  ;;  %v2209_v1 = vld [vmem:[#allocation2 + $0x39] sm:$0xff]  ;;  %v22724_v38 = vpack.c.bf16 %v4995_v20, %v4994_v17 }
 0x16f   : > { %18219 = vmatprep.mubr.msk.bf16.mxu1 %vm753_vm0, %v22392_v15  ;;  %v22683_v15 = vpack.c.bf16 %v2209_v1, %v2208_v63  ;;  %v2222_v63 = vld [vmem:[#allocation2 + $0xd9] sm:$0xff]  ;;  %v2223_v1 = vld [vmem:[#allocation2 + $0xe1] sm:$0xff] }
 0x170   : > { %v22765_v17 = vld [vmem:[%s25338_s15 + $0xc0] sm:$0xff]  }
 0x171   : > { %18578 = vmatpush3.bf16.msra.mxu0 %v21317_v31  ;;  %v22720_v31 = vpack.c.bf16 %v2219_v19, %v2218_v60  ;;  %v5001_v60 = vld [vmem:[#allocation4 + $0x99] sm:$0xff] }
 0x172   : > { %18611 = vmatprep.subr.bf16.mxu0 %v22647_v34 }
 0x174   : > { %18548 = vmatmul.mubr.msk.bf16.gmra.mrb[8].mxu0 %vm863_vm2, %v22381_v8  ;;  %v2211_v8 = vld [vmem:[#allocation2 + $0x51] sm:$0xff] }
 0x175   : > { %18551 = vmatprep.mubr.msk.bf16.mxu0 %vm863_vm2, %v22396_v18  ;;  %v21322_v18 = vld [vmem:[%s25336_s28 + $0x58] sm:$0xff]  }
 0x176   : > { %18220 = vmatmul.mubr.msk.bf16.gmra.mrb[20].mxu1 %vm753_vm0, %v22394_v16  ;;  %v22685_v16 = vpack.c.bf16 %v2211_v8, %v2210_v2  ;;  %v4996_v2 = vld [vmem:[#allocation4 + $0x61] sm:$0xff]  ;;  %v4997_v8 = vld [vmem:[#allocation4 + $0x69] sm:$0xff] }
 0x177   : > { %18223 = vmatprep.mubr.msk.bf16.mxu1 %vm753_vm0, %v22408_v32  ;;  %v2213_v32 = vld [vmem:[#allocation2 + $0x69] sm:$0xff] }
 0x17c   : > { %18552 = vmatmul.mubr.msk.bf16.gmra.mrb[12].mxu0 %vm863_vm2, %v22398_v22  ;;  %v2212_v22 = vld [vmem:[#allocation2 + $0x61] sm:$0xff] }
 0x17d   : > { %18555 = vmatprep.mubr.msk.bf16.mxu0 %vm863_vm2, %v22412_v39  ;;  %v2215_v39 = vld [vmem:[#allocation2 + $0x81] sm:$0xff] }
 0x17e   : > { %18224 = vmatmul.mubr.msk.bf16.gmra.mrb[24].mxu1 %vm753_vm0, %v22410_v33  ;;  %v2214_v33 = vld [vmem:[#allocation2 + $0x79] sm:$0xff] }
 0x17f   : > { %18227 = vmatprep.mubr.msk.bf16.mxu1 %vm753_vm0, %v22428_v56  ;;  %v4699_v56 = vld [vmem:[#allocation4 + $0x180] sm:$0xff]  ;;  %v22706_v40 = vpack.c.bf16 %v2215_v39, %v2214_v33  ;;  %v21321_v33 = vld [vmem:[%s25338_s15 + $0xb0] sm:$0xff]   ;;  %v22743_v39 = vpack.c.bf16 %v2223_v1, %v2222_v63 }
 0x180   : > { %v2229_v63 = vld [vmem:[#allocation2 + $0x129] sm:$0xff]  ;;  %v2230_v1 = vld [vmem:[#allocation2 + $0x139] sm:$0xff] }
 0x184   : > { %18556 = vmatmul.mubr.msk.bf16.gmra.mrb[16].mxu0 %vm863_vm2, %v22416_v44  ;;  %v22700_v44 = vld [vmem:[%s25336_s28 + $0x60] sm:$0xff]  }
 0x185   : > { %18559 = vmatprep.mubr.msk.bf16.mxu0 %vm863_vm2, %v22430_v58  ;;  %v4700_v58 = vld [vmem:[#allocation4 + $0x188] sm:$0xff] }
 0x186   : > { %18228 = vmatmul.mubr.msk.bf16.gmra.mrb[28].mxu1 %vm753_vm0, %v22674_v53 }
 0x187   : > { %18235 = vmatprep.mubr.msk.bf16.mxu1 %vm753_vm0, %v2238_v54  ;;  %v2221_v54 = vld [vmem:[#allocation2 + $0xc9] sm:$0xff] }
 0x18c   : > { %18560 = vmatmul.mubr.msk.bf16.gmra.mrb[20].mxu0 %vm863_vm2, %v22432_v61  ;;  %v22704_v61 = vpack.c.bf16 %v2213_v32, %v2212_v22  ;;  %v4998_v22 = vld [vmem:[#allocation4 + $0x79] sm:$0xff]  ;;  %v4999_v32 = vld [vmem:[#allocation4 + $0x81] sm:$0xff] }
 0x18d   : > { %18563 = vmatprep.mubr.msk.bf16.mxu0 %vm863_vm2, %v22443_v11  ;;  %v4990_v11 = vld [vmem:[#allocation4 + $0x19] sm:$0xff] }
 0x18e   : > { %18236 = vmatmul.mubr.msk.bf16.vlgmr.msra.gmra.mrb[0].mxu1 %vm753_vm0, %v22683_v15  ;;  %v5022_v37 = vpack.c.bf16 %v4991_v21, %v4990_v11  ;;  %v2224_v11 = vld [vmem:[#allocation2 + $0xf1] sm:$0xff]  ;;  %v2225_v21 = vld [vmem:[#allocation2 + $0xf9] sm:$0xff] }
 0x18f   : > { %18239 = vmatprep.mubr.msk.bf16.mxu1 %vm753_vm0, %v22685_v16  ;;  %18268 = vmatpush3.bf16.msra.mxu1 %v22603_v4  ;;  %v4992_v4 = vld [vmem:[#allocation4 + $0x31] sm:$0xff]  ;;  %v22760_v19 = vpack.c.bf16 %v2225_v21, %v2224_v11 }
 0x190   : > { %18269 = vmatprep.subr.bf16.mxu1 %v21322_v18  ;;  %v22722_v36 = vpack.c.bf16 %v4993_v25, %v4992_v4  ;;  %v5002_v4 = vld [vmem:[#allocation4 + $0xa9] sm:$0xff]  ;;  %v5003_v25 = vld [vmem:[#allocation4 + $0xb1] sm:$0xff] }
 0x193   : > { %18270 = vmatpush3.bf16.msra.mxu1 %v21322_v18  ;;  %v22738_v18 = vpack.c.bf16 %v2221_v54, %v2220_v52  ;;  %v22771_v52 = vpack.c.bf16 %v5003_v25, %v5002_v4  ;;  %v2228_v54 = vld [vmem:[#allocation2 + $0x121] sm:$0xff]  ;;  %v2235_v4 = vld [vmem:[#allocation2 + $0x171] sm:$0xff] }
 0x194   : > { %18564 = vmatmul.mubr.msk.bf16.gmra.mrb[24].mxu0 %vm863_vm2, %v22448_v13  ;;  %v22708_v13 = vpack.c.bf16 %v4700_v58, %v4699_v56  ;;  %18303 = vmatprep.subr.bf16.mxu1 %v22700_v44  ;;  %v22745_v56 = vpack.c.bf16 %v4997_v8, %v4996_v2  ;;  %v22747_v58 = vpack.c.bf16 %v4999_v32, %v4998_v22  ;;  %v2231_v2 = vld [vmem:[#allocation2 + $0x141] sm:$0xff]  ;;  %v5005_v22 = vld [vmem:[#allocation4 + $0xc9] sm:$0xff]  ;;  %v5008_v25 = vld [vmem:[#allocation4 + $0xf1] sm:$0xff] }
 0x195   : > { %18567 = vmatprep.mubr.msk.bf16.mxu0 %vm863_vm2, %v22468_v26  ;;  %v2216_v26 = vld [vmem:[#allocation2 + $0x91] sm:$0xff]  ;;  %v5004_v8 = vld [vmem:[#allocation4 + $0xc1] sm:$0xff]  ;;  %v22782_v32 = vpack.c.bf16 %v2229_v63, %v2228_v54  ;;  %v22784_v11 = vpack.c.bf16 %v2231_v2, %v2230_v1  ;;  %v5009_v54 = vld [vmem:[#allocation4 + $0xf9] sm:$0xff] }
 0x196   : > { %18240 = vmatmul.mubr.msk.bf16.gmra.mrb[4].mxu1 %vm753_vm0, %v22704_v61  ;;  %v22718_v30 = vpack.c.bf16 %v2217_v50, %v2216_v26  ;;  %v2227_v26 = vld [vmem:[#allocation2 + $0x111] sm:$0xff]  ;;  %v22786_v21 = vpack.c.bf16 %v5005_v22, %v5004_v8  ;;  %v5010_v1 = vld [vmem:[#allocation4 + $0x109] sm:$0xff]  ;;  %v22802_v22 = vpack.c.bf16 %v5009_v54, %v5008_v25  ;;  %v5015_v25 = vld [vmem:[#allocation4 + $0x141] sm:$0xff] }
 0x197   : > { %18243 = vmatprep.mubr.msk.bf16.mxu1 %vm753_vm0, %v22706_v40  ;;  %v5000_v50 = vld [vmem:[#allocation4 + $0x91] sm:$0xff] }
 0x198   : > { %v5011_v2 = vld [vmem:[#allocation4 + $0x111] sm:$0xff]  ;;  %25341 = vst [vmem:[#allocation23_spill] sm:$0xff] %v22802_v22 }
 0x19c   : > { %18568 = vmatmul.mubr.msk.bf16.gmra.mrb[28].mxu0 %vm863_vm2, %v22708_v13 }
 0x19d   : > { %18579 = vmatprep.mubr.msk.bf16.mxu0 %vm863_vm2, %v5022_v37  ;;  %v2226_v37 = vld [vmem:[#allocation2 + $0x109] sm:$0xff] }
 0x19e   : > { %18244 = vmatmul.mubr.msk.bf16.gmra.mrb[8].mxu1 %vm753_vm0, %v22718_v30  ;;  %v22767_v20 = vpack.c.bf16 %v2227_v26, %v2226_v37  ;;  %v2232_v26 = vld [vmem:[#allocation2 + $0x151] sm:$0xff] }
 0x19f   : > { %18247 = vmatprep.mubr.msk.bf16.mxu1 %vm753_vm0, %v22720_v31 }
 0x1a4   : > { %18580 = vmatmul.mubr.msk.bf16.vlgmr.msra.gmra.mrb[0].mxu0 %vm863_vm2, %v22722_v36 }
 0x1a5   : > { %18612 = vmatpush3.bf16.msra.mxu0 %v22647_v34  ;;  %18583 = vmatprep.mubr.msk.bf16.mxu0 %vm863_vm2, %v22724_v38  ;;  %v21323_v34 = vld [vmem:[%s25338_s15 + $0xb8] sm:$0xff]  }
 0x1a6   : > { %18613 = vmatprep.subr.bf16.mxu0 %v21320_v47  ;;  %18248 = vmatmul.mubr.msk.bf16.gmra.mrb[12].mxu1 %vm753_vm0, %v22738_v18 }
 0x1a7   : > { %18251 = vmatprep.mubr.msk.bf16.mxu1 %vm753_vm0, %v22743_v39 }
 0x1a9   : > { %18614 = vmatpush3.bf16.msra.mxu0 %v21320_v47  ;;  %v22769_v47 = vpack.c.bf16 %v5001_v60, %v5000_v50  ;;  %v2233_v50 = vld [vmem:[#allocation2 + $0x159] sm:$0xff]  ;;  %v2234_v60 = vld [vmem:[#allocation2 + $0x169] sm:$0xff] }
 0x1aa   : > { %18615 = vmatprep.subr.bf16.mxu0 %v21321_v33  ;;  %v22798_v63 = vpack.c.bf16 %v2233_v50, %v2232_v26  ;;  %v22800_v8 = vpack.c.bf16 %v2235_v4, %v2234_v60  ;;  %v5012_v26 = vld [vmem:[#allocation4 + $0x121] sm:$0xff]  ;;  %v5013_v50 = vld [vmem:[#allocation4 + $0x129] sm:$0xff]  ;;  %v5014_v4 = vld [vmem:[#allocation4 + $0x139] sm:$0xff] }
 0x1ab   : > { %v22816_v54 = vpack.c.bf16 %v5013_v50, %v5012_v26  ;;  %v5017_v26 = vld [vmem:[#allocation4 + $0x159] sm:$0xff] }
 0x1ac   : > { %18584 = vmatmul.mubr.msk.bf16.gmra.mrb[4].mxu0 %vm863_vm2, %v22745_v56  ;;  %25340 = vst [vmem:[#allocation22_spill] sm:$0xff] %v22800_v8 }
 0x1ad   : > { %18587 = vmatprep.mubr.msk.bf16.mxu0 %vm863_vm2, %v22747_v58  ;;  %18616 = vmatpush3.bf16.msra.mxu0 %v21321_v33  ;;  %v5006_v33 = vld [vmem:[#allocation4 + $0xd9] sm:$0xff]  ;;  %25344 = vst [vmem:[#allocation26_spill] sm:$0xff] %v22816_v54 }
 0x1ae   : > { %18617 = vmatprep.subr.bf16.mxu0 %v21323_v34  ;;  %18252 = vmatmul.mubr.msk.bf16.gmra.mrb[16].mxu1 %vm753_vm0, %v22760_v19 }
 0x1af   : > { %18255 = vmatprep.mubr.msk.bf16.mxu1 %vm753_vm0, %v22767_v20 }
 0x1b1   : > { %18618 = vmatpush3.bf16.msra.mxu0 %v21323_v34  ;;  %v5007_v34 = vld [vmem:[#allocation4 + $0xe1] sm:$0xff] }
 0x1b2   : > { %18651 = vmatprep.subr.bf16.mxu0 %v22765_v17  ;;  %v22788_v37 = vpack.c.bf16 %v5007_v34, %v5006_v33  ;;  %v22804_v33 = vpack.c.bf16 %v5011_v2, %v5010_v1  ;;  %v2236_v34 = vld [vmem:[#allocation2 + $0x181] sm:$0xff]  ;;  %v22818_v1 = vpack.c.bf16 %v5015_v25, %v5014_v4  ;;  %v2513_v2 = vld [vmem:[#allocation2 + $0x32] sm:$0xff]  ;;  %v5018_v4 = vld [vmem:[#allocation4 + $0x169] sm:$0xff] }
 0x1b3   : > { %v22814_v60 = vpack.c.bf16 %v2237_v3, %v2236_v34  ;;  %v2516_v3 = vld [vmem:[#allocation2 + $0x52] sm:$0xff] }
 0x1b4   : > { %18588 = vmatmul.mubr.msk.bf16.gmra.mrb[8].mxu0 %vm863_vm2, %v22769_v47  ;;  %25339 = vst [vmem:[#allocation21_spill] sm:$0xff] %v22788_v37  ;;  %25342 = vst [vmem:[#allocation24_spill] sm:$0xff] %v22804_v33  ;;  %v5016_v34 = vld [vmem:[#allocation4 + $0x151] sm:$0xff] }
 0x1b5   : > { %18591 = vmatprep.mubr.msk.bf16.mxu0 %vm863_vm2, %v22771_v52  ;;  %25343 = vst [vmem:[#allocation25_spill] sm:$0xff] %v22814_v60  ;;  %25345 = vst [vmem:[#allocation27_spill] sm:$0xff] %v22818_v1  ;;  %v5019_v25 = vld [vmem:[#allocation4 + $0x171] sm:$0xff] }
 0x1b6   : > { %18256 = vmatmul.mubr.msk.bf16.gmra.mrb[20].mxu1 %vm753_vm0, %v22782_v32 }
 0x1b7   : > { %18259 = vmatprep.mubr.msk.bf16.mxu1 %vm753_vm0, %v22784_v11 }
 0x1bc   : > { %18592 = vmatmul.mubr.msk.bf16.gmra.mrb[12].mxu0 %vm863_vm2, %v22786_v21 }
 0x1bd   : > { %18595 = vmatprep.mubr.msk.bf16.mxu0 %vm863_vm2, %v22788_v37  ;;  %v22833_v37 = vpack.c.bf16 %v5019_v25, %v5018_v4  ;;  %v22936_v25 = vld [vmem:[%s25336_s28 + $0x80] sm:$0xff]  }
 0x1be   : > { %18260 = vmatmul.mubr.msk.bf16.gmra.mrb[24].mxu1 %vm753_vm0, %v22798_v63 }
 0x1bf   : > { %18263 = vmatprep.mubr.msk.bf16.mxu1 %vm753_vm0, %v22800_v8  ;;  %v2514_v8 = vld [vmem:[#allocation2 + $0x3a] sm:$0xff] }
 0x1c0   : > { %v2544_v50 = vpack.c.bf16 %v2514_v8, %v2513_v2  ;;  %v2519_v8 = vld [vmem:[#allocation2 + $0x7a] sm:$0xff]  ;;  %v22843_v2 = vld [vmem:[%s25336_s28 + $0x70] sm:$0xff]  }
 0x1c4   : > { %18596 = vmatmul.mubr.msk.bf16.gmra.mrb[16].mxu0 %vm863_vm2, %v22802_v22 }
 0x1c5   : > { %18599 = vmatprep.mubr.msk.bf16.mxu0 %vm863_vm2, %v22804_v33  ;;  %v2515_v33 = vld [vmem:[#allocation2 + $0x4a] sm:$0xff] }
 0x1c6   : > { %18264 = vmatmul.mubr.msk.bf16.gmra.mrb[28].mxu1 %vm753_vm0, %v22814_v60  ;;  %v2545_v22 = vpack.c.bf16 %v2516_v3, %v2515_v33  ;;  %v22828_v60 = vpack.c.bf16 %v5017_v26, %v5016_v34  ;;  %v2520_v33 = vld [vmem:[#allocation2 + $0x82] sm:$0xff] }
 0x1c7   : > { %18271 = vmatprep.mubr.msk.bf16.mxu1 %vm753_vm0, %v22441_v9  ;;  %v21328_v9 = vld [vmem:[%s25336_s28 + $0x68] sm:$0xff]   ;;  %v2547_v26 = vpack.c.bf16 %v2520_v33, %v2519_v8  ;;  %v2829_v8 = vld [vmem:[#allocation2 + $0xc0] sm:$0xff] }
 0x1c8   : > { %v5020_v3 = vld [vmem:[#allocation4 + $0x181] sm:$0xff] }
 0x1c9   : > { %v2830_v33 = vld [vmem:[#allocation2 + $0xc8] sm:$0xff] }
 0x1cc   : > { %18600 = vmatmul.mubr.msk.bf16.gmra.mrb[20].mxu0 %vm863_vm2, %v22816_v54  ;;  %v2517_v54 = vld [vmem:[#allocation2 + $0x62] sm:$0xff] }
 0x1cd   : > { %18603 = vmatprep.mubr.msk.bf16.mxu0 %vm863_vm2, %v22818_v1  ;;  %v2518_v1 = vld [vmem:[#allocation2 + $0x6a] sm:$0xff] }
 0x1ce   : > { %18272 = vmatmul.mubr.msk.bf16.vlgmr.msra.gmra.mrb[0].mxu1 %vm753_vm0, %v2544_v50  ;;  %v2546_v34 = vpack.c.bf16 %v2518_v1, %v2517_v54  ;;  %v21326_v54 = vld [vmem:[%s25338_s15 + $0xc8] sm:$0xff]   ;;  %v5634_v1 = vld [vmem:[#allocation4 + $0x38] sm:$0xff] }
 0x1cf   : > { %18275 = vmatprep.mubr.msk.bf16.mxu1 %vm753_vm0, %v2545_v22  ;;  %18304 = vmatpush3.bf16.msra.mxu1 %v22700_v44  ;;  %v5021_v22 = vld [vmem:[#allocation4 + $0x189] sm:$0xff] }
 0x1d0   : > { %18305 = vmatprep.subr.bf16.mxu1 %v21328_v9  ;;  %v22847_v44 = vpack.c.bf16 %v5021_v22, %v5020_v3  ;;  %v5636_v3 = vld [vmem:[#allocation4 + $0x50] sm:$0xff] }
 0x1d3   : > { %18306 = vmatpush3.bf16.msra.mxu1 %v21328_v9  ;;  %v2828_v9 = vld [vmem:[#allocation2 + $0xb0] sm:$0xff] }
 0x1d4   : > { %18604 = vmatmul.mubr.msk.bf16.gmra.mrb[24].mxu0 %vm863_vm2, %v22828_v60  ;;  %18339 = vmatprep.subr.bf16.mxu1 %v22843_v2 }
 0x1d5   : > { %18607 = vmatprep.mubr.msk.bf16.mxu0 %vm863_vm2, %v22833_v37 }
 0x1d6   : > { %18276 = vmatmul.mubr.msk.bf16.gmra.mrb[4].mxu1 %vm753_vm0, %v2546_v34  ;;  %v5637_v34 = vld [vmem:[#allocation4 + $0x60] sm:$0xff] }
 0x1d7   : > { %18279 = vmatprep.mubr.msk.bf16.mxu1 %vm753_vm0, %v2547_v26  ;;  %v5638_v26 = vld [vmem:[#allocation4 + $0x68] sm:$0xff] }
 0x1dc   : > { %18608 = vmatmul.mubr.msk.bf16.gmra.mrb[28].mxu0 %vm863_vm2, %v22847_v44 }
 0x1dd   : > { %18619 = vmatprep.mubr.msk.bf16.mxu0 %vm863_vm2, %v22480_v48  ;;  %v21329_v48 = vld [vmem:[%s25338_s15 + $0xd8] sm:$0xff]  }
 0x1de   : > { %18280 = vmatmul.mubr.msk.bf16.gmra.mrb[8].mxu1 %vm753_vm0, %v22478_v46  ;;  %v21327_v46 = vld [vmem:[%s25338_s15 + $0xd0] sm:$0xff]  }
 0x1df   : > { %18283 = vmatprep.mubr.msk.bf16.mxu1 %vm753_vm0, %v22496_v59  ;;  %v2541_v59 = vld [vmem:[#allocation2 + $0x182] sm:$0xff] }
 0x1e4   : > { %18620 = vmatmul.mubr.msk.bf16.vlgmr.msra.gmra.mrb[0].mxu0 %vm863_vm2, %v22482_v49  ;;  %v22885_v49 = vld [vmem:[%s25338_s15 + $0xe0] sm:$0xff]  }
 0x1e5   : > { %18652 = vmatpush3.bf16.msra.mxu0 %v22765_v17  ;;  %18623 = vmatprep.mubr.msk.bf16.mxu0 %vm863_vm2, %v22503_v10  ;;  %v2817_v10 = vld [vmem:[#allocation2 + $0x30] sm:$0xff] }
 0x1e6   : > { %18653 = vmatprep.subr.bf16.mxu0 %v21326_v54  ;;  %18284 = vmatmul.mubr.msk.bf16.gmra.mrb[12].mxu1 %vm753_vm0, %v22501_v6  ;;  %v2542_v6 = vld [vmem:[#allocation2 + $0x18a] sm:$0xff] }
 0x1e7   : > { %18287 = vmatprep.mubr.msk.bf16.mxu1 %vm753_vm0, %v22518_v35  ;;  %v22912_v35 = vpack.c.bf16 %v2542_v6, %v2541_v59  ;;  %v5633_v17 = vld [vmem:[#allocation4 + $0x30] sm:$0xff]  ;;  %v21332_v59 = vld [vmem:[%s25338_s15 + $0xe8] sm:$0xff]   ;;  %v2831_v6 = vld [vmem:[#allocation2 + $0xd8] sm:$0xff] }
 0x1e9   : > { %18654 = vmatpush3.bf16.msra.mxu0 %v21326_v54  ;;  %v2855_v54 = vpack.c.bf16 %v2830_v33, %v2829_v8 }
 0x1ea   : > { %18655 = vmatprep.subr.bf16.mxu0 %v21327_v46 }
 0x1ec   : > { %18624 = vmatmul.mubr.msk.bf16.gmra.mrb[4].mxu0 %vm863_vm2, %v22505_v12  ;;  %v2818_v12 = vld [vmem:[#allocation2 + $0x38] sm:$0xff] }
 0x1ed   : > { %18627 = vmatprep.mubr.msk.bf16.mxu0 %vm863_vm2, %v22527_v42  ;;  %18656 = vmatpush3.bf16.msra.mxu0 %v21327_v46  ;;  %v2819_v42 = vld [vmem:[#allocation2 + $0x48] sm:$0xff] }
 0x1ee   : > { %18657 = vmatprep.subr.bf16.mxu0 %v21329_v48  ;;  %18288 = vmatmul.mubr.msk.bf16.gmra.mrb[16].mxu1 %vm753_vm0, %v22525_v41  ;;  %v2849_v41 = vpack.c.bf16 %v2818_v12, %v2817_v10  ;;  %v2832_v10 = vld [vmem:[#allocation2 + $0xe0] sm:$0xff]  ;;  %v2833_v12 = vld [vmem:[#allocation2 + $0xf0] sm:$0xff] }
 0x1ef   : > { %18291 = vmatprep.mubr.msk.bf16.mxu1 %vm753_vm0, %v22540_v57  ;;  %v2821_v57 = vld [vmem:[#allocation2 + $0x60] sm:$0xff] }
 0x1f1   : > { %18658 = vmatpush3.bf16.msra.mxu0 %v21329_v48  ;;  %v5667_v48 = vpack.c.bf16 %v5638_v26, %v5637_v34  ;;  %v2842_v34 = vld [vmem:[#allocation2 + $0x158] sm:$0xff] }
 0x1f2   : > { %18691 = vmatprep.subr.bf16.mxu0 %v22885_v49  ;;  %v5647_v26 = vld [vmem:[#allocation4 + $0xd8] sm:$0xff] }
 0x1f4   : > { %18628 = vmatmul.mubr.msk.bf16.gmra.mrb[8].mxu0 %vm863_vm2, %v22529_v43  ;;  %v2820_v43 = vld [vmem:[#allocation2 + $0x50] sm:$0xff] }
 0x1f5   : > { %18631 = vmatprep.mubr.msk.bf16.mxu0 %vm863_vm2, %v22544_v0  ;;  %v2850_v0 = vpack.c.bf16 %v2820_v43, %v2819_v42  ;;  %v5639_v42 = vld [vmem:[#allocation4 + $0x78] sm:$0xff]  ;;  %v5640_v43 = vld [vmem:[#allocation4 + $0x80] sm:$0xff] }
 0x1f6   : > { %18292 = vmatmul.mubr.msk.bf16.gmra.mrb[20].mxu1 %vm753_vm0, %v22542_v5  ;;  %v2822_v5 = vld [vmem:[#allocation2 + $0x68] sm:$0xff] }
 0x1f7   : > { %18295 = vmatprep.mubr.msk.bf16.mxu1 %vm753_vm0, %v22556_v29  ;;  %v21334_v29 = vld [vmem:[%s25336_s28 + $0x78] sm:$0xff]  }
 0x1fc   : > { %18632 = vmatmul.mubr.msk.bf16.gmra.mrb[12].mxu0 %vm863_vm2, %v22546_v14  ;;  %v2851_v14 = vpack.c.bf16 %v2822_v5, %v2821_v57  ;;  %v2856_v57 = vpack.c.bf16 %v2832_v10, %v2831_v6  ;;  %v5641_v5 = vld [vmem:[#allocation4 + $0x90] sm:$0xff] }
 0x1fd   : > { %18635 = vmatprep.mubr.msk.bf16.mxu0 %vm863_vm2, %v22560_v45  ;;  %v2824_v45 = vld [vmem:[#allocation2 + $0x80] sm:$0xff] }
 0x1fe   : > { %18296 = vmatmul.mubr.msk.bf16.gmra.mrb[24].mxu1 %vm753_vm0, %v22558_v51  ;;  %v2823_v51 = vld [vmem:[#allocation2 + $0x78] sm:$0xff] }
 0x1ff   : > { %18299 = vmatprep.mubr.msk.bf16.mxu1 %vm753_vm0, %v22572_v23  ;;  %v2826_v23 = vld [vmem:[#allocation2 + $0x98] sm:$0xff] }
 0x204   : > { %18636 = vmatmul.mubr.msk.bf16.gmra.mrb[16].mxu0 %vm863_vm2, %v22562_v55  ;;  %v2825_v55 = vld [vmem:[#allocation2 + $0x90] sm:$0xff] }
 0x205   : > { %18639 = vmatprep.mubr.msk.bf16.mxu0 %vm863_vm2, %v22574_v27  ;;  %v5341_v27 = vld [vmem:[#allocation4 + $0x182] sm:$0xff]  ;;  %v2853_v50 = vpack.c.bf16 %v2826_v23, %v2825_v55  ;;  %v2836_v23 = vld [vmem:[#allocation2 + $0x110] sm:$0xff] }
 0x206   : > { %18300 = vmatmul.mubr.msk.bf16.gmra.mrb[28].mxu1 %vm753_vm0, %v22912_v35  ;;  %v2835_v55 = vld [vmem:[#allocation2 + $0x108] sm:$0xff] }
 0x207   : > { %18307 = vmatprep.mubr.msk.bf16.mxu1 %vm753_vm0, %v2849_v41  ;;  %v2834_v41 = vld [vmem:[#allocation2 + $0xf8] sm:$0xff] }
 0x20c   : > { %18640 = vmatmul.mubr.msk.bf16.gmra.mrb[20].mxu0 %vm863_vm2, %v22576_v28  ;;  %v5342_v28 = vld [vmem:[#allocation4 + $0x18a] sm:$0xff] }
 0x20d   : > { %18643 = vmatprep.mubr.msk.bf16.mxu0 %vm863_vm2, %v22586_v62  ;;  %v2852_v62 = vpack.c.bf16 %v2824_v45, %v2823_v51  ;;  %v22931_v4 = vpack.c.bf16 %v5342_v28, %v5341_v27  ;;  %v5668_v51 = vpack.c.bf16 %v5640_v43, %v5639_v42  ;;  %v2837_v27 = vld [vmem:[#allocation2 + $0x120] sm:$0xff]  ;;  %v2838_v28 = vld [vmem:[#allocation2 + $0x128] sm:$0xff]  ;;  %v2844_v42 = vld [vmem:[#allocation2 + $0x170] sm:$0xff]  ;;  %v21517_v43 = vmov 0  }
 0x20e   : > { %18308 = vmatmul.mubr.msk.bf16.vlgmr.msra.gmra.mrb[0].mxu1 %vm753_vm0, %v2850_v0  ;;  %v5642_v0 = vld [vmem:[#allocation4 + $0x98] sm:$0xff]  ;;  %21284 = vset.pattern.permute.xlu0 %v21517_v43 }
 0x20f   : > { %18311 = vmatprep.mubr.msk.bf16.mxu1 %vm753_vm0, %v2851_v14  ;;  %18340 = vmatpush3.bf16.msra.mxu1 %v22843_v2  ;;  %v5635_v2 = vld [vmem:[#allocation4 + $0x48] sm:$0xff]  ;;  %v21333_v14 = vld [vmem:[%s25338_s15 + $0xf0] sm:$0xff]   ;;  %v5669_v45 = vpack.c.bf16 %v5642_v0, %v5641_v5 }
 0x210   : > { %18341 = vmatprep.subr.bf16.mxu1 %v21334_v29  ;;  %v5666_v46 = vpack.c.bf16 %v5636_v3, %v5635_v2  ;;  %v2839_v2 = vld [vmem:[#allocation2 + $0x138] sm:$0xff]  ;;  %v2840_v3 = vld [vmem:[#allocation2 + $0x140] sm:$0xff]  ;;  %21285 = vset.pattern.permute.xlu1 %v21517_v43  ;;  %v6662_v5 = vld [vmem:[%s21718_s2 + $0x10] sm:$0xff] }
 0x211   : > { %v5651_v0 = vld [vmem:[#allocation4 + $0x108] sm:$0xff]  ;;  %6704 = vperm.xlu1 %21285, %v6662_v5   ;;  %v6676_v43 = vld [vmem:[%s21718_s2 + $0x80] sm:$0xff]  ;;  %v6678_v5 = vld [vmem:[%s21718_s2 + $0x90] sm:$0xff] }
 0x213   : > { %18342 = vmatpush3.bf16.msra.mxu1 %v21334_v29  ;;  %v2857_v29 = vpack.c.bf16 %v2834_v41, %v2833_v12  ;;  %v2843_v41 = vld [vmem:[#allocation2 + $0x168] sm:$0xff] }
 0x214   : > { %18644 = vmatmul.mubr.msk.bf16.gmra.mrb[24].mxu0 %vm863_vm2, %v22591_v24  ;;  %19855 = vmatprep.subr.bf16.mxu1 %v22936_v25  ;;  %v5665_v24 = vpack.c.bf16 %v5634_v1, %v5633_v17  ;;  %v5644_v17 = vld [vmem:[#allocation4 + $0xb0] sm:$0xff]  ;;  %v2858_v1 = vpack.c.bf16 %v2836_v23, %v2835_v55 }
 0x215   : > { %18647 = vmatprep.mubr.msk.bf16.mxu0 %vm863_vm2, %v22607_v7  ;;  %v2827_v7 = vld [vmem:[#allocation2 + $0xa8] sm:$0xff] }
 0x216   : > { %18312 = vmatmul.mubr.msk.bf16.gmra.mrb[4].mxu1 %vm753_vm0, %v2852_v62  ;;  %v2854_v22 = vpack.c.bf16 %v2828_v9, %v2827_v7  ;;  %v5643_v62 = vld [vmem:[#allocation4 + $0xa8] sm:$0xff]  ;;  %v22965_v7 = vld [vmem:[%s25338_s15 + $0x100] sm:$0xff]   ;;  %v2859_v9 = vpack.c.bf16 %v2838_v28, %v2837_v27  ;;  %v2847_v27 = vld [vmem:[#allocation2 + $0x198] sm:$0xff] }
 0x217   : > { %18315 = vmatprep.mubr.msk.bf16.mxu1 %vm753_vm0, %v2853_v50  ;;  %v5645_v50 = vld [vmem:[#allocation4 + $0xc0] sm:$0xff]  ;;  %v5670_v8 = vpack.c.bf16 %v5644_v17, %v5643_v62  ;;  %v6663_v62 = vld [vmem:[%s21718_s2 + $0x18] sm:$0xff] }
 0x218   : > { %v2848_v28 = vld [vmem:[#allocation2 + $0x1a0] sm:$0xff]  ;;  %6709 = vperm.xlu1 %21285, %v6663_v62   ;;  %v3437_v62 = vld [vmem:[#allocation2 + $0xaa] sm:$0xff] }
 0x219   : > { %v6664_v17 = vld [vmem:[%s21718_s2 + $0x20] sm:$0xff] }
 0x21c   : > { %18648 = vmatmul.mubr.msk.bf16.gmra.mrb[28].mxu0 %vm863_vm2, %v22931_v4 }
 0x21d   : > { %18659 = vmatprep.mubr.msk.bf16.mxu0 %vm863_vm2, %v5665_v24  ;;  %v5646_v24 = vld [vmem:[#allocation4 + $0xc8] sm:$0xff] }
 0x21e   : > { %18316 = vmatmul.mubr.msk.bf16.gmra.mrb[8].mxu1 %vm753_vm0, %v2854_v22  ;;  %v5671_v33 = vpack.c.bf16 %v5646_v24, %v5645_v50  ;;  %v2841_v22 = vld [vmem:[#allocation2 + $0x150] sm:$0xff]  ;;  %v5656_v50 = vld [vmem:[#allocation4 + $0x140] sm:$0xff]  ;;  %v2864_v24 = vpack.c.bf16 %v2848_v28, %v2847_v27 }
 0x21f   : > { %18319 = vmatprep.mubr.msk.bf16.mxu1 %vm753_vm0, %v2855_v54  ;;  %v5648_v54 = vld [vmem:[#allocation4 + $0xe0] sm:$0xff]  ;;  %v2861_v6 = vpack.c.bf16 %v2842_v34, %v2841_v22  ;;  %v6667_v22 = vld [vmem:[%s21718_s2 + $0x38] sm:$0xff] }
 0x220   : > { %v5672_v10 = vpack.c.bf16 %v5648_v54, %v5647_v26  ;;  %v6668_v34 = vld [vmem:[%s21718_s2 + $0x40] sm:$0xff]  ;;  %v5659_v26 = vld [vmem:[#allocation4 + $0x168] sm:$0xff]  ;;  %v5660_v54 = vld [vmem:[#allocation4 + $0x170] sm:$0xff] }
 0x224   : > { %18660 = vmatmul.mubr.msk.bf16.vlgmr.msra.gmra.mrb[0].mxu0 %vm863_vm2, %v5666_v46  ;;  %v2860_v46 = vpack.c.bf16 %v2840_v3, %v2839_v2 }
 0x225   : > { %18692 = vmatpush3.bf16.msra.mxu0 %v22885_v49  ;;  %18663 = vmatprep.mubr.msk.bf16.mxu0 %vm863_vm2, %v5667_v48  ;;  %v21335_v49 = vld [vmem:[%s25338_s15 + $0xf8] sm:$0xff]   ;;  %v5649_v48 = vld [vmem:[#allocation4 + $0xf0] sm:$0xff] }
 0x226   : > { %18693 = vmatprep.subr.bf16.mxu0 %v21332_v59  ;;  %18320 = vmatmul.mubr.msk.bf16.gmra.mrb[12].mxu1 %vm753_vm0, %v2856_v57  ;;  %v6660_v57 = vld [vmem:[%s21718_s2] sm:$0xff] }
 0x227   : > { %18323 = vmatprep.mubr.msk.bf16.mxu1 %vm753_vm0, %v2857_v29  ;;  %6694 = vperm.xlu0 %21284, %v6660_v57   ;;  %v2862_v29 = vpack.c.bf16 %v2844_v42, %v2843_v41  ;;  %v25346_v42 = vmov 0.0   ;;  %v6677_v57 = vld [vmem:[%s21718_s2 + $0x88] sm:$0xff] }
 0x229   : > { %18694 = vmatpush3.bf16.msra.mxu0 %v21332_v59  ;;  %v5650_v59 = vld [vmem:[#allocation4 + $0xf8] sm:$0xff] }
 0x22a   : > { %18695 = vmatprep.subr.bf16.mxu0 %v21333_v14  ;;  %v5673_v12 = vpack.c.bf16 %v5650_v59, %v5649_v48  ;;  %v6670_v48 = vld [vmem:[%s21718_s2 + $0x50] sm:$0xff]  ;;  %v5678_v59 = vpack.c.bf16 %v5660_v54, %v5659_v26  ;;  %v6276_v54 = vld [vmem:[#allocation4 + $0x3a] sm:$0xff] }
 0x22c   : > { %18664 = vmatmul.mubr.msk.bf16.gmra.mrb[4].mxu0 %vm863_vm2, %v5668_v51  ;;  %v5653_v51 = vld [vmem:[#allocation4 + $0x120] sm:$0xff] }
 0x22d   : > { %18667 = vmatprep.mubr.msk.bf16.mxu0 %vm863_vm2, %v5669_v45  ;;  %18696 = vmatpush3.bf16.msra.mxu0 %v21333_v14  ;;  %v5652_v14 = vld [vmem:[#allocation4 + $0x110] sm:$0xff]  ;;  %v5654_v45 = vld [vmem:[#allocation4 + $0x128] sm:$0xff] }
 0x22e   : > { %18697 = vmatprep.subr.bf16.mxu0 %v21335_v49  ;;  %18324 = vmatmul.mubr.msk.bf16.gmra.mrb[16].mxu1 %vm753_vm0, %v2858_v1  ;;  %v5674_v55 = vpack.c.bf16 %v5652_v14, %v5651_v0  ;;  %v5675_v23 = vpack.c.bf16 %v5654_v45, %v5653_v51  ;;  %v5655_v1 = vld [vmem:[#allocation4 + $0x138] sm:$0xff]  ;;  %v6682_v0 = vld [vmem:[%s21718_s2 + $0xb0] sm:$0xff]  ;;  %v6689_v14 = vld [vmem:[%s21718_s2 + $0xe8] sm:$0xff] }
 0x22f   : > { %18327 = vmatprep.mubr.msk.bf16.mxu1 %vm753_vm0, %v2859_v9  ;;  %v5657_v9 = vld [vmem:[#allocation4 + $0x150] sm:$0xff]  ;;  %v5676_v2 = vpack.c.bf16 %v5656_v50, %v5655_v1  ;;  %v3153_v45 = vld [vmem:[#allocation2 + $0x1a1] sm:$0xff] }
 0x230   : > { %v25350_v51 = vld [vmem:[#allocation25_spill] sm:$0xff]  ;;  %v25353_v1 = vld [vmem:[#allocation27_spill] sm:$0xff] }
 0x231   : > { %18698 = vmatpush3.bf16.msra.mxu0 %v21335_v49  ;;  %v6661_v49 = vld [vmem:[%s21718_s2 + $0x8] sm:$0xff] }
 0x232   : > { %18731 = vmatprep.subr.bf16.mxu0 %v22965_v7  ;;  %6699 = vperm.xlu0 %21284, %v6661_v49   ;;  %v25351_v49 = vld [vmem:[#allocation24_spill] sm:$0xff] }
 0x233   : > { %v3439_v50 = vld [vmem:[#allocation2 + $0xc2] sm:$0xff] }
 0x234   : > { %18668 = vmatmul.mubr.msk.bf16.gmra.mrb[8].mxu0 %vm863_vm2, %v5670_v8  ;;  %v5658_v8 = vld [vmem:[#allocation4 + $0x158] sm:$0xff] }
 0x235   : > { %18671 = vmatprep.mubr.msk.bf16.mxu0 %vm863_vm2, %v5671_v33  ;;  %v6665_v33 = vld [vmem:[%s21718_s2 + $0x28] sm:$0xff]  ;;  %v5677_v3 = vpack.c.bf16 %v5658_v8, %v5657_v9 }
 0x236   : > { %18328 = vmatmul.mubr.msk.bf16.gmra.mrb[20].mxu1 %vm753_vm0, %v2860_v46  ;;  %6714 = vperm.xlu0 %21284, %v6664_v17   ;;  %v6669_v46 = vld [vmem:[%s21718_s2 + $0x48] sm:$0xff]  ;;  %v3438_v17 = vld [vmem:[#allocation2 + $0xb2] sm:$0xff] }
 0x237   : > { %18331 = vmatprep.mubr.msk.bf16.mxu1 %vm753_vm0, %v2861_v6  ;;  %6719 = vperm.xlu1 %21285, %v6665_v33   ;;  %v6671_v6 = vld [vmem:[%s21718_s2 + $0x58] sm:$0xff]  ;;  %v3464_v9 = vpack.c.bf16 %v3438_v17, %v3437_v62  ;;  %v6295_v17 = vld [vmem:[#allocation4 + $0x122] sm:$0xff] }
 0x238   : > { %v3441_v33 = vld [vmem:[#allocation2 + $0xda] sm:$0xff]  ;;  %v6294_v62 = vld [vmem:[#allocation4 + $0x112] sm:$0xff] }
 0x23b   : > { %6729 = vperm.xlu1 %21285, %v6667_v22   ;;  %v5984_v22 = vld [vmem:[#allocation4 + $0x199] sm:$0xff] }
 0x23c   : > { %18672 = vmatmul.mubr.msk.bf16.gmra.mrb[12].mxu0 %vm863_vm2, %v5672_v10  ;;  %v6672_v10 = vld [vmem:[%s21718_s2 + $0x60] sm:$0xff] }
 0x23d   : > { %18675 = vmatprep.mubr.msk.bf16.mxu0 %vm863_vm2, %v5673_v12  ;;  %v5664_v12 = vld [vmem:[#allocation4 + $0x1a0] sm:$0xff] }
 0x23e   : > { %18332 = vmatmul.mubr.msk.bf16.gmra.mrb[24].mxu1 %vm753_vm0, %v2862_v29  ;;  %v6690_v29 = vld [vmem:[%s21718_s2 + $0xf0] sm:$0xff] }
 0x23f   : > { %18335 = vmatprep.mubr.msk.bf16.mxu1 %vm753_vm0, %v22674_v53  ;;  %v6666_v53 = vld [vmem:[%s21718_s2 + $0x30] sm:$0xff]  ;;  %6739 = vperm.xlu1 %21285, %v6669_v46  }
 0x240   : > { %6724 = vperm.xlu0 %21284, %v6666_v53   ;;  %v3442_v53 = vld [vmem:[#allocation2 + $0xe2] sm:$0xff] }
 0x241   : > { %v3466_v26 = vpack.c.bf16 %v3442_v53, %v3441_v33  ;;  %v6299_v33 = vld [vmem:[#allocation4 + $0x152] sm:$0xff]  ;;  %v6300_v53 = vld [vmem:[#allocation4 + $0x15a] sm:$0xff] }
 0x243   : > { %6749 = vperm.xlu1 %21285, %v6671_v6   ;;  %v3446_v6 = vld [vmem:[#allocation2 + $0x112] sm:$0xff] }
 0x244   : > { %18676 = vmatmul.mubr.msk.bf16.gmra.mrb[16].mxu0 %vm863_vm2, %v5674_v55  ;;  %6734 = vperm.xlu0 %21284, %v6668_v34   ;;  %v3436_v55 = vld [vmem:[#allocation2 + $0x9a] sm:$0xff] }
 0x245   : > { %18679 = vmatprep.mubr.msk.bf16.mxu0 %vm863_vm2, %v5675_v23  ;;  %v25352_v23 = vld [vmem:[#allocation26_spill] sm:$0xff]  ;;  %v5985_v34 = vld [vmem:[#allocation4 + $0x1a1] sm:$0xff] }
 0x246   : > { %18336 = vmatmul.mubr.msk.bf16.gmra.mrb[28].mxu1 %vm753_vm0, %v2864_v24  ;;  %v3440_v24 = vld [vmem:[#allocation2 + $0xca] sm:$0xff] }
 0x247   : > { %18343 = vmatprep.mubr.msk.bf16.mxu1 %vm753_vm0, %v22683_v15  ;;  %v21355_v15 = vld [vmem:[%s25336_s28 + $0x88] sm:$0xff]   ;;  %v3465_v8 = vpack.c.bf16 %v3440_v24, %v3439_v50 }
 0x248   : > { %6744 = vperm.xlu0 %21284, %v6670_v48   ;;  %v6001_v48 = vpack.c.bf16 %v5985_v34, %v5984_v22  ;;  %v6301_v22 = vld [vmem:[#allocation4 + $0x16a] sm:$0xff]  ;;  %v6302_v34 = vld [vmem:[#allocation4 + $0x172] sm:$0xff] }
 0x24c   : > { %18680 = vmatmul.mubr.msk.bf16.gmra.mrb[20].mxu0 %vm863_vm2, %v5676_v2  ;;  %6754 = vperm.xlu0 %21284, %v6672_v10   ;;  %v3443_v2 = vld [vmem:[#allocation2 + $0xf2] sm:$0xff]  ;;  %v3448_v10 = vld [vmem:[#allocation2 + $0x12a] sm:$0xff] }
 0x24d   : > { %18683 = vmatprep.mubr.msk.bf16.mxu0 %vm863_vm2, %v5677_v3  ;;  %v3444_v3 = vld [vmem:[#allocation2 + $0xfa] sm:$0xff] }
 0x24e   : > { %18344 = vmatmul.mubr.msk.bf16.vlgmr.msra.gmra.mrb[0].mxu1 %vm753_vm0, %v22685_v16  ;;  %v5663_v16 = vld [vmem:[#allocation4 + $0x198] sm:$0xff]  ;;  %v3467_v46 = vpack.c.bf16 %v3444_v3, %v3443_v2  ;;  %v6319_v3 = vpack.c.bf16 %v6300_v53, %v6299_v33 }
 0x24f   : > { %18347 = vmatprep.mubr.msk.bf16.mxu1 %vm753_vm0, %v22704_v61  ;;  %19857 = vmatpush3.bf16.msra.mxu1 %v22936_v25  ;;  %v6673_v61 = vld [vmem:[%s21718_s2 + $0x68] sm:$0xff]  ;;  %v6674_v25 = vld [vmem:[%s21718_s2 + $0x70] sm:$0xff]  ;;  %v5680_v41 = vpack.c.bf16 %v5664_v12, %v5663_v16 }
 0x250   : > { %19856 = vmatprep.subr.bf16.mxu1 %v21355_v15  ;;  %6759 = vperm.xlu1 %21285, %v6673_v61   ;;  %v6278_v16 = vld [vmem:[#allocation4 + $0x52] sm:$0xff]  ;;  %v6279_v61 = vld [vmem:[#allocation4 + $0x62] sm:$0xff] }
 0x251   : > { %6764 = vperm.xlu0 %21284, %v6674_v25   ;;  %v6280_v25 = vld [vmem:[#allocation4 + $0x6a] sm:$0xff] }
 0x253   : > { %19858 = vmatpush3.bf16.msra.mxu1 %v21355_v15  ;;  %v3445_v15 = vld [vmem:[#allocation2 + $0x10a] sm:$0xff] }
 0x254   : > { %18684 = vmatmul.mubr.msk.bf16.gmra.mrb[24].mxu0 %vm863_vm2, %v5678_v59  ;;  %18771 = vmatprep.subr.bf16.mxu1 %v25346_v42  ;;  %v3468_v12 = vpack.c.bf16 %v3446_v6, %v3445_v15 }
 0x255   : > { %18687 = vmatprep.mubr.msk.bf16.mxu0 %vm863_vm2, %v22708_v13  ;;  %v6675_v13 = vld [vmem:[%s21718_s2 + $0x78] sm:$0xff]  ;;  %6774 = vperm.xlu0 %21284, %v6676_v43   ;;  %v6309_v43 = vpack.c.bf16 %v6280_v25, %v6279_v61 }
 0x256   : > { %18348 = vmatmul.mubr.msk.bf16.gmra.mrb[4].mxu1 %vm753_vm0, %v22706_v40  ;;  %6769 = vperm.xlu1 %21285, %v6675_v13   ;;  %v21337_v40 = vld [vmem:[%s25338_s15 + $0x108] sm:$0xff]  }
 0x257   : > { %18351 = vmatprep.mubr.msk.bf16.mxu1 %vm753_vm0, %v22718_v30  ;;  %v6679_v30 = vld [vmem:[%s21718_s2 + $0x98] sm:$0xff] }
 0x259   : > { %6784 = vperm.xlu0 %21284, %v6678_v5   ;;  %v3450_v5 = vld [vmem:[#allocation2 + $0x142] sm:$0xff] }
 0x25a   : > { %6779 = vperm.xlu1 %21285, %v6677_v57   ;;  %v3449_v57 = vld [vmem:[#allocation2 + $0x13a] sm:$0xff] }
 0x25c   : > { %18688 = vmatmul.mubr.msk.bf16.gmra.mrb[28].mxu0 %vm863_vm2, %v5680_v41 }
 0x25d   : > { %18699 = vmatprep.mubr.msk.bf16.mxu0 %vm863_vm2, %v22722_v36  ;;  %v6680_v36 = vld [vmem:[%s21718_s2 + $0xa0] sm:$0xff] }
 0x25e   : > { %18352 = vmatmul.mubr.msk.bf16.gmra.mrb[8].mxu1 %vm753_vm0, %v22720_v31  ;;  %v21338_v31 = vld [vmem:[%s25338_s15 + $0x110] sm:$0xff]   ;;  %6789 = vperm.xlu1 %21285, %v6679_v30   ;;  %v3452_v30 = vld [vmem:[#allocation2 + $0x15a] sm:$0xff] }
 0x25f   : > { %18355 = vmatprep.mubr.msk.bf16.mxu1 %vm753_vm0, %v22738_v18  ;;  %6794 = vperm.xlu0 %21284, %v6680_v36   ;;  %v6681_v18 = vld [vmem:[%s21718_s2 + $0xa8] sm:$0xff]  ;;  %v6281_v36 = vld [vmem:[#allocation4 + $0x7a] sm:$0xff] }
 0x262   : > { %6799 = vperm.xlu1 %21285, %v6681_v18   ;;  %v3470_v18 = vpack.c.bf16 %v3450_v5, %v3449_v57 }
 0x263   : > { %6804 = vperm.xlu0 %21284, %v6682_v0   ;;  %v6283_v0 = vld [vmem:[#allocation4 + $0x92] sm:$0xff] }
 0x264   : > { %18700 = vmatmul.mubr.msk.bf16.vlgmr.msra.gmra.mrb[0].mxu0 %vm863_vm2, %v22724_v38  ;;  %v21339_v38 = vld [vmem:[%s25338_s15 + $0x118] sm:$0xff]  }
 0x265   : > { %18732 = vmatpush3.bf16.msra.mxu0 %v22965_v7  ;;  %18703 = vmatprep.mubr.msk.bf16.mxu0 %vm863_vm2, %v22745_v56  ;;  %v6683_v56 = vld [vmem:[%s21718_s2 + $0xb8] sm:$0xff]  ;;  %v6685_v7 = vld [vmem:[%s21718_s2 + $0xc8] sm:$0xff] }
 0x266   : > { %18733 = vmatprep.subr.bf16.mxu0 %v21337_v40  ;;  %18356 = vmatmul.mubr.msk.bf16.gmra.mrb[12].mxu1 %vm753_vm0, %v22743_v39  ;;  %v6684_v39 = vld [vmem:[%s21718_s2 + $0xc0] sm:$0xff] }
 0x267   : > { %18359 = vmatprep.mubr.msk.bf16.mxu1 %vm753_vm0, %v22760_v19  ;;  %6809 = vperm.xlu1 %21285, %v6683_v56   ;;  %v6686_v19 = vld [vmem:[%s21718_s2 + $0xd0] sm:$0xff] }
 0x268   : > { %6814 = vperm.xlu0 %21284, %v6684_v39  }
 0x269   : > { %18734 = vmatpush3.bf16.msra.mxu0 %v21337_v40  ;;  %v3451_v40 = vld [vmem:[#allocation2 + $0x152] sm:$0xff] }
 0x26a   : > { %18735 = vmatprep.subr.bf16.mxu0 %v21338_v31  ;;  %v3471_v56 = vpack.c.bf16 %v3452_v30, %v3451_v40 }
 0x26b   : > { %6819 = vperm.xlu1 %21285, %v6685_v7  }
 0x26c   : > { %18704 = vmatmul.mubr.msk.bf16.gmra.mrb[4].mxu0 %vm863_vm2, %v22747_v58  ;;  %6824 = vperm.xlu0 %21284, %v6686_v19   ;;  %v6687_v58 = vld [vmem:[%s21718_s2 + $0xd8] sm:$0xff]  ;;  %v3453_v19 = vld [vmem:[#allocation2 + $0x16a] sm:$0xff] }
 0x26d   : > { %18707 = vmatprep.mubr.msk.bf16.mxu0 %vm863_vm2, %v22769_v47  ;;  %18736 = vmatpush3.bf16.msra.mxu0 %v21338_v31  ;;  %v6688_v47 = vld [vmem:[%s21718_s2 + $0xe0] sm:$0xff] }
 0x26e   : > { %18737 = vmatprep.subr.bf16.mxu0 %v21339_v38  ;;  %18360 = vmatmul.mubr.msk.bf16.gmra.mrb[16].mxu1 %vm753_vm0, %v22767_v20  ;;  %v25347_v20 = vld [vmem:[#allocation21_spill] sm:$0xff]  ;;  %v6282_v31 = vld [vmem:[#allocation4 + $0x82] sm:$0xff] }
 0x26f   : > { %18363 = vmatprep.mubr.msk.bf16.mxu1 %vm753_vm0, %v22782_v32  ;;  %6829 = vperm.xlu1 %21285, %v6687_v58   ;;  %v25348_v32 = vld [vmem:[#allocation23_spill] sm:$0xff]  ;;  %v6310_v39 = vpack.c.bf16 %v6282_v31, %v6281_v36  ;;  %v3454_v58 = vld [vmem:[#allocation2 + $0x172] sm:$0xff] }
 0x270   : > { %6834 = vperm.xlu0 %21284, %v6688_v47   ;;  %v6285_v47 = vld [vmem:[#allocation4 + $0xaa] sm:$0xff] }
 0x271   : > { %18738 = vmatpush3.bf16.msra.mxu0 %v21339_v38  ;;  %v6284_v38 = vld [vmem:[#allocation4 + $0x9a] sm:$0xff] }
 0x272   : > { %v6311_v7 = vpack.c.bf16 %v6284_v38, %v6283_v0 }
 0x273   : > { %6839 = vperm.xlu1 %21285, %v6689_v14   ;;  %v6286_v14 = vld [vmem:[#allocation4 + $0xb2] sm:$0xff] }
 0x274   : > { %18708 = vmatmul.mubr.msk.bf16.gmra.mrb[8].mxu0 %vm863_vm2, %v22771_v52  ;;  %6844 = vperm.xlu0 %21284, %v6690_v29   ;;  %v6691_v52 = vld [vmem:[%s21718_s2 + $0xf8] sm:$0xff]  ;;  %v3472_v29 = vpack.c.bf16 %v3454_v58, %v3453_v19 }
 0x275   : > { %18711 = vmatprep.mubr.msk.bf16.mxu0 %vm863_vm2, %v22786_v21  ;;  %v25349_v21 = vld [vmem:[#allocation22_spill] sm:$0xff] }
 0x276   : > { %18364 = vmatmul.mubr.msk.bf16.gmra.mrb[20].mxu1 %vm753_vm0, %v22784_v11  ;;  %v3152_v11 = vld [vmem:[#allocation2 + $0x199] sm:$0xff] }
 0x277   : > { %18367 = vmatprep.mubr.msk.bf16.mxu1 %vm753_vm0, %v22798_v63  ;;  %6849 = vperm.xlu1 %21285, %v6691_v52   ;;  %v3435_v63 = vld [vmem:[#allocation2 + $0x92] sm:$0xff]  ;;  %v3169_v27 = vpack.c.bf16 %v3153_v45, %v3152_v11  ;;  %v6288_v52 = vld [vmem:[#allocation4 + $0xca] sm:$0xff]  ;;  %v3458_v11 = vld [vmem:[#allocation2 + $0x1a2] sm:$0xff] }
 0x278   : > { %v3463_v28 = vpack.c.bf16 %v3436_v55, %v3435_v63  ;;  %v6289_v45 = vld [vmem:[#allocation4 + $0xda] sm:$0xff]  ;;  %v6291_v55 = vld [vmem:[#allocation4 + $0xf2] sm:$0xff] }
 0x27c   : > { %18712 = vmatmul.mubr.msk.bf16.gmra.mrb[12].mxu0 %vm863_vm2, %v25347_v20  ;;  %v6287_v20 = vld [vmem:[#allocation4 + $0xc2] sm:$0xff] }
 0x27d   : > { %18715 = vmatprep.mubr.msk.bf16.mxu0 %vm863_vm2, %v25348_v32  ;;  %v6312_v32 = vpack.c.bf16 %v6286_v14, %v6285_v47  ;;  %v23178_v14 = vld [vmem:[%s25263_s5] ss:$0 sm:$0xff] }
 0x27e   : > { %18368 = vmatmul.mubr.msk.bf16.gmra.mrb[24].mxu1 %vm753_vm0, %v25349_v21  ;;  %v6313_v21 = vpack.c.bf16 %v6288_v52, %v6287_v20 }
 0x27f   : > { %18371 = vmatprep.mubr.msk.bf16.mxu1 %vm753_vm0, %v25350_v51  ;;  %v3457_v51 = vld [vmem:[#allocation2 + $0x19a] sm:$0xff] }
 0x280   : > { %v3474_v63 = vpack.c.bf16 %v3458_v11, %v3457_v51 }
 0x284   : > { %18716 = vmatmul.mubr.msk.bf16.gmra.mrb[16].mxu0 %vm863_vm2, %v25351_v49  ;;  %v6290_v49 = vld [vmem:[#allocation4 + $0xe2] sm:$0xff] }
 0x285   : > { %18719 = vmatprep.mubr.msk.bf16.mxu0 %vm863_vm2, %v25352_v23  ;;  %v6292_v23 = vld [vmem:[#allocation4 + $0xfa] sm:$0xff] }
 0x286   : > { %18372 = vmatmul.mubr.msk.bf16.gmra.mrb[28].mxu1 %vm753_vm0, %v3169_v27  ;;  %v6314_v27 = vpack.c.bf16 %v6290_v49, %v6289_v45 }
 0x287   : > { %18387 = vmatprep.mubr.msk.bf16.mxu1 %vm753_vm0, %v3463_v28  ;;  %v6315_v28 = vpack.c.bf16 %v6292_v23, %v6291_v55 }
 0x28c   : > { %18720 = vmatmul.mubr.msk.bf16.gmra.mrb[20].mxu0 %vm863_vm2, %v25353_v1  ;;  %v6296_v1 = vld [vmem:[#allocation4 + $0x12a] sm:$0xff] }
 0x28d   : > { %18723 = vmatprep.mubr.msk.bf16.mxu0 %vm863_vm2, %v22828_v60  ;;  %v6275_v60 = vld [vmem:[#allocation4 + $0x32] sm:$0xff]  ;;  %v6317_v24 = vpack.c.bf16 %v6296_v1, %v6295_v17  ;;  %v6628_v1 = vld [vmem:[%s21708_s4] sm:$0xff] }
 0x28e   : > { %18388 = vmatmul.mubr.msk.bf16.vlgmr.msra.gmra.mrb[8].mxu1 %vm753_vm0, %v3464_v9  ;;  %v6307_v59 = vpack.c.bf16 %v6276_v54, %v6275_v60  ;;  %v6297_v9 = vld [vmem:[#allocation4 + $0x13a] sm:$0xff]  ;;  %v6306_v54 = vld [vmem:[#allocation4 + $0x1a2] sm:$0xff] }
 0x28f   : > { %18391 = vmatprep.mubr.msk.bf16.mxu1 %vm753_vm0, %v3465_v8  ;;  %v6298_v8 = vld [vmem:[#allocation4 + $0x142] sm:$0xff]  ;;  %v6305_v60 = vld [vmem:[#allocation4 + $0x19a] sm:$0xff] }
 0x290   : > { %v6318_v2 = vpack.c.bf16 %v6298_v8, %v6297_v9  ;;  %v6705_v25 = vpop.permute.xlu1 %6704  ;;  %v6631_v8 = vld [vmem:[%s21708_s4 + $0x18] sm:$0xff] }
 0x294   : > { %18724 = vmatmul.mubr.msk.bf16.gmra.mrb[24].mxu0 %vm863_vm2, %v22833_v37  ;;  %v3447_v37 = vld [vmem:[#allocation2 + $0x122] sm:$0xff] }
 0x295   : > { %18727 = vmatprep.mubr.msk.bf16.mxu0 %vm863_vm2, %v22847_v44  ;;  %v6277_v44 = vld [vmem:[#allocation4 + $0x4a] sm:$0xff]  ;;  %v3469_v41 = vpack.c.bf16 %v3448_v10, %v3447_v37  ;;  %v21340_v37 = vld [vmem:[%s25264_s6] sm:$0xff]  }
 0x296   : > { %18392 = vmatmul.mubr.msk.bf16.gmra.mrb[12].mxu1 %vm753_vm0, %v3466_v26  ;;  %v6308_v13 = vpack.c.bf16 %v6278_v16, %v6277_v44  ;;  %v6320_v26 = vpack.c.bf16 %v6302_v34, %v6301_v22 }
 0x297   : > { %18395 = vmatprep.mubr.msk.bf16.mxu1 %vm753_vm0, %v3467_v46  ;;  %v6322_v46 = vpack.c.bf16 %v6306_v54, %v6305_v60  ;;  %18772 = vmatpush3.bf16.msra.mxu1 %v21340_v37 }
 0x298   : > { %18773 = vmatprep.subr.bf16.mxu1 %v25346_v42 }
 0x29c   : > { %18728 = vmatmul.mubr.msk.bf16.gmra.mrb[28].mxu0 %vm863_vm2, %v6001_v48 }
 0x29d   : > { %18739 = vmatprep.mubr.msk.bf16.mxu0 %vm863_vm2, %v6307_v59 }
 0x29e   : > { %18396 = vmatmul.mubr.msk.bf16.gmra.mrb[16].mxu1 %vm753_vm0, %v3468_v12  ;;  %v21341_v12 = vld [vmem:[%s25264_s6 + $0x8] sm:$0xff]  }
 0x29f   : > { %18399 = vmatprep.mubr.msk.bf16.mxu1 %vm753_vm0, %v3469_v41  ;;  %18774 = vmatpush3.bf16.msra.mxu1 %v21341_v12 }
 0x2a0   : > { %18779 = vmatprep.subr.bf16.mxu1 %v25346_v42 }
 0x2a4   : > { %18740 = vmatmul.mubr.msk.bf16.vlgmr.msra.gmra.mrb[0].mxu0 %vm863_vm2, %v6308_v13  ;;  %v6710_v13 = vpop.permute.xlu1 %6709 }
 0x2a5   : > { %18743 = vmatprep.mubr.msk.bf16.mxu0 %vm863_vm2, %v6309_v43 }
 0x2a6   : > { %18400 = vmatmul.mubr.msk.bf16.gmra.mrb[20].mxu1 %vm753_vm0, %v3470_v18  ;;  %v6695_v61 = vpop.permute.xlu0 %6694 }
 0x2a7   : > { %18403 = vmatprep.mubr.msk.bf16.mxu1 %vm753_vm0, %v3471_v56 }
 0x2ac   : > { %18744 = vmatmul.mubr.msk.bf16.gmra.mrb[4].mxu0 %vm863_vm2, %v6310_v39 }
 0x2ad   : > { %18747 = vmatprep.mubr.msk.bf16.mxu0 %vm863_vm2, %v6311_v7 }
 0x2ae   : > { %18404 = vmatmul.mubr.msk.bf16.gmra.mrb[24].mxu1 %vm753_vm0, %v3472_v29 }
 0x2af   : > { %18407 = vmatprep.mubr.msk.bf16.mxu1 %vm753_vm0, %v22912_v35  ;;  %v6293_v35 = vld [vmem:[#allocation4 + $0x10a] sm:$0xff] }
 0x2b0   : > { %v6316_v50 = vpack.c.bf16 %v6294_v62, %v6293_v35 }
 0x2b1   : > { %v6700_v41 = vpop.permute.xlu0 %6699 }
 0x2b4   : > { %18748 = vmatmul.mubr.msk.bf16.gmra.mrb[8].mxu0 %vm863_vm2, %v6312_v32 }
 0x2b5   : > { %18751 = vmatprep.mubr.msk.bf16.mxu0 %vm863_vm2, %v6313_v21  ;;  %v23143_v43 = vpop.permute.xlu0 %6714 }
 0x2b6   : > { %18408 = vmatmul.mubr.msk.bf16.gmra.mrb[28].mxu1 %vm753_vm0, %v3474_v63  ;;  %v23145_v57 = vpop.permute.xlu1 %6719 }
 0x2b7   : > { %18775 = vmatprep.mubr.msk.bf16.mxu1 %vm21518_vm4, %v25346_v42 }
 0x2ba   : > { %v23149_v40 = vpop.permute.xlu1 %6729 }
 0x2bc   : > { %18752 = vmatmul.mubr.msk.bf16.gmra.mrb[12].mxu0 %vm863_vm2, %v6314_v27 }
 0x2bd   : > { %18755 = vmatprep.mubr.msk.bf16.mxu0 %vm863_vm2, %v6315_v28  ;;  %v6630_v28 = vld [vmem:[%s21708_s4 + $0x10] sm:$0xff] }
 0x2be   : > { %v23161_v38 = vpop.permute.xlu1 %6739 }
 0x2bf   : > { %v23147_v5 = vpop.permute.xlu0 %6724 }
 0x2c2   : > { %v23171_v58 = vpop.permute.xlu1 %6749 }
 0x2c3   : > { %v23159_v0 = vpop.permute.xlu0 %6734 }
 0x2c4   : > { %18756 = vmatmul.mubr.msk.bf16.gmra.mrb[16].mxu0 %vm863_vm2, %v6316_v50 }
 0x2c5   : > { %18759 = vmatprep.mubr.msk.bf16.mxu0 %vm863_vm2, %v6317_v24 }
 0x2c7   : > { %v23167_v7 = vpop.permute.xlu0 %6744 }
 0x2cb   : > { %v23180_v29 = vpop.permute.xlu0 %6754 }
 0x2cc   : > { %18760 = vmatmul.mubr.msk.bf16.gmra.mrb[20].mxu0 %vm863_vm2, %v6318_v2 }
 0x2cd   : > { %18763 = vmatprep.mubr.msk.bf16.mxu0 %vm863_vm2, %v6319_v3  ;;  %v6629_v3 = vld [vmem:[%s21708_s4 + $0x8] sm:$0xff] }
 0x2cf   : > { %v23185_v32 = vpop.permute.xlu1 %6759 }
 0x2d0   : > { %v23200_v22 = vpop.permute.xlu0 %6764 }
 0x2d4   : > { %18764 = vmatmul.mubr.msk.bf16.gmra.mrb[24].mxu0 %vm863_vm2, %v6320_v26 }
 0x2d5   : > { %18767 = vmatprep.mubr.msk.bf16.mxu0 %vm863_vm2, %v22931_v4 }
 0x2dc   : > { %18768 = vmatmul.mubr.msk.bf16.gmra.mrb[28].mxu0 %vm863_vm2, %v6322_v46  ;;  %v23205_v46 = vpop.permute.xlu1 %6769 }
 0x321   : > { %v18345_v48 = vpop.f32.mrb[0].mxu1 }
 0x322   : > { %v3268_v59 = vpop.f32.mrb[1].mxu1  ;;  %v19859_v52 = vadd.f32 %v18345_v48, %v23178_v14 }
 0x323   : > { %v18346_v15 = vpop.f32.mrb[2].mxu1  ;;  %v19861_v51 = vadd.f32 %v23178_v14, %v3268_v59 }
 0x324   : > { %v3271_v6 = vpop.f32.mrb[3].mxu1  ;;  %v19863_v49 = vadd.f32 %v18346_v15, %v23178_v14 }
 0x325   : > { %v19865_v27 = vadd.f32 %v23178_v14, %v3271_v6 }
 0x329   : > { %v18349_v10 = vpop.f32.mrb[4].mxu1 }
 0x32a   : > { %v23131_v44 = vpop.f32.mrb[5].mxu1  ;;  %v19867_v54 = vadd.f32 %v18349_v10, %v23178_v14 }
 0x32b   : > { %v23133_v4 = vpop.f32.mrb[6].mxu1  ;;  %v19869_v15 = vadd.f32 %v23178_v14, %v23131_v44 }
 0x32c   : > { %v23135_v16 = vpop.f32.mrb[7].mxu1  ;;  %v19871_v10 = vadd.f32 %v23133_v4, %v23178_v14 }
 0x32d   : > { %v19873_v44 = vadd.f32 %v23178_v14, %v23135_v16 }
 0x361   : > { %v23151_v30 = vpop.f32.mrb[8].mxu1 }
 0x362   : > { %v23153_v36 = vpop.f32.mrb[9].mxu1 }
 0x363   : > { %v23155_v31 = vpop.f32.mrb[10].mxu1 }
 0x364   : > { %v23157_v18 = vpop.f32.mrb[11].mxu1 }
 0x369   : > { %v23163_v56 = vpop.f32.mrb[12].mxu1 }
 0x36a   : > { %v23165_v39 = vpop.f32.mrb[13].mxu1 }
 0x36b   : > { %v23169_v19 = vpop.f32.mrb[14].mxu1 }
 0x36c   : > { %v23173_v47 = vpop.f32.mrb[15].mxu1 }
 0x371   : > { %v23182_v20 = vpop.f32.mrb[16].mxu1 }
 0x372   : > { %v23187_v21 = vpop.f32.mrb[17].mxu1 }
 0x373   : > { %v23190_v45 = vpop.f32.mrb[18].mxu1 }
 0x374   : > { %v23193_v23 = vpop.f32.mrb[19].mxu1 }
 0x377   : > { %v18741_v11 = vpop.f32.mrb[0].mxu0 }
 0x378   : > { %v19860_v63 = vadd.f32 %v19859_v52, %v18741_v11  ;;  %v6437_v55 = vpop.f32.mrb[1].mxu0 }
 0x379   : > { %v19862_v35 = vadd.f32 %v19861_v51, %v6437_v55  ;;  %v18742_v62 = vpop.f32.mrb[2].mxu0  ;;  %v23202_v60 = vpop.f32.mrb[20].mxu1  ;;  %v6634_v51 = vld [vmem:[%s21708_s4 + $0x30] sm:$0xff]  ;;  %v6632_v55 = vld [vmem:[%s21708_s4 + $0x20] sm:$0xff] }
 0x37a   : > { %v6854_v17 = vmul.f32 %v19860_v63, %v6705_v25  ;;  %v19864_v50 = vadd.f32 %v19863_v49, %v18742_v62  ;;  %v6440_v24 = vpop.f32.mrb[3].mxu0  ;;  %v23208_v59 = vpop.f32.mrb[21].mxu1  ;;  %v6635_v62 = vld [vmem:[%s21708_s4 + $0x38] sm:$0xff] }
 0x37b   : > { %v6852_v9 = vmul.f32 %v19862_v35, %v6695_v61  ;;  %v19866_v33 = vadd.f32 %v19865_v27, %v6440_v24  ;;  %v23213_v12 = vpop.f32.mrb[22].mxu1 }
 0x37c   : > { %v6886_v53 = vadd.f32 %v6854_v17, %v6630_v28  ;;  %v6855_v2 = vmul.f32 %v19864_v50, %v6710_v13 }
 0x37d   : > { %v6884_v34 = vadd.f32 %v6852_v9, %v6628_v1  ;;  %v6853_v26 = vmul.f32 %v19866_v33, %v6700_v41  ;;  %v23218_v41 = vpop.f32.mrb[23].mxu1  ;;  %v6633_v9 = vld [vmem:[%s21708_s4 + $0x28] sm:$0xff] }
 0x37e   : > { %7165 = vst.msk [vmem:[#allocation2 + $0x31] sm:$0xff] %vm753_vm0, %v6886_v53  ;;  %v6887_v48 = vadd.f32 %v6855_v2, %v6631_v8  ;;  %v6919_v35 = vsel %vm753_vm0, %v6886_v53, 0.0  ;;  %v23233_v8 = vpop.permute.xlu0 %6774 }
 0x37f   : > { %7163 = vst.msk [vmem:[#allocation2 + $0x19] sm:$0xff] %vm753_vm0, %v6884_v34  ;;  %v6885_v6 = vadd.f32 %v6853_v26, %v6629_v3  ;;  %v18745_v37 = vpop.f32.mrb[4].mxu0  ;;  %v6916_v13 = vsel %vm753_vm0, %v6884_v34, 0.0  ;;  %v23239_v34 = vpop.permute.xlu1 %6779 }
 0x380   : > { %7166 = vst.msk [vmem:[#allocation2 + $0x39] sm:$0xff] %vm753_vm0, %v6887_v48  ;;  %v19868_v61 = vadd.f32 %v19867_v54, %v18745_v37  ;;  %v6453_v25 = vpop.f32.mrb[5].mxu0  ;;  %v6921_v33 = vsel %vm753_vm0, %v6887_v48, 0.0  ;;  %v19877_v54 = vadd.f32 %v23178_v14, %v23153_v36  ;;  %v19881_v36 = vadd.f32 %v23178_v14, %v23157_v18 }
 0x381   : > { %v6917_v52 = vsel %vm753_vm0, %v6885_v6, 0.0  ;;  %7164 = vst.msk [vmem:[#allocation2 + $0x21] sm:$0xff] %vm753_vm0, %v6885_v6  ;;  %v19870_v11 = vadd.f32 %v19869_v15, %v6453_v25  ;;  %v18746_v4 = vpop.f32.mrb[6].mxu0  ;;  %v23237_v3 = vpop.f32.mrb[24].mxu1 }
 0x382   : > { %v6918_v49 = vadd.f32 %v6917_v52, %v6916_v13  ;;  %v6858_v63 = vmul.f32 %v19868_v61, %v23147_v5  ;;  %v19872_v27 = vadd.f32 %v19871_v10, %v18746_v4  ;;  %v6456_v28 = vpop.f32.mrb[7].mxu0  ;;  %v6638_v13 = vld [vmem:[%s21708_s4 + $0x50] sm:$0xff]  ;;  %v6636_v4 = vld [vmem:[%s21708_s4 + $0x40] sm:$0xff] }
 0x383   : > { %v6856_v16 = vmul.f32 %v19870_v11, %v23143_v43  ;;  %v19874_v17 = vadd.f32 %v19873_v44, %v6456_v28  ;;  %v19875_v43 = vadd.f32 %v23151_v30, %v23178_v14  ;;  %v19879_v30 = vadd.f32 %v23155_v31, %v23178_v14  ;;  %v6639_v28 = vld [vmem:[%s21708_s4 + $0x58] sm:$0xff] }
 0x384   : > { %v6920_v1 = vadd.f32 %v6919_v35, %v6918_v49  ;;  %v6890_v50 = vadd.f32 %v6858_v63, %v6634_v51  ;;  %v6859_v24 = vmul.f32 %v19872_v27, %v23149_v40  ;;  %v23244_v40 = vpop.f32.mrb[25].mxu1 }
 0x385   : > { %v6888_v2 = vadd.f32 %v6856_v16, %v6632_v55  ;;  %v6857_v5 = vmul.f32 %v19874_v17, %v23145_v57  ;;  %v23250_v6 = vpop.f32.mrb[26].mxu1  ;;  %v6637_v17 = vld [vmem:[%s21708_s4 + $0x48] sm:$0xff] }
 0x386   : > { %7169 = vst.msk [vmem:[#allocation2 + $0x61] sm:$0xff] %vm753_vm0, %v6890_v50  ;;  %v6922_v53 = vadd.f32 %v6921_v33, %v6920_v1  ;;  %v6891_v26 = vadd.f32 %v6859_v24, %v6635_v62  ;;  %v23255_v25 = vpop.f32.mrb[27].mxu1  ;;  %v6927_v55 = vsel %vm753_vm0, %v6890_v50, 0.0  ;;  %v23269_v1 = vpop.permute.xlu0 %6784 }
 0x387   : > { %v6923_v48 = vsel %vm753_vm0, %v6888_v2, 0.0  ;;  %7167 = vst.msk [vmem:[#allocation2 + $0x49] sm:$0xff] %vm753_vm0, %v6888_v2  ;;  %v6889_v57 = vadd.f32 %v6857_v5, %v6633_v9  ;;  %v18749_v15 = vpop.f32.mrb[8].mxu0  ;;  %v23275_v2 = vpop.permute.xlu1 %6789 }
 0x388   : > { %v6924_v37 = vadd.f32 %v6923_v48, %v6922_v53  ;;  %7170 = vst.msk [vmem:[#allocation2 + $0x69] sm:$0xff] %vm753_vm0, %v6891_v26  ;;  %v19876_v10 = vadd.f32 %v19875_v43, %v18749_v15  ;;  %v6469_v61 = vpop.f32.mrb[9].mxu0  ;;  %v6929_v24 = vsel %vm753_vm0, %v6891_v26, 0.0  ;;  %v19885_v43 = vadd.f32 %v23178_v14, %v23165_v39 }
 0x389   : > { %v6925_v44 = vsel %vm753_vm0, %v6889_v57, 0.0  ;;  %7168 = vst.msk [vmem:[#allocation2 + $0x51] sm:$0xff] %vm753_vm0, %v6889_v57  ;;  %v19878_v52 = vadd.f32 %v19877_v54, %v6469_v61  ;;  %v18750_v51 = vpop.f32.mrb[10].mxu0  ;;  %v23273_v33 = vpop.f32.mrb[28].mxu1  ;;  %v19889_v39 = vadd.f32 %v23178_v14, %v23173_v47 }
 0x38a   : > { %v6926_v31 = vadd.f32 %v6925_v44, %v6924_v37  ;;  %v6862_v11 = vmul.f32 %v19876_v10, %v23167_v7  ;;  %v19880_v49 = vadd.f32 %v19879_v30, %v18750_v51  ;;  %v6472_v63 = vpop.f32.mrb[11].mxu0  ;;  %v6642_v10 = vld [vmem:[%s21708_s4 + $0x70] sm:$0xff] }
 0x38b   : > { %v6860_v27 = vmul.f32 %v19878_v52, %v23159_v0  ;;  %v19882_v18 = vadd.f32 %v19881_v36, %v6472_v63  ;;  %v19883_v0 = vadd.f32 %v23163_v56, %v23178_v14  ;;  %v19887_v56 = vadd.f32 %v23169_v19, %v23178_v14 }
 0x38c   : > { %v6928_v35 = vadd.f32 %v6927_v55, %v6926_v31  ;;  %v6894_v16 = vadd.f32 %v6862_v11, %v6638_v13  ;;  %v6863_v62 = vmul.f32 %v19880_v49, %v23171_v58  ;;  %v23280_v58 = vpop.f32.mrb[29].mxu1  ;;  %v6640_v13 = vld [vmem:[%s21708_s4 + $0x60] sm:$0xff]  ;;  %v23300_v31 = vpop.permute.xlu0 %6794 }
 0x38d   : > { %v6892_v9 = vadd.f32 %v6860_v27, %v6636_v4  ;;  %v6861_v7 = vmul.f32 %v19882_v18, %v23161_v38  ;;  %v23286_v54 = vpop.f32.mrb[30].mxu1  ;;  %v6643_v4 = vld [vmem:[%s21708_s4 + $0x78] sm:$0xff]  ;;  %v23307_v18 = vpop.permute.xlu1 %6799 }
 0x38e   : > { %7173 = vst.msk [vmem:[#allocation2 + $0x91] sm:$0xff] %vm753_vm0, %v6894_v16  ;;  %v6930_v50 = vadd.f32 %v6929_v24, %v6928_v35  ;;  %v6895_v5 = vadd.f32 %v6863_v62, %v6639_v28  ;;  %v23291_v30 = vpop.f32.mrb[31].mxu1  ;;  %v6935_v11 = vsel %vm753_vm0, %v6894_v16, 0.0  ;;  %v6641_v28 = vld [vmem:[%s21708_s4 + $0x68] sm:$0xff]  ;;  %v19893_v24 = vadd.f32 %v23178_v14, %v23187_v21 }
 0x38f   : > { %v6931_v53 = vsel %vm753_vm0, %v6892_v9, 0.0  ;;  %7171 = vst.msk [vmem:[#allocation2 + $0x79] sm:$0xff] %vm753_vm0, %v6892_v9  ;;  %v6893_v38 = vadd.f32 %v6861_v7, %v6637_v17  ;;  %v18753_v26 = vpop.f32.mrb[12].mxu0  ;;  %v19891_v17 = vadd.f32 %v23182_v20, %v23178_v14  ;;  %v19897_v21 = vadd.f32 %v23178_v14, %v23193_v23  ;;  %v6647_v23 = vld [vmem:[%s21708_s4 + $0x98] sm:$0xff] }
 0x390   : > { %v6932_v48 = vadd.f32 %v6931_v53, %v6930_v50  ;;  %7174 = vst.msk [vmem:[#allocation2 + $0x99] sm:$0xff] %vm753_vm0, %v6895_v5  ;;  %v19884_v57 = vadd.f32 %v19883_v0, %v18753_v26  ;;  %v6485_v15 = vpop.f32.mrb[13].mxu0  ;;  %v6646_v53 = vld [vmem:[%s21708_s4 + $0x90] sm:$0xff] }
 0x391   : > { %v6933_v37 = vsel %vm753_vm0, %v6893_v38, 0.0  ;;  %7172 = vst.msk [vmem:[#allocation2 + $0x81] sm:$0xff] %vm753_vm0, %v6893_v38  ;;  %v19886_v61 = vadd.f32 %v19885_v43, %v6485_v15  ;;  %v18754_v36 = vpop.f32.mrb[14].mxu0 }
 0x392   : > { %v6934_v19 = vadd.f32 %v6933_v37, %v6932_v48  ;;  %v6866_v44 = vmul.f32 %v19884_v57, %v23200_v22  ;;  %v19888_v52 = vadd.f32 %v19887_v56, %v18754_v36  ;;  %v6488_v51 = vpop.f32.mrb[15].mxu0  ;;  %v6937_v22 = vsel %vm753_vm0, %v6895_v5, 0.0  ;;  %v6805_v5 = vpop.permute.xlu0 %6804  ;;  %v6644_v48 = vld [vmem:[%s21708_s4 + $0x80] sm:$0xff] }
 0x393   : > { %v6864_v47 = vmul.f32 %v19886_v61, %v23180_v29  ;;  %v19890_v49 = vadd.f32 %v19889_v39, %v6488_v51  ;;  %v6810_v39 = vpop.permute.xlu1 %6809 }
 0x394   : > { %v6936_v63 = vadd.f32 %v6935_v11, %v6934_v19  ;;  %v6898_v55 = vadd.f32 %v6866_v44, %v6642_v10  ;;  %v6867_v27 = vmul.f32 %v19888_v52, %v23205_v46  ;;  %v19899_v11 = vadd.f32 %v23202_v60, %v23178_v14 }
 0x395   : > { %v6896_v35 = vadd.f32 %v6864_v47, %v6640_v13  ;;  %v6865_v62 = vmul.f32 %v19890_v49, %v23185_v32  ;;  %v19895_v32 = vadd.f32 %v23190_v45, %v23178_v14  ;;  %v6645_v13 = vld [vmem:[%s21708_s4 + $0x88] sm:$0xff]  ;;  %v19901_v49 = vadd.f32 %v23178_v14, %v23208_v59 }
 0x396   : > { %7177 = vst.msk [vmem:[#allocation2 + $0xc1] sm:$0xff] %vm753_vm0, %v6898_v55  ;;  %v6938_v29 = vadd.f32 %v6937_v22, %v6936_v63  ;;  %v6899_v16 = vadd.f32 %v6867_v27, %v6643_v4  ;;  %v6943_v37 = vsel %vm753_vm0, %v6898_v55, 0.0  ;;  %v19903_v60 = vadd.f32 %v23213_v12, %v23178_v14 }
 0x397   : > { %v6939_v46 = vsel %vm753_vm0, %v6896_v35, 0.0  ;;  %7175 = vst.msk [vmem:[#allocation2 + $0xa9] sm:$0xff] %vm753_vm0, %v6896_v35  ;;  %v6897_v9 = vadd.f32 %v6865_v62, %v6641_v28  ;;  %v18757_v7 = vpop.f32.mrb[16].mxu0  ;;  %v6820_v22 = vpop.permute.xlu1 %6819  ;;  %v19905_v59 = vadd.f32 %v23178_v14, %v23218_v41  ;;  %v6650_v62 = vld [vmem:[%s21708_s4 + $0xb0] sm:$0xff] }
 0x398   : > { %v6940_v0 = vadd.f32 %v6939_v46, %v6938_v29  ;;  %7178 = vst.msk [vmem:[#allocation2 + $0xc9] sm:$0xff] %vm753_vm0, %v6899_v16  ;;  %v19892_v20 = vadd.f32 %v19891_v17, %v18757_v7  ;;  %v6501_v50 = vpop.f32.mrb[17].mxu0  ;;  %v6945_v52 = vsel %vm753_vm0, %v6899_v16, 0.0 }
 0x399   : > { %v6941_v43 = vsel %vm753_vm0, %v6897_v9, 0.0  ;;  %7176 = vst.msk [vmem:[#allocation2 + $0xb1] sm:$0xff] %vm753_vm0, %v6897_v9  ;;  %v19894_v38 = vadd.f32 %v19893_v24, %v6501_v50  ;;  %v18758_v26 = vpop.f32.mrb[18].mxu0  ;;  %v6648_v24 = vld [vmem:[%s21708_s4 + $0xa0] sm:$0xff] }
 0x39a   : > { %v6942_v56 = vadd.f32 %v6941_v43, %v6940_v0  ;;  %v6870_v45 = vmul.f32 %v19892_v20, %v23269_v1  ;;  %v19896_v57 = vadd.f32 %v19895_v32, %v18758_v26  ;;  %v6504_v15 = vpop.f32.mrb[19].mxu0  ;;  %v6651_v0 = vld [vmem:[%s21708_s4 + $0xb8] sm:$0xff]  ;;  %v6649_v43 = vld [vmem:[%s21708_s4 + $0xa8] sm:$0xff] }
 0x39b   : > { %v6868_v10 = vmul.f32 %v19894_v38, %v23233_v8  ;;  %v19898_v61 = vadd.f32 %v19897_v21, %v6504_v15  ;;  %v23338_v8 = vpop.permute.xlu0 %6814 }
 0x39c   : > { %v6944_v36 = vadd.f32 %v6943_v37, %v6942_v56  ;;  %v6902_v19 = vadd.f32 %v6870_v45, %v6646_v53  ;;  %v6871_v44 = vmul.f32 %v19896_v57, %v23275_v2  ;;  %v19909_v57 = vadd.f32 %v23178_v14, %v23244_v40 }
 0x39d   : > { %v6900_v51 = vadd.f32 %v6868_v10, %v6644_v48  ;;  %v6869_v1 = vmul.f32 %v19898_v61, %v23239_v34  ;;  %v6830_v48 = vpop.permute.xlu1 %6829  ;;  %v19913_v61 = vadd.f32 %v23178_v14, %v23255_v25 }
 0x39e   : > { %7181 = vst.msk [vmem:[#allocation2 + $0xf1] sm:$0xff] %vm753_vm0, %v6902_v19  ;;  %v6946_v47 = vadd.f32 %v6945_v52, %v6944_v36  ;;  %v6903_v4 = vadd.f32 %v6871_v44, %v6647_v23  ;;  %v6951_v7 = vsel %vm753_vm0, %v6902_v19, 0.0  ;;  %v6654_v36 = vld [vmem:[%s21708_s4 + $0xd0] sm:$0xff] }
 0x39f   : > { %v6947_v2 = vsel %vm753_vm0, %v6900_v51, 0.0  ;;  %7179 = vst.msk [vmem:[#allocation2 + $0xd9] sm:$0xff] %vm753_vm0, %v6900_v51  ;;  %v6901_v63 = vadd.f32 %v6869_v1, %v6645_v13  ;;  %v18761_v34 = vpop.f32.mrb[20].mxu0  ;;  %v6825_v53 = vpop.permute.xlu0 %6824 }
 0x3a0   : > { %v6948_v55 = vadd.f32 %v6947_v2, %v6946_v47  ;;  %7182 = vst.msk [vmem:[#allocation2 + $0xf9] sm:$0xff] %vm753_vm0, %v6903_v4  ;;  %v19900_v27 = vadd.f32 %v19899_v11, %v18761_v34  ;;  %v6517_v28 = vpop.f32.mrb[21].mxu0  ;;  %v6953_v38 = vsel %vm753_vm0, %v6903_v4, 0.0 }
 0x3a1   : > { %v6949_v35 = vsel %vm753_vm0, %v6901_v63, 0.0  ;;  %7180 = vst.msk [vmem:[#allocation2 + $0xe1] sm:$0xff] %vm753_vm0, %v6901_v63  ;;  %v19902_v17 = vadd.f32 %v19901_v49, %v6517_v28  ;;  %v18762_v29 = vpop.f32.mrb[22].mxu0  ;;  %v6655_v49 = vld [vmem:[%s21708_s4 + $0xd8] sm:$0xff] }
 0x3a2   : > { %v6950_v16 = vadd.f32 %v6949_v35, %v6948_v55  ;;  %v6874_v12 = vmul.f32 %v19900_v27, %v6805_v5  ;;  %v19904_v46 = vadd.f32 %v19903_v60, %v18762_v29  ;;  %v6520_v9 = vpop.f32.mrb[23].mxu0  ;;  %v19907_v5 = vadd.f32 %v23237_v3, %v23178_v14  ;;  %v6653_v60 = vld [vmem:[%s21708_s4 + $0xc8] sm:$0xff]  ;;  %v6840_v55 = vpop.permute.xlu1 %6839 }
 0x3a3   : > { %v6872_v32 = vmul.f32 %v19902_v17, %v23300_v31  ;;  %v19906_v20 = vadd.f32 %v19905_v59, %v6520_v9  ;;  %v6835_v11 = vpop.permute.xlu0 %6834  ;;  %v19915_v35 = vadd.f32 %v23273_v33, %v23178_v14 }
 0x3a4   : > { %v6952_v41 = vadd.f32 %v6951_v7, %v6950_v16  ;;  %v6906_v50 = vadd.f32 %v6874_v12, %v6650_v62  ;;  %v6875_v21 = vmul.f32 %v19904_v46, %v6810_v39 }
 0x3a5   : > { %v6904_v26 = vadd.f32 %v6872_v32, %v6648_v24  ;;  %v6873_v56 = vmul.f32 %v19906_v20, %v23307_v18  ;;  %v19911_v18 = vadd.f32 %v23250_v6, %v23178_v14  ;;  %v6652_v6 = vld [vmem:[%s21708_s4 + $0xc0] sm:$0xff]  ;;  %v6658_v32 = vld [vmem:[%s21708_s4 + $0xf0] sm:$0xff] }
 0x3a6   : > { %7185 = vst.msk [vmem:[#allocation2 + $0x121] sm:$0xff] %vm753_vm0, %v6906_v50  ;;  %v6954_v45 = vadd.f32 %v6953_v38, %v6952_v41  ;;  %v6907_v31 = vadd.f32 %v6875_v21, %v6651_v0  ;;  %v6959_v47 = vsel %vm753_vm0, %v6906_v50, 0.0  ;;  %v6656_v50 = vld [vmem:[%s21708_s4 + $0xe0] sm:$0xff] }
 0x3a7   : > { %v6955_v15 = vsel %vm753_vm0, %v6904_v26, 0.0  ;;  %7183 = vst.msk [vmem:[#allocation2 + $0x109] sm:$0xff] %vm753_vm0, %v6904_v26  ;;  %v6905_v39 = vadd.f32 %v6873_v56, %v6649_v43  ;;  %v18765_v37 = vpop.f32.mrb[24].mxu0  ;;  %v6845_v9 = vpop.permute.xlu0 %6844  ;;  %v6659_v56 = vld [vmem:[%s21708_s4 + $0xf8] sm:$0xff] }
 0x3a8   : > { %v6956_v3 = vadd.f32 %v6955_v15, %v6954_v45  ;;  %7186 = vst.msk [vmem:[#allocation2 + $0x129] sm:$0xff] %vm753_vm0, %v6907_v31  ;;  %v19908_v10 = vadd.f32 %v19907_v5, %v18765_v37  ;;  %v6533_v23 = vpop.f32.mrb[25].mxu0  ;;  %v6961_v27 = vsel %vm753_vm0, %v6907_v31, 0.0  ;;  %v6657_v31 = vld [vmem:[%s21708_s4 + $0xe8] sm:$0xff] }
 0x3a9   : > { %v6957_v40 = vsel %vm753_vm0, %v6905_v39, 0.0  ;;  %7184 = vst.msk [vmem:[#allocation2 + $0x111] sm:$0xff] %vm753_vm0, %v6905_v39  ;;  %v19910_v19 = vadd.f32 %v19909_v57, %v6533_v23  ;;  %v18766_v44 = vpop.f32.mrb[26].mxu0 }
 0x3aa   : > { %v6958_v13 = vadd.f32 %v6957_v40, %v6956_v3  ;;  %v6878_v52 = vmul.f32 %v19908_v10, %v6825_v53  ;;  %v19912_v51 = vadd.f32 %v19911_v18, %v18766_v44  ;;  %v6536_v1 = vpop.f32.mrb[27].mxu0  ;;  %v6850_v53 = vpop.permute.xlu1 %6849 }
 0x3ab   : > { %v6876_v4 = vmul.f32 %v19910_v19, %v23338_v8  ;;  %v19914_v25 = vadd.f32 %v19913_v61, %v6536_v1  ;;  %v19917_v8 = vadd.f32 %v23178_v14, %v23280_v58  ;;  %v19921_v58 = vadd.f32 %v23178_v14, %v23291_v30 }
 0x3ac   : > { %v6960_v2 = vadd.f32 %v6959_v47, %v6958_v13  ;;  %v6910_v63 = vadd.f32 %v6878_v52, %v6654_v36  ;;  %v6879_v34 = vmul.f32 %v19912_v51, %v6830_v48 }
 0x3ad   : > { %v6908_v28 = vadd.f32 %v6876_v4, %v6652_v6  ;;  %v6877_v59 = vmul.f32 %v19914_v25, %v6820_v22  ;;  %v19919_v22 = vadd.f32 %v23286_v54, %v23178_v14  ;;  %v21342_v4 = vld [vmem:[%s25266_s8] sm:$0xff]   ;;  %v21343_v25 = vld [vmem:[%s25266_s8 + $0x8] sm:$0xff]  }
 0x3ae   : > { %7189 = vst.msk [vmem:[#allocation2 + $0x151] sm:$0xff] %vm753_vm0, %v6910_v63  ;;  %v6962_v62 = vadd.f32 %v6961_v27, %v6960_v2  ;;  %v6911_v17 = vadd.f32 %v6879_v34, %v6655_v49  ;;  %v6967_v38 = vsel %vm753_vm0, %v6910_v63, 0.0  ;;  %v21344_v2 = vld [vmem:[%s25266_s8 + $0x10] sm:$0xff]   ;;  %v21345_v63 = vld [vmem:[%s25266_s8 + $0x18] sm:$0xff]   ;;  %v21346_v34 = vld [vmem:[%s25266_s8 + $0x20] sm:$0xff]  }
 0x3af   : > { %v6963_v29 = vsel %vm753_vm0, %v6908_v28, 0.0  ;;  %7187 = vst.msk [vmem:[#allocation2 + $0x139] sm:$0xff] %vm753_vm0, %v6908_v28  ;;  %v6909_v16 = vadd.f32 %v6877_v59, %v6653_v60  ;;  %v18769_v12 = vpop.f32.mrb[28].mxu0  ;;  %v21347_v60 = vld [vmem:[%s25266_s8 + $0x28] sm:$0xff]   ;;  %v21349_v27 = vld [vmem:[%s25266_s8 + $0x38] sm:$0xff]  }
 0x3b0   : > { %v6964_v24 = vadd.f32 %v6963_v29, %v6962_v62  ;;  %7190 = vst.msk [vmem:[#allocation2 + $0x159] sm:$0xff] %vm753_vm0, %v6911_v17  ;;  %v19916_v33 = vadd.f32 %v19915_v35, %v18769_v12  ;;  %v6549_v46 = vpop.f32.mrb[29].mxu0  ;;  %v6969_v48 = vsel %vm753_vm0, %v6911_v17, 0.0  ;;  %v6992_v28 = vld [vmem:[%s25265_s7] sm:$0x1] }
 0x3b1   : > { %v6965_v7 = vsel %vm753_vm0, %v6909_v16, 0.0  ;;  %7188 = vst.msk [vmem:[#allocation2 + $0x141] sm:$0xff] %vm753_vm0, %v6909_v16  ;;  %v19918_v0 = vadd.f32 %v19917_v8, %v6549_v46  ;;  %v18770_v20 = vpop.f32.mrb[30].mxu0 }
 0x3b2   : > { %v6966_v41 = vadd.f32 %v6965_v7, %v6964_v24  ;;  %v6882_v54 = vmul.f32 %v19916_v33, %v6845_v9  ;;  %v19920_v21 = vadd.f32 %v19919_v22, %v18770_v20  ;;  %v6552_v43 = vpop.f32.mrb[31].mxu0 }
 0x3b3   : > { %v6880_v26 = vmul.f32 %v19918_v0, %v6835_v11  ;;  %v19922_v5 = vadd.f32 %v19921_v58, %v6552_v43 }
 0x3b4   : > { %v6968_v14 = vadd.f32 %v6967_v38, %v6966_v41  ;;  %v6914_v30 = vadd.f32 %v6882_v54, %v6658_v32  ;;  %v6883_v45 = vmul.f32 %v19920_v21, %v6850_v53 }
 0x3b5   : > { %v6912_v57 = vadd.f32 %v6880_v26, %v6656_v50  ;;  %v6881_v15 = vmul.f32 %v19922_v5, %v6840_v55  ;;  %v21348_v55 = vld [vmem:[%s25266_s8 + $0x30] sm:$0xff]  }
 0x3b6   : > { %7193 = vst.msk [vmem:[#allocation2 + $0x181] sm:$0xff] %vm753_vm0, %v6914_v30  ;;  %v6970_v39 = vadd.f32 %v6969_v48, %v6968_v14  ;;  %v6915_v37 = vadd.f32 %v6883_v45, %v6659_v56  ;;  %v6975_v40 = vsel %vm753_vm0, %v6914_v30, 0.0 }
 0x3b7   : > { %v6971_v18 = vsel %vm753_vm0, %v6912_v57, 0.0  ;;  %7191 = vst.msk [vmem:[#allocation2 + $0x169] sm:$0xff] %vm753_vm0, %v6912_v57  ;;  %v6913_v3 = vadd.f32 %v6881_v15, %v6657_v31 }
 0x3b8   : > { %v6972_v10 = vadd.f32 %v6971_v18, %v6970_v39  ;;  %7194 = vst.msk [vmem:[#allocation2 + $0x189] sm:$0xff] %vm753_vm0, %v6915_v37  ;;  %v6977_v19 = vsel %vm753_vm0, %v6915_v37, 0.0 }
 0x3b9   : > { %v6973_v23 = vsel %vm753_vm0, %v6913_v3, 0.0  ;;  %7192 = vst.msk [vmem:[#allocation2 + $0x171] sm:$0xff] %vm753_vm0, %v6913_v3 }
 0x3ba   : > { %v6974_v61 = vadd.f32 %v6973_v23, %v6972_v10 }
 0x3bc   : > { %v6976_v36 = vadd.f32 %v6975_v40, %v6974_v61 }
 0x3be   : > { %v6978_v44 = vadd.f32 %v6977_v19, %v6976_v36 }
 0x3c0   : > { %v6979_v13 = vrot.slane %v6978_v44, 4 }
 0x3c2   : > { %v6980_v52 = vadd.f32 %v6979_v13, %v6978_v44 }
 0x3c4   : > { %v6981_v6 = vrot.slane %v6980_v52, 2 }
 0x3c6   : > { %v6982_v51 = vadd.f32 %v6981_v6, %v6980_v52 }
 0x3c8   : > { %v6983_v1 = vrot.slane %v6982_v51, 1 }
 0x3ca   : > { %v6984_v11 = vadd.f32 %v6983_v1, %v6982_v51 }
 0x3cc   : > { %v6986_v47 = vmul.f32 0.00390625, %v6984_v11 }
 0x3ce   : > { %v6987_v49 = vpack.c.bf16 %v6986_v47, %v6986_v47 }
 0x3d0   : > { %18776 = vmatmul.mubr.msk.bf16.vlgmr.msra.gmra.mrb[32].mxu1 %vm753_vm0, %v6987_v49 }
 0x3d1   : > { %18780 = vmatpush3.bf16.msra.mxu1 %v21342_v4  ;;  %18795 = vmatprep.mubr.msk.bf16.mxu1 %vm21518_vm4, %v25346_v42 }
 0x3d2   : > { %18781 = vmatprep.subr.bf16.mxu1 %v25346_v42 }
 0x3d5   : > { %18782 = vmatpush3.bf16.msra.mxu1 %v21343_v25 }
 0x3d6   : > { %18783 = vmatprep.subr.bf16.mxu1 %v25346_v42 }
 0x3d9   : > { %18784 = vmatpush3.bf16.msra.mxu1 %v21344_v2 }
 0x3da   : > { %18785 = vmatprep.subr.bf16.mxu1 %v25346_v42 }
 0x3dd   : > { %18786 = vmatpush3.bf16.msra.mxu1 %v21345_v63 }
 0x3de   : > { %18787 = vmatprep.subr.bf16.mxu1 %v25346_v42 }
 0x3e1   : > { %18788 = vmatpush3.bf16.msra.mxu1 %v21346_v34 }
 0x3e2   : > { %18789 = vmatprep.subr.bf16.mxu1 %v25346_v42 }
 0x3e5   : > { %18790 = vmatpush3.bf16.msra.mxu1 %v21347_v60 }
 0x3e6   : > { %18791 = vmatprep.subr.bf16.mxu1 %v25346_v42 }
 0x3e9   : > { %18792 = vmatpush3.bf16.msra.mxu1 %v21348_v55 }
 0x3ea   : > { %18793 = vmatprep.subr.bf16.mxu1 %v25346_v42  ;;  %v7066_v42 = vld [vmem:[%s25267_s9] sm:$0x1] }
 0x3ed   : > { %18794 = vmatpush3.bf16.msra.mxu1 %v21349_v27 }
 0x4a3   : > { %v7042_v59 = vpop.f32.mrb[32].mxu1 }
 0x4a4   : > { %v7043_v35 = vadd.f32 %v7042_v59, %v6992_v28  ;;  %v18777_v62 = vpop.f32.mrb[33].mxu1 }
 0x4a5   : > { %v7045_v17 = vpop.f32.mrb[34].mxu1 }
 0x4a6   : > { %v7048_v8 = vmax.f32 %v7043_v35, 0.0  ;;  %v18778_v29 = vpop.f32.mrb[35].mxu1 }
 0x4a8   : > { %v7049_v16 = vpack.c.bf16 %v7048_v8, %v7048_v8 }
 0x4aa   : > { %18796 = vmatmul.mubr.bf16.vlgmr.msra.gmra.mrb[36].mxu1 %v7049_v16 }
 0x57d   : > { %v7149_v12 = vpop.f32.mrb[36].mxu1 }
 0x57e   : > { %v7150_v22 = vadd.f32 %v7149_v12, %v7066_v42  ;;  %v18797_v24 = vpop.f32.mrb[37].mxu1 }
 0x57f   : > { %v7152_v33 = vpop.f32.mrb[38].mxu1 }
 0x580   : > { %v7155_v46 = vsub.f32 0.0, %v7150_v22  ;;  %v18798_v9 = vpop.f32.mrb[39].mxu1 }
 0x582   : > { %v7156_v58 = vmul.f32 1.442695, %v7155_v46 }
 0x584   : > { %21350 = vpow2.f32 %v7156_v58 }
 0x58e   : > { %v21351_v7 = vpop.eup %21350 }
 0x58f   : > { %v7158_v32 = vadd.f32 1.0, %v21351_v7 }
 0x591   : > { %21352 = vrcp.f32 %v7158_v32 }
 0x59b   : > { %v21353_v0 = vpop.eup %21352 }
 0x59c   : > { %7162 = vst.msk [vmem:[#allocation5] sm:$0x1] %vm7161_vm5, %v21353_v0 }
 0x59d PF: > { %v21356_v20 = vld [vmem:[%s21732_s23 + $0x10] sm:$0xff]   ;;  %v21357_v41 = vld [vmem:[%s21732_s23 + $0x18] sm:$0xff]   ;;  %v7247_v54 = vld [vmem:[#allocation2 + $0x1] sm:$0xff]  ;;  %vm7311_vm6 = vcmask 261120   ;;  %p17003_p1 = scmp.ne.s32.totalorder %s21498_s24, 11 }
 0x59e   : > { %18799 = vmatprep.subr.bf16.mxu0 %v21356_v20  ;;  %v7248_v50 = vld [vmem:[#allocation2 + $0x9] sm:$0xff]  ;;  %v7249_v21 = vld [vmem:[#allocation2 + $0x19] sm:$0xff]  ;;  %v7250_v53 = vld [vmem:[#allocation2 + $0x21] sm:$0xff]  ;;  %s25354_s29 = sld [smem:[#allocation33_spill]] (!%p17003_p1)  ;;  %s25355_s26 = sld [smem:[#allocation35_spill]] (!%p17003_p1) }
 0x59f   : > { %18800 = vmatpush3.bf16.msra.mxu0 %v21356_v20  ;;  %v7279_v43 = vpack.c.bf16 %v7248_v50, %v7247_v54  ;;  %v21358_v38 = vld [vmem:[%s21732_s23] sm:$0xff]   ;;  %v7251_v26 = vld [vmem:[#allocation2 + $0x31] sm:$0xff]  ;;  %v23452_v5 = vpack.c.bf16 %v7250_v53, %v7249_v21  ;;  %v21359_v30 = vld [vmem:[%s21732_s23 + $0x8] sm:$0xff]   ;;  %s25358_s16 = sld [smem:[#allocation37_spill]] (!%p17003_p1)  ;;  %s25359_s20 = sld [smem:[#allocation36_spill]] (!%p17003_p1) }
 0x5a0   : > { %18801 = vmatprep.subr.bf16.mxu0 %v21357_v41  ;;  %v7252_v56 = vld [vmem:[#allocation2 + $0x39] sm:$0xff]  ;;  %v7253_v45 = vld [vmem:[#allocation2 + $0x49] sm:$0xff]  ;;  %v7254_v31 = vld [vmem:[#allocation2 + $0x51] sm:$0xff]  ;;  %s25360_s0 = sld [smem:[#allocation38_spill]] (!%p17003_p1) }
 0x5a1   : > { %18803 = vmatprep.mubr.msk.bf16.mxu0 %vm7311_vm6, %v7279_v43  ;;  %v23454_v14 = vpack.c.bf16 %v7252_v56, %v7251_v26  ;;  %v7255_v48 = vld [vmem:[#allocation2 + $0x61] sm:$0xff]  ;;  %v7256_v57 = vld [vmem:[#allocation2 + $0x69] sm:$0xff]  ;;  %v23461_v15 = vpack.c.bf16 %v7254_v31, %v7253_v45  ;;  %v7257_v18 = vld [vmem:[#allocation2 + $0x79] sm:$0xff] }
 0x5a2   : > { %v23463_v39 = vpack.c.bf16 %v7256_v57, %v7255_v48  ;;  %v21360_v37 = vld [vmem:[%s21732_s23 + $0x20] sm:$0xff]   ;;  %v7259_v10 = vld [vmem:[#allocation2 + $0x91] sm:$0xff]  ;;  %v7261_v36 = vld [vmem:[#allocation2 + $0xa9] sm:$0xff] }
 0x5a3   : > { %18802 = vmatpush3.bf16.msra.mxu0 %v21357_v41  ;;  %v7258_v3 = vld [vmem:[#allocation2 + $0x81] sm:$0xff]  ;;  %v7260_v23 = vld [vmem:[#allocation2 + $0x99] sm:$0xff]  ;;  %v7262_v19 = vld [vmem:[#allocation2 + $0xb1] sm:$0xff] }
 0x5a4   : > { %18835 = vmatprep.subr.bf16.mxu0 %v21358_v38  ;;  %v23470_v61 = vpack.c.bf16 %v7258_v3, %v7257_v18  ;;  %v23472_v40 = vpack.c.bf16 %v7260_v23, %v7259_v10  ;;  %v7263_v44 = vld [vmem:[#allocation2 + $0xc1] sm:$0xff]  ;;  %v7264_v13 = vld [vmem:[#allocation2 + $0xc9] sm:$0xff]  ;;  %v23478_v52 = vpack.c.bf16 %v7262_v19, %v7261_v36  ;;  %v7265_v51 = vld [vmem:[#allocation2 + $0xd9] sm:$0xff]  ;;  %s25356_s4 = smov (!%p17003_p1), %s25355_s26 }
 0x5a5   : > { %v23480_v6 = vpack.c.bf16 %v7264_v13, %v7263_v44  ;;  %v7266_v1 = vld [vmem:[#allocation2 + $0xe1] sm:$0xff]  ;;  %v7267_v11 = vld [vmem:[#allocation2 + $0xf1] sm:$0xff]  ;;  %v7268_v47 = vld [vmem:[#allocation2 + $0xf9] sm:$0xff] }
 0x5a6   : > { %18804 = vmatmul.mubr.msk.bf16.vlgmr.msra.gmra.mrb[0].mxu0 %vm7311_vm6, %v23452_v5  ;;  %v23486_v4 = vpack.c.bf16 %v7266_v1, %v7265_v51  ;;  %v23488_v49 = vpack.c.bf16 %v7268_v47, %v7267_v11  ;;  %v7269_v25 = vld [vmem:[#allocation2 + $0x109] sm:$0xff]  ;;  %v7270_v2 = vld [vmem:[#allocation2 + $0x111] sm:$0xff]  ;;  %v7271_v63 = vld [vmem:[#allocation2 + $0x121] sm:$0xff] }
 0x5a7   : > { %18836 = vmatpush3.bf16.msra.mxu0 %v21358_v38  ;;  %18807 = vmatprep.mubr.msk.bf16.mxu0 %vm7311_vm6, %v23454_v14  ;;  %v7272_v34 = vld [vmem:[#allocation2 + $0x129] sm:$0xff]  ;;  %v23494_v60 = vpack.c.bf16 %v7270_v2, %v7269_v25  ;;  %v7273_v27 = vld [vmem:[#allocation2 + $0x139] sm:$0xff]  ;;  %v7274_v28 = vld [vmem:[#allocation2 + $0x141] sm:$0xff] }
 0x5a8   : > { %18837 = vmatprep.subr.bf16.mxu0 %v21359_v30  ;;  %v23496_v55 = vpack.c.bf16 %v7272_v34, %v7271_v63  ;;  %v7275_v59 = vld [vmem:[#allocation2 + $0x151] sm:$0xff]  ;;  %v7276_v35 = vld [vmem:[#allocation2 + $0x159] sm:$0xff]  ;;  %v23502_v62 = vpack.c.bf16 %v7274_v28, %v7273_v27  ;;  %v7277_v8 = vld [vmem:[#allocation2 + $0x169] sm:$0xff] }
 0x5a9   : > { %v23504_v17 = vpack.c.bf16 %v7276_v35, %v7275_v59  ;;  %v7278_v29 = vld [vmem:[#allocation2 + $0x171] sm:$0xff]  ;;  %v7195_v16 = vld [vmem:[#allocation2] sm:$0xff]  ;;  %v7196_v42 = vld [vmem:[#allocation2 + $0x8] sm:$0xff] }
 0x5aa   : > { %v23510_v12 = vpack.c.bf16 %v7278_v29, %v7277_v8  ;;  %v7227_v22 = vpack.c.bf16 %v7196_v42, %v7195_v16  ;;  %v7197_v24 = vld [vmem:[#allocation2 + $0x18] sm:$0xff]  ;;  %v7198_v33 = vld [vmem:[#allocation2 + $0x20] sm:$0xff]  ;;  %v7199_v46 = vld [vmem:[#allocation2 + $0x30] sm:$0xff] }
 0x5ab   : > { %18838 = vmatpush3.bf16.msra.mxu0 %v21359_v30  ;;  %v7200_v9 = vld [vmem:[#allocation2 + $0x38] sm:$0xff]  ;;  %v23515_v58 = vpack.c.bf16 %v7198_v33, %v7197_v24  ;;  %v21361_v32 = vld [vmem:[%s21732_s23 + $0x28] sm:$0xff]   ;;  %v7202_v20 = vld [vmem:[#allocation2 + $0x50] sm:$0xff] }
 0x5ac   : > { %18871 = vmatprep.subr.bf16.mxu0 %v21360_v37  ;;  %v23517_v7 = vpack.c.bf16 %v7200_v9, %v7199_v46  ;;  %v7201_v0 = vld [vmem:[#allocation2 + $0x48] sm:$0xff]  ;;  %v7203_v41 = vld [vmem:[#allocation2 + $0x60] sm:$0xff]  ;;  %v23525_v50 = vld [vmem:[%s21732_s23 + $0x30] sm:$0xff]  }
 0x5ad   : > { %v7204_v54 = vld [vmem:[#allocation2 + $0x68] sm:$0xff]  ;;  %v23527_v21 = vpack.c.bf16 %v7202_v20, %v7201_v0  ;;  %v7205_v53 = vld [vmem:[#allocation2 + $0x78] sm:$0xff]  ;;  %v7206_v38 = vld [vmem:[#allocation2 + $0x80] sm:$0xff] }
 0x5ae   : > { %18808 = vmatmul.mubr.msk.bf16.gmra.mrb[4].mxu0 %vm7311_vm6, %v23461_v15  ;;  %v23529_v43 = vpack.c.bf16 %v7204_v54, %v7203_v41  ;;  %v7207_v26 = vld [vmem:[#allocation2 + $0x90] sm:$0xff]  ;;  %v7208_v56 = vld [vmem:[#allocation2 + $0x98] sm:$0xff]  ;;  %v23536_v30 = vpack.c.bf16 %v7206_v38, %v7205_v53  ;;  %v7209_v31 = vld [vmem:[#allocation2 + $0xa8] sm:$0xff] }
 0x5af   : > { %18811 = vmatprep.mubr.msk.bf16.mxu0 %vm7311_vm6, %v23463_v39  ;;  %v23538_v45 = vpack.c.bf16 %v7208_v56, %v7207_v26  ;;  %v7210_v48 = vld [vmem:[#allocation2 + $0xb0] sm:$0xff]  ;;  %v7211_v57 = vld [vmem:[#allocation2 + $0xc0] sm:$0xff]  ;;  %v7213_v10 = vld [vmem:[#allocation2 + $0xd8] sm:$0xff] }
 0x5b0   : > { %v23544_v18 = vpack.c.bf16 %v7210_v48, %v7209_v31  ;;  %v7214_v23 = vld [vmem:[#allocation2 + $0xe0] sm:$0xff]  ;;  %v7215_v36 = vld [vmem:[#allocation2 + $0xf0] sm:$0xff]  ;;  %v7216_v19 = vld [vmem:[#allocation2 + $0xf8] sm:$0xff] }
 0x5b1   : > { %v23552_v44 = vpack.c.bf16 %v7214_v23, %v7213_v10  ;;  %v23554_v13 = vpack.c.bf16 %v7216_v19, %v7215_v36  ;;  %v7217_v51 = vld [vmem:[#allocation2 + $0x108] sm:$0xff]  ;;  %v7218_v1 = vld [vmem:[#allocation2 + $0x110] sm:$0xff]  ;;  %v7219_v11 = vld [vmem:[#allocation2 + $0x120] sm:$0xff] }
 0x5b2   : > { %v7220_v47 = vld [vmem:[#allocation2 + $0x128] sm:$0xff]  ;;  %v23560_v25 = vpack.c.bf16 %v7218_v1, %v7217_v51  ;;  %v7221_v63 = vld [vmem:[#allocation2 + $0x138] sm:$0xff]  ;;  %v7222_v34 = vld [vmem:[#allocation2 + $0x140] sm:$0xff] }
 0x5b3   : > { %v23562_v2 = vpack.c.bf16 %v7220_v47, %v7219_v11  ;;  %v7223_v27 = vld [vmem:[#allocation2 + $0x150] sm:$0xff]  ;;  %v7224_v28 = vld [vmem:[#allocation2 + $0x158] sm:$0xff]  ;;  %v23568_v59 = vpack.c.bf16 %v7222_v34, %v7221_v63  ;;  %v7225_v8 = vld [vmem:[#allocation2 + $0x168] sm:$0xff] }
 0x5b4   : > { %v23570_v35 = vpack.c.bf16 %v7224_v28, %v7223_v27  ;;  %v7226_v29 = vld [vmem:[#allocation2 + $0x170] sm:$0xff]  ;;  %v7742_v16 = vld [vmem:[#allocation2 + $0x2] sm:$0xff]  ;;  %v7744_v33 = vld [vmem:[#allocation2 + $0x1a] sm:$0xff] }
 0x5b5   : > { %v7743_v42 = vld [vmem:[#allocation2 + $0xa] sm:$0xff]  ;;  %v7745_v46 = vld [vmem:[#allocation2 + $0x22] sm:$0xff]  ;;  %v7746_v9 = vld [vmem:[#allocation2 + $0x32] sm:$0xff] }
 0x5b6   : > { %18812 = vmatmul.mubr.msk.bf16.gmra.mrb[8].mxu0 %vm7311_vm6, %v23470_v61  ;;  %v7774_v24 = vpack.c.bf16 %v7743_v42, %v7742_v16  ;;  %v23581_v0 = vpack.c.bf16 %v7745_v46, %v7744_v33  ;;  %v21363_v41 = vld [vmem:[%s21732_s23 + $0x38] sm:$0xff]   ;;  %v7748_v54 = vld [vmem:[#allocation2 + $0x4a] sm:$0xff]  ;;  %v7750_v38 = vld [vmem:[#allocation2 + $0x62] sm:$0xff] }
 0x5b7   : > { %18815 = vmatprep.mubr.msk.bf16.mxu0 %vm7311_vm6, %v23472_v40  ;;  %v7749_v53 = vld [vmem:[#allocation2 + $0x52] sm:$0xff]  ;;  %v7751_v26 = vld [vmem:[#allocation2 + $0x6a] sm:$0xff]  ;;  %v21364_v56 = vld [vmem:[%s21732_s23 + $0x40] sm:$0xff]  }
 0x5b8   : > { %v23592_v31 = vpack.c.bf16 %v7749_v53, %v7748_v54  ;;  %v23594_v48 = vpack.c.bf16 %v7751_v26, %v7750_v38  ;;  %v7755_v10 = vld [vmem:[#allocation2 + $0x9a] sm:$0xff]  ;;  %v7756_v19 = vld [vmem:[#allocation2 + $0xaa] sm:$0xff]  ;;  %v7757_v51 = vld [vmem:[#allocation2 + $0xb2] sm:$0xff] }
 0x5b9   : > { %v7758_v1 = vld [vmem:[#allocation2 + $0xc2] sm:$0xff]  ;;  %v7759_v11 = vld [vmem:[#allocation2 + $0xca] sm:$0xff]  ;;  %v23608_v47 = vpack.c.bf16 %v7757_v51, %v7756_v19  ;;  %v7760_v34 = vld [vmem:[#allocation2 + $0xda] sm:$0xff] }
 0x5ba   : > { %v23610_v63 = vpack.c.bf16 %v7759_v11, %v7758_v1  ;;  %v7761_v27 = vld [vmem:[#allocation2 + $0xe2] sm:$0xff]  ;;  %v7762_v28 = vld [vmem:[#allocation2 + $0xf2] sm:$0xff]  ;;  %v7764_v42 = vld [vmem:[#allocation2 + $0x10a] sm:$0xff] }
 0x5bb   : > { %v7766_v33 = vld [vmem:[#allocation2 + $0x122] sm:$0xff]  ;;  %v7767_v46 = vld [vmem:[#allocation2 + $0x12a] sm:$0xff]  ;;  %v7770_v53 = vld [vmem:[#allocation2 + $0x152] sm:$0xff] }
 0x5bc   : > { %v7769_v54 = vld [vmem:[#allocation2 + $0x142] sm:$0xff]  ;;  %v7771_v38 = vld [vmem:[#allocation2 + $0x15a] sm:$0xff]  ;;  %v21366_v51 = vld [vmem:[%s21732_s23 + $0x50] sm:$0xff]  }
 0x5bd   : > { %v21365_v19 = vld [vmem:[%s21732_s23 + $0x48] sm:$0xff]   ;;  %v21367_v11 = vld [vmem:[%s21732_s23 + $0x58] sm:$0xff]  }
 0x5be   : > { %18816 = vmatmul.mubr.msk.bf16.gmra.mrb[12].mxu0 %vm7311_vm6, %v23478_v52 }
 0x5bf   : > { %18819 = vmatprep.mubr.msk.bf16.mxu0 %vm7311_vm6, %v23480_v6 }
 0x5c6   : > { %18820 = vmatmul.mubr.msk.bf16.gmra.mrb[16].mxu0 %vm7311_vm6, %v23486_v4 }
 0x5c7   : > { %18823 = vmatprep.mubr.msk.bf16.mxu0 %vm7311_vm6, %v23488_v49 }
 0x5ce   : > { %18824 = vmatmul.mubr.msk.bf16.gmra.mrb[20].mxu0 %vm7311_vm6, %v23494_v60 }
 0x5cf   : > { %18827 = vmatprep.mubr.msk.bf16.mxu0 %vm7311_vm6, %v23496_v55 }
 0x5d6   : > { %18828 = vmatmul.mubr.msk.bf16.gmra.mrb[24].mxu0 %vm7311_vm6, %v23502_v62 }
 0x5d7   : > { %18831 = vmatprep.mubr.msk.bf16.mxu0 %vm7311_vm6, %v23504_v17 }
 0x5de   : > { %18832 = vmatmul.mubr.msk.bf16.gmra.mrb[28].mxu0 %vm7311_vm6, %v23510_v12 }
 0x5df   : > { %18839 = vmatprep.mubr.msk.bf16.mxu0 %vm7311_vm6, %v7227_v22  ;;  %v23576_v22 = vpack.c.bf16 %v7226_v29, %v7225_v8  ;;  %v7763_v8 = vld [vmem:[#allocation2 + $0xfa] sm:$0xff]  ;;  %v23616_v29 = vpack.c.bf16 %v7761_v27, %v7760_v34  ;;  %v8384_v27 = vld [vmem:[#allocation2 + $0x189] sm:$0xff] }
 0x5e0   : > { %v23618_v16 = vpack.c.bf16 %v7763_v8, %v7762_v28  ;;  %v21368_v34 = vld [vmem:[%s21732_s23 + $0x60] sm:$0xff]   ;;  %v21369_v8 = vld [vmem:[%s21732_s23 + $0x68] sm:$0xff]  }
 0x5e6   : > { %18840 = vmatmul.mubr.msk.bf16.vlgmr.msra.gmra.mrb[0].mxu0 %vm7311_vm6, %v23515_v58 }
 0x5e7   : > { %18872 = vmatpush3.bf16.msra.mxu0 %v21360_v37  ;;  %18843 = vmatprep.mubr.msk.bf16.mxu0 %vm7311_vm6, %v23517_v7  ;;  %v7212_v37 = vld [vmem:[#allocation2 + $0xc8] sm:$0xff] }
 0x5e8   : > { %18873 = vmatprep.subr.bf16.mxu0 %v21361_v32  ;;  %v23546_v3 = vpack.c.bf16 %v7212_v37, %v7211_v57  ;;  %v7753_v57 = vld [vmem:[#allocation2 + $0x82] sm:$0xff]  ;;  %v7754_v37 = vld [vmem:[#allocation2 + $0x92] sm:$0xff] }
 0x5e9   : > { %v23602_v36 = vpack.c.bf16 %v7755_v10, %v7754_v37  ;;  %v7773_v37 = vld [vmem:[#allocation2 + $0x172] sm:$0xff] }
 0x5eb   : > { %18874 = vmatpush3.bf16.msra.mxu0 %v21361_v32  ;;  %v7747_v32 = vld [vmem:[#allocation2 + $0x3a] sm:$0xff] }
 0x5ec   : > { %18907 = vmatprep.subr.bf16.mxu0 %v23525_v50  ;;  %v23583_v20 = vpack.c.bf16 %v7747_v32, %v7746_v9  ;;  %v23626_v32 = vpack.c.bf16 %v7767_v46, %v7766_v33  ;;  %v21371_v46 = vld [vmem:[%s21732_s23 + $0x78] sm:$0xff]  }
 0x5ee   : > { %18844 = vmatmul.mubr.msk.bf16.gmra.mrb[4].mxu0 %vm7311_vm6, %v23527_v21 }
 0x5ef   : > { %18847 = vmatprep.mubr.msk.bf16.mxu0 %vm7311_vm6, %v23529_v43 }
 0x5f6   : > { %18848 = vmatmul.mubr.msk.bf16.gmra.mrb[8].mxu0 %vm7311_vm6, %v23536_v30 }
 0x5f7   : > { %18851 = vmatprep.mubr.msk.bf16.mxu0 %vm7311_vm6, %v23538_v45 }
 0x5fe   : > { %18852 = vmatmul.mubr.msk.bf16.gmra.mrb[12].mxu0 %vm7311_vm6, %v23544_v18 }
 0x5ff   : > { %18855 = vmatprep.mubr.msk.bf16.mxu0 %vm7311_vm6, %v23546_v3 }
 0x606   : > { %18856 = vmatmul.mubr.msk.bf16.gmra.mrb[16].mxu0 %vm7311_vm6, %v23552_v44 }
 0x607   : > { %18859 = vmatprep.mubr.msk.bf16.mxu0 %vm7311_vm6, %v23554_v13 }
 0x60e   : > { %18860 = vmatmul.mubr.msk.bf16.gmra.mrb[20].mxu0 %vm7311_vm6, %v23560_v25 }
 0x60f   : > { %18863 = vmatprep.mubr.msk.bf16.mxu0 %vm7311_vm6, %v23562_v2 }
 0x616   : > { %18864 = vmatmul.mubr.msk.bf16.gmra.mrb[24].mxu0 %vm7311_vm6, %v23568_v59 }
 0x617   : > { %18867 = vmatprep.mubr.msk.bf16.mxu0 %vm7311_vm6, %v23570_v35 }
 0x61e   : > { %18868 = vmatmul.mubr.msk.bf16.gmra.mrb[28].mxu0 %vm7311_vm6, %v23576_v22 }
 0x61f   : > { %18875 = vmatprep.mubr.msk.bf16.mxu0 %vm7311_vm6, %v7774_v24  ;;  %v7765_v24 = vld [vmem:[#allocation2 + $0x112] sm:$0xff] }
 0x620   : > { %v23624_v9 = vpack.c.bf16 %v7765_v24, %v7764_v42  ;;  %v21370_v42 = vld [vmem:[%s21732_s23 + $0x70] sm:$0xff]  }
 0x621   : > { %v8689_v24 = vld [vmem:[#allocation2 + $0x18a] sm:$0xff] }
 0x626   : > { %18876 = vmatmul.mubr.msk.bf16.vlgmr.msra.gmra.mrb[0].mxu0 %vm7311_vm6, %v23581_v0 }
 0x627   : > { %18908 = vmatpush3.bf16.msra.mxu0 %v23525_v50  ;;  %18879 = vmatprep.mubr.msk.bf16.mxu0 %vm7311_vm6, %v23583_v20  ;;  %v7752_v50 = vld [vmem:[#allocation2 + $0x7a] sm:$0xff] }
 0x628   : > { %18909 = vmatprep.subr.bf16.mxu0 %v21363_v41  ;;  %v23600_v23 = vpack.c.bf16 %v7753_v57, %v7752_v50  ;;  %v23634_v50 = vpack.c.bf16 %v7771_v38, %v7770_v53  ;;  %v7772_v57 = vld [vmem:[#allocation2 + $0x16a] sm:$0xff] }
 0x629   : > { %v23640_v10 = vpack.c.bf16 %v7773_v37, %v7772_v57 }
 0x62b   : > { %18910 = vmatpush3.bf16.msra.mxu0 %v21363_v41  ;;  %v7768_v41 = vld [vmem:[#allocation2 + $0x13a] sm:$0xff] }
 0x62c   : > { %18943 = vmatprep.subr.bf16.mxu0 %v21364_v56  ;;  %v23632_v26 = vpack.c.bf16 %v7769_v54, %v7768_v41  ;;  %v21372_v41 = vld [vmem:[%s21732_s23 + $0x80] sm:$0xff]  }
 0x62e   : > { %18880 = vmatmul.mubr.msk.bf16.gmra.mrb[4].mxu0 %vm7311_vm6, %v23592_v31 }
 0x62f   : > { %18883 = vmatprep.mubr.msk.bf16.mxu0 %vm7311_vm6, %v23594_v48 }
 0x636   : > { %18884 = vmatmul.mubr.msk.bf16.gmra.mrb[8].mxu0 %vm7311_vm6, %v23600_v23 }
 0x637   : > { %18887 = vmatprep.mubr.msk.bf16.mxu0 %vm7311_vm6, %v23602_v36 }
 0x63e   : > { %18888 = vmatmul.mubr.msk.bf16.gmra.mrb[12].mxu0 %vm7311_vm6, %v23608_v47 }
 0x63f   : > { %18891 = vmatprep.mubr.msk.bf16.mxu0 %vm7311_vm6, %v23610_v63 }
 0x646   : > { %18892 = vmatmul.mubr.msk.bf16.gmra.mrb[16].mxu0 %vm7311_vm6, %v23616_v29 }
 0x647   : > { %18895 = vmatprep.mubr.msk.bf16.mxu0 %vm7311_vm6, %v23618_v16 }
 0x64e   : > { %18896 = vmatmul.mubr.msk.bf16.gmra.mrb[20].mxu0 %vm7311_vm6, %v23624_v9 }
 0x64f   : > { %18899 = vmatprep.mubr.msk.bf16.mxu0 %vm7311_vm6, %v23626_v32 }
 0x656   : > { %18900 = vmatmul.mubr.msk.bf16.gmra.mrb[24].mxu0 %vm7311_vm6, %v23632_v26 }
 0x657   : > { %18903 = vmatprep.mubr.msk.bf16.mxu0 %vm7311_vm6, %v23634_v50 }
 0x65e   : > { %18904 = vmatmul.mubr.msk.bf16.gmra.mrb[28].mxu0 %vm7311_vm6, %v23640_v10 }
 0x65f   : > { %18911 = vmatprep.mubr.msk.bf16.mxu0 %vm7311_vm6, %v23515_v58  ;;  %v8078_v58 = vld [vmem:[#allocation2 + $0x180] sm:$0xff] }
 0x666   : > { %18912 = vmatmul.mubr.msk.bf16.vlgmr.msra.gmra.mrb[0].mxu0 %vm7311_vm6, %v23517_v7 }
 0x667   : > { %18944 = vmatpush3.bf16.msra.mxu0 %v21364_v56  ;;  %18915 = vmatprep.mubr.msk.bf16.mxu0 %vm7311_vm6, %v23527_v21  ;;  %v8079_v56 = vld [vmem:[#allocation2 + $0x188] sm:$0xff] }
 0x668   : > { %18945 = vmatprep.subr.bf16.mxu0 %v21365_v19  ;;  %v23676_v1 = vpack.c.bf16 %v8079_v56, %v8078_v58 }
 0x66b   : > { %18946 = vmatpush3.bf16.msra.mxu0 %v21365_v19  ;;  %v21377_v19 = vld [vmem:[%s21737_s22 + $0x8] sm:$0xff]  }
 0x66c   : > { %18979 = vmatprep.subr.bf16.mxu0 %v21366_v51 }
 0x66e   : > { %18916 = vmatmul.mubr.msk.bf16.gmra.mrb[4].mxu0 %vm7311_vm6, %v23529_v43 }
 0x66f   : > { %18919 = vmatprep.mubr.msk.bf16.mxu0 %vm7311_vm6, %v23536_v30 }
 0x676   : > { %18920 = vmatmul.mubr.msk.bf16.gmra.mrb[8].mxu0 %vm7311_vm6, %v23538_v45 }
 0x677   : > { %18923 = vmatprep.mubr.msk.bf16.mxu0 %vm7311_vm6, %v23544_v18 }
 0x67e   : > { %18924 = vmatmul.mubr.msk.bf16.gmra.mrb[12].mxu0 %vm7311_vm6, %v23546_v3 }
 0x67f   : > { %18927 = vmatprep.mubr.msk.bf16.mxu0 %vm7311_vm6, %v23552_v44 }
 0x686   : > { %18928 = vmatmul.mubr.msk.bf16.gmra.mrb[16].mxu0 %vm7311_vm6, %v23554_v13 }
 0x687   : > { %18931 = vmatprep.mubr.msk.bf16.mxu0 %vm7311_vm6, %v23560_v25 }
 0x68e   : > { %18932 = vmatmul.mubr.msk.bf16.gmra.mrb[20].mxu0 %vm7311_vm6, %v23562_v2 }
 0x68f   : > { %18935 = vmatprep.mubr.msk.bf16.mxu0 %vm7311_vm6, %v23568_v59 }
 0x696   : > { %18936 = vmatmul.mubr.msk.bf16.gmra.mrb[24].mxu0 %vm7311_vm6, %v23570_v35 }
 0x697   : > { %18939 = vmatprep.mubr.msk.bf16.mxu0 %vm7311_vm6, %v23576_v22 }
 0x69e   : > { %18940 = vmatmul.mubr.msk.bf16.gmra.mrb[28].mxu0 %vm7311_vm6, %v23676_v1 }
 0x69f   : > { %18947 = vmatprep.mubr.msk.bf16.mxu0 %vm7311_vm6, %v23452_v5  ;;  %v8383_v5 = vld [vmem:[#allocation2 + $0x181] sm:$0xff] }
 0x6a0   : > { %v23712_v28 = vpack.c.bf16 %v8384_v27, %v8383_v5 }
 0x6a6   : > { %18948 = vmatmul.mubr.msk.bf16.vlgmr.msra.gmra.mrb[0].mxu0 %vm7311_vm6, %v23454_v14 }
 0x6a7   : > { %18980 = vmatpush3.bf16.msra.mxu0 %v21366_v51  ;;  %18951 = vmatprep.mubr.msk.bf16.mxu0 %vm7311_vm6, %v23461_v15 }
 0x6a8   : > { %18981 = vmatprep.subr.bf16.mxu0 %v21367_v11 }
 0x6ab   : > { %18982 = vmatpush3.bf16.msra.mxu0 %v21367_v11 }
 0x6ac   : > { %19015 = vmatprep.subr.bf16.mxu0 %v21368_v34 }
 0x6ae   : > { %18952 = vmatmul.mubr.msk.bf16.gmra.mrb[4].mxu0 %vm7311_vm6, %v23463_v39 }
 0x6af   : > { %18955 = vmatprep.mubr.msk.bf16.mxu0 %vm7311_vm6, %v23470_v61 }
 0x6b6   : > { %18956 = vmatmul.mubr.msk.bf16.gmra.mrb[8].mxu0 %vm7311_vm6, %v23472_v40 }
 0x6b7   : > { %18959 = vmatprep.mubr.msk.bf16.mxu0 %vm7311_vm6, %v23478_v52 }
 0x6be   : > { %18960 = vmatmul.mubr.msk.bf16.gmra.mrb[12].mxu0 %vm7311_vm6, %v23480_v6 }
 0x6bf   : > { %18963 = vmatprep.mubr.msk.bf16.mxu0 %vm7311_vm6, %v23486_v4 }
 0x6c6   : > { %18964 = vmatmul.mubr.msk.bf16.gmra.mrb[16].mxu0 %vm7311_vm6, %v23488_v49 }
 0x6c7   : > { %18967 = vmatprep.mubr.msk.bf16.mxu0 %vm7311_vm6, %v23494_v60 }
 0x6ce   : > { %18968 = vmatmul.mubr.msk.bf16.gmra.mrb[20].mxu0 %vm7311_vm6, %v23496_v55 }
 0x6cf   : > { %18971 = vmatprep.mubr.msk.bf16.mxu0 %vm7311_vm6, %v23502_v62 }
 0x6d6   : > { %18972 = vmatmul.mubr.msk.bf16.gmra.mrb[24].mxu0 %vm7311_vm6, %v23504_v17 }
 0x6d7   : > { %18975 = vmatprep.mubr.msk.bf16.mxu0 %vm7311_vm6, %v23510_v12 }
 0x6de   : > { %18976 = vmatmul.mubr.msk.bf16.gmra.mrb[28].mxu0 %vm7311_vm6, %v23712_v28 }
 0x6df   : > { %18983 = vmatprep.mubr.msk.bf16.mxu0 %vm7311_vm6, %v23581_v0  ;;  %v8688_v0 = vld [vmem:[#allocation2 + $0x182] sm:$0xff] }
 0x6e0   : > { %v23748_v33 = vpack.c.bf16 %v8689_v24, %v8688_v0 }
 0x6e6   : > { %18984 = vmatmul.mubr.msk.bf16.vlgmr.msra.gmra.mrb[0].mxu0 %vm7311_vm6, %v23583_v20 }
 0x6e7   : > { %19016 = vmatpush3.bf16.msra.mxu0 %v21368_v34  ;;  %18987 = vmatprep.mubr.msk.bf16.mxu0 %vm7311_vm6, %v23592_v31 }
 0x6e8   : > { %19017 = vmatprep.subr.bf16.mxu0 %v21369_v8 }
 0x6eb   : > { %19018 = vmatpush3.bf16.msra.mxu0 %v21369_v8 }
 0x6ec   : > { %19051 = vmatprep.subr.bf16.mxu0 %v21370_v42 }
 0x6ee   : > { %18988 = vmatmul.mubr.msk.bf16.gmra.mrb[4].mxu0 %vm7311_vm6, %v23594_v48 }
 0x6ef   : > { %18991 = vmatprep.mubr.msk.bf16.mxu0 %vm7311_vm6, %v23600_v23 }
 0x6f6   : > { %18992 = vmatmul.mubr.msk.bf16.gmra.mrb[8].mxu0 %vm7311_vm6, %v23602_v36 }
 0x6f7   : > { %18995 = vmatprep.mubr.msk.bf16.mxu0 %vm7311_vm6, %v23608_v47 }
 0x6fe   : > { %18996 = vmatmul.mubr.msk.bf16.gmra.mrb[12].mxu0 %vm7311_vm6, %v23610_v63 }
 0x6ff   : > { %18999 = vmatprep.mubr.msk.bf16.mxu0 %vm7311_vm6, %v23616_v29 }
 0x706   : > { %19000 = vmatmul.mubr.msk.bf16.gmra.mrb[16].mxu0 %vm7311_vm6, %v23618_v16 }
 0x707   : > { %19003 = vmatprep.mubr.msk.bf16.mxu0 %vm7311_vm6, %v23624_v9 }
 0x70e   : > { %19004 = vmatmul.mubr.msk.bf16.gmra.mrb[20].mxu0 %vm7311_vm6, %v23626_v32 }
 0x70f   : > { %19007 = vmatprep.mubr.msk.bf16.mxu0 %vm7311_vm6, %v23632_v26 }
 0x716   : > { %19008 = vmatmul.mubr.msk.bf16.gmra.mrb[24].mxu0 %vm7311_vm6, %v23634_v50 }
 0x717   : > { %19011 = vmatprep.mubr.msk.bf16.mxu0 %vm7311_vm6, %v23640_v10 }
 0x71e   : > { %19012 = vmatmul.mubr.msk.bf16.gmra.mrb[28].mxu0 %vm7311_vm6, %v23748_v33 }
 0x71f   : > { %19019 = vmatprep.mubr.msk.bf16.mxu0 %vm7311_vm6, %v23517_v7  ;;  %v8994_v7 = vld [vmem:[#allocation2 + $0x198] sm:$0xff] }
 0x726   : > { %19020 = vmatmul.mubr.msk.bf16.vlgmr.msra.gmra.mrb[0].mxu0 %vm7311_vm6, %v23527_v21  ;;  %v8995_v21 = vld [vmem:[#allocation2 + $0x1a0] sm:$0xff] }
 0x727   : > { %19052 = vmatpush3.bf16.msra.mxu0 %v21370_v42  ;;  %19023 = vmatprep.mubr.msk.bf16.mxu0 %vm7311_vm6, %v23529_v43  ;;  %v9011_v43 = vpack.c.bf16 %v8995_v21, %v8994_v7  ;;  %v23889_v42 = vld [vmem:[%s21737_s22 + $0x20] sm:$0xff]  }
 0x728   : > { %19053 = vmatprep.subr.bf16.mxu0 %v21371_v46 }
 0x72b   : > { %19054 = vmatpush3.bf16.msra.mxu0 %v21371_v46 }
 0x72c   : > { %19087 = vmatprep.subr.bf16.mxu0 %v21372_v41 }
 0x72e   : > { %19024 = vmatmul.mubr.msk.bf16.gmra.mrb[4].mxu0 %vm7311_vm6, %v23536_v30  ;;  %v21373_v30 = vld [vmem:[%s21732_s23 + $0x88] sm:$0xff]  }
 0x72f   : > { %19027 = vmatprep.mubr.msk.bf16.mxu0 %vm7311_vm6, %v23538_v45 }
 0x736   : > { %19028 = vmatmul.mubr.msk.bf16.gmra.mrb[8].mxu0 %vm7311_vm6, %v23544_v18 }
 0x737   : > { %19031 = vmatprep.mubr.msk.bf16.mxu0 %vm7311_vm6, %v23546_v3 }
 0x73e   : > { %19032 = vmatmul.mubr.msk.bf16.gmra.mrb[12].mxu0 %vm7311_vm6, %v23552_v44 }
 0x73f   : > { %19035 = vmatprep.mubr.msk.bf16.mxu0 %vm7311_vm6, %v23554_v13 }
 0x746   : > { %19036 = vmatmul.mubr.msk.bf16.gmra.mrb[16].mxu0 %vm7311_vm6, %v23560_v25 }
 0x747   : > { %19039 = vmatprep.mubr.msk.bf16.mxu0 %vm7311_vm6, %v23562_v2 }
 0x74e   : > { %19040 = vmatmul.mubr.msk.bf16.gmra.mrb[20].mxu0 %vm7311_vm6, %v23568_v59 }
 0x74f   : > { %19043 = vmatprep.mubr.msk.bf16.mxu0 %vm7311_vm6, %v23570_v35 }
 0x756   : > { %19044 = vmatmul.mubr.msk.bf16.gmra.mrb[24].mxu0 %vm7311_vm6, %v23576_v22 }
 0x757   : > { %19047 = vmatprep.mubr.msk.bf16.mxu0 %vm7311_vm6, %v23676_v1 }
 0x75e   : > { %19048 = vmatmul.mubr.msk.bf16.gmra.mrb[28].mxu0 %vm7311_vm6, %v9011_v43 }
 0x75f   : > { %19055 = vmatprep.mubr.msk.bf16.mxu0 %vm7311_vm6, %v23454_v14  ;;  %v9299_v14 = vld [vmem:[#allocation2 + $0x199] sm:$0xff] }
 0x766   : > { %19056 = vmatmul.mubr.msk.bf16.vlgmr.msra.gmra.mrb[0].mxu0 %vm7311_vm6, %v23461_v15  ;;  %v9300_v15 = vld [vmem:[#allocation2 + $0x1a1] sm:$0xff] }
 0x767   : > { %19088 = vmatpush3.bf16.msra.mxu0 %v21372_v41  ;;  %19059 = vmatprep.mubr.msk.bf16.mxu0 %vm7311_vm6, %v23463_v39  ;;  %v9316_v39 = vpack.c.bf16 %v9300_v15, %v9299_v14 }
 0x768   : > { %19089 = vmatprep.subr.bf16.mxu0 %v21373_v30 }
 0x76b   : > { %19090 = vmatpush3.bf16.msra.mxu0 %v21373_v30 }
 0x76e   : > { %19060 = vmatmul.mubr.msk.bf16.gmra.mrb[4].mxu0 %vm7311_vm6, %v23470_v61  ;;  %v9604_v61 = vld [vmem:[#allocation2 + $0x19a] sm:$0xff] }
 0x76f   : > { %19063 = vmatprep.mubr.msk.bf16.mxu0 %vm7311_vm6, %v23472_v40  ;;  %v9605_v40 = vld [vmem:[#allocation2 + $0x1a2] sm:$0xff] }
 0x776   : > { %19064 = vmatmul.mubr.msk.bf16.gmra.mrb[8].mxu0 %vm7311_vm6, %v23478_v52  ;;  %v9621_v52 = vpack.c.bf16 %v9605_v40, %v9604_v61 }
 0x777   : > { %19067 = vmatprep.mubr.msk.bf16.mxu0 %vm7311_vm6, %v23480_v6  ;;  %v21374_v6 = vld [vmem:[%s21737_s22 + $0x10] sm:$0xff]  }
 0x778   : > { %19123 = vmatprep.subr.bf16.mxu1 %v21374_v6 }
 0x779   : > { %19124 = vmatpush3.bf16.msra.mxu1 %v21374_v6 }
 0x77e   : > { %19068 = vmatmul.mubr.msk.bf16.gmra.mrb[12].mxu0 %vm7311_vm6, %v23486_v4  ;;  %v21375_v4 = vld [vmem:[%s21737_s22 + $0x18] sm:$0xff]  }
 0x77f   : > { %19071 = vmatprep.mubr.msk.bf16.mxu0 %vm7311_vm6, %v23488_v49  ;;  %19125 = vmatprep.subr.bf16.mxu1 %v21375_v4  ;;  %v10035_v49 = vld [vmem:[#allocation3 + $0x1] sm:$0xff] }
 0x780   : > { %19126 = vmatpush3.bf16.msra.mxu1 %v21375_v4 }
 0x786   : > { %19072 = vmatmul.mubr.msk.bf16.gmra.mrb[16].mxu0 %vm7311_vm6, %v23494_v60  ;;  %v10036_v60 = vld [vmem:[#allocation3 + $0x9] sm:$0xff] }
 0x787   : > { %19075 = vmatprep.mubr.msk.bf16.mxu0 %vm7311_vm6, %v23496_v55  ;;  %v10067_v55 = vpack.c.bf16 %v10036_v60, %v10035_v49 }
 0x789   : > { %19127 = vmatprep.mubr.msk.bf16.mxu1 %vm7311_vm6, %v10067_v55 }
 0x78e   : > { %19076 = vmatmul.mubr.msk.bf16.gmra.mrb[20].mxu0 %vm7311_vm6, %v23502_v62  ;;  %v21376_v62 = vld [vmem:[%s21737_s22] sm:$0xff]  }
 0x78f   : > { %19079 = vmatprep.mubr.msk.bf16.mxu0 %vm7311_vm6, %v23504_v17  ;;  %19159 = vmatprep.subr.bf16.mxu1 %v21376_v62  ;;  %v23857_v17 = vld [vmem:[%s739_s1] ss:$0 sm:$0xff] }
 0x796   : > { %19080 = vmatmul.mubr.msk.bf16.gmra.mrb[24].mxu0 %vm7311_vm6, %v23510_v12 }
 0x797   : > { %19083 = vmatprep.mubr.msk.bf16.mxu0 %vm7311_vm6, %v23712_v28 }
 0x79e   : > { %19084 = vmatmul.mubr.msk.bf16.gmra.mrb[28].mxu0 %vm7311_vm6, %v9316_v39 }
 0x79f   : > { %19091 = vmatprep.mubr.msk.bf16.mxu0 %vm7311_vm6, %v23583_v20 }
 0x7a6   : > { %19092 = vmatmul.mubr.msk.bf16.vlgmr.msra.gmra.mrb[0].mxu0 %vm7311_vm6, %v23592_v31 }
 0x7a7   : > { %19095 = vmatprep.mubr.msk.bf16.mxu0 %vm7311_vm6, %v23594_v48 }
 0x7ae   : > { %19096 = vmatmul.mubr.msk.bf16.gmra.mrb[4].mxu0 %vm7311_vm6, %v23600_v23 }
 0x7af   : > { %19099 = vmatprep.mubr.msk.bf16.mxu0 %vm7311_vm6, %v23602_v36 }
 0x7b6   : > { %19100 = vmatmul.mubr.msk.bf16.gmra.mrb[8].mxu0 %vm7311_vm6, %v23608_v47 }
 0x7b7   : > { %19103 = vmatprep.mubr.msk.bf16.mxu0 %vm7311_vm6, %v23610_v63 }
 0x7be   : > { %19104 = vmatmul.mubr.msk.bf16.gmra.mrb[12].mxu0 %vm7311_vm6, %v23616_v29 }
 0x7bf   : > { %19107 = vmatprep.mubr.msk.bf16.mxu0 %vm7311_vm6, %v23618_v16 }
 0x7c6   : > { %19108 = vmatmul.mubr.msk.bf16.gmra.mrb[16].mxu0 %vm7311_vm6, %v23624_v9 }
 0x7c7   : > { %19111 = vmatprep.mubr.msk.bf16.mxu0 %vm7311_vm6, %v23626_v32 }
 0x7ce   : > { %19112 = vmatmul.mubr.msk.bf16.gmra.mrb[20].mxu0 %vm7311_vm6, %v23632_v26 }
 0x7cf   : > { %19115 = vmatprep.mubr.msk.bf16.mxu0 %vm7311_vm6, %v23634_v50 }
 0x7d6   : > { %19116 = vmatmul.mubr.msk.bf16.gmra.mrb[24].mxu0 %vm7311_vm6, %v23640_v10 }
 0x7d7   : > { %19119 = vmatprep.mubr.msk.bf16.mxu0 %vm7311_vm6, %v23748_v33 }
 0x7de   : > { %19120 = vmatmul.mubr.msk.bf16.gmra.mrb[28].mxu0 %vm7311_vm6, %v9621_v52 }
 0x879   : > { %v19093_v12 = vpop.f32.mrb[0].mxu0 }
 0x87a   : > { %v9888_v45 = vadd.f32 %v19093_v12, %v23857_v17  ;;  %v9720_v18 = vpop.f32.mrb[1].mxu0 }
 0x87b   : > { %v9886_v3 = vadd.f32 %v23857_v17, %v9720_v18  ;;  %v19094_v44 = vpop.f32.mrb[2].mxu0 }
 0x87c   : > { %v9920_v13 = vmax.f32 %v9888_v45, 0.0  ;;  %v9889_v25 = vadd.f32 %v19094_v44, %v23857_v17  ;;  %v9723_v2 = vpop.f32.mrb[3].mxu0 }
 0x87d   : > { %v9918_v59 = vmax.f32 %v9886_v3, 0.0  ;;  %v9887_v35 = vadd.f32 %v23857_v17, %v9723_v2 }
 0x87e   : > { %9953 = vst.msk [vmem:[#allocation3 + $0x31] sm:$0xff] %vm7311_vm6, %v9920_v13  ;;  %v9921_v22 = vmax.f32 %v9889_v25, 0.0 }
 0x87f   : > { %9951 = vst.msk [vmem:[#allocation3 + $0x19] sm:$0xff] %vm7311_vm6, %v9918_v59  ;;  %v9919_v20 = vmax.f32 %v9887_v35, 0.0 }
 0x880   : > { %9954 = vst.msk [vmem:[#allocation3 + $0x39] sm:$0xff] %vm7311_vm6, %v9921_v22 }
 0x881   : > { %9952 = vst.msk [vmem:[#allocation3 + $0x21] sm:$0xff] %vm7311_vm6, %v9919_v20  ;;  %v19097_v31 = vpop.f32.mrb[4].mxu0 }
 0x882   : > { %v9892_v48 = vadd.f32 %v19097_v31, %v23857_v17  ;;  %v9736_v23 = vpop.f32.mrb[5].mxu0 }
 0x883   : > { %v9890_v36 = vadd.f32 %v23857_v17, %v9736_v23  ;;  %v19098_v47 = vpop.f32.mrb[6].mxu0 }
 0x884   : > { %v9924_v63 = vmax.f32 %v9892_v48, 0.0  ;;  %v9893_v29 = vadd.f32 %v19098_v47, %v23857_v17  ;;  %v9739_v16 = vpop.f32.mrb[7].mxu0 }
 0x885   : > { %v9922_v9 = vmax.f32 %v9890_v36, 0.0  ;;  %v9891_v32 = vadd.f32 %v23857_v17, %v9739_v16  ;;  %v10039_v10 = vld [vmem:[#allocation3 + $0x31] sm:$0xff] }
 0x886   : > { %9957 = vst.msk [vmem:[#allocation3 + $0x61] sm:$0xff] %vm7311_vm6, %v9924_v63  ;;  %v9925_v54 = vmax.f32 %v9893_v29, 0.0  ;;  %v10037_v26 = vld [vmem:[#allocation3 + $0x19] sm:$0xff] }
 0x887   : > { %9955 = vst.msk [vmem:[#allocation3 + $0x49] sm:$0xff] %vm7311_vm6, %v9922_v9  ;;  %v9923_v53 = vmax.f32 %v9891_v32, 0.0  ;;  %v10040_v38 = vld [vmem:[#allocation3 + $0x39] sm:$0xff] }
 0x888   : > { %9958 = vst.msk [vmem:[#allocation3 + $0x69] sm:$0xff] %vm7311_vm6, %v9925_v54  ;;  %v10038_v50 = vld [vmem:[#allocation3 + $0x21] sm:$0xff]  ;;  %v23879_v56 = vpack.c.bf16 %v10040_v38, %v10039_v10 }
 0x889   : > { %9956 = vst.msk [vmem:[#allocation3 + $0x51] sm:$0xff] %vm7311_vm6, %v9923_v53  ;;  %v19101_v57 = vpop.f32.mrb[8].mxu0  ;;  %v23875_v37 = vpack.c.bf16 %v10038_v50, %v10037_v26 }
 0x88a   : > { %v9896_v51 = vadd.f32 %v19101_v57, %v23857_v17  ;;  %v9752_v58 = vpop.f32.mrb[9].mxu0 }
 0x88b   : > { %v9894_v1 = vadd.f32 %v23857_v17, %v9752_v58  ;;  %v19102_v11 = vpop.f32.mrb[10].mxu0  ;;  %19128 = vmatmul.mubr.msk.bf16.vlgmr.msra.gmra.mrb[0].mxu1 %vm7311_vm6, %v23875_v37 }
 0x88c   : > { %v9928_v34 = vmax.f32 %v9896_v51, 0.0  ;;  %v9897_v5 = vadd.f32 %v19102_v11, %v23857_v17  ;;  %v9755_v27 = vpop.f32.mrb[11].mxu0  ;;  %19131 = vmatprep.mubr.msk.bf16.mxu1 %vm7311_vm6, %v23879_v56  ;;  %19160 = vmatpush3.bf16.msra.mxu1 %v21376_v62 }
 0x88d   : > { %v9926_v28 = vmax.f32 %v9894_v1, 0.0  ;;  %v9895_v8 = vadd.f32 %v23857_v17, %v9755_v27  ;;  %19161 = vmatprep.subr.bf16.mxu1 %v21377_v19  ;;  %v10043_v43 = vld [vmem:[#allocation3 + $0x61] sm:$0xff] }
 0x88e   : > { %9961 = vst.msk [vmem:[#allocation3 + $0x91] sm:$0xff] %vm7311_vm6, %v9928_v34  ;;  %v9929_v0 = vmax.f32 %v9897_v5, 0.0  ;;  %v10041_v46 = vld [vmem:[#allocation3 + $0x49] sm:$0xff] }
 0x88f   : > { %9959 = vst.msk [vmem:[#allocation3 + $0x79] sm:$0xff] %vm7311_vm6, %v9926_v28  ;;  %v9927_v24 = vmax.f32 %v9895_v8, 0.0  ;;  %v10044_v33 = vld [vmem:[#allocation3 + $0x69] sm:$0xff] }
 0x890   : > { %9962 = vst.msk [vmem:[#allocation3 + $0x99] sm:$0xff] %vm7311_vm6, %v9929_v0  ;;  %v10042_v41 = vld [vmem:[#allocation3 + $0x51] sm:$0xff]  ;;  %19162 = vmatpush3.bf16.msra.mxu1 %v21377_v19  ;;  %v23899_v15 = vpack.c.bf16 %v10044_v33, %v10043_v43 }
 0x891   : > { %9960 = vst.msk [vmem:[#allocation3 + $0x81] sm:$0xff] %vm7311_vm6, %v9927_v24  ;;  %v19105_v7 = vpop.f32.mrb[12].mxu0  ;;  %v23895_v21 = vpack.c.bf16 %v10042_v41, %v10041_v46  ;;  %19195 = vmatprep.subr.bf16.mxu1 %v23889_v42 }
 0x892   : > { %v9900_v30 = vadd.f32 %v19105_v7, %v23857_v17  ;;  %v9768_v14 = vpop.f32.mrb[13].mxu0 }
 0x893   : > { %v9898_v39 = vadd.f32 %v23857_v17, %v9768_v14  ;;  %v19106_v61 = vpop.f32.mrb[14].mxu0  ;;  %19132 = vmatmul.mubr.msk.bf16.gmra.mrb[4].mxu1 %vm7311_vm6, %v23895_v21 }
 0x894   : > { %v9932_v40 = vmax.f32 %v9900_v30, 0.0  ;;  %v9901_v52 = vadd.f32 %v19106_v61, %v23857_v17  ;;  %v9771_v6 = vpop.f32.mrb[15].mxu0  ;;  %19135 = vmatprep.mubr.msk.bf16.mxu1 %vm7311_vm6, %v23899_v15 }
 0x895   : > { %v9930_v4 = vmax.f32 %v9898_v39, 0.0  ;;  %v9899_v49 = vadd.f32 %v23857_v17, %v9771_v6  ;;  %v10047_v44 = vld [vmem:[#allocation3 + $0x91] sm:$0xff] }
 0x896   : > { %9965 = vst.msk [vmem:[#allocation3 + $0xc1] sm:$0xff] %vm7311_vm6, %v9932_v40  ;;  %v9933_v60 = vmax.f32 %v9901_v52, 0.0  ;;  %v10045_v12 = vld [vmem:[#allocation3 + $0x79] sm:$0xff] }
 0x897   : > { %9963 = vst.msk [vmem:[#allocation3 + $0xa9] sm:$0xff] %vm7311_vm6, %v9930_v4  ;;  %v9931_v55 = vmax.f32 %v9899_v49, 0.0  ;;  %v10048_v62 = vld [vmem:[#allocation3 + $0x99] sm:$0xff] }
 0x898   : > { %9966 = vst.msk [vmem:[#allocation3 + $0xc9] sm:$0xff] %vm7311_vm6, %v9933_v60  ;;  %v10046_v45 = vld [vmem:[#allocation3 + $0x81] sm:$0xff]  ;;  %v23915_v2 = vpack.c.bf16 %v10048_v62, %v10047_v44 }
 0x899   : > { %9964 = vst.msk [vmem:[#allocation3 + $0xb1] sm:$0xff] %vm7311_vm6, %v9931_v55  ;;  %v19109_v18 = vpop.f32.mrb[16].mxu0  ;;  %v23912_v3 = vpack.c.bf16 %v10046_v45, %v10045_v12 }
 0x89a   : > { %v9904_v13 = vadd.f32 %v19109_v18, %v23857_v17  ;;  %v9784_v25 = vpop.f32.mrb[17].mxu0 }
 0x89b   : > { %v9902_v59 = vadd.f32 %v23857_v17, %v9784_v25  ;;  %v19110_v35 = vpop.f32.mrb[18].mxu0  ;;  %19136 = vmatmul.mubr.msk.bf16.gmra.mrb[8].mxu1 %vm7311_vm6, %v23912_v3 }
 0x89c   : > { %v9936_v22 = vmax.f32 %v9904_v13, 0.0  ;;  %v9905_v20 = vadd.f32 %v19110_v35, %v23857_v17  ;;  %v9787_v31 = vpop.f32.mrb[19].mxu0  ;;  %19139 = vmatprep.mubr.msk.bf16.mxu1 %vm7311_vm6, %v23915_v2 }
 0x89d   : > { %v9934_v48 = vmax.f32 %v9902_v59, 0.0  ;;  %v9903_v23 = vadd.f32 %v23857_v17, %v9787_v31  ;;  %v10051_v54 = vld [vmem:[#allocation3 + $0xc1] sm:$0xff] }
 0x89e   : > { %9969 = vst.msk [vmem:[#allocation3 + $0xf1] sm:$0xff] %vm7311_vm6, %v9936_v22  ;;  %v9937_v36 = vmax.f32 %v9905_v20, 0.0  ;;  %v10049_v29 = vld [vmem:[#allocation3 + $0xa9] sm:$0xff] }
 0x89f   : > { %9967 = vst.msk [vmem:[#allocation3 + $0xd9] sm:$0xff] %vm7311_vm6, %v9934_v48  ;;  %v9935_v47 = vmax.f32 %v9903_v23, 0.0  ;;  %v10052_v63 = vld [vmem:[#allocation3 + $0xc9] sm:$0xff] }
 0x8a0   : > { %9970 = vst.msk [vmem:[#allocation3 + $0xf9] sm:$0xff] %vm7311_vm6, %v9937_v36  ;;  %v10050_v16 = vld [vmem:[#allocation3 + $0xb1] sm:$0xff]  ;;  %v23931_v26 = vpack.c.bf16 %v10052_v63, %v10051_v54  ;;  %v9984_v54 = vld [vmem:[#allocation3 + $0x8] sm:$0xff] }
 0x8a1   : > { %9968 = vst.msk [vmem:[#allocation3 + $0xe1] sm:$0xff] %vm7311_vm6, %v9935_v47  ;;  %v19113_v9 = vpop.f32.mrb[20].mxu0  ;;  %v23928_v32 = vpack.c.bf16 %v10050_v16, %v10049_v29 }
 0x8a2   : > { %v9908_v53 = vadd.f32 %v19113_v9, %v23857_v17  ;;  %v9800_v38 = vpop.f32.mrb[21].mxu0 }
 0x8a3   : > { %v9906_v50 = vadd.f32 %v23857_v17, %v9800_v38  ;;  %v19114_v57 = vpop.f32.mrb[22].mxu0  ;;  %19140 = vmatmul.mubr.msk.bf16.gmra.mrb[12].mxu1 %vm7311_vm6, %v23928_v32 }
 0x8a4   : > { %v9940_v10 = vmax.f32 %v9908_v53, 0.0  ;;  %v9909_v19 = vadd.f32 %v19114_v57, %v23857_v17  ;;  %v9803_v51 = vpop.f32.mrb[23].mxu0  ;;  %19143 = vmatprep.mubr.msk.bf16.mxu1 %vm7311_vm6, %v23931_v26 }
 0x8a5   : > { %v9938_v58 = vmax.f32 %v9906_v50, 0.0  ;;  %v9907_v1 = vadd.f32 %v23857_v17, %v9803_v51  ;;  %v10055_v24 = vld [vmem:[#allocation3 + $0xf1] sm:$0xff] }
 0x8a6   : > { %9973 = vst.msk [vmem:[#allocation3 + $0x121] sm:$0xff] %vm7311_vm6, %v9940_v10  ;;  %v9941_v11 = vmax.f32 %v9909_v19, 0.0  ;;  %v10053_v27 = vld [vmem:[#allocation3 + $0xd9] sm:$0xff] }
 0x8a7   : > { %9971 = vst.msk [vmem:[#allocation3 + $0x109] sm:$0xff] %vm7311_vm6, %v9938_v58  ;;  %v9939_v34 = vmax.f32 %v9907_v1, 0.0  ;;  %v10056_v5 = vld [vmem:[#allocation3 + $0xf9] sm:$0xff]  ;;  %v9987_v1 = vld [vmem:[#allocation3 + $0x30] sm:$0xff] }
 0x8a8   : > { %9974 = vst.msk [vmem:[#allocation3 + $0x129] sm:$0xff] %vm7311_vm6, %v9941_v11  ;;  %v10054_v28 = vld [vmem:[#allocation3 + $0xe1] sm:$0xff]  ;;  %v23947_v41 = vpack.c.bf16 %v10056_v5, %v10055_v24  ;;  %v9988_v19 = vld [vmem:[#allocation3 + $0x38] sm:$0xff] }
 0x8a9   : > { %9972 = vst.msk [vmem:[#allocation3 + $0x111] sm:$0xff] %vm7311_vm6, %v9939_v34  ;;  %v19117_v8 = vpop.f32.mrb[24].mxu0  ;;  %v23944_v0 = vpack.c.bf16 %v10054_v28, %v10053_v27  ;;  %v9986_v10 = vld [vmem:[#allocation3 + $0x20] sm:$0xff]  ;;  %v9985_v51 = vld [vmem:[#allocation3 + $0x18] sm:$0xff]  ;;  %v23992_v34 = vpack.c.bf16 %v9988_v19, %v9987_v1  ;;  %v9990_v27 = vld [vmem:[#allocation3 + $0x50] sm:$0xff] }
 0x8aa   : > { %v9912_v33 = vadd.f32 %v19117_v8, %v23857_v17  ;;  %v9816_v46 = vpop.f32.mrb[25].mxu0  ;;  %v23989_v58 = vpack.c.bf16 %v9986_v10, %v9985_v51  ;;  %v21379_v11 = vld [vmem:[%s21737_s22 + $0x28] sm:$0xff]   ;;  %v24000_v5 = vld [vmem:[%s21737_s22 + $0x30] sm:$0xff]   ;;  %v9992_v28 = vld [vmem:[#allocation3 + $0x68] sm:$0xff] }
 0x8ab   : > { %v9910_v7 = vadd.f32 %v23857_v17, %v9816_v46  ;;  %v19118_v43 = vpop.f32.mrb[26].mxu0  ;;  %19144 = vmatmul.mubr.msk.bf16.gmra.mrb[16].mxu1 %vm7311_vm6, %v23944_v0  ;;  %v9989_v8 = vld [vmem:[#allocation3 + $0x48] sm:$0xff]  ;;  %v10531_v19 = vld [vmem:[#allocation3 + $0x1a] sm:$0xff]  ;;  %v10533_v1 = vld [vmem:[#allocation3 + $0x32] sm:$0xff] }
 0x8ac   : > { %v9944_v30 = vmax.f32 %v9912_v33, 0.0  ;;  %v9913_v14 = vadd.f32 %v19118_v43, %v23857_v17  ;;  %v9819_v39 = vpop.f32.mrb[27].mxu0  ;;  %19147 = vmatprep.mubr.msk.bf16.mxu1 %vm7311_vm6, %v23947_v41  ;;  %v24002_v24 = vpack.c.bf16 %v9990_v27, %v9989_v8  ;;  %v9991_v33 = vld [vmem:[#allocation3 + $0x60] sm:$0xff]  ;;  %v9993_v43 = vld [vmem:[#allocation3 + $0x78] sm:$0xff] }
 0x8ad   : > { %v9942_v61 = vmax.f32 %v9910_v7, 0.0  ;;  %v9911_v40 = vadd.f32 %v23857_v17, %v9819_v39  ;;  %v10059_v12 = vld [vmem:[#allocation3 + $0x121] sm:$0xff]  ;;  %v24005_v46 = vpack.c.bf16 %v9992_v28, %v9991_v33  ;;  %v9996_v7 = vld [vmem:[#allocation3 + $0x98] sm:$0xff]  ;;  %v21382_v33 = vld [vmem:[%s21737_s22 + $0x40] sm:$0xff]  }
 0x8ae   : > { %9977 = vst.msk [vmem:[#allocation3 + $0x151] sm:$0xff] %vm7311_vm6, %v9944_v30  ;;  %v9945_v52 = vmax.f32 %v9913_v14, 0.0  ;;  %v10057_v49 = vld [vmem:[#allocation3 + $0x109] sm:$0xff] }
 0x8af   : > { %9975 = vst.msk [vmem:[#allocation3 + $0x139] sm:$0xff] %vm7311_vm6, %v9942_v61  ;;  %v9943_v6 = vmax.f32 %v9911_v40, 0.0  ;;  %v10060_v4 = vld [vmem:[#allocation3 + $0x129] sm:$0xff] }
 0x8b0   : > { %9978 = vst.msk [vmem:[#allocation3 + $0x159] sm:$0xff] %vm7311_vm6, %v9945_v52  ;;  %v10058_v60 = vld [vmem:[#allocation3 + $0x111] sm:$0xff]  ;;  %v23963_v44 = vpack.c.bf16 %v10060_v4, %v10059_v12  ;;  %v10000_v40 = vld [vmem:[#allocation3 + $0xc8] sm:$0xff]  ;;  %v9999_v4 = vld [vmem:[#allocation3 + $0xc0] sm:$0xff] }
 0x8b1   : > { %9976 = vst.msk [vmem:[#allocation3 + $0x141] sm:$0xff] %vm7311_vm6, %v9943_v6  ;;  %v19121_v55 = vpop.f32.mrb[28].mxu0  ;;  %v23960_v62 = vpack.c.bf16 %v10058_v60, %v10057_v49  ;;  %v9995_v14 = vld [vmem:[#allocation3 + $0x90] sm:$0xff]  ;;  %v9997_v52 = vld [vmem:[#allocation3 + $0xa8] sm:$0xff]  ;;  %v24021_v49 = vpack.c.bf16 %v10000_v40, %v9999_v4  ;;  %v10002_v60 = vld [vmem:[#allocation3 + $0xe0] sm:$0xff] }
 0x8b2   : > { %v9916_v45 = vadd.f32 %v19121_v55, %v23857_v17  ;;  %v9832_v18 = vpop.f32.mrb[29].mxu0  ;;  %v24013_v39 = vpack.c.bf16 %v9996_v7, %v9995_v14  ;;  %v9998_v61 = vld [vmem:[#allocation3 + $0xb0] sm:$0xff]  ;;  %v10004_v55 = vld [vmem:[#allocation3 + $0xf8] sm:$0xff]  ;;  %v10532_v51 = vld [vmem:[#allocation3 + $0x22] sm:$0xff] }
 0x8b3   : > { %v9914_v13 = vadd.f32 %v23857_v17, %v9832_v18  ;;  %v19122_v25 = vpop.f32.mrb[30].mxu0  ;;  %19148 = vmatmul.mubr.msk.bf16.gmra.mrb[20].mxu1 %vm7311_vm6, %v23960_v62  ;;  %v24019_v6 = vpack.c.bf16 %v9998_v61, %v9997_v52  ;;  %v10001_v12 = vld [vmem:[#allocation3 + $0xd8] sm:$0xff]  ;;  %v10003_v18 = vld [vmem:[#allocation3 + $0xf0] sm:$0xff]  ;;  %v24056_v27 = vpack.c.bf16 %v10532_v51, %v10531_v19  ;;  %v21381_v28 = vld [vmem:[%s21737_s22 + $0x38] sm:$0xff]  }
 0x8b4   : > { %v9948_v59 = vmax.f32 %v9916_v45, 0.0  ;;  %v9917_v35 = vadd.f32 %v19122_v25, %v23857_v17  ;;  %v9835_v22 = vpop.f32.mrb[31].mxu0  ;;  %19151 = vmatprep.mubr.msk.bf16.mxu1 %vm7311_vm6, %v23963_v44  ;;  %v24027_v45 = vpack.c.bf16 %v10002_v60, %v10001_v12  ;;  %v10006_v25 = vld [vmem:[#allocation3 + $0x110] sm:$0xff]  ;;  %v10539_v52 = vld [vmem:[#allocation3 + $0x7a] sm:$0xff]  ;;  %v10553_v19 = vld [vmem:[#allocation3 + $0x122] sm:$0xff] }
 0x8b5   : > { %v9946_v20 = vmax.f32 %v9914_v13, 0.0  ;;  %v9915_v31 = vadd.f32 %v23857_v17, %v9835_v22  ;;  %v10063_v16 = vld [vmem:[#allocation3 + $0x151] sm:$0xff]  ;;  %v9983_v17 = vld [vmem:[#allocation3] sm:$0xff]  ;;  %v24029_v13 = vpack.c.bf16 %v10004_v55, %v10003_v18 }
 0x8b6   : > { %9981 = vst.msk [vmem:[#allocation3 + $0x181] sm:$0xff] %vm7311_vm6, %v9948_v59  ;;  %v9949_v48 = vmax.f32 %v9917_v35, 0.0  ;;  %v10061_v47 = vld [vmem:[#allocation3 + $0x139] sm:$0xff]  ;;  %v10015_v50 = vpack.c.bf16 %v9984_v54, %v9983_v17  ;;  %v10008_v59 = vld [vmem:[#allocation3 + $0x128] sm:$0xff] }
 0x8b7   : > { %9979 = vst.msk [vmem:[#allocation3 + $0x169] sm:$0xff] %vm7311_vm6, %v9946_v20  ;;  %v9947_v23 = vmax.f32 %v9915_v31, 0.0  ;;  %v10064_v36 = vld [vmem:[#allocation3 + $0x159] sm:$0xff]  ;;  %v10005_v35 = vld [vmem:[#allocation3 + $0x108] sm:$0xff] }
 0x8b8   : > { %9982 = vst.msk [vmem:[#allocation3 + $0x189] sm:$0xff] %vm7311_vm6, %v9949_v48  ;;  %v10062_v63 = vld [vmem:[#allocation3 + $0x141] sm:$0xff]  ;;  %v23978_v9 = vpack.c.bf16 %v10064_v36, %v10063_v16  ;;  %v24035_v22 = vpack.c.bf16 %v10006_v25, %v10005_v35  ;;  %v10009_v36 = vld [vmem:[#allocation3 + $0x138] sm:$0xff]  ;;  %v10530_v54 = vld [vmem:[#allocation3 + $0xa] sm:$0xff] }
 0x8b9   : > { %9980 = vst.msk [vmem:[#allocation3 + $0x171] sm:$0xff] %vm7311_vm6, %v9947_v23  ;;  %v23976_v29 = vpack.c.bf16 %v10062_v63, %v10061_v47  ;;  %v10007_v20 = vld [vmem:[#allocation3 + $0x120] sm:$0xff]  ;;  %v10012_v23 = vld [vmem:[#allocation3 + $0x158] sm:$0xff]  ;;  %v10011_v63 = vld [vmem:[#allocation3 + $0x150] sm:$0xff] }
 0x8ba   : > { %v24037_v31 = vpack.c.bf16 %v10008_v59, %v10007_v20  ;;  %v10010_v48 = vld [vmem:[#allocation3 + $0x140] sm:$0xff]  ;;  %v24045_v16 = vpack.c.bf16 %v10012_v23, %v10011_v63  ;;  %v10536_v7 = vld [vmem:[#allocation3 + $0x52] sm:$0xff]  ;;  %v10538_v14 = vld [vmem:[#allocation3 + $0x6a] sm:$0xff] }
 0x8bb   : > { %19152 = vmatmul.mubr.msk.bf16.gmra.mrb[24].mxu1 %vm7311_vm6, %v23976_v29  ;;  %v24043_v47 = vpack.c.bf16 %v10010_v48, %v10009_v36  ;;  %v10529_v17 = vld [vmem:[#allocation3 + $0x2] sm:$0xff]  ;;  %v10541_v4 = vld [vmem:[#allocation3 + $0x92] sm:$0xff]  ;;  %v10542_v60 = vld [vmem:[#allocation3 + $0x9a] sm:$0xff] }
 0x8bc   : > { %19155 = vmatprep.mubr.msk.bf16.mxu1 %vm7311_vm6, %v23978_v9  ;;  %v24077_v12 = vpack.c.bf16 %v10542_v60, %v10541_v4  ;;  %v10543_v18 = vld [vmem:[#allocation3 + $0xaa] sm:$0xff]  ;;  %v10544_v25 = vld [vmem:[#allocation3 + $0xb2] sm:$0xff]  ;;  %v10545_v59 = vld [vmem:[#allocation3 + $0xc2] sm:$0xff] }
 0x8bd   : > { %v10546_v35 = vld [vmem:[#allocation3 + $0xca] sm:$0xff]  ;;  %v24083_v20 = vpack.c.bf16 %v10544_v25, %v10543_v18  ;;  %v10547_v23 = vld [vmem:[#allocation3 + $0xda] sm:$0xff]  ;;  %v10548_v36 = vld [vmem:[#allocation3 + $0xe2] sm:$0xff] }
 0x8be   : > { %v10065_v53 = vld [vmem:[#allocation3 + $0x169] sm:$0xff]  ;;  %v24085_v48 = vpack.c.bf16 %v10546_v35, %v10545_v59  ;;  %v10549_v63 = vld [vmem:[#allocation3 + $0xf2] sm:$0xff]  ;;  %v21384_v25 = vld [vmem:[%s21737_s22 + $0x50] sm:$0xff]  }
 0x8bf   : > { %v10554_v51 = vld [vmem:[#allocation3 + $0x12a] sm:$0xff]  ;;  %v21383_v18 = vld [vmem:[%s21737_s22 + $0x48] sm:$0xff]  }
 0x8c0   : > { %v10066_v38 = vld [vmem:[#allocation3 + $0x171] sm:$0xff]  ;;  %v21385_v35 = vld [vmem:[%s21737_s22 + $0x58] sm:$0xff]  }
 0x8c1   : > { %v23984_v57 = vpack.c.bf16 %v10066_v38, %v10065_v53  ;;  %v10014_v53 = vld [vmem:[#allocation3 + $0x170] sm:$0xff]  ;;  %v10013_v38 = vld [vmem:[#allocation3 + $0x168] sm:$0xff] }
 0x8c2   : > { %v24051_v10 = vpack.c.bf16 %v10014_v53, %v10013_v38  ;;  %v10551_v38 = vld [vmem:[#allocation3 + $0x10a] sm:$0xff]  ;;  %v10560_v4 = vld [vmem:[#allocation3 + $0x172] sm:$0xff] }
 0x8c3   : > { %19156 = vmatmul.mubr.msk.bf16.gmra.mrb[28].mxu1 %vm7311_vm6, %v23984_v57 }
 0x8c4   : > { %19163 = vmatprep.mubr.msk.bf16.mxu1 %vm7311_vm6, %v10015_v50  ;;  %v10561_v50 = vpack.c.bf16 %v10530_v54, %v10529_v17  ;;  %v10550_v17 = vld [vmem:[#allocation3 + $0xfa] sm:$0xff]  ;;  %v24091_v54 = vpack.c.bf16 %v10548_v36, %v10547_v23  ;;  %v21386_v23 = vld [vmem:[%s21737_s22 + $0x60] sm:$0xff]  }
 0x8c5   : > { %v24093_v53 = vpack.c.bf16 %v10550_v17, %v10549_v63  ;;  %v12061_v36 = vld [vmem:[#allocation3 + $0x79] sm:$0xff]  ;;  %v12063_v17 = vld [vmem:[#allocation3 + $0x91] sm:$0xff] }
 0x8cb   : > { %19164 = vmatmul.mubr.msk.bf16.vlgmr.msra.gmra.mrb[0].mxu1 %vm7311_vm6, %v23989_v58 }
 0x8cc   : > { %19167 = vmatprep.mubr.msk.bf16.mxu1 %vm7311_vm6, %v23992_v34  ;;  %19196 = vmatpush3.bf16.msra.mxu1 %v23889_v42  ;;  %v9994_v42 = vld [vmem:[#allocation3 + $0x80] sm:$0xff] }
 0x8cd   : > { %19197 = vmatprep.subr.bf16.mxu1 %v21379_v11  ;;  %v24011_v30 = vpack.c.bf16 %v9994_v42, %v9993_v43  ;;  %v10535_v42 = vld [vmem:[#allocation3 + $0x4a] sm:$0xff]  ;;  %v10537_v43 = vld [vmem:[#allocation3 + $0x62] sm:$0xff] }
 0x8ce   : > { %v24067_v61 = vpack.c.bf16 %v10536_v7, %v10535_v42  ;;  %v24069_v40 = vpack.c.bf16 %v10538_v14, %v10537_v43  ;;  %v10556_v42 = vld [vmem:[#allocation3 + $0x142] sm:$0xff]  ;;  %v10557_v7 = vld [vmem:[#allocation3 + $0x152] sm:$0xff]  ;;  %v10558_v43 = vld [vmem:[#allocation3 + $0x15a] sm:$0xff] }
 0x8d0   : > { %19198 = vmatpush3.bf16.msra.mxu1 %v21379_v11  ;;  %v10534_v11 = vld [vmem:[#allocation3 + $0x3a] sm:$0xff] }
 0x8d1   : > { %19231 = vmatprep.subr.bf16.mxu1 %v24000_v5  ;;  %v24059_v8 = vpack.c.bf16 %v10534_v11, %v10533_v1  ;;  %v24101_v11 = vpack.c.bf16 %v10554_v51, %v10553_v19  ;;  %v12068_v19 = vld [vmem:[#allocation3 + $0xc9] sm:$0xff] }
 0x8d2   : > { %v12065_v51 = vld [vmem:[#allocation3 + $0xa9] sm:$0xff] }
 0x8d3   : > { %19168 = vmatmul.mubr.msk.bf16.gmra.mrb[4].mxu1 %vm7311_vm6, %v24002_v24 }
 0x8d4   : > { %19171 = vmatprep.mubr.msk.bf16.mxu1 %vm7311_vm6, %v24005_v46 }
 0x8db   : > { %19172 = vmatmul.mubr.msk.bf16.gmra.mrb[8].mxu1 %vm7311_vm6, %v24011_v30 }
 0x8dc   : > { %19175 = vmatprep.mubr.msk.bf16.mxu1 %vm7311_vm6, %v24013_v39 }
 0x8e3   : > { %19176 = vmatmul.mubr.msk.bf16.gmra.mrb[12].mxu1 %vm7311_vm6, %v24019_v6 }
 0x8e4   : > { %19179 = vmatprep.mubr.msk.bf16.mxu1 %vm7311_vm6, %v24021_v49 }
 0x8eb   : > { %19180 = vmatmul.mubr.msk.bf16.gmra.mrb[16].mxu1 %vm7311_vm6, %v24027_v45 }
 0x8ec   : > { %19183 = vmatprep.mubr.msk.bf16.mxu1 %vm7311_vm6, %v24029_v13 }
 0x8f3   : > { %19184 = vmatmul.mubr.msk.bf16.gmra.mrb[20].mxu1 %vm7311_vm6, %v24035_v22 }
 0x8f4   : > { %19187 = vmatprep.mubr.msk.bf16.mxu1 %vm7311_vm6, %v24037_v31 }
 0x8fb   : > { %19188 = vmatmul.mubr.msk.bf16.gmra.mrb[24].mxu1 %vm7311_vm6, %v24043_v47 }
 0x8fc   : > { %19191 = vmatprep.mubr.msk.bf16.mxu1 %vm7311_vm6, %v24045_v16 }
 0x903   : > { %19192 = vmatmul.mubr.msk.bf16.gmra.mrb[28].mxu1 %vm7311_vm6, %v24051_v10 }
 0x904   : > { %19199 = vmatprep.mubr.msk.bf16.mxu1 %vm7311_vm6, %v10561_v50  ;;  %v10552_v50 = vld [vmem:[#allocation3 + $0x112] sm:$0xff] }
 0x905   : > { %v24099_v1 = vpack.c.bf16 %v10552_v50, %v10551_v38  ;;  %v12066_v50 = vld [vmem:[#allocation3 + $0xb1] sm:$0xff] }
 0x90b   : > { %19200 = vmatmul.mubr.msk.bf16.vlgmr.msra.gmra.mrb[0].mxu1 %vm7311_vm6, %v24056_v27 }
 0x90c   : > { %19203 = vmatprep.mubr.msk.bf16.mxu1 %vm7311_vm6, %v24059_v8  ;;  %19232 = vmatpush3.bf16.msra.mxu1 %v24000_v5  ;;  %v10540_v5 = vld [vmem:[#allocation3 + $0x82] sm:$0xff] }
 0x90d   : > { %19233 = vmatprep.subr.bf16.mxu1 %v21381_v28  ;;  %v24075_v55 = vpack.c.bf16 %v10540_v5, %v10539_v52  ;;  %v24109_v52 = vpack.c.bf16 %v10558_v43, %v10557_v7  ;;  %v10559_v5 = vld [vmem:[#allocation3 + $0x16a] sm:$0xff]  ;;  %v12070_v43 = vld [vmem:[#allocation3 + $0xe1] sm:$0xff] }
 0x90e   : > { %v24115_v60 = vpack.c.bf16 %v10560_v4, %v10559_v5  ;;  %v12072_v5 = vld [vmem:[#allocation3 + $0xf9] sm:$0xff] }
 0x90f   : > { %v12069_v4 = vld [vmem:[#allocation3 + $0xd9] sm:$0xff] }
 0x910   : > { %19234 = vmatpush3.bf16.msra.mxu1 %v21381_v28  ;;  %v10555_v28 = vld [vmem:[#allocation3 + $0x13a] sm:$0xff] }
 0x911   : > { %19267 = vmatprep.subr.bf16.mxu1 %v21382_v33  ;;  %v24107_v14 = vpack.c.bf16 %v10556_v42, %v10555_v28  ;;  %v12092_v28 = vpack.c.bf16 %v12066_v50, %v12065_v51  ;;  %v12067_v42 = vld [vmem:[#allocation3 + $0xc1] sm:$0xff] }
 0x912   : > { %v12093_v7 = vpack.c.bf16 %v12068_v19, %v12067_v42  ;;  %v12718_v42 = vld [vmem:[#allocation2 + $0xc1] sm:$0xff] }
 0x913   : > { %19204 = vmatmul.mubr.msk.bf16.gmra.mrb[4].mxu1 %vm7311_vm6, %v24067_v61 }
 0x914   : > { %19207 = vmatprep.mubr.msk.bf16.mxu1 %vm7311_vm6, %v24069_v40 }
 0x91b   : > { %19208 = vmatmul.mubr.msk.bf16.gmra.mrb[8].mxu1 %vm7311_vm6, %v24075_v55 }
 0x91c   : > { %19211 = vmatprep.mubr.msk.bf16.mxu1 %vm7311_vm6, %v24077_v12 }
 0x923   : > { %19212 = vmatmul.mubr.msk.bf16.gmra.mrb[12].mxu1 %vm7311_vm6, %v24083_v20 }
 0x924   : > { %19215 = vmatprep.mubr.msk.bf16.mxu1 %vm7311_vm6, %v24085_v48 }
 0x92b   : > { %19216 = vmatmul.mubr.msk.bf16.gmra.mrb[16].mxu1 %vm7311_vm6, %v24091_v54 }
 0x92c   : > { %19219 = vmatprep.mubr.msk.bf16.mxu1 %vm7311_vm6, %v24093_v53 }
 0x933   : > { %19220 = vmatmul.mubr.msk.bf16.gmra.mrb[20].mxu1 %vm7311_vm6, %v24099_v1 }
 0x934   : > { %19223 = vmatprep.mubr.msk.bf16.mxu1 %vm7311_vm6, %v24101_v11 }
 0x93b   : > { %19224 = vmatmul.mubr.msk.bf16.gmra.mrb[24].mxu1 %vm7311_vm6, %v24107_v14 }
 0x93c   : > { %19227 = vmatprep.mubr.msk.bf16.mxu1 %vm7311_vm6, %v24109_v52 }
 0x943   : > { %19228 = vmatmul.mubr.msk.bf16.gmra.mrb[28].mxu1 %vm7311_vm6, %v24115_v60 }
 0x944   : > { %19235 = vmatprep.mubr.msk.bf16.mxu1 %vm7311_vm6, %v23989_v58  ;;  %v10865_v58 = vld [vmem:[#allocation3 + $0x188] sm:$0xff] }
 0x94b   : > { %19236 = vmatmul.mubr.msk.bf16.vlgmr.msra.gmra.mrb[0].mxu1 %vm7311_vm6, %v23992_v34 }
 0x94c   : > { %19239 = vmatprep.mubr.msk.bf16.mxu1 %vm7311_vm6, %v24002_v24  ;;  %19268 = vmatpush3.bf16.msra.mxu1 %v21382_v33  ;;  %v10864_v33 = vld [vmem:[#allocation3 + $0x180] sm:$0xff] }
 0x94d   : > { %19269 = vmatprep.subr.bf16.mxu1 %v21383_v18  ;;  %v24151_v59 = vpack.c.bf16 %v10865_v58, %v10864_v33  ;;  %v12085_v33 = vld [vmem:[#allocation3 + $0x199] sm:$0xff] }
 0x950   : > { %19270 = vmatpush3.bf16.msra.mxu1 %v21383_v18  ;;  %v12094_v18 = vpack.c.bf16 %v12070_v43, %v12069_v4 }
 0x951   : > { %19303 = vmatprep.subr.bf16.mxu1 %v21384_v25 }
 0x953   : > { %19240 = vmatmul.mubr.msk.bf16.gmra.mrb[4].mxu1 %vm7311_vm6, %v24005_v46 }
 0x954   : > { %19243 = vmatprep.mubr.msk.bf16.mxu1 %vm7311_vm6, %v24011_v30 }
 0x95b   : > { %19244 = vmatmul.mubr.msk.bf16.gmra.mrb[8].mxu1 %vm7311_vm6, %v24013_v39 }
 0x95c   : > { %19247 = vmatprep.mubr.msk.bf16.mxu1 %vm7311_vm6, %v24019_v6 }
 0x963   : > { %19248 = vmatmul.mubr.msk.bf16.gmra.mrb[12].mxu1 %vm7311_vm6, %v24021_v49 }
 0x964   : > { %19251 = vmatprep.mubr.msk.bf16.mxu1 %vm7311_vm6, %v24027_v45 }
 0x96b   : > { %19252 = vmatmul.mubr.msk.bf16.gmra.mrb[16].mxu1 %vm7311_vm6, %v24029_v13 }
 0x96c   : > { %19255 = vmatprep.mubr.msk.bf16.mxu1 %vm7311_vm6, %v24035_v22 }
 0x973   : > { %19256 = vmatmul.mubr.msk.bf16.gmra.mrb[20].mxu1 %vm7311_vm6, %v24037_v31 }
 0x974   : > { %19259 = vmatprep.mubr.msk.bf16.mxu1 %vm7311_vm6, %v24043_v47 }
 0x97b   : > { %19260 = vmatmul.mubr.msk.bf16.gmra.mrb[24].mxu1 %vm7311_vm6, %v24045_v16 }
 0x97c   : > { %19263 = vmatprep.mubr.msk.bf16.mxu1 %vm7311_vm6, %v24051_v10 }
 0x983   : > { %19264 = vmatmul.mubr.msk.bf16.gmra.mrb[28].mxu1 %vm7311_vm6, %v24151_v59 }
 0x984   : > { %19271 = vmatprep.mubr.msk.bf16.mxu1 %vm7311_vm6, %v23875_v37  ;;  %v11170_v37 = vld [vmem:[#allocation3 + $0x189] sm:$0xff] }
 0x98b   : > { %19272 = vmatmul.mubr.msk.bf16.vlgmr.msra.gmra.mrb[0].mxu1 %vm7311_vm6, %v23879_v56  ;;  %v11169_v56 = vld [vmem:[#allocation3 + $0x181] sm:$0xff] }
 0x98c   : > { %19275 = vmatprep.mubr.msk.bf16.mxu1 %vm7311_vm6, %v23895_v21  ;;  %19304 = vmatpush3.bf16.msra.mxu1 %v21384_v25  ;;  %v24187_v21 = vpack.c.bf16 %v11170_v37, %v11169_v56  ;;  %v12071_v25 = vld [vmem:[#allocation3 + $0xf1] sm:$0xff] }
 0x98d   : > { %19305 = vmatprep.subr.bf16.mxu1 %v21385_v35  ;;  %v12095_v58 = vpack.c.bf16 %v12072_v5, %v12071_v25  ;;  %v12710_v56 = vld [vmem:[#allocation2 + $0x61] sm:$0xff]  ;;  %v12716_v5 = vld [vmem:[#allocation2 + $0xa9] sm:$0xff] }
 0x98e   : > { %v12719_v25 = vld [vmem:[#allocation2 + $0xc9] sm:$0xff] }
 0x990   : > { %19306 = vmatpush3.bf16.msra.mxu1 %v21385_v35 }
 0x991   : > { %19339 = vmatprep.subr.bf16.mxu1 %v21386_v23 }
 0x993   : > { %19276 = vmatmul.mubr.msk.bf16.gmra.mrb[4].mxu1 %vm7311_vm6, %v23899_v15  ;;  %v21387_v15 = vld [vmem:[%s21737_s22 + $0x68] sm:$0xff]  }
 0x994   : > { %19279 = vmatprep.mubr.msk.bf16.mxu1 %vm7311_vm6, %v23912_v3  ;;  %v21388_v3 = vld [vmem:[%s21737_s22 + $0x70] sm:$0xff]  }
 0x99b   : > { %19280 = vmatmul.mubr.msk.bf16.gmra.mrb[8].mxu1 %vm7311_vm6, %v23915_v2  ;;  %v11474_v2 = vld [vmem:[#allocation3 + $0x182] sm:$0xff] }
 0x99c   : > { %19283 = vmatprep.mubr.msk.bf16.mxu1 %vm7311_vm6, %v23928_v32  ;;  %v11475_v32 = vld [vmem:[#allocation3 + $0x18a] sm:$0xff] }
 0x9a3   : > { %19284 = vmatmul.mubr.msk.bf16.gmra.mrb[12].mxu1 %vm7311_vm6, %v23931_v26  ;;  %v24223_v26 = vpack.c.bf16 %v11475_v32, %v11474_v2 }
 0x9a4   : > { %19287 = vmatprep.mubr.msk.bf16.mxu1 %vm7311_vm6, %v23944_v0  ;;  %v21389_v0 = vld [vmem:[%s21737_s22 + $0x78] sm:$0xff]  }
 0x9ab   : > { %19288 = vmatmul.mubr.msk.bf16.gmra.mrb[16].mxu1 %vm7311_vm6, %v23947_v41  ;;  %v21390_v41 = vld [vmem:[%s21737_s22 + $0x80] sm:$0xff]  }
 0x9ac   : > { %19291 = vmatprep.mubr.msk.bf16.mxu1 %vm7311_vm6, %v23960_v62 }
 0x9b3   : > { %19292 = vmatmul.mubr.msk.bf16.gmra.mrb[20].mxu1 %vm7311_vm6, %v23963_v44 }
 0x9b4   : > { %19295 = vmatprep.mubr.msk.bf16.mxu1 %vm7311_vm6, %v23976_v29 }
 0x9bb   : > { %19296 = vmatmul.mubr.msk.bf16.gmra.mrb[24].mxu1 %vm7311_vm6, %v23978_v9 }
 0x9bc   : > { %19299 = vmatprep.mubr.msk.bf16.mxu1 %vm7311_vm6, %v23984_v57 }
 0x9c3   : > { %19300 = vmatmul.mubr.msk.bf16.gmra.mrb[28].mxu1 %vm7311_vm6, %v24187_v21 }
 0x9c4   : > { %19307 = vmatprep.mubr.msk.bf16.mxu1 %vm7311_vm6, %v24056_v27  ;;  %v12064_v27 = vld [vmem:[#allocation3 + $0x99] sm:$0xff] }
 0x9c5   : > { %v12091_v38 = vpack.c.bf16 %v12064_v27, %v12063_v17  ;;  %v12713_v17 = vld [vmem:[#allocation2 + $0x81] sm:$0xff] }
 0x9cb   : > { %19308 = vmatmul.mubr.msk.bf16.vlgmr.msra.gmra.mrb[0].mxu1 %vm7311_vm6, %v24059_v8 }
 0x9cc   : > { %19311 = vmatprep.mubr.msk.bf16.mxu1 %vm7311_vm6, %v24067_v61  ;;  %19340 = vmatpush3.bf16.msra.mxu1 %v21386_v23 }
 0x9cd   : > { %19341 = vmatprep.subr.bf16.mxu1 %v21387_v15 }
 0x9d0   : > { %19342 = vmatpush3.bf16.msra.mxu1 %v21387_v15 }
 0x9d1   : > { %19375 = vmatprep.subr.bf16.mxu1 %v21388_v3 }
 0x9d3   : > { %19312 = vmatmul.mubr.msk.bf16.gmra.mrb[4].mxu1 %vm7311_vm6, %v24069_v40 }
 0x9d4   : > { %19315 = vmatprep.mubr.msk.bf16.mxu1 %vm7311_vm6, %v24075_v55 }
 0x9db   : > { %19316 = vmatmul.mubr.msk.bf16.gmra.mrb[8].mxu1 %vm7311_vm6, %v24077_v12 }
 0x9dc   : > { %19319 = vmatprep.mubr.msk.bf16.mxu1 %vm7311_vm6, %v24083_v20 }
 0x9e3   : > { %19320 = vmatmul.mubr.msk.bf16.gmra.mrb[12].mxu1 %vm7311_vm6, %v24085_v48 }
 0x9e4   : > { %19323 = vmatprep.mubr.msk.bf16.mxu1 %vm7311_vm6, %v24091_v54 }
 0x9eb   : > { %19324 = vmatmul.mubr.msk.bf16.gmra.mrb[16].mxu1 %vm7311_vm6, %v24093_v53 }
 0x9ec   : > { %19327 = vmatprep.mubr.msk.bf16.mxu1 %vm7311_vm6, %v24099_v1 }
 0x9f3   : > { %19328 = vmatmul.mubr.msk.bf16.gmra.mrb[20].mxu1 %vm7311_vm6, %v24101_v11 }
 0x9f4   : > { %19331 = vmatprep.mubr.msk.bf16.mxu1 %vm7311_vm6, %v24107_v14 }
 0x9fb   : > { %19332 = vmatmul.mubr.msk.bf16.gmra.mrb[24].mxu1 %vm7311_vm6, %v24109_v52 }
 0x9fc   : > { %19335 = vmatprep.mubr.msk.bf16.mxu1 %vm7311_vm6, %v24115_v60 }
 0xa03   : > { %19336 = vmatmul.mubr.msk.bf16.gmra.mrb[28].mxu1 %vm7311_vm6, %v24223_v26 }
 0xa04   : > { %19343 = vmatprep.mubr.msk.bf16.mxu1 %vm7311_vm6, %v23992_v34  ;;  %v11780_v34 = vld [vmem:[#allocation3 + $0x198] sm:$0xff] }
 0xa0b   : > { %19344 = vmatmul.mubr.msk.bf16.vlgmr.msra.gmra.mrb[0].mxu1 %vm7311_vm6, %v24002_v24  ;;  %v11781_v24 = vld [vmem:[#allocation3 + $0x1a0] sm:$0xff] }
 0xa0c   : > { %19347 = vmatprep.mubr.msk.bf16.mxu1 %vm7311_vm6, %v24005_v46  ;;  %19376 = vmatpush3.bf16.msra.mxu1 %v21388_v3  ;;  %v11797_v46 = vpack.c.bf16 %v11781_v24, %v11780_v34  ;;  %v12708_v3 = vld [vmem:[#allocation2 + $0x49] sm:$0xff]  ;;  %v12709_v24 = vld [vmem:[#allocation2 + $0x51] sm:$0xff] }
 0xa0d   : > { %19377 = vmatprep.subr.bf16.mxu1 %v21389_v0 }
 0xa10   : > { %19378 = vmatpush3.bf16.msra.mxu1 %v21389_v0 }
 0xa11   : > { %19411 = vmatprep.subr.bf16.mxu1 %v21390_v41 }
 0xa13   : > { %19348 = vmatmul.mubr.msk.bf16.gmra.mrb[4].mxu1 %vm7311_vm6, %v24011_v30  ;;  %v12056_v30 = vld [vmem:[#allocation3 + $0x39] sm:$0xff] }
 0xa14   : > { %19351 = vmatprep.mubr.msk.bf16.mxu1 %vm7311_vm6, %v24013_v39  ;;  %v12055_v39 = vld [vmem:[#allocation3 + $0x31] sm:$0xff] }
 0xa1b   : > { %19352 = vmatmul.mubr.msk.bf16.gmra.mrb[8].mxu1 %vm7311_vm6, %v24019_v6  ;;  %v12087_v6 = vpack.c.bf16 %v12056_v30, %v12055_v39 }
 0xa1c   : > { %19355 = vmatprep.mubr.msk.bf16.mxu1 %vm7311_vm6, %v24021_v49  ;;  %v12058_v49 = vld [vmem:[#allocation3 + $0x51] sm:$0xff] }
 0xa23   : > { %19356 = vmatmul.mubr.msk.bf16.gmra.mrb[12].mxu1 %vm7311_vm6, %v24027_v45  ;;  %v12060_v45 = vld [vmem:[#allocation3 + $0x69] sm:$0xff] }
 0xa24   : > { %19359 = vmatprep.mubr.msk.bf16.mxu1 %vm7311_vm6, %v24029_v13  ;;  %v12057_v13 = vld [vmem:[#allocation3 + $0x49] sm:$0xff] }
 0xa2b   : > { %19360 = vmatmul.mubr.msk.bf16.gmra.mrb[16].mxu1 %vm7311_vm6, %v24035_v22  ;;  %v12088_v22 = vpack.c.bf16 %v12058_v49, %v12057_v13 }
 0xa2c   : > { %19363 = vmatprep.mubr.msk.bf16.mxu1 %vm7311_vm6, %v24037_v31  ;;  %v12059_v31 = vld [vmem:[#allocation3 + $0x61] sm:$0xff] }
 0xa33   : > { %19364 = vmatmul.mubr.msk.bf16.gmra.mrb[20].mxu1 %vm7311_vm6, %v24043_v47  ;;  %v21391_v47 = vld [vmem:[%s21737_s22 + $0x88] sm:$0xff]  }
 0xa34   : > { %19367 = vmatprep.mubr.msk.bf16.mxu1 %vm7311_vm6, %v24045_v16  ;;  %v12089_v16 = vpack.c.bf16 %v12060_v45, %v12059_v31  ;;  %v12714_v45 = vld [vmem:[#allocation2 + $0x91] sm:$0xff]  ;;  %v12712_v31 = vld [vmem:[#allocation2 + $0x79] sm:$0xff] }
 0xa3b   : > { %19368 = vmatmul.mubr.msk.bf16.gmra.mrb[24].mxu1 %vm7311_vm6, %v24051_v10  ;;  %v12062_v10 = vld [vmem:[#allocation3 + $0x81] sm:$0xff] }
 0xa3c   : > { %19371 = vmatprep.mubr.msk.bf16.mxu1 %vm7311_vm6, %v24151_v59  ;;  %v12090_v63 = vpack.c.bf16 %v12062_v10, %v12061_v36  ;;  %v12086_v59 = vld [vmem:[#allocation3 + $0x1a1] sm:$0xff]  ;;  %v12715_v10 = vld [vmem:[#allocation2 + $0x99] sm:$0xff] }
 0xa3d   : > { %v12102_v35 = vpack.c.bf16 %v12086_v59, %v12085_v33 }
 0xa43   : > { %19372 = vmatmul.mubr.msk.bf16.gmra.mrb[28].mxu1 %vm7311_vm6, %v11797_v46 }
 0xa44   : > { %19379 = vmatprep.mubr.msk.bf16.mxu1 %vm7311_vm6, %v12087_v6 }
 0xa4b   : > { %19380 = vmatmul.mubr.msk.bf16.vlgmr.msra.gmra.mrb[0].mxu1 %vm7311_vm6, %v12088_v22 }
 0xa4c   : > { %19383 = vmatprep.mubr.msk.bf16.mxu1 %vm7311_vm6, %v12089_v16  ;;  %19412 = vmatpush3.bf16.msra.mxu1 %v21390_v41 }
 0xa4d   : > { %19413 = vmatprep.subr.bf16.mxu1 %v21391_v47 }
 0xa50   : > { %19414 = vmatpush3.bf16.msra.mxu1 %v21391_v47 }
 0xa53   : > { %19384 = vmatmul.mubr.msk.bf16.gmra.mrb[4].mxu1 %vm7311_vm6, %v12090_v63 }
 0xa54   : > { %19387 = vmatprep.mubr.msk.bf16.mxu1 %vm7311_vm6, %v12091_v38 }
 0xa5b   : > { %19388 = vmatmul.mubr.msk.bf16.gmra.mrb[8].mxu1 %vm7311_vm6, %v12092_v28 }
 0xa5c   : > { %19391 = vmatprep.mubr.msk.bf16.mxu1 %vm7311_vm6, %v12093_v7 }
 0xa63   : > { %19392 = vmatmul.mubr.msk.bf16.gmra.mrb[12].mxu1 %vm7311_vm6, %v12094_v18 }
 0xa64   : > { %19395 = vmatprep.mubr.msk.bf16.mxu1 %vm7311_vm6, %v12095_v58 }
 0xa6b   : > { %19396 = vmatmul.mubr.msk.bf16.gmra.mrb[16].mxu1 %vm7311_vm6, %v23960_v62  ;;  %v12390_v62 = vld [vmem:[#allocation3 + $0x19a] sm:$0xff] }
 0xa6c   : > { %19399 = vmatprep.mubr.msk.bf16.mxu1 %vm7311_vm6, %v23963_v44  ;;  %v12391_v44 = vld [vmem:[#allocation3 + $0x1a2] sm:$0xff] }
 0xa73   : > { %19400 = vmatmul.mubr.msk.bf16.gmra.mrb[20].mxu1 %vm7311_vm6, %v23976_v29  ;;  %v12407_v29 = vpack.c.bf16 %v12391_v44, %v12390_v62 }
 0xa74   : > { %19403 = vmatprep.mubr.msk.bf16.mxu1 %vm7311_vm6, %v23978_v9  ;;  %v24319_v9 = vld [vmem:[%s747_s3] ss:$0 sm:$0xff] }
 0xa7b   : > { %19404 = vmatmul.mubr.msk.bf16.gmra.mrb[24].mxu1 %vm7311_vm6, %v23984_v57 }
 0xa7c   : > { %19407 = vmatprep.mubr.msk.bf16.mxu1 %vm7311_vm6, %v24187_v21 }
 0xa83   : > { %19408 = vmatmul.mubr.msk.bf16.gmra.mrb[28].mxu1 %vm7311_vm6, %v12102_v35  ;;  %v12717_v35 = vld [vmem:[#allocation2 + $0xb1] sm:$0xff] }
 0xa84   : > { %19415 = vmatprep.mubr.msk.bf16.mxu1 %vm7311_vm6, %v24059_v8  ;;  %v12706_v8 = vld [vmem:[#allocation2 + $0x31] sm:$0xff] }
 0xa8b   : > { %19416 = vmatmul.mubr.msk.bf16.vlgmr.msra.gmra.mrb[0].mxu1 %vm7311_vm6, %v24067_v61 }
 0xa8c   : > { %19419 = vmatprep.mubr.msk.bf16.mxu1 %vm7311_vm6, %v24069_v40 }
 0xa93   : > { %19420 = vmatmul.mubr.msk.bf16.gmra.mrb[4].mxu1 %vm7311_vm6, %v24075_v55  ;;  %v12704_v55 = vld [vmem:[#allocation2 + $0x19] sm:$0xff] }
 0xa94   : > { %19423 = vmatprep.mubr.msk.bf16.mxu1 %vm7311_vm6, %v24077_v12 }
 0xa9b   : > { %19424 = vmatmul.mubr.msk.bf16.gmra.mrb[8].mxu1 %vm7311_vm6, %v24083_v20 }
 0xa9c   : > { %19427 = vmatprep.mubr.msk.bf16.mxu1 %vm7311_vm6, %v24085_v48  ;;  %v12707_v48 = vld [vmem:[#allocation2 + $0x39] sm:$0xff] }
 0xaa3   : > { %19428 = vmatmul.mubr.msk.bf16.gmra.mrb[12].mxu1 %vm7311_vm6, %v24091_v54 }
 0xaa4   : > { %19431 = vmatprep.mubr.msk.bf16.mxu1 %vm7311_vm6, %v24093_v53 }
 0xaab   : > { %19432 = vmatmul.mubr.msk.bf16.gmra.mrb[16].mxu1 %vm7311_vm6, %v24099_v1 }
 0xaac   : > { %19435 = vmatprep.mubr.msk.bf16.mxu1 %vm7311_vm6, %v24101_v11  ;;  %v12705_v11 = vld [vmem:[#allocation2 + $0x21] sm:$0xff] }
 0xab3   : > { %19436 = vmatmul.mubr.msk.bf16.gmra.mrb[20].mxu1 %vm7311_vm6, %v24107_v14 }
 0xab4   : > { %19439 = vmatprep.mubr.msk.bf16.mxu1 %vm7311_vm6, %v24109_v52 }
 0xabb   : > { %19440 = vmatmul.mubr.msk.bf16.gmra.mrb[24].mxu1 %vm7311_vm6, %v24115_v60 }
 0xabc   : > { %19443 = vmatprep.mubr.msk.bf16.mxu1 %vm7311_vm6, %v24223_v26  ;;  %v12711_v26 = vld [vmem:[#allocation2 + $0x69] sm:$0xff] }
 0xac3   : > { %19444 = vmatmul.mubr.msk.bf16.gmra.mrb[28].mxu1 %vm7311_vm6, %v12407_v29 }
 0xb5e   : > { %v19417_v57 = vpop.f32.mrb[0].mxu1 }
 0xb5f   : > { %v12674_v61 = vadd.f32 %v19417_v57, %v24319_v9  ;;  %v12506_v40 = vpop.f32.mrb[1].mxu1 }
 0xb60   : > { %v12672_v12 = vadd.f32 %v24319_v9, %v12506_v40  ;;  %v19418_v20 = vpop.f32.mrb[2].mxu1 }
 0xb61   : > { %v12738_v54 = vadd.f32 %v12706_v8, %v12674_v61  ;;  %v12675_v53 = vadd.f32 %v19418_v20, %v24319_v9  ;;  %v12509_v1 = vpop.f32.mrb[3].mxu1  ;;  %v12722_v61 = vld [vmem:[#allocation2 + $0xf1] sm:$0xff] }
 0xb62   : > { %v12736_v14 = vadd.f32 %v12704_v55, %v12672_v12  ;;  %v12673_v52 = vadd.f32 %v24319_v9, %v12509_v1  ;;  %v12720_v12 = vld [vmem:[#allocation2 + $0xd9] sm:$0xff] }
 0xb63   : > { %12770 = vst.msk [vmem:[#allocation2 + $0x31] sm:$0xff] %vm7311_vm6, %v12738_v54  ;;  %v12739_v60 = vadd.f32 %v12707_v48, %v12675_v53  ;;  %v12723_v54 = vld [vmem:[#allocation2 + $0xf9] sm:$0xff] }
 0xb64   : > { %12768 = vst.msk [vmem:[#allocation2 + $0x19] sm:$0xff] %vm7311_vm6, %v12736_v14  ;;  %v12737_v23 = vadd.f32 %v12705_v11, %v12673_v52  ;;  %v12721_v14 = vld [vmem:[#allocation2 + $0xe1] sm:$0xff] }
 0xb65   : > { %12771 = vst.msk [vmem:[#allocation2 + $0x39] sm:$0xff] %vm7311_vm6, %v12739_v60 }
 0xb66   : > { %12769 = vst.msk [vmem:[#allocation2 + $0x21] sm:$0xff] %vm7311_vm6, %v12737_v23  ;;  %v19421_v37 = vpop.f32.mrb[4].mxu1 }
 0xb67   : > { %v12678_v21 = vadd.f32 %v19421_v37, %v24319_v9  ;;  %v12522_v15 = vpop.f32.mrb[5].mxu1 }
 0xb68   : > { %v12676_v2 = vadd.f32 %v24319_v9, %v12522_v15  ;;  %v19422_v32 = vpop.f32.mrb[6].mxu1 }
 0xb69   : > { %v12742_v0 = vadd.f32 %v12710_v56, %v12678_v21  ;;  %v12679_v41 = vadd.f32 %v19422_v32, %v24319_v9  ;;  %v12525_v34 = vpop.f32.mrb[7].mxu1  ;;  %v12726_v21 = vld [vmem:[#allocation2 + $0x121] sm:$0xff] }
 0xb6a   : > { %v12740_v46 = vadd.f32 %v12708_v3, %v12676_v2  ;;  %v12677_v30 = vadd.f32 %v24319_v9, %v12525_v34  ;;  %v12724_v2 = vld [vmem:[#allocation2 + $0x109] sm:$0xff] }
 0xb6b   : > { %12774 = vst.msk [vmem:[#allocation2 + $0x61] sm:$0xff] %vm7311_vm6, %v12742_v0  ;;  %v12743_v39 = vadd.f32 %v12711_v26, %v12679_v41  ;;  %v12727_v0 = vld [vmem:[#allocation2 + $0x129] sm:$0xff] }
 0xb6c   : > { %12772 = vst.msk [vmem:[#allocation2 + $0x49] sm:$0xff] %vm7311_vm6, %v12740_v46  ;;  %v12741_v6 = vadd.f32 %v12709_v24, %v12677_v30  ;;  %v12725_v46 = vld [vmem:[#allocation2 + $0x111] sm:$0xff] }
 0xb6d   : > { %12775 = vst.msk [vmem:[#allocation2 + $0x69] sm:$0xff] %vm7311_vm6, %v12743_v39 }
 0xb6e   : > { %12773 = vst.msk [vmem:[#allocation2 + $0x51] sm:$0xff] %vm7311_vm6, %v12741_v6  ;;  %v19425_v49 = vpop.f32.mrb[8].mxu1 }
 0xb6f   : > { %v12682_v13 = vadd.f32 %v19425_v49, %v24319_v9  ;;  %v12538_v22 = vpop.f32.mrb[9].mxu1 }
 0xb70   : > { %v12680_v47 = vadd.f32 %v24319_v9, %v12538_v22  ;;  %v19426_v16 = vpop.f32.mrb[10].mxu1 }
 0xb71   : > { %v12746_v27 = vadd.f32 %v12714_v45, %v12682_v13  ;;  %v12683_v36 = vadd.f32 %v19426_v16, %v24319_v9  ;;  %v12541_v63 = vpop.f32.mrb[11].mxu1  ;;  %v12730_v13 = vld [vmem:[#allocation2 + $0x151] sm:$0xff] }
 0xb72   : > { %v12744_v38 = vadd.f32 %v12712_v31, %v12680_v47  ;;  %v12681_v50 = vadd.f32 %v24319_v9, %v12541_v63  ;;  %v12728_v47 = vld [vmem:[#allocation2 + $0x139] sm:$0xff] }
 0xb73   : > { %12778 = vst.msk [vmem:[#allocation2 + $0x91] sm:$0xff] %vm7311_vm6, %v12746_v27  ;;  %v12747_v19 = vadd.f32 %v12715_v10, %v12683_v36  ;;  %v12731_v27 = vld [vmem:[#allocation2 + $0x159] sm:$0xff] }
 0xb74   : > { %12776 = vst.msk [vmem:[#allocation2 + $0x79] sm:$0xff] %vm7311_vm6, %v12744_v38  ;;  %v12745_v51 = vadd.f32 %v12713_v17, %v12681_v50  ;;  %v12729_v38 = vld [vmem:[#allocation2 + $0x141] sm:$0xff] }
 0xb75   : > { %12779 = vst.msk [vmem:[#allocation2 + $0x99] sm:$0xff] %vm7311_vm6, %v12747_v19 }
 0xb76   : > { %12777 = vst.msk [vmem:[#allocation2 + $0x81] sm:$0xff] %vm7311_vm6, %v12745_v51  ;;  %v19429_v28 = vpop.f32.mrb[12].mxu1 }
 0xb77   : > { %v12686_v7 = vadd.f32 %v19429_v28, %v24319_v9  ;;  %v12554_v43 = vpop.f32.mrb[13].mxu1 }
 0xb78   : > { %v12684_v4 = vadd.f32 %v24319_v9, %v12554_v43  ;;  %v19430_v18 = vpop.f32.mrb[14].mxu1 }
 0xb79   : > { %v12750_v58 = vadd.f32 %v12718_v42, %v12686_v7  ;;  %v12687_v33 = vadd.f32 %v19430_v18, %v24319_v9  ;;  %v12557_v59 = vpop.f32.mrb[15].mxu1  ;;  %v12734_v7 = vld [vmem:[#allocation2 + $0x181] sm:$0xff] }
 0xb7a   : > { %v12748_v62 = vadd.f32 %v12716_v5, %v12684_v4  ;;  %v12685_v44 = vadd.f32 %v24319_v9, %v12557_v59  ;;  %v12732_v4 = vld [vmem:[#allocation2 + $0x169] sm:$0xff] }
 0xb7b   : > { %12782 = vst.msk [vmem:[#allocation2 + $0xc1] sm:$0xff] %vm7311_vm6, %v12750_v58  ;;  %v12751_v29 = vadd.f32 %v12719_v25, %v12687_v33  ;;  %v12735_v58 = vld [vmem:[#allocation2 + $0x189] sm:$0xff] }
 0xb7c   : > { %12780 = vst.msk [vmem:[#allocation2 + $0xa9] sm:$0xff] %vm7311_vm6, %v12748_v62  ;;  %v12749_v57 = vadd.f32 %v12717_v35, %v12685_v44  ;;  %v12733_v62 = vld [vmem:[#allocation2 + $0x171] sm:$0xff] }
 0xb7d   : > { %12783 = vst.msk [vmem:[#allocation2 + $0xc9] sm:$0xff] %vm7311_vm6, %v12751_v29 }
 0xb7e   : > { %12781 = vst.msk [vmem:[#allocation2 + $0xb1] sm:$0xff] %vm7311_vm6, %v12749_v57  ;;  %v19433_v8 = vpop.f32.mrb[16].mxu1 }
 0xb7f   : > { %v12690_v40 = vadd.f32 %v19433_v8, %v24319_v9  ;;  %v12570_v55 = vpop.f32.mrb[17].mxu1 }
 0xb80   : > { %v12688_v20 = vadd.f32 %v24319_v9, %v12570_v55  ;;  %v19434_v48 = vpop.f32.mrb[18].mxu1  ;;  %v12805_v55 = vld [vmem:[#allocation2 + $0x21] sm:$0xff] (!%p17003_p1) }
 0xb81   : > { %v12754_v53 = vadd.f32 %v12722_v61, %v12690_v40  ;;  %v12691_v1 = vadd.f32 %v19434_v48, %v24319_v9  ;;  %v12573_v11 = vpop.f32.mrb[19].mxu1  ;;  %v21392_v61 = vld [vmem:[%s25354_s29] sm:$0xff] (!%p17003_p1)  }
 0xb82   : > { %v12752_v52 = vadd.f32 %v12720_v12, %v12688_v20  ;;  %v12689_v60 = vadd.f32 %v24319_v9, %v12573_v11  ;;  %19447 = vmatprep.subr.bf16.mxu1 (!%p17003_p1), %v21392_v61  ;;  %v12804_v40 = vld [vmem:[#allocation2 + $0x19] sm:$0xff] (!%p17003_p1)  ;;  %v12806_v20 = vld [vmem:[#allocation2 + $0x31] sm:$0xff] (!%p17003_p1) }
 0xb83   : > { %12786 = vst.msk [vmem:[#allocation2 + $0xf1] sm:$0xff] %vm7311_vm6, %v12754_v53  ;;  %v12755_v23 = vadd.f32 %v12723_v54, %v12691_v1  ;;  %19448 = vmatpush3.bf16.msra.mxu1 (!%p17003_p1), %v21392_v61  ;;  %v12836_v12 = vpack.c.bf16 (!%p17003_p1), %v12805_v55, %v12804_v40  ;;  %v12807_v48 = vld [vmem:[#allocation2 + $0x39] sm:$0xff] (!%p17003_p1)  ;;  %v12808_v54 = vld [vmem:[#allocation2 + $0x49] sm:$0xff] (!%p17003_p1)  ;;  %v12809_v53 = vld [vmem:[#allocation2 + $0x51] sm:$0xff] (!%p17003_p1) }
 0xb84   : > { %12784 = vst.msk [vmem:[#allocation2 + $0xd9] sm:$0xff] %vm7311_vm6, %v12752_v52  ;;  %v12753_v37 = vadd.f32 %v12721_v14, %v12689_v60  ;;  %v12837_v1 = vpack.c.bf16 (!%p17003_p1), %v12807_v48, %v12806_v20  ;;  %v12838_v11 = vpack.c.bf16 (!%p17003_p1), %v12809_v53, %v12808_v54  ;;  %v12810_v14 = vld [vmem:[#allocation2 + $0x61] sm:$0xff] (!%p17003_p1)  ;;  %v12811_v52 = vld [vmem:[#allocation2 + $0x69] sm:$0xff] (!%p17003_p1)  ;;  %v12812_v60 = vld [vmem:[#allocation2 + $0x79] sm:$0xff] (!%p17003_p1) }
 0xb85   : > { %12787 = vst.msk [vmem:[#allocation2 + $0xf9] sm:$0xff] %vm7311_vm6, %v12755_v23  ;;  %19451 = vmatprep.mubr.msk.bf16.mxu1 (!%p17003_p1), %vm7311_vm6, %v12836_v12  ;;  %v12813_v23 = vld [vmem:[#allocation2 + $0x81] sm:$0xff] (!%p17003_p1) }
 0xb86   : > { %12785 = vst.msk [vmem:[#allocation2 + $0xe1] sm:$0xff] %vm7311_vm6, %v12753_v37  ;;  %v19437_v56 = vpop.f32.mrb[20].mxu1  ;;  %v21394_v37 = vld [vmem:[%s25355_s26] sm:$0xff] (!%p17003_p1)   ;;  %s25357_s26 = sld [smem:[#allocation34_spill]] (!%p17003_p1) }
 0xb87   : > { %v12694_v15 = vadd.f32 %v19437_v56, %v24319_v9  ;;  %v12586_v3 = vpop.f32.mrb[21].mxu1  ;;  %v12839_v56 = vpack.c.bf16 (!%p17003_p1), %v12811_v52, %v12810_v14 }
 0xb88   : > { %v12692_v32 = vadd.f32 %v24319_v9, %v12586_v3  ;;  %v19438_v26 = vpop.f32.mrb[22].mxu1  ;;  %v12814_v3 = vld [vmem:[#allocation2 + $0x91] sm:$0xff] (!%p17003_p1) }
 0xb89   : > { %v12758_v41 = vadd.f32 %v12726_v21, %v12694_v15  ;;  %v12695_v34 = vadd.f32 %v19438_v26, %v24319_v9  ;;  %v12589_v24 = vpop.f32.mrb[23].mxu1  ;;  %v21395_v21 = vld [vmem:[%s25356_s4 + $0x8] sm:$0xff] (!%p17003_p1)   ;;  %v12840_v15 = vpack.c.bf16 (!%p17003_p1), %v12813_v23, %v12812_v60 }
 0xb8a   : > { %v12756_v30 = vadd.f32 %v12724_v2, %v12692_v32  ;;  %v12693_v39 = vadd.f32 %v24319_v9, %v12589_v24  ;;  %v12815_v2 = vld [vmem:[#allocation2 + $0x99] sm:$0xff] (!%p17003_p1)  ;;  %v21396_v32 = vld [vmem:[%s25356_s4 + $0x10] sm:$0xff] (!%p17003_p1)  }
 0xb8b   : > { %12790 = vst.msk [vmem:[#allocation2 + $0x121] sm:$0xff] %vm7311_vm6, %v12758_v41  ;;  %v12759_v6 = vadd.f32 %v12727_v0, %v12695_v34  ;;  %v12816_v26 = vld [vmem:[#allocation2 + $0xa9] sm:$0xff] (!%p17003_p1)  ;;  %v12817_v0 = vld [vmem:[#allocation2 + $0xb1] sm:$0xff] (!%p17003_p1)  ;;  %v12841_v34 = vpack.c.bf16 (!%p17003_p1), %v12815_v2, %v12814_v3 }
 0xb8c   : > { %12788 = vst.msk [vmem:[#allocation2 + $0x109] sm:$0xff] %vm7311_vm6, %v12756_v30  ;;  %v12757_v49 = vadd.f32 %v12725_v46, %v12693_v39  ;;  %v21397_v41 = vld [vmem:[%s25356_s4 + $0x18] sm:$0xff] (!%p17003_p1)   ;;  %v12842_v24 = vpack.c.bf16 (!%p17003_p1), %v12817_v0, %v12816_v26  ;;  %v21398_v46 = vld [vmem:[%s25356_s4 + $0x20] sm:$0xff] (!%p17003_p1)   ;;  %v12819_v39 = vld [vmem:[#allocation2 + $0xc9] sm:$0xff] (!%p17003_p1) }
 0xb8d   : > { %12791 = vst.msk [vmem:[#allocation2 + $0x129] sm:$0xff] %vm7311_vm6, %v12759_v6  ;;  %v12818_v30 = vld [vmem:[#allocation2 + $0xc1] sm:$0xff] (!%p17003_p1)  ;;  %v12820_v6 = vld [vmem:[#allocation2 + $0xd9] sm:$0xff] (!%p17003_p1) }
 0xb8e   : > { %12789 = vst.msk [vmem:[#allocation2 + $0x111] sm:$0xff] %vm7311_vm6, %v12757_v49  ;;  %v19441_v45 = vpop.f32.mrb[24].mxu1  ;;  %v12821_v49 = vld [vmem:[#allocation2 + $0xe1] sm:$0xff] (!%p17003_p1) }
 0xb8f   : > { %v12698_v22 = vadd.f32 %v19441_v45, %v24319_v9  ;;  %v12602_v31 = vpop.f32.mrb[25].mxu1  ;;  %v21399_v45 = vld [vmem:[%s25356_s4 + $0x28] sm:$0xff] (!%p17003_p1)  }
 0xb90   : > { %v12696_v16 = vadd.f32 %v24319_v9, %v12602_v31  ;;  %v19442_v10 = vpop.f32.mrb[26].mxu1  ;;  %v21400_v31 = vld [vmem:[%s25356_s4 + $0x30] sm:$0xff] (!%p17003_p1)  }
 0xb91   : > { %v12762_v36 = vadd.f32 %v12730_v13, %v12698_v22  ;;  %v12699_v63 = vadd.f32 %v19442_v10, %v24319_v9  ;;  %v12605_v17 = vpop.f32.mrb[27].mxu1  ;;  %v12843_v13 = vpack.c.bf16 (!%p17003_p1), %v12819_v39, %v12818_v30  ;;  %v12844_v22 = vpack.c.bf16 (!%p17003_p1), %v12821_v49, %v12820_v6 }
 0xb92   : > { %v12760_v50 = vadd.f32 %v12728_v47, %v12696_v16  ;;  %v12697_v19 = vadd.f32 %v24319_v9, %v12605_v17  ;;  %v12822_v47 = vld [vmem:[#allocation2 + $0xf1] sm:$0xff] (!%p17003_p1)  ;;  %v12823_v16 = vld [vmem:[#allocation2 + $0xf9] sm:$0xff] (!%p17003_p1)  ;;  %v12826_v17 = vld [vmem:[#allocation2 + $0x121] sm:$0xff] (!%p17003_p1) }
 0xb93   : > { %12794 = vst.msk [vmem:[#allocation2 + $0x151] sm:$0xff] %vm7311_vm6, %v12762_v36  ;;  %v12763_v51 = vadd.f32 %v12731_v27, %v12699_v63  ;;  %v12824_v10 = vld [vmem:[#allocation2 + $0x109] sm:$0xff] (!%p17003_p1)  ;;  %v12845_v36 = vpack.c.bf16 (!%p17003_p1), %v12823_v16, %v12822_v47 }
 0xb94   : > { %12792 = vst.msk [vmem:[#allocation2 + $0x139] sm:$0xff] %vm7311_vm6, %v12760_v50  ;;  %v12761_v28 = vadd.f32 %v12729_v38, %v12697_v19  ;;  %v12827_v38 = vld [vmem:[#allocation2 + $0x129] sm:$0xff] (!%p17003_p1) }
 0xb95   : > { %12795 = vst.msk [vmem:[#allocation2 + $0x159] sm:$0xff] %vm7311_vm6, %v12763_v51  ;;  %v12825_v27 = vld [vmem:[#allocation2 + $0x111] sm:$0xff] (!%p17003_p1)  ;;  %v12847_v51 = vpack.c.bf16 (!%p17003_p1), %v12827_v38, %v12826_v17 }
 0xb96   : > { %12793 = vst.msk [vmem:[#allocation2 + $0x141] sm:$0xff] %vm7311_vm6, %v12761_v28  ;;  %v19445_v42 = vpop.f32.mrb[28].mxu1  ;;  %v12846_v63 = vpack.c.bf16 (!%p17003_p1), %v12825_v27, %v12824_v10 }
 0xb97   : > { %v12702_v43 = vadd.f32 %v19445_v42, %v24319_v9  ;;  %v12618_v5 = vpop.f32.mrb[29].mxu1 }
 0xb98   : > { %v12700_v18 = vadd.f32 %v24319_v9, %v12618_v5  ;;  %v19446_v25 = vpop.f32.mrb[30].mxu1  ;;  %12803 = sbr.rel (%p17003_p1) target bundleno = 3990 (0xf96), region = 108 }
 0xb99   : > { %v12766_v33 = vadd.f32 %v12734_v7, %v12702_v43  ;;  %v12703_v59 = vadd.f32 %v19446_v25, %v24319_v9  ;;  %v12621_v35 = vpop.f32.mrb[31].mxu1 }
 0xb9a   : > { %v12764_v44 = vadd.f32 %v12732_v4, %v12700_v18  ;;  %v12701_v29 = vadd.f32 %v24319_v9, %v12621_v35  ;;  %v21393_v9 = vld [vmem:[%s25354_s29 + $0x8] sm:$0xff] (!%p17003_p1)   ;;  %v12830_v42 = vld [vmem:[#allocation2 + $0x151] sm:$0xff] (!%p17003_p1) }
 0xb9b   : > { %12798 = vst.msk [vmem:[#allocation2 + $0x181] sm:$0xff] %vm7311_vm6, %v12766_v33  ;;  %v12767_v57 = vadd.f32 %v12735_v58, %v12703_v59  ;;  %19449 = vmatprep.subr.bf16.mxu1 (!%p17003_p1), %v21393_v9  ;;  %v12828_v50 = vld [vmem:[#allocation2 + $0x139] sm:$0xff] (!%p17003_p1) }
 0xb9c   : > { %12796 = vst.msk [vmem:[#allocation2 + $0x169] sm:$0xff] %vm7311_vm6, %v12764_v44  ;;  %v12765_v8 = vadd.f32 %v12733_v62, %v12701_v29  ;;  %19450 = vmatpush3.bf16.msra.mxu1 (!%p17003_p1), %v21393_v9  ;;  %v12831_v7 = vld [vmem:[#allocation2 + $0x159] sm:$0xff] (!%p17003_p1) }
 0xb9d   : > { %12799 = vst.msk [vmem:[#allocation2 + $0x189] sm:$0xff] %vm7311_vm6, %v12767_v57  ;;  %19483 = vmatprep.subr.bf16.mxu1 (!%p17003_p1), %v21394_v37  ;;  %v12829_v19 = vld [vmem:[#allocation2 + $0x141] sm:$0xff] (!%p17003_p1)  ;;  %v12849_v4 = vpack.c.bf16 (!%p17003_p1), %v12831_v7, %v12830_v42  ;;  %v21401_v59 = vld [vmem:[%s25356_s4 + $0x38] sm:$0xff] (!%p17003_p1)   ;;  %v24435_v62 = vld [vmem:[%s25357_s26] ss:$0 sm:$0xff] (!%p17003_p1) }
 0xb9e   : > { %12797 = vst.msk [vmem:[#allocation2 + $0x171] sm:$0xff] %vm7311_vm6, %v12765_v8  ;;  %v12848_v28 = vpack.c.bf16 (!%p17003_p1), %v12829_v19, %v12828_v50 }
 0xb9f   : > { %19452 = vmatmul.mubr.msk.bf16.vlgmr.msra.gmra.mrb[0].mxu1 %vm7311_vm6, %v12837_v1 }
 0xba0   : > { %19455 = vmatprep.mubr.msk.bf16.mxu1 %vm7311_vm6, %v12838_v11  ;;  %19484 = vmatpush3.bf16.msra.mxu1 %v21394_v37 }
 0xba1   : > { %19485 = vmatprep.subr.bf16.mxu1 %v21395_v21 }
 0xba2   : > { %v12834_v25 = vld [vmem:[#allocation2 + $0x181] sm:$0xff] }
 0xba3   : > { %v12832_v43 = vld [vmem:[#allocation2 + $0x169] sm:$0xff] }
 0xba4   : > { %19486 = vmatpush3.bf16.msra.mxu1 %v21395_v21  ;;  %v12835_v58 = vld [vmem:[#allocation2 + $0x189] sm:$0xff] }
 0xba5   : > { %19487 = vmatprep.subr.bf16.mxu1 %v21396_v32  ;;  %v12833_v5 = vld [vmem:[#allocation2 + $0x171] sm:$0xff]  ;;  %v12851_v33 = vpack.c.bf16 %v12835_v58, %v12834_v25 }
 0xba6   : > { %v12850_v18 = vpack.c.bf16 %v12833_v5, %v12832_v43 }
 0xba7   : > { %19456 = vmatmul.mubr.msk.bf16.gmra.mrb[4].mxu1 %vm7311_vm6, %v12839_v56 }
 0xba8   : > { %19459 = vmatprep.mubr.msk.bf16.mxu1 %vm7311_vm6, %v12840_v15  ;;  %19488 = vmatpush3.bf16.msra.mxu1 %v21396_v32 }
 0xba9   : > { %19489 = vmatprep.subr.bf16.mxu1 %v21397_v41 }
 0xbac   : > { %19490 = vmatpush3.bf16.msra.mxu1 %v21397_v41 }
 0xbad   : > { %19491 = vmatprep.subr.bf16.mxu1 %v21398_v46 }
 0xbaf   : > { %19460 = vmatmul.mubr.msk.bf16.gmra.mrb[8].mxu1 %vm7311_vm6, %v12841_v34 }
 0xbb0   : > { %19463 = vmatprep.mubr.msk.bf16.mxu1 %vm7311_vm6, %v12842_v24  ;;  %19492 = vmatpush3.bf16.msra.mxu1 %v21398_v46 }
 0xbb1   : > { %19493 = vmatprep.subr.bf16.mxu1 %v21399_v45 }
 0xbb4   : > { %19494 = vmatpush3.bf16.msra.mxu1 %v21399_v45 }
 0xbb5   : > { %19495 = vmatprep.subr.bf16.mxu1 %v21400_v31 }
 0xbb7   : > { %19464 = vmatmul.mubr.msk.bf16.gmra.mrb[12].mxu1 %vm7311_vm6, %v12843_v13 }
 0xbb8   : > { %19467 = vmatprep.mubr.msk.bf16.mxu1 %vm7311_vm6, %v12844_v22  ;;  %19496 = vmatpush3.bf16.msra.mxu1 %v21400_v31 }
 0xbb9   : > { %19497 = vmatprep.subr.bf16.mxu1 %v21401_v59 }
 0xbbc   : > { %19498 = vmatpush3.bf16.msra.mxu1 %v21401_v59 }
 0xbbf   : > { %19468 = vmatmul.mubr.msk.bf16.gmra.mrb[16].mxu1 %vm7311_vm6, %v12845_v36 }
 0xbc0   : > { %19471 = vmatprep.mubr.msk.bf16.mxu1 %vm7311_vm6, %v12846_v63 }
 0xbc7   : > { %19472 = vmatmul.mubr.msk.bf16.gmra.mrb[20].mxu1 %vm7311_vm6, %v12847_v51 }
 0xbc8   : > { %19475 = vmatprep.mubr.msk.bf16.mxu1 %vm7311_vm6, %v12848_v28 }
 0xbcf   : > { %19476 = vmatmul.mubr.msk.bf16.gmra.mrb[24].mxu1 %vm7311_vm6, %v12849_v4 }
 0xbd0   : > { %19479 = vmatprep.mubr.msk.bf16.mxu1 %vm7311_vm6, %v12850_v18 }
 0xbd7   : > { %19480 = vmatmul.mubr.msk.bf16.gmra.mrb[28].mxu1 %vm7311_vm6, %v12851_v33 }
 0xc72   : > { %v19453_v35 = vpop.f32.mrb[0].mxu1 }
 0xc73   : > { %v12957_v44 = vpop.f32.mrb[1].mxu1  ;;  %v12966_v57 = vadd.f32 %v19453_v35, %v24435_v62 }
 0xc74   : > { %v19454_v29 = vpop.f32.mrb[2].mxu1  ;;  %v12958_v9 = vadd.f32 %v24435_v62, %v12957_v44 }
 0xc75   : > { %v12969_v8 = vadd.f32 %v19454_v29, %v24435_v62  ;;  %v12960_v61 = vpop.f32.mrb[3].mxu1 }
 0xc76   : > { %v12961_v40 = vadd.f32 %v24435_v62, %v12960_v61 }
 0xc77   : > { %v13085_v55 = vpack.c.bf16 %v12969_v8, %v12966_v57 }
 0xc78   : > { %v13084_v12 = vpack.c.bf16 %v12961_v40, %v12958_v9 }
 0xc7a   : > { %v19457_v20 = vpop.f32.mrb[4].mxu1  ;;  %19499 = vmatprep.mubr.bf16.mxu1 %v13084_v12 }
 0xc7b   : > { %v12973_v48 = vpop.f32.mrb[5].mxu1  ;;  %19500 = vmatmul.mubr.bf16.vlgmr.msra.gmra.mrb[32].mxu1 %v13085_v55  ;;  %v12982_v53 = vadd.f32 %v19457_v20, %v24435_v62 }
 0xc7c   : > { %v19458_v54 = vpop.f32.mrb[6].mxu1  ;;  %v12974_v14 = vadd.f32 %v24435_v62, %v12973_v48 }
 0xc7d   : > { %v12985_v1 = vadd.f32 %v19458_v54, %v24435_v62  ;;  %v12976_v11 = vpop.f32.mrb[7].mxu1 }
 0xc7e   : > { %v12977_v52 = vadd.f32 %v24435_v62, %v12976_v11 }
 0xc7f   : > { %v13087_v60 = vpack.c.bf16 %v12985_v1, %v12982_v53 }
 0xc80   : > { %v13086_v23 = vpack.c.bf16 %v12977_v52, %v12974_v14  ;;  %v21402_v52 = vld [vmem:[%s25358_s16 + $0x10] sm:$0xff]  }
 0xc81   : > { %19531 = vmatprep.subr.bf16.mxu1 %v21402_v52 }
 0xc82   : > { %v19461_v37 = vpop.f32.mrb[8].mxu1  ;;  %19503 = vmatprep.mubr.bf16.mxu1 %v13086_v23  ;;  %19532 = vmatpush3.bf16.msra.mxu1 %v21402_v52  ;;  %v24485_v23 = vld [vmem:[%s25358_s16 + $0x38] sm:$0xff]  }
 0xc83   : > { %v12989_v56 = vpop.f32.mrb[9].mxu1  ;;  %19504 = vmatmul.mubr.bf16.gmra.mrb[36].mxu1 %v13087_v60  ;;  %v12998_v15 = vadd.f32 %v19461_v37, %v24435_v62  ;;  %v24475_v60 = vld [vmem:[%s25358_s16 + $0x30] sm:$0xff]  }
 0xc84   : > { %v19462_v21 = vpop.f32.mrb[10].mxu1  ;;  %v12990_v32 = vadd.f32 %v24435_v62, %v12989_v56  ;;  %19639 = vmatprep.subr.bf16.mxu0 %v24475_v60  ;;  %v13455_v37 = vld [vmem:[#allocation3 + $0x1] sm:$0xff]  ;;  %v13456_v56 = vld [vmem:[#allocation3 + $0x9] sm:$0xff] }
 0xc85   : > { %v13001_v3 = vadd.f32 %v19462_v21, %v24435_v62  ;;  %v12992_v2 = vpop.f32.mrb[11].mxu1  ;;  %19640 = vmatpush3.bf16.msra.mxu0 %v24475_v60  ;;  %v13487_v21 = vpack.c.bf16 %v13456_v56, %v13455_v37 }
 0xc86   : > { %v12993_v26 = vadd.f32 %v24435_v62, %v12992_v2  ;;  %19641 = vmatprep.subr.bf16.mxu0 %v24485_v23  ;;  %v24505_v2 = vld [vmem:[%s25359_s20] ss:$0 sm:$0xff] }
 0xc87   : > { %v13089_v0 = vpack.c.bf16 %v13001_v3, %v12998_v15  ;;  %v24493_v15 = vld [vmem:[%s25358_s16 + $0x40] sm:$0xff]  }
 0xc88   : > { %v13088_v41 = vpack.c.bf16 %v12993_v26, %v12990_v32  ;;  %v24499_v3 = vld [vmem:[%s25358_s16] sm:$0xff]   ;;  %v24507_v26 = vld [vmem:[#allocation5] ss:$0 sm:$0xff] }
 0xc89   : > { %19642 = vmatpush3.bf16.msra.mxu0 %v24485_v23 }
 0xc8a   : > { %v19465_v34 = vpop.f32.mrb[12].mxu1  ;;  %19507 = vmatprep.mubr.bf16.mxu1 %v13088_v41  ;;  %19675 = vmatprep.subr.bf16.mxu0 %v24493_v15 }
 0xc8b   : > { %v13005_v24 = vpop.f32.mrb[13].mxu1  ;;  %19508 = vmatmul.mubr.bf16.gmra.mrb[40].mxu1 %v13089_v0  ;;  %v13014_v30 = vadd.f32 %v19465_v34, %v24435_v62 }
 0xc8c   : > { %v19466_v46 = vpop.f32.mrb[14].mxu1  ;;  %v13006_v49 = vadd.f32 %v24435_v62, %v13005_v24 }
 0xc8d   : > { %v13017_v39 = vadd.f32 %v19466_v46, %v24435_v62  ;;  %v13008_v6 = vpop.f32.mrb[15].mxu1 }
 0xc8e   : > { %v13009_v45 = vadd.f32 %v24435_v62, %v13008_v6 }
 0xc8f   : > { %v13091_v13 = vpack.c.bf16 %v13017_v39, %v13014_v30 }
 0xc90   : > { %v13090_v22 = vpack.c.bf16 %v13009_v45, %v13006_v49 }
 0xc92   : > { %v19469_v31 = vpop.f32.mrb[16].mxu1  ;;  %19511 = vmatprep.mubr.bf16.mxu1 %v13090_v22 }
 0xc93   : > { %v13030_v47 = vadd.f32 %v19469_v31, %v24435_v62  ;;  %v13021_v16 = vpop.f32.mrb[17].mxu1  ;;  %19512 = vmatmul.mubr.bf16.gmra.mrb[44].mxu1 %v13091_v13 }
 0xc94   : > { %v13022_v10 = vadd.f32 %v24435_v62, %v13021_v16  ;;  %v19470_v27 = vpop.f32.mrb[18].mxu1 }
 0xc95   : > { %v13033_v36 = vadd.f32 %v19470_v27, %v24435_v62  ;;  %v13024_v63 = vpop.f32.mrb[19].mxu1 }
 0xc96   : > { %v13025_v17 = vadd.f32 %v24435_v62, %v13024_v63 }
 0xc97   : > { %v13093_v38 = vpack.c.bf16 %v13033_v36, %v13030_v47 }
 0xc98   : > { %v13092_v50 = vpack.c.bf16 %v13025_v17, %v13022_v10 }
 0xc9a   : > { %v19473_v19 = vpop.f32.mrb[20].mxu1  ;;  %19515 = vmatprep.mubr.bf16.mxu1 %v13092_v50 }
 0xc9b   : > { %v13046_v51 = vadd.f32 %v19473_v19, %v24435_v62  ;;  %v13037_v28 = vpop.f32.mrb[21].mxu1  ;;  %19516 = vmatmul.mubr.bf16.gmra.mrb[48].mxu1 %v13093_v38 }
 0xc9c   : > { %v13038_v42 = vadd.f32 %v24435_v62, %v13037_v28  ;;  %v19474_v7 = vpop.f32.mrb[22].mxu1 }
 0xc9d   : > { %v13049_v43 = vadd.f32 %v19474_v7, %v24435_v62  ;;  %v13040_v5 = vpop.f32.mrb[23].mxu1 }
 0xc9e   : > { %v13041_v4 = vadd.f32 %v24435_v62, %v13040_v5 }
 0xc9f   : > { %v13095_v18 = vpack.c.bf16 %v13049_v43, %v13046_v51 }
 0xca0   : > { %v13094_v25 = vpack.c.bf16 %v13041_v4, %v13038_v42 }
 0xca2   : > { %v19477_v58 = vpop.f32.mrb[24].mxu1  ;;  %19519 = vmatprep.mubr.bf16.mxu1 %v13094_v25 }
 0xca3   : > { %v13062_v33 = vadd.f32 %v19477_v58, %v24435_v62  ;;  %v13053_v59 = vpop.f32.mrb[25].mxu1  ;;  %19520 = vmatmul.mubr.bf16.gmra.mrb[52].mxu1 %v13095_v18 }
 0xca4   : > { %v13054_v35 = vadd.f32 %v24435_v62, %v13053_v59  ;;  %v19478_v44 = vpop.f32.mrb[26].mxu1 }
 0xca5   : > { %v13065_v29 = vadd.f32 %v19478_v44, %v24435_v62  ;;  %v13056_v57 = vpop.f32.mrb[27].mxu1 }
 0xca6   : > { %v13057_v8 = vadd.f32 %v24435_v62, %v13056_v57  ;;  %v21407_v57 = vld [vmem:[%s25358_s16 + $0x48] sm:$0xff]  }
 0xca7   : > { %v13097_v61 = vpack.c.bf16 %v13065_v29, %v13062_v33 }
 0xca8   : > { %v13096_v9 = vpack.c.bf16 %v13057_v8, %v13054_v35  ;;  %v21410_v8 = vld [vmem:[%s25358_s16 + $0x8] sm:$0xff]  }
 0xcaa   : > { %v19481_v40 = vpop.f32.mrb[28].mxu1  ;;  %19523 = vmatprep.mubr.bf16.mxu1 %v13096_v9 }
 0xcab   : > { %v13078_v55 = vadd.f32 %v19481_v40, %v24435_v62  ;;  %v13069_v12 = vpop.f32.mrb[29].mxu1  ;;  %19524 = vmatmul.mubr.bf16.gmra.mrb[56].mxu1 %v13097_v61 }
 0xcac   : > { %v13070_v20 = vadd.f32 %v24435_v62, %v13069_v12  ;;  %v19482_v48 = vpop.f32.mrb[30].mxu1 }
 0xcad   : > { %v13081_v54 = vadd.f32 %v19482_v48, %v24435_v62  ;;  %v13072_v53 = vpop.f32.mrb[31].mxu1 }
 0xcae   : > { %v13073_v1 = vadd.f32 %v24435_v62, %v13072_v53  ;;  %v21404_v62 = vld [vmem:[%s25358_s16 + $0x18] sm:$0xff]   ;;  %v24568_v53 = vld [vmem:[%s25358_s16 + $0x50] sm:$0xff]  }
 0xcaf   : > { %v13099_v11 = vpack.c.bf16 %v13081_v54, %v13078_v55  ;;  %19533 = vmatprep.subr.bf16.mxu1 %v21404_v62 }
 0xcb0   : > { %v13098_v14 = vpack.c.bf16 %v13073_v1, %v13070_v20  ;;  %19534 = vmatpush3.bf16.msra.mxu1 %v21404_v62  ;;  %v24573_v1 = vld [vmem:[%s25358_s16 + $0x20] sm:$0xff]  }
 0xcb1   : > { %19567 = vmatprep.subr.bf16.mxu1 %v24499_v3 }
 0xcb2   : > { %19527 = vmatprep.mubr.bf16.mxu1 %v13098_v14 }
 0xcb3   : > { %19528 = vmatmul.mubr.bf16.gmra.mrb[60].mxu1 %v13099_v11 }
 0xcb4   : > { %19535 = vmatprep.mubr.msk.bf16.mxu1 %vm7311_vm6, %v13487_v21 }
 0xd4e   : > { %v19501_v32 = vpop.f32.mrb[32].mxu1 }
 0xd4f   : > { %v13214_v0 = vadd.f32 %v19501_v32, %v24505_v2  ;;  %v13205_v41 = vpop.f32.mrb[33].mxu1 }
 0xd50   : > { %v13206_v34 = vadd.f32 %v24505_v2, %v13205_v41  ;;  %v19502_v24 = vpop.f32.mrb[34].mxu1 }
 0xd51   : > { %v13341_v46 = vmul.f32 %v24507_v26, %v13214_v0  ;;  %v13217_v30 = vadd.f32 %v19502_v24, %v24505_v2  ;;  %v13208_v39 = vpop.f32.mrb[35].mxu1 }
 0xd52   : > { %v13339_v6 = vmul.f32 %v24507_v26, %v13206_v34  ;;  %v13209_v49 = vadd.f32 %v24505_v2, %v13208_v39 }
 0xd53   : > { %13373 = vst.msk [vmem:[#allocation3 + $0x31] sm:$0xff] %vm7311_vm6, %v13341_v46  ;;  %v13342_v45 = vmul.f32 %v24507_v26, %v13217_v30 }
 0xd54   : > { %13371 = vst.msk [vmem:[#allocation3 + $0x19] sm:$0xff] %vm7311_vm6, %v13339_v6  ;;  %v13340_v13 = vmul.f32 %v24507_v26, %v13209_v49 }
 0xd55   : > { %13374 = vst.msk [vmem:[#allocation3 + $0x39] sm:$0xff] %vm7311_vm6, %v13342_v45 }
 0xd56   : > { %13372 = vst.msk [vmem:[#allocation3 + $0x21] sm:$0xff] %vm7311_vm6, %v13340_v13  ;;  %v19505_v22 = vpop.f32.mrb[36].mxu1 }
 0xd57   : > { %v13230_v31 = vadd.f32 %v19505_v22, %v24505_v2  ;;  %v13221_v47 = vpop.f32.mrb[37].mxu1 }
 0xd58   : > { %v13222_v16 = vadd.f32 %v24505_v2, %v13221_v47  ;;  %v19506_v10 = vpop.f32.mrb[38].mxu1 }
 0xd59   : > { %v13345_v27 = vmul.f32 %v24507_v26, %v13230_v31  ;;  %v13233_v36 = vadd.f32 %v19506_v10, %v24505_v2  ;;  %v13224_v63 = vpop.f32.mrb[39].mxu1 }
 0xd5a   : > { %v13343_v17 = vmul.f32 %v24507_v26, %v13222_v16  ;;  %v13225_v38 = vadd.f32 %v24505_v2, %v13224_v63  ;;  %v13459_v58 = vld [vmem:[#allocation3 + $0x31] sm:$0xff] }
 0xd5b   : > { %13377 = vst.msk [vmem:[#allocation3 + $0x61] sm:$0xff] %vm7311_vm6, %v13345_v27  ;;  %v13346_v50 = vmul.f32 %v24507_v26, %v13233_v36  ;;  %v13457_v51 = vld [vmem:[#allocation3 + $0x19] sm:$0xff]  ;;  %v14256_v33 = vld [vmem:[#allocation3 + $0x30] sm:$0xff] }
 0xd5c   : > { %13375 = vst.msk [vmem:[#allocation3 + $0x49] sm:$0xff] %vm7311_vm6, %v13343_v17  ;;  %v13344_v19 = vmul.f32 %v24507_v26, %v13225_v38  ;;  %v13460_v28 = vld [vmem:[#allocation3 + $0x39] sm:$0xff] }
 0xd5d   : > { %v14257_v42 = vld [vmem:[#allocation3 + $0x38] sm:$0xff]  ;;  %13378 = vst.msk [vmem:[#allocation3 + $0x69] sm:$0xff] %vm7311_vm6, %v13346_v50  ;;  %v13458_v7 = vld [vmem:[#allocation3 + $0x21] sm:$0xff]  ;;  %v24538_v44 = vpack.c.bf16 %v13460_v28, %v13459_v58 }
 0xd5e   : > { %v14254_v43 = vld [vmem:[#allocation3 + $0x18] sm:$0xff]  ;;  %v14255_v5 = vld [vmem:[#allocation3 + $0x20] sm:$0xff]  ;;  %13376 = vst.msk [vmem:[#allocation3 + $0x51] sm:$0xff] %vm7311_vm6, %v13344_v19  ;;  %v19509_v4 = vpop.f32.mrb[40].mxu1  ;;  %v24533_v18 = vpack.c.bf16 %v13458_v7, %v13457_v51  ;;  %v24540_v29 = vpack.c.bf16 %v14257_v42, %v14256_v33 }
 0xd5f   : > { %v24535_v25 = vpack.c.bf16 %v14255_v5, %v14254_v43  ;;  %v13246_v59 = vadd.f32 %v19509_v4, %v24505_v2  ;;  %v13237_v35 = vpop.f32.mrb[41].mxu1 }
 0xd60   : > { %v13238_v61 = vadd.f32 %v24505_v2, %v13237_v35  ;;  %v19510_v9 = vpop.f32.mrb[42].mxu1  ;;  %19536 = vmatmul.mubr.msk.bf16.vlgmr.msra.gmra.mrb[64].mxu1 %vm7311_vm6, %v24533_v18 }
 0xd61   : > { %19643 = vmatprep.mubr.msk.bf16.mxu0 %vm7311_vm6, %v24535_v25  ;;  %v13349_v40 = vmul.f32 %v24507_v26, %v13246_v59  ;;  %v13249_v55 = vadd.f32 %v19510_v9, %v24505_v2  ;;  %v13240_v12 = vpop.f32.mrb[43].mxu1  ;;  %19539 = vmatprep.mubr.msk.bf16.mxu1 %vm7311_vm6, %v24538_v44 }
 0xd62   : > { %19644 = vmatmul.mubr.msk.bf16.vlgmr.msra.gmra.mrb[0].mxu0 %vm7311_vm6, %v24540_v29  ;;  %v13347_v20 = vmul.f32 %v24507_v26, %v13238_v61  ;;  %v13241_v48 = vadd.f32 %v24505_v2, %v13240_v12  ;;  %19568 = vmatpush3.bf16.msra.mxu1 %v24499_v3  ;;  %v13463_v0 = vld [vmem:[#allocation3 + $0x61] sm:$0xff] }
 0xd63   : > { %19676 = vmatpush3.bf16.msra.mxu0 %v24493_v15  ;;  %13381 = vst.msk [vmem:[#allocation3 + $0x91] sm:$0xff] %vm7311_vm6, %v13349_v40  ;;  %v13350_v54 = vmul.f32 %v24507_v26, %v13249_v55  ;;  %19569 = vmatprep.subr.bf16.mxu1 %v21410_v8  ;;  %v13461_v14 = vld [vmem:[#allocation3 + $0x49] sm:$0xff]  ;;  %v14260_v41 = vld [vmem:[#allocation3 + $0x60] sm:$0xff] }
 0xd64   : > { %19677 = vmatprep.subr.bf16.mxu0 %v21407_v57  ;;  %13379 = vst.msk [vmem:[#allocation3 + $0x79] sm:$0xff] %vm7311_vm6, %v13347_v20  ;;  %v13348_v11 = vmul.f32 %v24507_v26, %v13241_v48  ;;  %v13464_v52 = vld [vmem:[#allocation3 + $0x69] sm:$0xff] }
 0xd65   : > { %v14261_v62 = vld [vmem:[#allocation3 + $0x68] sm:$0xff]  ;;  %13382 = vst.msk [vmem:[#allocation3 + $0x99] sm:$0xff] %vm7311_vm6, %v13350_v54  ;;  %v13462_v37 = vld [vmem:[#allocation3 + $0x51] sm:$0xff]  ;;  %v24584_v46 = vpack.c.bf16 %v13464_v52, %v13463_v0 }
 0xd66   : > { %v14258_v56 = vld [vmem:[#allocation3 + $0x48] sm:$0xff]  ;;  %v14259_v21 = vld [vmem:[#allocation3 + $0x50] sm:$0xff]  ;;  %13380 = vst.msk [vmem:[#allocation3 + $0x81] sm:$0xff] %vm7311_vm6, %v13348_v11  ;;  %v19513_v15 = vpop.f32.mrb[44].mxu1  ;;  %v24579_v3 = vpack.c.bf16 %v13462_v37, %v13461_v14  ;;  %19570 = vmatpush3.bf16.msra.mxu1 %v21410_v8  ;;  %v24586_v30 = vpack.c.bf16 %v14261_v62, %v14260_v41 }
 0xd67   : > { %v24581_v32 = vpack.c.bf16 %v14259_v21, %v14258_v56  ;;  %19678 = vmatpush3.bf16.msra.mxu0 %v21407_v57  ;;  %v13262_v34 = vadd.f32 %v19513_v15, %v24505_v2  ;;  %v13253_v24 = vpop.f32.mrb[45].mxu1  ;;  %19603 = vmatprep.subr.bf16.mxu1 %v24573_v1 }
 0xd68   : > { %19711 = vmatprep.subr.bf16.mxu0 %v24568_v53  ;;  %v13254_v39 = vadd.f32 %v24505_v2, %v13253_v24  ;;  %v19514_v6 = vpop.f32.mrb[46].mxu1  ;;  %19540 = vmatmul.mubr.msk.bf16.gmra.mrb[68].mxu1 %vm7311_vm6, %v24579_v3 }
 0xd69   : > { %19647 = vmatprep.mubr.msk.bf16.mxu0 %vm7311_vm6, %v24581_v32  ;;  %v13353_v49 = vmul.f32 %v24507_v26, %v13262_v34  ;;  %v13265_v45 = vadd.f32 %v19514_v6, %v24505_v2  ;;  %v13256_v13 = vpop.f32.mrb[47].mxu1  ;;  %19543 = vmatprep.mubr.msk.bf16.mxu1 %vm7311_vm6, %v24584_v46 }
 0xd6a   : > { %19648 = vmatmul.mubr.msk.bf16.gmra.mrb[4].mxu0 %vm7311_vm6, %v24586_v30  ;;  %v13351_v22 = vmul.f32 %v24507_v26, %v13254_v39  ;;  %v13257_v31 = vadd.f32 %v24505_v2, %v13256_v13  ;;  %v13467_v28 = vld [vmem:[#allocation3 + $0x91] sm:$0xff] }
 0xd6b   : > { %13385 = vst.msk [vmem:[#allocation3 + $0xc1] sm:$0xff] %vm7311_vm6, %v13353_v49  ;;  %v13354_v47 = vmul.f32 %v24507_v26, %v13265_v45  ;;  %v13465_v10 = vld [vmem:[#allocation3 + $0x79] sm:$0xff]  ;;  %v14264_v42 = vld [vmem:[#allocation3 + $0x90] sm:$0xff] }
 0xd6c   : > { %13383 = vst.msk [vmem:[#allocation3 + $0xa9] sm:$0xff] %vm7311_vm6, %v13351_v22  ;;  %v13352_v16 = vmul.f32 %v24507_v26, %v13257_v31  ;;  %v13468_v27 = vld [vmem:[#allocation3 + $0x99] sm:$0xff] }
 0xd6d   : > { %v14265_v36 = vld [vmem:[#allocation3 + $0x98] sm:$0xff]  ;;  %13386 = vst.msk [vmem:[#allocation3 + $0xc9] sm:$0xff] %vm7311_vm6, %v13354_v47  ;;  %v13466_v63 = vld [vmem:[#allocation3 + $0x81] sm:$0xff]  ;;  %v24614_v5 = vpack.c.bf16 %v13468_v27, %v13467_v28 }
 0xd6e   : > { %v14262_v17 = vld [vmem:[#allocation3 + $0x78] sm:$0xff]  ;;  %v14263_v38 = vld [vmem:[#allocation3 + $0x80] sm:$0xff]  ;;  %13384 = vst.msk [vmem:[#allocation3 + $0xb1] sm:$0xff] %vm7311_vm6, %v13352_v16  ;;  %v19517_v50 = vpop.f32.mrb[48].mxu1  ;;  %v24609_v19 = vpack.c.bf16 %v13466_v63, %v13465_v10  ;;  %v24616_v4 = vpack.c.bf16 %v14265_v36, %v14264_v42 }
 0xd6f   : > { %v24611_v51 = vpack.c.bf16 %v14263_v38, %v14262_v17  ;;  %v13278_v7 = vadd.f32 %v19517_v50, %v24505_v2  ;;  %v13269_v43 = vpop.f32.mrb[49].mxu1  ;;  %v21411_v50 = vld [vmem:[%s25358_s16 + $0x58] sm:$0xff]  }
 0xd70   : > { %v13270_v58 = vadd.f32 %v24505_v2, %v13269_v43  ;;  %v19518_v33 = vpop.f32.mrb[50].mxu1  ;;  %19544 = vmatmul.mubr.msk.bf16.gmra.mrb[72].mxu1 %vm7311_vm6, %v24609_v19 }
 0xd71   : > { %19651 = vmatprep.mubr.msk.bf16.mxu0 %vm7311_vm6, %v24611_v51  ;;  %v13357_v59 = vmul.f32 %v24507_v26, %v13278_v7  ;;  %v13281_v35 = vadd.f32 %v19518_v33, %v24505_v2  ;;  %v13272_v57 = vpop.f32.mrb[51].mxu1  ;;  %19547 = vmatprep.mubr.msk.bf16.mxu1 %vm7311_vm6, %v24614_v5 }
 0xd72   : > { %19652 = vmatmul.mubr.msk.bf16.gmra.mrb[8].mxu0 %vm7311_vm6, %v24616_v4  ;;  %v13355_v8 = vmul.f32 %v24507_v26, %v13270_v58  ;;  %v13273_v61 = vadd.f32 %v24505_v2, %v13272_v57  ;;  %v13471_v37 = vld [vmem:[#allocation3 + $0xc1] sm:$0xff] }
 0xd73   : > { %13389 = vst.msk [vmem:[#allocation3 + $0xf1] sm:$0xff] %vm7311_vm6, %v13357_v59  ;;  %v13358_v9 = vmul.f32 %v24507_v26, %v13281_v35  ;;  %v13469_v55 = vld [vmem:[#allocation3 + $0xa9] sm:$0xff]  ;;  %v14268_v56 = vld [vmem:[#allocation3 + $0xc0] sm:$0xff] }
 0xd74   : > { %13387 = vst.msk [vmem:[#allocation3 + $0xd9] sm:$0xff] %vm7311_vm6, %v13355_v8  ;;  %v13356_v40 = vmul.f32 %v24507_v26, %v13273_v61  ;;  %v13472_v12 = vld [vmem:[#allocation3 + $0xc9] sm:$0xff] }
 0xd75   : > { %v14269_v20 = vld [vmem:[#allocation3 + $0xc8] sm:$0xff]  ;;  %13390 = vst.msk [vmem:[#allocation3 + $0xf9] sm:$0xff] %vm7311_vm6, %v13358_v9  ;;  %v13470_v48 = vld [vmem:[#allocation3 + $0xb1] sm:$0xff]  ;;  %v24642_v0 = vpack.c.bf16 %v13472_v12, %v13471_v37 }
 0xd76   : > { %v14266_v54 = vld [vmem:[#allocation3 + $0xa8] sm:$0xff]  ;;  %v14267_v11 = vld [vmem:[#allocation3 + $0xb0] sm:$0xff]  ;;  %13388 = vst.msk [vmem:[#allocation3 + $0xe1] sm:$0xff] %vm7311_vm6, %v13356_v40  ;;  %v19521_v14 = vpop.f32.mrb[52].mxu1  ;;  %v24637_v52 = vpack.c.bf16 %v13470_v48, %v13469_v55  ;;  %v24644_v41 = vpack.c.bf16 %v14269_v20, %v14268_v56 }
 0xd77   : > { %v24639_v62 = vpack.c.bf16 %v14267_v11, %v14266_v54  ;;  %v13294_v21 = vadd.f32 %v19521_v14, %v24505_v2  ;;  %v13285_v15 = vpop.f32.mrb[53].mxu1 }
 0xd78   : > { %v13286_v34 = vadd.f32 %v24505_v2, %v13285_v15  ;;  %v19522_v24 = vpop.f32.mrb[54].mxu1  ;;  %19548 = vmatmul.mubr.msk.bf16.gmra.mrb[76].mxu1 %vm7311_vm6, %v24637_v52 }
 0xd79   : > { %19655 = vmatprep.mubr.msk.bf16.mxu0 %vm7311_vm6, %v24639_v62  ;;  %v13361_v39 = vmul.f32 %v24507_v26, %v13294_v21  ;;  %v13297_v6 = vadd.f32 %v19522_v24, %v24505_v2  ;;  %v13288_v49 = vpop.f32.mrb[55].mxu1  ;;  %19551 = vmatprep.mubr.msk.bf16.mxu1 %vm7311_vm6, %v24642_v0 }
 0xd7a   : > { %19656 = vmatmul.mubr.msk.bf16.gmra.mrb[12].mxu0 %vm7311_vm6, %v24644_v41  ;;  %v13359_v45 = vmul.f32 %v24507_v26, %v13286_v34  ;;  %v13289_v13 = vadd.f32 %v24505_v2, %v13288_v49  ;;  %v13475_v22 = vld [vmem:[#allocation3 + $0xf1] sm:$0xff] }
 0xd7b   : > { %19679 = vmatprep.mubr.msk.bf16.mxu0 %vm7311_vm6, %v24533_v18  ;;  %13393 = vst.msk [vmem:[#allocation3 + $0x121] sm:$0xff] %vm7311_vm6, %v13361_v39  ;;  %v13362_v31 = vmul.f32 %v24507_v26, %v13297_v6  ;;  %v13473_v47 = vld [vmem:[#allocation3 + $0xd9] sm:$0xff] }
 0xd7c   : > { %13391 = vst.msk [vmem:[#allocation3 + $0x109] sm:$0xff] %vm7311_vm6, %v13359_v45  ;;  %v13360_v16 = vmul.f32 %v24507_v26, %v13289_v13  ;;  %v13476_v10 = vld [vmem:[#allocation3 + $0xf9] sm:$0xff] }
 0xd7d   : > { %13394 = vst.msk [vmem:[#allocation3 + $0x129] sm:$0xff] %vm7311_vm6, %v13362_v31  ;;  %v13474_v27 = vld [vmem:[#allocation3 + $0xe1] sm:$0xff]  ;;  %v24666_v36 = vpack.c.bf16 %v13476_v10, %v13475_v22 }
 0xd7e   : > { %13392 = vst.msk [vmem:[#allocation3 + $0x111] sm:$0xff] %vm7311_vm6, %v13360_v16  ;;  %v19525_v63 = vpop.f32.mrb[56].mxu1  ;;  %v24669_v18 = vpack.c.bf16 %v13474_v27, %v13473_v47  ;;  %v14864_v47 = vld [vmem:[#allocation3 + $0x1a] sm:$0xff]  ;;  %v14865_v16 = vld [vmem:[#allocation3 + $0x22] sm:$0xff] }
 0xd7f   : > { %v13310_v17 = vadd.f32 %v19525_v63, %v24505_v2  ;;  %v13301_v38 = vpop.f32.mrb[57].mxu1  ;;  %v24779_v27 = vpack.c.bf16 %v14865_v16, %v14864_v47  ;;  %v13421_v63 = vld [vmem:[#allocation3 + $0xd8] sm:$0xff]  ;;  %v14878_v47 = vld [vmem:[#allocation3 + $0xc2] sm:$0xff]  ;;  %v14879_v16 = vld [vmem:[#allocation3 + $0xca] sm:$0xff] }
 0xd80   : > { %v13302_v28 = vadd.f32 %v24505_v2, %v13301_v38  ;;  %v19526_v42 = vpop.f32.mrb[58].mxu1  ;;  %19552 = vmatmul.mubr.msk.bf16.gmra.mrb[80].mxu1 %vm7311_vm6, %v24669_v18  ;;  %v14866_v38 = vld [vmem:[#allocation3 + $0x32] sm:$0xff] }
 0xd81   : > { %v13365_v7 = vmul.f32 %v24507_v26, %v13310_v17  ;;  %v13313_v43 = vadd.f32 %v19526_v42, %v24505_v2  ;;  %v13304_v58 = vpop.f32.mrb[59].mxu1  ;;  %19555 = vmatprep.mubr.msk.bf16.mxu1 %vm7311_vm6, %v24666_v36  ;;  %v13422_v17 = vld [vmem:[#allocation3 + $0xe0] sm:$0xff] }
 0xd82   : > { %19680 = vmatmul.mubr.msk.bf16.vlgmr.msra.gmra.mrb[0].mxu0 %vm7311_vm6, %v24538_v44  ;;  %v13363_v33 = vmul.f32 %v24507_v26, %v13302_v28  ;;  %v13305_v59 = vadd.f32 %v24505_v2, %v13304_v58  ;;  %v13479_v35 = vld [vmem:[#allocation3 + $0x121] sm:$0xff]  ;;  %v24694_v44 = vld [vmem:[%s25358_s16 + $0x60] sm:$0xff]   ;;  %v13424_v28 = vld [vmem:[#allocation3 + $0xf8] sm:$0xff]  ;;  %v24787_v58 = vpack.c.bf16 %v13422_v17, %v13421_v63 }
 0xd83   : > { %19712 = vmatpush3.bf16.msra.mxu0 %v24568_v53  ;;  %19683 = vmatprep.mubr.msk.bf16.mxu0 %vm7311_vm6, %v24579_v3  ;;  %13397 = vst.msk [vmem:[#allocation3 + $0x151] sm:$0xff] %vm7311_vm6, %v13365_v7  ;;  %v13366_v57 = vmul.f32 %v24507_v26, %v13313_v43  ;;  %v13477_v8 = vld [vmem:[#allocation3 + $0x109] sm:$0xff]  ;;  %v14867_v42 = vld [vmem:[#allocation3 + $0x3a] sm:$0xff]  ;;  %v14869_v43 = vld [vmem:[#allocation3 + $0x52] sm:$0xff] }
 0xd84   : > { %19713 = vmatprep.subr.bf16.mxu0 %v21411_v50  ;;  %13395 = vst.msk [vmem:[#allocation3 + $0x139] sm:$0xff] %vm7311_vm6, %v13363_v33  ;;  %v13364_v61 = vmul.f32 %v24507_v26, %v13305_v59  ;;  %v13480_v53 = vld [vmem:[#allocation3 + $0x129] sm:$0xff]  ;;  %v24791_v59 = vpack.c.bf16 %v14867_v42, %v14866_v38  ;;  %v14880_v63 = vld [vmem:[#allocation3 + $0xda] sm:$0xff] }
 0xd85   : > { %13398 = vst.msk [vmem:[#allocation3 + $0x159] sm:$0xff] %vm7311_vm6, %v13366_v57  ;;  %v13478_v3 = vld [vmem:[#allocation3 + $0x111] sm:$0xff]  ;;  %v24699_v9 = vpack.c.bf16 %v13480_v53, %v13479_v35  ;;  %v14881_v17 = vld [vmem:[#allocation3 + $0xe2] sm:$0xff] }
 0xd86   : > { %13396 = vst.msk [vmem:[#allocation3 + $0x141] sm:$0xff] %vm7311_vm6, %v13364_v61  ;;  %v19529_v40 = vpop.f32.mrb[60].mxu1  ;;  %v24702_v55 = vpack.c.bf16 %v13478_v3, %v13477_v8  ;;  %v14868_v7 = vld [vmem:[#allocation3 + $0x4a] sm:$0xff]  ;;  %v21415_v35 = vld [vmem:[%s25358_s16 + $0x68] sm:$0xff]   ;;  %v14870_v8 = vld [vmem:[#allocation3 + $0x62] sm:$0xff]  ;;  %v24851_v42 = vpack.c.bf16 %v14881_v17, %v14880_v63 }
 0xd87   : > { %19714 = vmatpush3.bf16.msra.mxu0 %v21411_v50  ;;  %v13326_v12 = vadd.f32 %v19529_v40, %v24505_v2  ;;  %v13317_v20 = vpop.f32.mrb[61].mxu1  ;;  %v13423_v50 = vld [vmem:[#allocation3 + $0xf0] sm:$0xff]  ;;  %v24798_v57 = vpack.c.bf16 %v14869_v43, %v14868_v7  ;;  %v13425_v61 = vld [vmem:[#allocation3 + $0x108] sm:$0xff]  ;;  %v24810_v3 = vld [vmem:[%s25358_s16 + $0x70] sm:$0xff]  }
 0xd88   : > { %19747 = vmatprep.subr.bf16.mxu0 %v24694_v44  ;;  %v13318_v48 = vadd.f32 %v24505_v2, %v13317_v20  ;;  %v19530_v54 = vpop.f32.mrb[62].mxu1  ;;  %19556 = vmatmul.mubr.msk.bf16.gmra.mrb[84].mxu1 %vm7311_vm6, %v24702_v55  ;;  %v24789_v33 = vpack.c.bf16 %v13424_v28, %v13423_v50  ;;  %v13426_v53 = vld [vmem:[#allocation3 + $0x110] sm:$0xff]  ;;  %v13427_v40 = vld [vmem:[#allocation3 + $0x120] sm:$0xff]  ;;  %v24847_v28 = vpack.c.bf16 %v14879_v16, %v14878_v47 }
 0xd89   : > { %v13369_v11 = vmul.f32 %v24507_v26, %v13326_v12  ;;  %v13329_v14 = vadd.f32 %v19530_v54, %v24505_v2  ;;  %v13320_v37 = vpop.f32.mrb[63].mxu1  ;;  %19559 = vmatprep.mubr.msk.bf16.mxu1 %vm7311_vm6, %v24699_v9  ;;  %v13428_v12 = vld [vmem:[#allocation3 + $0x128] sm:$0xff]  ;;  %v14882_v7 = vld [vmem:[#allocation3 + $0xf2] sm:$0xff]  ;;  %v14883_v43 = vld [vmem:[#allocation3 + $0xfa] sm:$0xff] }
 0xd8a   : > { %19684 = vmatmul.mubr.msk.bf16.gmra.mrb[4].mxu0 %vm7311_vm6, %v24584_v46  ;;  %v13367_v56 = vmul.f32 %v24507_v26, %v13318_v48  ;;  %v13321_v21 = vadd.f32 %v24505_v2, %v13320_v37  ;;  %v13483_v15 = vld [vmem:[#allocation3 + $0x151] sm:$0xff]  ;;  %v14872_v48 = vld [vmem:[#allocation3 + $0x7a] sm:$0xff]  ;;  %v14873_v54 = vld [vmem:[#allocation3 + $0x82] sm:$0xff] }
 0xd8b   : > { %19687 = vmatprep.mubr.msk.bf16.mxu0 %vm7311_vm6, %v24609_v19  ;;  %13401 = vst.msk [vmem:[#allocation3 + $0x181] sm:$0xff] %vm7311_vm6, %v13369_v11  ;;  %v13370_v34 = vmul.f32 %v24507_v26, %v13329_v14  ;;  %v13481_v24 = vld [vmem:[#allocation3 + $0x139] sm:$0xff]  ;;  %v13404_v19 = vld [vmem:[#allocation3 + $0x8] sm:$0xff]  ;;  %v24812_v11 = vpack.c.bf16 %v13426_v53, %v13425_v61  ;;  %v24821_v37 = vpack.c.bf16 %v14873_v54, %v14872_v48  ;;  %v15482_v17 = vld [vmem:[#allocation3 + $0x91] sm:$0xff] }
 0xd8c   : > { %13399 = vst.msk [vmem:[#allocation3 + $0x169] sm:$0xff] %vm7311_vm6, %v13367_v56  ;;  %v13368_v46 = vmul.f32 %v24507_v26, %v13321_v21  ;;  %v13484_v39 = vld [vmem:[#allocation3 + $0x159] sm:$0xff]  ;;  %v14871_v20 = vld [vmem:[#allocation3 + $0x6a] sm:$0xff]  ;;  %v24858_v61 = vpack.c.bf16 %v14883_v43, %v14882_v7 }
 0xd8d   : > { %13402 = vst.msk [vmem:[#allocation3 + $0x189] sm:$0xff] %vm7311_vm6, %v13370_v34  ;;  %v13482_v6 = vld [vmem:[#allocation3 + $0x141] sm:$0xff]  ;;  %v24724_v49 = vpack.c.bf16 %v13484_v39, %v13483_v15  ;;  %v24816_v14 = vpack.c.bf16 %v14871_v20, %v14870_v8  ;;  %v13429_v56 = vld [vmem:[#allocation3 + $0x138] sm:$0xff]  ;;  %v13431_v34 = vld [vmem:[#allocation3 + $0x150] sm:$0xff] }
 0xd8e   : > { %13400 = vst.msk [vmem:[#allocation3 + $0x171] sm:$0xff] %vm7311_vm6, %v13368_v46  ;;  %v24727_v2 = vpack.c.bf16 %v13482_v6, %v13481_v24  ;;  %v13403_v26 = vld [vmem:[#allocation3] sm:$0xff]  ;;  %v14874_v15 = vld [vmem:[#allocation3 + $0x92] sm:$0xff]  ;;  %v14876_v39 = vld [vmem:[#allocation3 + $0xaa] sm:$0xff] }
 0xd8f   : > { %v13435_v22 = vpack.c.bf16 %v13404_v19, %v13403_v26  ;;  %v13430_v21 = vld [vmem:[#allocation3 + $0x140] sm:$0xff]  ;;  %v13432_v24 = vld [vmem:[#allocation3 + $0x158] sm:$0xff] }
 0xd90   : > { %19560 = vmatmul.mubr.msk.bf16.gmra.mrb[88].mxu1 %vm7311_vm6, %v24727_v2  ;;  %v14875_v46 = vld [vmem:[#allocation3 + $0x9a] sm:$0xff]  ;;  %v14877_v6 = vld [vmem:[#allocation3 + $0xb2] sm:$0xff]  ;;  %v24829_v26 = vpack.c.bf16 %v13430_v21, %v13429_v56  ;;  %v24831_v19 = vpack.c.bf16 %v13432_v24, %v13431_v34  ;;  %v14889_v48 = vld [vmem:[#allocation3 + $0x142] sm:$0xff] }
 0xd91   : > { %19563 = vmatprep.mubr.msk.bf16.mxu1 %vm7311_vm6, %v24724_v49  ;;  %v14885_v8 = vld [vmem:[#allocation3 + $0x112] sm:$0xff]  ;;  %v14888_v20 = vld [vmem:[#allocation3 + $0x13a] sm:$0xff] }
 0xd92   : > { %19688 = vmatmul.mubr.msk.bf16.gmra.mrb[8].mxu0 %vm7311_vm6, %v24614_v5  ;;  %v21414_v5 = vld [vmem:[%s25358_s16 + $0x28] sm:$0xff]   ;;  %v24877_v54 = vpack.c.bf16 %v14889_v48, %v14888_v20 }
 0xd93   : > { %19691 = vmatprep.mubr.msk.bf16.mxu0 %vm7311_vm6, %v24637_v52  ;;  %v13485_v45 = vld [vmem:[#allocation3 + $0x169] sm:$0xff]  ;;  %v14891_v56 = vld [vmem:[#allocation3 + $0x15a] sm:$0xff] }
 0xd94   : > { %v14894_v24 = vld [vmem:[#allocation3 + $0x182] sm:$0xff]  ;;  %v15483_v47 = vld [vmem:[#allocation3 + $0x99] sm:$0xff] }
 0xd95   : > { %v13486_v13 = vld [vmem:[#allocation3 + $0x171] sm:$0xff]  ;;  %v15480_v16 = vld [vmem:[#allocation3 + $0x79] sm:$0xff] }
 0xd96   : > { %v24737_v31 = vpack.c.bf16 %v13486_v13, %v13485_v45  ;;  %v24833_v45 = vpack.c.bf16 %v14875_v46, %v14874_v15  ;;  %v24837_v13 = vpack.c.bf16 %v14877_v6, %v14876_v39  ;;  %v14892_v21 = vld [vmem:[#allocation3 + $0x16a] sm:$0xff] }
 0xd97   : > { %v14895_v46 = vld [vmem:[#allocation3 + $0x18a] sm:$0xff] }
 0xd98   : > { %19564 = vmatmul.mubr.msk.bf16.gmra.mrb[92].mxu1 %vm7311_vm6, %v24737_v31  ;;  %v24897_v39 = vpack.c.bf16 %v14895_v46, %v14894_v24  ;;  %v21417_v6 = vld [vmem:[%s25358_s16 + $0x78] sm:$0xff]  }
 0xd99   : > { %19571 = vmatprep.mubr.msk.bf16.mxu1 %vm7311_vm6, %v13435_v22  ;;  %v13949_v22 = vld [vmem:[#allocation3 + $0x2] sm:$0xff] }
 0xd9a   : > { %19692 = vmatmul.mubr.msk.bf16.gmra.mrb[12].mxu0 %vm7311_vm6, %v24642_v0 }
 0xd9b   : > { %19695 = vmatprep.mubr.msk.bf16.mxu0 %vm7311_vm6, %v24669_v18 }
 0xda0   : > { %19572 = vmatmul.mubr.msk.bf16.vlgmr.msra.gmra.mrb[64].mxu1 %vm7311_vm6, %v24535_v25  ;;  %v14589_v25 = vld [vmem:[#allocation3 + $0x181] sm:$0xff] }
 0xda1   : > { %19575 = vmatprep.mubr.msk.bf16.mxu1 %vm7311_vm6, %v24540_v29  ;;  %19604 = vmatpush3.bf16.msra.mxu1 %v24573_v1  ;;  %v14590_v1 = vld [vmem:[#allocation3 + $0x189] sm:$0xff] }
 0xda2   : > { %19696 = vmatmul.mubr.msk.bf16.gmra.mrb[16].mxu0 %vm7311_vm6, %v24666_v36  ;;  %19605 = vmatprep.subr.bf16.mxu1 %v21414_v5  ;;  %v24775_v10 = vpack.c.bf16 %v14590_v1, %v14589_v25  ;;  %v13433_v25 = vld [vmem:[#allocation3 + $0x168] sm:$0xff]  ;;  %v13434_v1 = vld [vmem:[#allocation3 + $0x170] sm:$0xff] }
 0xda3   : > { %19699 = vmatprep.mubr.msk.bf16.mxu0 %vm7311_vm6, %v24702_v55  ;;  %v24845_v50 = vpack.c.bf16 %v13434_v1, %v13433_v25  ;;  %v15481_v1 = vld [vmem:[#allocation3 + $0x81] sm:$0xff] }
 0xda4   : > { %v15509_v63 = vpack.c.bf16 %v15481_v1, %v15480_v16 }
 0xda5   : > { %19606 = vmatpush3.bf16.msra.mxu1 %v21414_v5  ;;  %v13950_v5 = vld [vmem:[#allocation3 + $0xa] sm:$0xff] }
 0xda6   : > { %20947 = vmatprep.subr.bf16.mxu1 %v24475_v60  ;;  %v13981_v38 = vpack.c.bf16 %v13950_v5, %v13949_v22  ;;  %v15478_v22 = vld [vmem:[#allocation3 + $0x61] sm:$0xff]  ;;  %v21419_v5 = vld [vmem:[%s25358_s16 + $0x88] sm:$0xff]  }
 0xda8   : > { %19576 = vmatmul.mubr.msk.bf16.gmra.mrb[68].mxu1 %vm7311_vm6, %v24581_v32 }
 0xda9   : > { %19579 = vmatprep.mubr.msk.bf16.mxu1 %vm7311_vm6, %v24586_v30 }
 0xdaa   : > { %19700 = vmatmul.mubr.msk.bf16.gmra.mrb[20].mxu0 %vm7311_vm6, %v24699_v9 }
 0xdab   : > { %19703 = vmatprep.mubr.msk.bf16.mxu0 %vm7311_vm6, %v24727_v2 }
 0xdb0   : > { %19580 = vmatmul.mubr.msk.bf16.gmra.mrb[72].mxu1 %vm7311_vm6, %v24611_v51 }
 0xdb1   : > { %19583 = vmatprep.mubr.msk.bf16.mxu1 %vm7311_vm6, %v24616_v4 }
 0xdb2   : > { %19704 = vmatmul.mubr.msk.bf16.gmra.mrb[24].mxu0 %vm7311_vm6, %v24724_v49 }
 0xdb3   : > { %19707 = vmatprep.mubr.msk.bf16.mxu0 %vm7311_vm6, %v24737_v31 }
 0xdb8   : > { %19584 = vmatmul.mubr.msk.bf16.gmra.mrb[76].mxu1 %vm7311_vm6, %v24639_v62 }
 0xdb9   : > { %19587 = vmatprep.mubr.msk.bf16.mxu1 %vm7311_vm6, %v24644_v41 }
 0xdba   : > { %19708 = vmatmul.mubr.msk.bf16.gmra.mrb[28].mxu0 %vm7311_vm6, %v24775_v10 }
 0xdbb   : > { %19715 = vmatprep.mubr.msk.bf16.mxu0 %vm7311_vm6, %v24779_v27 }
 0xdc0   : > { %19588 = vmatmul.mubr.msk.bf16.gmra.mrb[80].mxu1 %vm7311_vm6, %v24787_v58 }
 0xdc1   : > { %19591 = vmatprep.mubr.msk.bf16.mxu1 %vm7311_vm6, %v24789_v33 }
 0xdc2   : > { %19716 = vmatmul.mubr.msk.bf16.vlgmr.msra.gmra.mrb[0].mxu0 %vm7311_vm6, %v24791_v59 }
 0xdc3   : > { %19748 = vmatpush3.bf16.msra.mxu0 %v24694_v44  ;;  %19719 = vmatprep.mubr.msk.bf16.mxu0 %vm7311_vm6, %v24798_v57  ;;  %v24814_v44 = vpack.c.bf16 %v13428_v12, %v13427_v40  ;;  %v14886_v40 = vld [vmem:[#allocation3 + $0x122] sm:$0xff]  ;;  %v14887_v12 = vld [vmem:[#allocation3 + $0x12a] sm:$0xff] }
 0xdc4   : > { %19749 = vmatprep.subr.bf16.mxu0 %v21415_v35 }
 0xdc7   : > { %19750 = vmatpush3.bf16.msra.mxu0 %v21415_v35  ;;  %v14884_v35 = vld [vmem:[#allocation3 + $0x10a] sm:$0xff] }
 0xdc8   : > { %19783 = vmatprep.subr.bf16.mxu0 %v24810_v3  ;;  %19592 = vmatmul.mubr.msk.bf16.gmra.mrb[84].mxu1 %vm7311_vm6, %v24812_v11  ;;  %v24862_v53 = vpack.c.bf16 %v14885_v8, %v14884_v35 }
 0xdc9   : > { %19595 = vmatprep.mubr.msk.bf16.mxu1 %vm7311_vm6, %v24814_v44 }
 0xdca   : > { %19720 = vmatmul.mubr.msk.bf16.gmra.mrb[4].mxu0 %vm7311_vm6, %v24816_v14 }
 0xdcb   : > { %19723 = vmatprep.mubr.msk.bf16.mxu0 %vm7311_vm6, %v24821_v37 }
 0xdd0   : > { %19596 = vmatmul.mubr.msk.bf16.gmra.mrb[88].mxu1 %vm7311_vm6, %v24829_v26 }
 0xdd1   : > { %19599 = vmatprep.mubr.msk.bf16.mxu1 %vm7311_vm6, %v24831_v19 }
 0xdd2   : > { %19724 = vmatmul.mubr.msk.bf16.gmra.mrb[8].mxu0 %vm7311_vm6, %v24833_v45 }
 0xdd3   : > { %19727 = vmatprep.mubr.msk.bf16.mxu0 %vm7311_vm6, %v24837_v13 }
 0xdd8   : > { %19600 = vmatmul.mubr.msk.bf16.gmra.mrb[92].mxu1 %vm7311_vm6, %v24845_v50 }
 0xdd9   : > { %19607 = vmatprep.mubr.msk.bf16.mxu1 %vm7311_vm6, %v13981_v38  ;;  %v15510_v38 = vpack.c.bf16 %v15483_v47, %v15482_v17 }
 0xdda   : > { %19728 = vmatmul.mubr.msk.bf16.gmra.mrb[12].mxu0 %vm7311_vm6, %v24847_v28 }
 0xddb   : > { %19731 = vmatprep.mubr.msk.bf16.mxu0 %vm7311_vm6, %v24851_v42 }
 0xde0   : > { %19608 = vmatmul.mubr.msk.bf16.vlgmr.msra.gmra.mrb[64].mxu1 %vm7311_vm6, %v24779_v27  ;;  %v24873_v27 = vpack.c.bf16 %v14887_v12, %v14886_v40 }
 0xde1   : > { %19611 = vmatprep.mubr.msk.bf16.mxu1 %vm7311_vm6, %v24791_v59  ;;  %20949 = vmatpush3.bf16.msra.mxu1 %v24475_v60  ;;  %v14890_v60 = vld [vmem:[#allocation3 + $0x152] sm:$0xff] }
 0xde2   : > { %19732 = vmatmul.mubr.msk.bf16.gmra.mrb[16].mxu0 %vm7311_vm6, %v24858_v61  ;;  %20948 = vmatprep.subr.bf16.mxu1 %v24485_v23  ;;  %v24885_v15 = vpack.c.bf16 %v14891_v56, %v14890_v60 }
 0xde3   : > { %19735 = vmatprep.mubr.msk.bf16.mxu0 %vm7311_vm6, %v24862_v53 }
 0xde5   : > { %20950 = vmatpush3.bf16.msra.mxu1 %v24485_v23  ;;  %v14893_v23 = vld [vmem:[#allocation3 + $0x172] sm:$0xff] }
 0xde6   : > { %v24889_v34 = vpack.c.bf16 %v14893_v23, %v14892_v21 }
 0xde8   : > { %19612 = vmatmul.mubr.msk.bf16.gmra.mrb[68].mxu1 %vm7311_vm6, %v24798_v57 }
 0xde9   : > { %19615 = vmatprep.mubr.msk.bf16.mxu1 %vm7311_vm6, %v24816_v14 }
 0xdea   : > { %19736 = vmatmul.mubr.msk.bf16.gmra.mrb[20].mxu0 %vm7311_vm6, %v24873_v27 }
 0xdeb   : > { %19739 = vmatprep.mubr.msk.bf16.mxu0 %vm7311_vm6, %v24877_v54 }
 0xdf0   : > { %19616 = vmatmul.mubr.msk.bf16.gmra.mrb[72].mxu1 %vm7311_vm6, %v24821_v37 }
 0xdf1   : > { %19619 = vmatprep.mubr.msk.bf16.mxu1 %vm7311_vm6, %v24833_v45 }
 0xdf2   : > { %19740 = vmatmul.mubr.msk.bf16.gmra.mrb[24].mxu0 %vm7311_vm6, %v24885_v15 }
 0xdf3   : > { %19743 = vmatprep.mubr.msk.bf16.mxu0 %vm7311_vm6, %v24889_v34 }
 0xdf8   : > { %19620 = vmatmul.mubr.msk.bf16.gmra.mrb[76].mxu1 %vm7311_vm6, %v24837_v13 }
 0xdf9   : > { %19623 = vmatprep.mubr.msk.bf16.mxu1 %vm7311_vm6, %v24847_v28 }
 0xdfa   : > { %19744 = vmatmul.mubr.msk.bf16.gmra.mrb[28].mxu0 %vm7311_vm6, %v24897_v39 }
 0xdfb   : > { %19751 = vmatprep.mubr.msk.bf16.mxu0 %vm7311_vm6, %v24540_v29  ;;  %v21418_v29 = vld [vmem:[%s25358_s16 + $0x80] sm:$0xff]  }
 0xe00   : > { %19624 = vmatmul.mubr.msk.bf16.gmra.mrb[80].mxu1 %vm7311_vm6, %v24851_v42 }
 0xe01   : > { %19627 = vmatprep.mubr.msk.bf16.mxu1 %vm7311_vm6, %v24858_v61 }
 0xe02   : > { %19752 = vmatmul.mubr.msk.bf16.vlgmr.msra.gmra.mrb[0].mxu0 %vm7311_vm6, %v24581_v32  ;;  %v15197_v32 = vld [vmem:[#allocation3 + $0x180] sm:$0xff] }
 0xe03   : > { %19784 = vmatpush3.bf16.msra.mxu0 %v24810_v3  ;;  %19755 = vmatprep.mubr.msk.bf16.mxu0 %vm7311_vm6, %v24586_v30  ;;  %v15198_v30 = vld [vmem:[#allocation3 + $0x188] sm:$0xff] }
 0xe04   : > { %19785 = vmatprep.subr.bf16.mxu0 %v21417_v6 }
 0xe07   : > { %19786 = vmatpush3.bf16.msra.mxu0 %v21417_v6 }
 0xe08   : > { %19819 = vmatprep.subr.bf16.mxu0 %v21418_v29  ;;  %19628 = vmatmul.mubr.msk.bf16.gmra.mrb[84].mxu1 %vm7311_vm6, %v24862_v53 }
 0xe09   : > { %19631 = vmatprep.mubr.msk.bf16.mxu1 %vm7311_vm6, %v24873_v27 }
 0xe0a   : > { %19756 = vmatmul.mubr.msk.bf16.gmra.mrb[4].mxu0 %vm7311_vm6, %v24611_v51  ;;  %v15215_v51 = vpack.c.bf16 %v15198_v30, %v15197_v32 }
 0xe0b   : > { %19759 = vmatprep.mubr.msk.bf16.mxu0 %vm7311_vm6, %v24616_v4  ;;  %v15199_v4 = vld [vmem:[#allocation3 + $0x198] sm:$0xff] }
 0xe10   : > { %19632 = vmatmul.mubr.msk.bf16.gmra.mrb[88].mxu1 %vm7311_vm6, %v24877_v54 }
 0xe11   : > { %19635 = vmatprep.mubr.msk.bf16.mxu1 %vm7311_vm6, %v24885_v15 }
 0xe12   : > { %19760 = vmatmul.mubr.msk.bf16.gmra.mrb[8].mxu0 %vm7311_vm6, %v24639_v62  ;;  %v15200_v62 = vld [vmem:[#allocation3 + $0x1a0] sm:$0xff] }
 0xe13   : > { %19763 = vmatprep.mubr.msk.bf16.mxu0 %vm7311_vm6, %v24644_v41  ;;  %v15216_v41 = vpack.c.bf16 %v15200_v62, %v15199_v4 }
 0xe18   : > { %19636 = vmatmul.mubr.msk.bf16.gmra.mrb[92].mxu1 %vm7311_vm6, %v24889_v34 }
 0xe19   : > { %19659 = vmatprep.mubr.msk.bf16.mxu1 %vm7311_vm6, %v24787_v58 }
 0xe1a   : > { %19764 = vmatmul.mubr.msk.bf16.gmra.mrb[12].mxu0 %vm7311_vm6, %v24787_v58  ;;  %v15475_v58 = vld [vmem:[#allocation3 + $0x39] sm:$0xff] }
 0xe1b   : > { %19767 = vmatprep.mubr.msk.bf16.mxu0 %vm7311_vm6, %v24789_v33 }
 0xe20   : > { %19660 = vmatmul.mubr.msk.bf16.vlgmr.msra.gmra.mrb[80].mxu1 %vm7311_vm6, %v24789_v33  ;;  %v15474_v33 = vld [vmem:[#allocation3 + $0x31] sm:$0xff] }
 0xe21   : > { %19663 = vmatprep.mubr.msk.bf16.mxu1 %vm7311_vm6, %v24812_v11  ;;  %v15506_v3 = vpack.c.bf16 %v15475_v58, %v15474_v33 }
 0xe22   : > { %19768 = vmatmul.mubr.msk.bf16.gmra.mrb[16].mxu0 %vm7311_vm6, %v24812_v11  ;;  %v15477_v11 = vld [vmem:[#allocation3 + $0x51] sm:$0xff] }
 0xe23   : > { %19771 = vmatprep.mubr.msk.bf16.mxu0 %vm7311_vm6, %v24814_v44 }
 0xe28   : > { %19664 = vmatmul.mubr.msk.bf16.gmra.mrb[84].mxu1 %vm7311_vm6, %v24814_v44  ;;  %v15479_v44 = vld [vmem:[#allocation3 + $0x69] sm:$0xff] }
 0xe29   : > { %19667 = vmatprep.mubr.msk.bf16.mxu1 %vm7311_vm6, %v24829_v26  ;;  %v15508_v25 = vpack.c.bf16 %v15479_v44, %v15478_v22 }
 0xe2a   : > { %19772 = vmatmul.mubr.msk.bf16.gmra.mrb[20].mxu0 %vm7311_vm6, %v24829_v26  ;;  %v15476_v26 = vld [vmem:[#allocation3 + $0x49] sm:$0xff] }
 0xe2b   : > { %19775 = vmatprep.mubr.msk.bf16.mxu0 %vm7311_vm6, %v24831_v19 }
 0xe30   : > { %19668 = vmatmul.mubr.msk.bf16.gmra.mrb[88].mxu1 %vm7311_vm6, %v24831_v19  ;;  %v15507_v19 = vpack.c.bf16 %v15477_v11, %v15476_v26 }
 0xe31   : > { %19671 = vmatprep.mubr.msk.bf16.mxu1 %vm7311_vm6, %v24845_v50 }
 0xe32   : > { %19776 = vmatmul.mubr.msk.bf16.gmra.mrb[24].mxu0 %vm7311_vm6, %v24845_v50 }
 0xe33   : > { %19779 = vmatprep.mubr.msk.bf16.mxu0 %vm7311_vm6, %v15215_v51 }
 0xe38   : > { %19672 = vmatmul.mubr.msk.bf16.gmra.mrb[92].mxu1 %vm7311_vm6, %v15215_v51 }
 0xe3a   : > { %19780 = vmatmul.mubr.msk.bf16.gmra.mrb[28].mxu0 %vm7311_vm6, %v15216_v41 }
 0xe3b   : > { %19787 = vmatprep.mubr.msk.bf16.mxu0 %vm7311_vm6, %v15506_v3 }
 0xe42   : > { %19788 = vmatmul.mubr.msk.bf16.vlgmr.msra.gmra.mrb[0].mxu0 %vm7311_vm6, %v15507_v19 }
 0xe43   : > { %19820 = vmatpush3.bf16.msra.mxu0 %v21418_v29  ;;  %19791 = vmatprep.mubr.msk.bf16.mxu0 %vm7311_vm6, %v15508_v25 }
 0xe44   : > { %19821 = vmatprep.subr.bf16.mxu0 %v21419_v5 }
 0xe47   : > { %19822 = vmatpush3.bf16.msra.mxu0 %v21419_v5 }
 0xe4a   : > { %19792 = vmatmul.mubr.msk.bf16.gmra.mrb[4].mxu0 %vm7311_vm6, %v15509_v63 }
 0xe4b   : > { %19795 = vmatprep.mubr.msk.bf16.mxu0 %vm7311_vm6, %v15510_v38 }
 0xe52   : > { %19796 = vmatmul.mubr.msk.bf16.gmra.mrb[8].mxu0 %vm7311_vm6, %v24637_v52  ;;  %v15504_v52 = vld [vmem:[#allocation3 + $0x199] sm:$0xff] }
 0xe53   : > { %19799 = vmatprep.mubr.msk.bf16.mxu0 %vm7311_vm6, %v24642_v0  ;;  %v15505_v0 = vld [vmem:[#allocation3 + $0x1a1] sm:$0xff] }
 0xe5a   : > { %19800 = vmatmul.mubr.msk.bf16.gmra.mrb[12].mxu0 %vm7311_vm6, %v24669_v18  ;;  %v15809_v18 = vld [vmem:[#allocation3 + $0x19a] sm:$0xff] }
 0xe5b   : > { %19803 = vmatprep.mubr.msk.bf16.mxu0 %vm7311_vm6, %v24666_v36  ;;  %v15521_v36 = vpack.c.bf16 %v15505_v0, %v15504_v52 }
 0xe62   : > { %19804 = vmatmul.mubr.msk.bf16.gmra.mrb[16].mxu0 %vm7311_vm6, %v24702_v55 }
 0xe63   : > { %19807 = vmatprep.mubr.msk.bf16.mxu0 %vm7311_vm6, %v24699_v9  ;;  %v15810_v9 = vld [vmem:[#allocation3 + $0x1a2] sm:$0xff] }
 0xe6a   : > { %19808 = vmatmul.mubr.msk.bf16.gmra.mrb[20].mxu0 %vm7311_vm6, %v24727_v2 }
 0xe6b   : > { %19811 = vmatprep.mubr.msk.bf16.mxu0 %vm7311_vm6, %v24724_v49 }
 0xe72   : > { %19812 = vmatmul.mubr.msk.bf16.gmra.mrb[24].mxu0 %vm7311_vm6, %v24737_v31  ;;  %v15826_v31 = vpack.c.bf16 %v15810_v9, %v15809_v18 }
 0xe73   : > { %19815 = vmatprep.mubr.msk.bf16.mxu0 %vm7311_vm6, %v24775_v10 }
 0xe7a   : > { %19816 = vmatmul.mubr.msk.bf16.gmra.mrb[28].mxu0 %vm7311_vm6, %v15521_v36 }
 0xe7b   : > { %19823 = vmatprep.mubr.msk.bf16.mxu0 %vm7311_vm6, %v24791_v59 }
 0xe82   : > { %19824 = vmatmul.mubr.msk.bf16.vlgmr.msra.gmra.mrb[0].mxu0 %vm7311_vm6, %v24798_v57 }
 0xe83   : > { %19827 = vmatprep.mubr.msk.bf16.mxu0 %vm7311_vm6, %v24816_v14 }
 0xe8a   : > { %19828 = vmatmul.mubr.msk.bf16.gmra.mrb[4].mxu0 %vm7311_vm6, %v24821_v37 }
 0xe8b   : > { %19831 = vmatprep.mubr.msk.bf16.mxu0 %vm7311_vm6, %v24833_v45 }
 0xe92   : > { %19832 = vmatmul.mubr.msk.bf16.gmra.mrb[8].mxu0 %vm7311_vm6, %v24837_v13 }
 0xe93   : > { %19835 = vmatprep.mubr.msk.bf16.mxu0 %vm7311_vm6, %v24847_v28 }
 0xe9a   : > { %19836 = vmatmul.mubr.msk.bf16.gmra.mrb[12].mxu0 %vm7311_vm6, %v24851_v42 }
 0xe9b   : > { %19839 = vmatprep.mubr.msk.bf16.mxu0 %vm7311_vm6, %v24858_v61 }
 0xea2   : > { %19840 = vmatmul.mubr.msk.bf16.gmra.mrb[16].mxu0 %vm7311_vm6, %v24862_v53 }
 0xea3   : > { %19843 = vmatprep.mubr.msk.bf16.mxu0 %vm7311_vm6, %v24873_v27 }
 0xeaa   : > { %19844 = vmatmul.mubr.msk.bf16.gmra.mrb[20].mxu0 %vm7311_vm6, %v24877_v54 }
 0xeab   : > { %19847 = vmatprep.mubr.msk.bf16.mxu0 %vm7311_vm6, %v24885_v15 }
 0xeb2   : > { %19848 = vmatmul.mubr.msk.bf16.gmra.mrb[24].mxu0 %vm7311_vm6, %v24889_v34 }
 0xeb3   : > { %19851 = vmatprep.mubr.msk.bf16.mxu0 %vm7311_vm6, %v24897_v39  ;;  %v19609_v55 = vpop.f32.mrb[64].mxu1  ;;  %v25076_v39 = vld [vmem:[%s25360_s0] ss:$0 sm:$0xff] }
 0xeb4   : > { %v14095_v49 = vpop.f32.mrb[65].mxu1 }
 0xeb5   : > { %v19610_v2 = vpop.f32.mrb[66].mxu1 }
 0xeb6   : > { %v14098_v10 = vpop.f32.mrb[67].mxu1 }
 0xeba   : > { %19852 = vmatmul.mubr.msk.bf16.gmra.mrb[28].mxu0 %vm7311_vm6, %v15826_v31 }
 0xebb   : > { %v19613_v59 = vpop.f32.mrb[68].mxu1 }
 0xebc   : > { %v14111_v57 = vpop.f32.mrb[69].mxu1 }
 0xebd   : > { %v19614_v14 = vpop.f32.mrb[70].mxu1 }
 0xebe   : > { %v14114_v37 = vpop.f32.mrb[71].mxu1 }
 0xec3   : > { %v19617_v45 = vpop.f32.mrb[72].mxu1 }
 0xec4   : > { %v14127_v13 = vpop.f32.mrb[73].mxu1 }
 0xec5   : > { %v19618_v50 = vpop.f32.mrb[74].mxu1 }
 0xec6   : > { %v25031_v28 = vpop.f32.mrb[75].mxu1 }
 0xecb   : > { %v25033_v42 = vpop.f32.mrb[76].mxu1 }
 0xecc   : > { %v25035_v7 = vpop.f32.mrb[77].mxu1 }
 0xecd   : > { %v25037_v43 = vpop.f32.mrb[78].mxu1 }
 0xece   : > { %v25039_v35 = vpop.f32.mrb[79].mxu1 }
 0xef3   : > { %v25041_v8 = vpop.f32.mrb[80].mxu1 }
 0xef4   : > { %v25043_v61 = vpop.f32.mrb[81].mxu1 }
 0xef5   : > { %v25045_v53 = vpop.f32.mrb[82].mxu1 }
 0xef6   : > { %v25047_v40 = vpop.f32.mrb[83].mxu1 }
 0xefb   : > { %v25049_v12 = vpop.f32.mrb[84].mxu1 }
 0xefc   : > { %v25051_v20 = vpop.f32.mrb[85].mxu1 }
 0xefd   : > { %v25053_v48 = vpop.f32.mrb[86].mxu1 }
 0xefe   : > { %v25055_v27 = vpop.f32.mrb[87].mxu1 }
 0xf03   : > { %v25057_v54 = vpop.f32.mrb[88].mxu1 }
 0xf04   : > { %v25059_v60 = vpop.f32.mrb[89].mxu1 }
 0xf05   : > { %v25061_v56 = vpop.f32.mrb[90].mxu1 }
 0xf06   : > { %v25063_v21 = vpop.f32.mrb[91].mxu1 }
 0xf0b   : > { %v25065_v23 = vpop.f32.mrb[92].mxu1 }
 0xf0c   : > { %v25067_v15 = vpop.f32.mrb[93].mxu1 }
 0xf0d   : > { %v25069_v34 = vpop.f32.mrb[94].mxu1 }
 0xf0e   : > { %v25071_v24 = vpop.f32.mrb[95].mxu1 }
 0xf55   : > { %v19825_v46 = vpop.f32.mrb[0].mxu0 }
 0xf56   : > { %v20951_v6 = vadd.f32 %v19825_v46, %v19609_v55  ;;  %v15925_v29 = vpop.f32.mrb[1].mxu0 }
 0xf57   : > { %v20952_v32 = vadd.f32 %v15925_v29, %v14095_v49  ;;  %v19826_v30 = vpop.f32.mrb[2].mxu0 }
 0xf58   : > { %v16093_v51 = vadd.f32 %v20951_v6, %v25076_v39  ;;  %v20953_v4 = vadd.f32 %v19826_v30, %v19610_v2  ;;  %v15928_v62 = vpop.f32.mrb[3].mxu0 }
 0xf59   : > { %v16091_v41 = vadd.f32 %v20952_v32, %v25076_v39  ;;  %v20954_v58 = vadd.f32 %v15928_v62, %v14098_v10 }
 0xf5a   : > { %16125 = vst.msk [vmem:[%s21739_s19 + $0x10] sm:$0xff] %vm7311_vm6, %v16093_v51  ;;  %v16094_v33 = vadd.f32 %v20953_v4, %v25076_v39 }
 0xf5b   : > { %16123 = vst.msk [vmem:[%s21739_s19] sm:$0xff] %vm7311_vm6, %v16091_v41  ;;  %v16092_v3 = vadd.f32 %v20954_v58, %v25076_v39 }
 0xf5c   : > { %16126 = vst.msk [vmem:[%s21739_s19 + $0x18] sm:$0xff] %vm7311_vm6, %v16094_v33 }
 0xf5d   : > { %16124 = vst.msk [vmem:[%s21739_s19 + $0x8] sm:$0xff] %vm7311_vm6, %v16092_v3  ;;  %v19829_v11 = vpop.f32.mrb[4].mxu0 }
 0xf5e   : > { %v20955_v44 = vadd.f32 %v19829_v11, %v19613_v59  ;;  %v15941_v26 = vpop.f32.mrb[5].mxu0 }
 0xf5f   : > { %v20956_v19 = vadd.f32 %v15941_v26, %v14111_v57  ;;  %v19830_v22 = vpop.f32.mrb[6].mxu0 }
 0xf60   : > { %v16097_v5 = vadd.f32 %v20955_v44, %v25076_v39  ;;  %v20957_v25 = vadd.f32 %v19830_v22, %v19614_v14  ;;  %v15944_v1 = vpop.f32.mrb[7].mxu0 }
 0xf61   : > { %v16095_v47 = vadd.f32 %v20956_v19, %v25076_v39  ;;  %v20958_v16 = vadd.f32 %v15944_v1, %v14114_v37 }
 0xf62   : > { %16129 = vst.msk [vmem:[%s21739_s19 + $0x30] sm:$0xff] %vm7311_vm6, %v16097_v5  ;;  %v16098_v63 = vadd.f32 %v20957_v25, %v25076_v39 }
 0xf63   : > { %16127 = vst.msk [vmem:[%s21739_s19 + $0x20] sm:$0xff] %vm7311_vm6, %v16095_v47  ;;  %v16096_v17 = vadd.f32 %v20958_v16, %v25076_v39 }
 0xf64   : > { %16130 = vst.msk [vmem:[%s21739_s19 + $0x38] sm:$0xff] %vm7311_vm6, %v16098_v63 }
 0xf65   : > { %16128 = vst.msk [vmem:[%s21739_s19 + $0x28] sm:$0xff] %vm7311_vm6, %v16096_v17  ;;  %v19833_v38 = vpop.f32.mrb[8].mxu0 }
 0xf66   : > { %v20959_v52 = vadd.f32 %v19833_v38, %v19617_v45  ;;  %v15957_v0 = vpop.f32.mrb[9].mxu0 }
 0xf67   : > { %v20960_v36 = vadd.f32 %v15957_v0, %v14127_v13  ;;  %v19834_v18 = vpop.f32.mrb[10].mxu0 }
 0xf68   : > { %v16101_v9 = vadd.f32 %v20959_v52, %v25076_v39  ;;  %v20961_v55 = vadd.f32 %v19834_v18, %v19618_v50  ;;  %v15960_v49 = vpop.f32.mrb[11].mxu0 }
 0xf69   : > { %v16099_v2 = vadd.f32 %v20960_v36, %v25076_v39  ;;  %v20962_v31 = vadd.f32 %v15960_v49, %v25031_v28 }
 0xf6a   : > { %16133 = vst.msk [vmem:[%s21739_s19 + $0x50] sm:$0xff] %vm7311_vm6, %v16101_v9  ;;  %v16102_v10 = vadd.f32 %v20961_v55, %v25076_v39 }
 0xf6b   : > { %16131 = vst.msk [vmem:[%s21739_s19 + $0x40] sm:$0xff] %vm7311_vm6, %v16099_v2  ;;  %v16100_v59 = vadd.f32 %v20962_v31, %v25076_v39 }
 0xf6c   : > { %16134 = vst.msk [vmem:[%s21739_s19 + $0x58] sm:$0xff] %vm7311_vm6, %v16102_v10 }
 0xf6d   : > { %16132 = vst.msk [vmem:[%s21739_s19 + $0x48] sm:$0xff] %vm7311_vm6, %v16100_v59  ;;  %v19837_v57 = vpop.f32.mrb[12].mxu0 }
 0xf6e   : > { %v20963_v14 = vadd.f32 %v19837_v57, %v25033_v42  ;;  %v15973_v37 = vpop.f32.mrb[13].mxu0 }
 0xf6f   : > { %v20964_v45 = vadd.f32 %v15973_v37, %v25035_v7  ;;  %v19838_v13 = vpop.f32.mrb[14].mxu0 }
 0xf70   : > { %v16105_v50 = vadd.f32 %v20963_v14, %v25076_v39  ;;  %v20965_v28 = vadd.f32 %v19838_v13, %v25037_v43  ;;  %v15976_v46 = vpop.f32.mrb[15].mxu0 }
 0xf71   : > { %v16103_v6 = vadd.f32 %v20964_v45, %v25076_v39  ;;  %v20966_v29 = vadd.f32 %v15976_v46, %v25039_v35 }
 0xf72   : > { %16137 = vst.msk [vmem:[%s21739_s19 + $0x70] sm:$0xff] %vm7311_vm6, %v16105_v50  ;;  %v16106_v32 = vadd.f32 %v20965_v28, %v25076_v39 }
 0xf73   : > { %16135 = vst.msk [vmem:[%s21739_s19 + $0x60] sm:$0xff] %vm7311_vm6, %v16103_v6  ;;  %v16104_v42 = vadd.f32 %v20966_v29, %v25076_v39 }
 0xf74   : > { %16138 = vst.msk [vmem:[%s21739_s19 + $0x78] sm:$0xff] %vm7311_vm6, %v16106_v32 }
 0xf75   : > { %16136 = vst.msk [vmem:[%s21739_s19 + $0x68] sm:$0xff] %vm7311_vm6, %v16104_v42  ;;  %v19841_v7 = vpop.f32.mrb[16].mxu0 }
 0xf76   : > { %v20967_v43 = vadd.f32 %v19841_v7, %v25041_v8  ;;  %v15989_v35 = vpop.f32.mrb[17].mxu0 }
 0xf77   : > { %v20968_v30 = vadd.f32 %v15989_v35, %v25043_v61  ;;  %v19842_v51 = vpop.f32.mrb[18].mxu0 }
 0xf78   : > { %v16109_v4 = vadd.f32 %v20967_v43, %v25076_v39  ;;  %v20969_v62 = vadd.f32 %v19842_v51, %v25045_v53  ;;  %v15992_v41 = vpop.f32.mrb[19].mxu0 }
 0xf79   : > { %v16107_v58 = vadd.f32 %v20968_v30, %v25076_v39  ;;  %v20970_v33 = vadd.f32 %v15992_v41, %v25047_v40 }
 0xf7a   : > { %16141 = vst.msk [vmem:[%s21739_s19 + $0x90] sm:$0xff] %vm7311_vm6, %v16109_v4  ;;  %v16110_v3 = vadd.f32 %v20969_v62, %v25076_v39 }
 0xf7b   : > { %16139 = vst.msk [vmem:[%s21739_s19 + $0x80] sm:$0xff] %vm7311_vm6, %v16107_v58  ;;  %v16108_v8 = vadd.f32 %v20970_v33, %v25076_v39 }
 0xf7c   : > { %16142 = vst.msk [vmem:[%s21739_s19 + $0x98] sm:$0xff] %vm7311_vm6, %v16110_v3 }
 0xf7d   : > { %16140 = vst.msk [vmem:[%s21739_s19 + $0x88] sm:$0xff] %vm7311_vm6, %v16108_v8  ;;  %v19845_v61 = vpop.f32.mrb[20].mxu0 }
 0xf7e   : > { %v20971_v53 = vadd.f32 %v19845_v61, %v25049_v12  ;;  %v16005_v40 = vpop.f32.mrb[21].mxu0 }
 0xf7f   : > { %v20972_v11 = vadd.f32 %v16005_v40, %v25051_v20  ;;  %v19846_v44 = vpop.f32.mrb[22].mxu0 }
 0xf80   : > { %v16113_v26 = vadd.f32 %v20971_v53, %v25076_v39  ;;  %v20973_v19 = vadd.f32 %v19846_v44, %v25053_v48  ;;  %v16008_v22 = vpop.f32.mrb[23].mxu0 }
 0xf81   : > { %v16111_v5 = vadd.f32 %v20972_v11, %v25076_v39  ;;  %v20974_v25 = vadd.f32 %v16008_v22, %v25055_v27 }
 0xf82   : > { %16145 = vst.msk [vmem:[%s21739_s19 + $0xb0] sm:$0xff] %vm7311_vm6, %v16113_v26  ;;  %v16114_v1 = vadd.f32 %v20973_v19, %v25076_v39 }
 0xf83   : > { %16143 = vst.msk [vmem:[%s21739_s19 + $0xa0] sm:$0xff] %vm7311_vm6, %v16111_v5  ;;  %v16112_v12 = vadd.f32 %v20974_v25, %v25076_v39 }
 0xf84   : > { %16146 = vst.msk [vmem:[%s21739_s19 + $0xb8] sm:$0xff] %vm7311_vm6, %v16114_v1 }
 0xf85   : > { %16144 = vst.msk [vmem:[%s21739_s19 + $0xa8] sm:$0xff] %vm7311_vm6, %v16112_v12  ;;  %v19849_v20 = vpop.f32.mrb[24].mxu0 }
 0xf86   : > { %v20975_v48 = vadd.f32 %v19849_v20, %v25057_v54  ;;  %v16021_v27 = vpop.f32.mrb[25].mxu0 }
 0xf87   : > { %v20976_v47 = vadd.f32 %v16021_v27, %v25059_v60  ;;  %v19850_v16 = vpop.f32.mrb[26].mxu0 }
 0xf88   : > { %v16117_v63 = vadd.f32 %v20975_v48, %v25076_v39  ;;  %v20977_v17 = vadd.f32 %v19850_v16, %v25061_v56  ;;  %v16024_v38 = vpop.f32.mrb[27].mxu0 }
 0xf89   : > { %v16115_v52 = vadd.f32 %v20976_v47, %v25076_v39  ;;  %v20978_v0 = vadd.f32 %v16024_v38, %v25063_v21 }
 0xf8a   : > { %16149 = vst.msk [vmem:[%s21739_s19 + $0xd0] sm:$0xff] %vm7311_vm6, %v16117_v63  ;;  %v16118_v36 = vadd.f32 %v20977_v17, %v25076_v39 }
 0xf8b   : > { %16147 = vst.msk [vmem:[%s21739_s19 + $0xc0] sm:$0xff] %vm7311_vm6, %v16115_v52  ;;  %v16116_v54 = vadd.f32 %v20978_v0, %v25076_v39 }
 0xf8c   : > { %16150 = vst.msk [vmem:[%s21739_s19 + $0xd8] sm:$0xff] %vm7311_vm6, %v16118_v36 }
 0xf8d   : > { %16148 = vst.msk [vmem:[%s21739_s19 + $0xc8] sm:$0xff] %vm7311_vm6, %v16116_v54  ;;  %v19853_v60 = vpop.f32.mrb[28].mxu0 }
 0xf8e   : > { %v20979_v56 = vadd.f32 %v19853_v60, %v25065_v23  ;;  %v16037_v21 = vpop.f32.mrb[29].mxu0 }
 0xf8f   : > { %v20980_v18 = vadd.f32 %v16037_v21, %v25067_v15  ;;  %v19854_v9 = vpop.f32.mrb[30].mxu0 }
 0xf90   : > { %v16121_v55 = vadd.f32 %v20979_v56, %v25076_v39  ;;  %v20981_v49 = vadd.f32 %v19854_v9, %v25069_v34  ;;  %v16040_v2 = vpop.f32.mrb[31].mxu0 }
 0xf91   : > { %v16119_v31 = vadd.f32 %v20980_v18, %v25076_v39  ;;  %v20982_v10 = vadd.f32 %v16040_v2, %v25071_v24 }
 0xf92   : > { %16153 = vst.msk [vmem:[%s21739_s19 + $0xf0] sm:$0xff] %vm7311_vm6, %v16121_v55  ;;  %v16122_v59 = vadd.f32 %v20981_v49, %v25076_v39 }
 0xf93   : > { %16151 = vst.msk [vmem:[%s21739_s19 + $0xe0] sm:$0xff] %vm7311_vm6, %v16119_v31  ;;  %v16120_v23 = vadd.f32 %v20982_v10, %v25076_v39 }
 0xf94   : > { %16154 = vst.msk [vmem:[%s21739_s19 + $0xf8] sm:$0xff] %vm7311_vm6, %v16122_v59 }
 0xf95   : > { %16152 = vst.msk [vmem:[%s21739_s19 + $0xe8] sm:$0xff] %vm7311_vm6, %v16120_v23 }
 0xf96 PF: > { %s25361_s3 = sld [smem:[#allocation12_spill]]  ;;  %s25364_s18 = sld [smem:[#allocation39_spill]] }
 0xf97   : > { %s25362_s27 = sld [smem:[#allocation10_spill]]  ;;  %s16169_s17 = sshll.u32 %s21739_s19, 4  ;;  %s25202_s17 = int_to_ptr.vmem [resolvable:$true] %s16169_s17 }
 0xf98   : > { %s21420_s23 = scalar_lea.vmem %s25202_s17, 4096  ;;  %s21519_s2 = smov [#allocation6]  }
 0xf99   : > { %p21421_p2 = scmp.ne.s32.totalorder %s25202_s17, %s21420_s23  ;;  %s21424_s1 = sshll.u32 %s21519_s2, 4  ;;  %s21425_s1 = int_to_ptr.vmem [resolvable:$false] %s21424_s1 }
 0xf9a   : > { %s21426_s22 = scalar_lea.vmem %s21425_s1, 8192  ;;  %p21427_p6 = scmp.lt.s32.totalorder %s25202_s17, %s21425_s1 }
 0xf9b   : > { %p21422_p4 = pnand %p21421_p2, %p21676_p3  ;;  %p21428_p7 = scmp.lt.s32.totalorder %s21426_s22, %s21420_s23 }
 0xf9c   : > { %s17204_s24 = sshll.u32 %s25361_s3, 12 }
 0xf9d   : > { %s25199_s14 = scalar_lea.hbm %s25364_s18, %s17204_s24  ;;  %s25365_s21 = sand.u32 1, %s25362_s27  }
 0xf9e   : > { %s25206_s25 = scalar_lea.sflag [#allocation7], %s25365_s21  ;;  %p21423_p5 = pneg %p21422_p4 }
 0xf9f   : > { %p21429_p8 = por %p21428_p7, %p21427_p6 }
 0xfa1   : > { %p21430_p10 = pnand %p21429_p8, %p21423_p5 }
 0xfa3   : > { %21433 = shalt.err (!%p21430_p10)
}
 0xfa4   : > { %s21434_s19 = scalar_lea.hbm %s25199_s14, 4096  ;;  %s21438_s27 = scalar_lea.hbm %s25364_s18, 8192 }
 0xfa5   : > { %p21435_p11 = scmp.ne.s32.totalorder %s25199_s14, %s21434_s19  ;;  %p21439_p0 = scmp.lt.u32.totalorder %s25199_s14, %s25364_s18 }
 0xfa6   : > { %p21440_p1 = scmp.lt.u32.totalorder %s21438_s27, %s21434_s19  ;;  %p21442_p4 = scmp.lt.u32.totalorder %s21434_s19, %s25199_s14 }
 0xfa7   : > { %p21436_p12 = pnand %p21435_p11, %p21676_p3 }
 0xfa8   : > { %p21441_p2 = por %p21440_p1, %p21439_p0 }
 0xfa9   : > { %p21437_p13 = pneg %p21436_p12 }
 0xfaa   : > { %p21443_p5 = por %p21442_p4, %p21441_p2 }
 0xfac   : > { %p21444_p6 = pnand %p21443_p5, %p21437_p13 }
 0xfae   : > { %21447 = shalt.err (!%p21444_p6)
}
 0xfaf   : > { %s21520_s26 = smov 128   ;;  %s21521_s21 = smov 8  }
 0xfb0   : > { %21208 = dma.vmem_to_hbm [thread:$0]  (%p21676_p3), %s25202_s17, 4096, %s25199_s14, %s25206_s25, %s21520_s26, %s21520_s26, %s21521_s21  }
 0xfb1 PF: > { %s25366_s23 = sld [smem:[#allocation15_spill]]  ;;  %s25367_s2 = sld [smem:[#allocation9_spill]] }
 0xfb7   : > { %p21214_p7 = scmp.ge.s32.totalorder %s25366_s23, 2  ;;  %s16184_s22 = sand.u32 1, %s25367_s2  }
 0xfb8   : > { %s16185_s19 = scalar_lea.sflag [#allocation7], %s16184_s22 }
 0xfb9   : > { %p21211_p8 = pnand %p21214_p7, %p21686_p9 }
 0xfbb   : > { %21481 = dma.done.wait (!%p21211_p8), %s16185_s19, 4096  }
 0xfbc   : > { %21483 = vsyncadd (!%p21211_p8), %s16185_s19, 4294963200  ;;  %s33_s26 = sadd.s32 1, %s25366_s23   ;;  %s25369_s1 = sld [smem:[#allocation10_spill]] }
 0xfbd   : > { %p30_p10 = scmp.ge.s32.totalorder %s33_s26, 26   ;;  %s25370_s22 = sld [smem:[#allocation11_spill]] }
 0xfbe   : > { %s25371_s23 = sld [smem:[#allocation20_spill]]  ;;  %s25372_s24 = sld [smem:[#allocation13_spill]] }
 0xfbf   : > { %s25373_s2 = sld [smem:[#allocation14_spill]]  ;;  %s25374_s25 = sld [smem:[#allocation16_spill]] }
 0xfc0   : > { %s25375_s3 = sld [smem:[#allocation18_spill]]  ;;  %32 = sbr.rel (!%p30_p10) target bundleno = 18 (0x12), region = 169 }
 0xfc7   :  { %16190 = vsyncpa [#allocation7], 1 }
 0xfc8   :  { %16192 = vsyncpa [#allocation7 + $0x1], 1 }

</bundles_post_ra>
